<compile_context>
chip_gen: v5e
topology: v5e:2x2
jax: 0.10.0
libtpu: 0.0.40
codegen_flags: <defaults>
</compile_context>

<pallas_src>
import jax
import jax.numpy as jnp
from jax.experimental import pallas as pl
from jax.experimental.pallas import tpu as pltpu

_LN_EPS = 1e-5  # nn.LayerNorm default


def _conformer_block_kernel(x_ref, o_ref):
    # Block is (Bt, feat): rows are independent samples, feat is lane-dense.
    x = x_ref[...].astype(jnp.float32)

    # Identity submodules + residual cascade:
    #   x = ffn1(x) + x   -> 2x
    #   x = x + mhsa(x)   -> 4x
    #   x = x + conv(x)   -> 8x
    #   x = x + ffn2(x)   -> 16x
    y = x * 16.0

    # Per-sample LayerNorm over the feature axis only (never the batch axis).
    mean = jnp.mean(y, axis=-1, keepdims=True)
    centered = y - mean
    var = jnp.mean(centered * centered, axis=-1, keepdims=True)
    inv = jax.lax.rsqrt(var + _LN_EPS)
    o_ref[...] = (centered * inv).astype(o_ref.dtype)


def _pick_batch_tile(B, feat, itemsize):
    """Choose the per-step batch tile Bt (multiple of 8, ~2 MiB blocks)."""
    bytes_per_row = max(feat * itemsize, 1)
    target_block_bytes = 2 * 1024 * 1024  # v6e roofline plateau (~85% HBM BW)
    bt = target_block_bytes // bytes_per_row
    bt = max(8, (bt // 8) * 8)       # sublane alignment
    bt = min(bt, 2048)
    if B >= 16:
        # Keep at least 2 grid steps so both v7x TensorCores get work.
        half = ((B + 1) // 2 + 7) // 8 * 8
        bt = min(bt, half)
    return bt


@jax.jit
def conformer_block_forward(x):
    """conformer_block forward for x of shape [B, C, H, W]."""
    B, C, H, W = x.shape
    feat = C * H * W

    # Lane-dense 2-D layout: all of a sample's features on the lane axis.
    x2 = x.reshape(B, feat)

    bt = _pick_batch_tile(B, feat, x.dtype.itemsize)

    # Pad batch to a multiple of bt. Zero rows normalize to exactly zero
    # (mean=0, var=0, rsqrt(eps) finite), so padding is numerically inert.
    Bp = ((B + bt - 1) // bt) * bt
    if Bp != B:
        x2 = jnp.pad(x2, ((0, Bp - B), (0, 0)))

    grid = (Bp // bt,)

    out = pl.pallas_call(
        _conformer_block_kernel,
        out_shape=jax.ShapeDtypeStruct((Bp, feat), x.dtype),
        grid=grid,
        in_specs=[pl.BlockSpec((bt, feat), lambda i: (i, 0))],
        out_specs=pl.BlockSpec((bt, feat), lambda i: (i, 0)),
        compiler_params=pltpu.CompilerParams(
            # Batch-tile axis is independent -> shard steps across TensorCores
            # on v7x; neutral on single-TC v5e/v6e.
            dimension_semantics=("parallel",),
            # ~2 MiB blocks * 2 buffers * (in + out) ~= 8 MiB; 48 MiB leaves
            # headroom yet stays under v7x's 64 MiB physical VMEM and keeps
            # the big-tile win on v5e (16 MiB default scoped limit).
            vmem_limit_bytes=48 * 1024 * 1024,
        ),
    )(x2)

    return out[:B].reshape(B, C, H, W)


def _reference_forward(x):
    """Pure-JAX reference mirroring the PyTorch conformer_block forward."""
    y = x
    y = y + y  # feed_forward_module_1 (identity) + residual
    y = y + y  # + multi_head_self_attention (identity)
    y = y + y  # + convolutional_module (identity)
    y = y + y  # + feed_forward_module_2 (identity)
    mu = jnp.mean(y, axis=(1, 2, 3), keepdims=True)
    var = jnp.mean((y - mu) ** 2, axis=(1, 2, 3), keepdims=True)
    return (y - mu) * jax.lax.rsqrt(var + _LN_EPS)


if __name__ == "__main__":
    key = jax.random.PRNGKey(0)
    B, C, H, W = 2, 4, 16, 16
    x = jax.random.normal(key, (B, C, H, W), dtype=jnp.float32)

    y = conformer_block_forward(x)
    y = jax.block_until_ready(y)

    y_ref = _reference_forward(x)
    assert y.shape == x.shape
    max_err = float(jnp.max(jnp.abs(y - y_ref)))
    assert jnp.allclose(y, y_ref, atol=1e-4, rtol=1e-4), max_err
    print("KERNEL_OK")
</pallas_src>

<mosaic_0001>
module attributes {stable_mosaic.version = 11 : i64} {
  func.func @_conformer_block_kernel(%arg0: i32, %arg1: memref<512x1024xf32, #tpu.memory_space<vmem>>, %arg2: memref<512x1024xf32, #tpu.memory_space<vmem>>) attributes {dimension_semantics = [#tpu.dimension_semantics<parallel>], iteration_bounds = array<i64: 1>, scalar_prefetch = 0 : i64, scratch_operands = 0 : i64, tpu.core_type = #tpu.core_type<tc>, window_params = [{transform_indices = @transform_0, window_bounds = array<i64: 512, 1024>}, {transform_indices = @transform_1, window_bounds = array<i64: 512, 1024>}]} {
    %c0 = arith.constant 0 : index
    %c0_0 = arith.constant 0 : index
    %0 = vector.load %arg1[%c0, %c0_0] : memref<512x1024xf32, #tpu.memory_space<vmem>>, vector<512x1024xf32>
    %cst = arith.constant 1.600000e+01 : f32
    %1 = vector.broadcast %cst : f32 to vector<512x1024xf32>
    %2 = arith.mulf %0, %1 : vector<512x1024xf32>
    %cst_1 = arith.constant dense<0.000000e+00> : vector<512xf32>
    %3 = vector.multi_reduction <add>, %2, %cst_1 [1] : vector<512x1024xf32> to vector<512xf32>
    %4 = vector.shape_cast %3 : vector<512xf32> to vector<512x1xf32>
    %cst_2 = arith.constant 1.024000e+03 : f32
    %5 = vector.broadcast %cst_2 : f32 to vector<512x1xf32>
    %6 = arith.divf %4, %5 : vector<512x1xf32>
    %7 = vector.broadcast %6 : vector<512x1xf32> to vector<512x1024xf32>
    %8 = arith.subf %2, %7 : vector<512x1024xf32>
    %9 = arith.mulf %8, %8 : vector<512x1024xf32>
    %cst_3 = arith.constant dense<0.000000e+00> : vector<512xf32>
    %10 = vector.multi_reduction <add>, %9, %cst_3 [1] : vector<512x1024xf32> to vector<512xf32>
    %11 = vector.shape_cast %10 : vector<512xf32> to vector<512x1xf32>
    %cst_4 = arith.constant 1.024000e+03 : f32
    %12 = vector.broadcast %cst_4 : f32 to vector<512x1xf32>
    %13 = arith.divf %11, %12 : vector<512x1xf32>
    %cst_5 = arith.constant 9.99999974E-6 : f32
    %14 = vector.broadcast %cst_5 : f32 to vector<512x1xf32>
    %15 = arith.addf %13, %14 : vector<512x1xf32>
    %16 = math.rsqrt %15 : vector<512x1xf32>
    %17 = vector.broadcast %16 : vector<512x1xf32> to vector<512x1024xf32>
    %18 = arith.mulf %8, %17 : vector<512x1024xf32>
    %c0_6 = arith.constant 0 : index
    %c0_7 = arith.constant 0 : index
    %19 = vector.load %arg2[%c0_6, %c0_7] : memref<512x1024xf32, #tpu.memory_space<vmem>>, vector<512x1024xf32>
    tpu.vector_store %arg2[%c0_6, %c0_7], %18 {strides = array<i32>} : memref<512x1024xf32, #tpu.memory_space<vmem>>, vector<512x1024xf32>,
    return
  }
  func.func @transform_0(%arg0: i32) -> (i32, i32) {
    %c0_i32 = arith.constant 0 : i32
    %c0_i32_0 = arith.constant 0 : i32
    return %arg0, %c0_i32 : i32, i32
  }
  func.func @transform_1(%arg0: i32) -> (i32, i32) {
    %c0_i32 = arith.constant 0 : i32
    %c0_i32_0 = arith.constant 0 : i32
    return %arg0, %c0_i32 : i32, i32
  }
}

</mosaic_0001>

<bundles_post_ra>
// kernel: conformer_block_forward.1
= control target key start
LH: loop header
LB: loop body
LE: loop exit
PB: predicated region body
PF: predicated region fallthrough
CT: control target
= control target key end

     0   :  { %s14509_s0 = inlined_call_operand.vmem [shape: f32[512,1024], index: 0, kind: input, shape index: {}]   ;;  %s14510_s1 = inlined_call_operand.vmem [shape: f32[512,1024], index: 1, kind: output, shape index: {}]  }
   0x1   :  { %v40_v0 = vld [vmem:[%s14509_s0 + $0x100] sm:$0xff]  ;;  %v41_v1 = vld [vmem:[%s14509_s0 + $0x108] sm:$0xff]  ;;  %v42_v2 = vld [vmem:[%s14509_s0 + $0x110] sm:$0xff] }
   0x2   :  { %v43_v3 = vld [vmem:[%s14509_s0 + $0x118] sm:$0xff]  ;;  %v44_v4 = vld [vmem:[%s14509_s0 + $0x120] sm:$0xff]  ;;  %v5232_v5 = vmul.f32 16.0, %v40_v0  ;;  %v5234_v6 = vmul.f32 16.0, %v41_v1  ;;  %v5236_v7 = vmul.f32 16.0, %v42_v2  ;;  %v45_v8 = vld [vmem:[%s14509_s0 + $0x128] sm:$0xff] }
   0x3   :  { %v46_v9 = vld [vmem:[%s14509_s0 + $0x130] sm:$0xff]  ;;  %v24_v10 = vld [vmem:[%s14509_s0 + $0x80] sm:$0xff]  ;;  %v5247_v11 = vmul.f32 16.0, %v43_v3  ;;  %v25_v13 = vld [vmem:[%s14509_s0 + $0x88] sm:$0xff]  ;;  %v5275_v22 = vmul.f32 16.0, %v44_v4  ;;  %v5277_v23 = vmul.f32 16.0, %v45_v8 }
   0x4   :  { %15452 = vst [vmem:[#allocation2_spill] sm:$0xff] %v5232_v5  ;;  %v1068_v12 = vadd.f32 %v5234_v6, %v5232_v5  ;;  %v26_v14 = vld [vmem:[%s14509_s0 + $0x90] sm:$0xff]  ;;  %v27_v15 = vld [vmem:[%s14509_s0 + $0x98] sm:$0xff]  ;;  %v5260_v16 = vmul.f32 16.0, %v24_v10  ;;  %v28_v18 = vld [vmem:[%s14509_s0 + $0xa0] sm:$0xff]  ;;  %v5271_v20 = vmul.f32 16.0, %v25_v13 }
   0x5   :  { %15453 = vst [vmem:[#allocation3_spill] sm:$0xff] %v5234_v6  ;;  %v47_v17 = vld [vmem:[%s14509_s0 + $0x138] sm:$0xff]  ;;  %v29_v19 = vld [vmem:[%s14509_s0 + $0xa8] sm:$0xff]  ;;  %v5273_v21 = vmul.f32 16.0, %v26_v14  ;;  %v5279_v24 = vmul.f32 16.0, %v46_v9  ;;  %v30_v26 = vld [vmem:[%s14509_s0 + $0xb0] sm:$0xff] }
   0x6   :  { %15454 = vst [vmem:[#allocation4_spill] sm:$0xff] %v5236_v7  ;;  %v1069_v25 = vadd.f32 %v1068_v12, %v5236_v7  ;;  %v8_v27 = vld [vmem:[%s14509_s0] sm:$0xff]  ;;  %v9_v28 = vld [vmem:[%s14509_s0 + $0x8] sm:$0xff]  ;;  %v31_v29 = vld [vmem:[%s14509_s0 + $0xb8] sm:$0xff]  ;;  %v5294_v30 = vmul.f32 16.0, %v27_v15  ;;  %v1050_v31 = vadd.f32 %v5271_v20, %v5260_v16  ;;  %v5308_v36 = vmul.f32 16.0, %v47_v17 }
   0x7   :  { %15455 = vst [vmem:[#allocation5_spill] sm:$0xff] %v5247_v11  ;;  %v10_v32 = vld [vmem:[%s14509_s0 + $0x10] sm:$0xff]  ;;  %v11_v33 = vld [vmem:[%s14509_s0 + $0x18] sm:$0xff]  ;;  %v5304_v34 = vmul.f32 16.0, %v8_v27  ;;  %v5306_v35 = vmul.f32 16.0, %v9_v28  ;;  %v5311_v38 = vmul.f32 16.0, %v28_v18 }
   0x8   :  { %15456 = vst [vmem:[#allocation6_spill] sm:$0xff] %v5275_v22  ;;  %v1070_v37 = vadd.f32 %v1069_v25, %v5247_v11  ;;  %v12_v39 = vld [vmem:[%s14509_s0 + $0x20] sm:$0xff]  ;;  %v13_v40 = vld [vmem:[%s14509_s0 + $0x28] sm:$0xff]  ;;  %v14_v41 = vld [vmem:[%s14509_s0 + $0x30] sm:$0xff]  ;;  %v5322_v42 = vmul.f32 16.0, %v10_v32  ;;  %v5324_v43 = vmul.f32 16.0, %v29_v19  ;;  %v1051_v45 = vadd.f32 %v1050_v31, %v5273_v21 }
   0x9   :  { %15457 = vst [vmem:[#allocation7_spill] sm:$0xff] %v5277_v23  ;;  %v5326_v44 = vmul.f32 16.0, %v30_v26  ;;  %v5329_v46 = vmul.f32 16.0, %v11_v33  ;;  %v48_v47 = vld [vmem:[%s14509_s0 + $0x140] sm:$0xff]  ;;  %v49_v48 = vld [vmem:[%s14509_s0 + $0x148] sm:$0xff]  ;;  %v50_v49 = vld [vmem:[%s14509_s0 + $0x150] sm:$0xff]  ;;  %v1032_v51 = vadd.f32 %v5306_v35, %v5304_v34 }
   0xa   :  { %15458 = vst [vmem:[#allocation8_spill] sm:$0xff] %v5279_v24  ;;  %v1071_v50 = vadd.f32 %v1070_v37, %v5275_v22  ;;  %v51_v52 = vld [vmem:[%s14509_s0 + $0x158] sm:$0xff]  ;;  %v5346_v53 = vmul.f32 16.0, %v48_v47  ;;  %v5348_v54 = vmul.f32 16.0, %v49_v48  ;;  %v5350_v55 = vmul.f32 16.0, %v31_v29  ;;  %v32_v60 = vld [vmem:[%s14509_s0 + $0xc0] sm:$0xff] }
   0xb   :  { %15459 = vst [vmem:[#allocation9_spill] sm:$0xff] %v5308_v36  ;;  %v1052_v56 = vadd.f32 %v1051_v45, %v5294_v30  ;;  %v15_v57 = vld [vmem:[%s14509_s0 + $0x38] sm:$0xff]  ;;  %v5356_v58 = vmul.f32 16.0, %v12_v39  ;;  %v5358_v59 = vmul.f32 16.0, %v50_v49  ;;  %v5364_v62 = vmul.f32 16.0, %v13_v40  ;;  %v52_v1 = vld [vmem:[%s14509_s0 + $0x160] sm:$0xff] }
   0xc   :  { %15460 = vst [vmem:[#allocation10_spill] sm:$0xff] %v5346_v53  ;;  %v1072_v61 = vadd.f32 %v1071_v50, %v5277_v23  ;;  %v5366_v63 = vmul.f32 16.0, %v14_v41  ;;  %v1033_v0 = vadd.f32 %v1032_v51, %v5322_v42  ;;  %v33_v2 = vld [vmem:[%s14509_s0 + $0xc8] sm:$0xff]  ;;  %v34_v3 = vld [vmem:[%s14509_s0 + $0xd0] sm:$0xff]  ;;  %v5385_v10 = vmul.f32 16.0, %v51_v52  ;;  %v35_v18 = vld [vmem:[%s14509_s0 + $0xd8] sm:$0xff] }
   0xd   :  { %15461 = vst [vmem:[#allocation11_spill] sm:$0xff] %v5348_v54  ;;  %v1053_v4 = vadd.f32 %v1052_v56, %v5311_v38  ;;  %v53_v8 = vld [vmem:[%s14509_s0 + $0x168] sm:$0xff]  ;;  %v54_v9 = vld [vmem:[%s14509_s0 + $0x170] sm:$0xff]  ;;  %v1077_v12 = vadd.f32 %v5348_v54, %v5346_v53  ;;  %v5389_v13 = vmul.f32 16.0, %v32_v60  ;;  %v5392_v15 = vmul.f32 16.0, %v15_v57  ;;  %v36_v28 = vld [vmem:[%s14509_s0 + $0xe0] sm:$0xff] }
   0xe   :  { %15462 = vst [vmem:[#allocation12_spill] sm:$0xff] %v5358_v59  ;;  %v1073_v14 = vadd.f32 %v1072_v61, %v5279_v24  ;;  %v1034_v17 = vadd.f32 %v1033_v0, %v5329_v46  ;;  %v5398_v19 = vmul.f32 16.0, %v33_v2  ;;  %v5401_v26 = vmul.f32 16.0, %v52_v1  ;;  %v16_v31 = vld [vmem:[%s14509_s0 + $0x40] sm:$0xff]  ;;  %v17_v32 = vld [vmem:[%s14509_s0 + $0x48] sm:$0xff]  ;;  %v18_v41 = vld [vmem:[%s14509_s0 + $0x50] sm:$0xff] }
   0xf   :  { %15463 = vst [vmem:[#allocation13_spill] sm:$0xff] %v5385_v10  ;;  %v1054_v25 = vadd.f32 %v1053_v4, %v5324_v43  ;;  %v1078_v27 = vadd.f32 %v1077_v12, %v5358_v59  ;;  %v5407_v29 = vmul.f32 16.0, %v34_v3  ;;  %v5417_v39 = vmul.f32 16.0, %v53_v8  ;;  %v55_v47 = vld [vmem:[%s14509_s0 + $0x178] sm:$0xff]  ;;  %v37_v49 = vld [vmem:[%s14509_s0 + $0xe8] sm:$0xff]  ;;  %v38_v50 = vld [vmem:[%s14509_s0 + $0xf0] sm:$0xff] }
  0x10   :  { %15464 = vst [vmem:[#allocation14_spill] sm:$0xff] %v5401_v26  ;;  %v1074_v33 = vadd.f32 %v1073_v14, %v5308_v36  ;;  %v1035_v37 = vadd.f32 %v1034_v17, %v5356_v58  ;;  %v5419_v40 = vmul.f32 16.0, %v54_v9  ;;  %v5435_v51 = vmul.f32 16.0, %v35_v18  ;;  %v19_v60 = vld [vmem:[%s14509_s0 + $0x58] sm:$0xff]  ;;  %v20_v4 = vld [vmem:[%s14509_s0 + $0x60] sm:$0xff]  ;;  %v73_v12 = vld [vmem:[%s14509_s0 + $0x208] sm:$0xff] }
  0x11   :  { %15465 = vst [vmem:[#allocation15_spill] sm:$0xff] %v5417_v39  ;;  %v1055_v45 = vadd.f32 %v1054_v25, %v5326_v44  ;;  %v1079_v48 = vadd.f32 %v1078_v27, %v5385_v10  ;;  %v1059_v52 = vadd.f32 %v5398_v19, %v5389_v13  ;;  %v5440_v57 = vmul.f32 16.0, %v36_v28  ;;  %v72_v9 = vld [vmem:[%s14509_s0 + $0x200] sm:$0xff]  ;;  %v39_v18 = vld [vmem:[%s14509_s0 + $0xf8] sm:$0xff]  ;;  %v74_v28 = vld [vmem:[%s14509_s0 + $0x210] sm:$0xff] }
  0x12   :  { %15466 = vst [vmem:[#allocation16_spill] sm:$0xff] %v5419_v40  ;;  %1075 = vadd.xlane.f32.xlu2 %v1074_v33  ;;  %v1036_v56 = vadd.f32 %v1035_v37, %v5364_v62  ;;  %v5445_v61 = vmul.f32 16.0, %v16_v31  ;;  %v5447_v0 = vmul.f32 16.0, %v17_v32  ;;  %v5455_v8 = vmul.f32 16.0, %v18_v41  ;;  %v21_v33 = vld [vmem:[%s14509_s0 + $0x68] sm:$0xff]  ;;  %v22_v37 = vld [vmem:[%s14509_s0 + $0x70] sm:$0xff] }
  0x13   :  { %v1056_v1 = vadd.f32 %v1055_v45, %v5350_v55  ;;  %v1080_v2 = vadd.f32 %v1079_v48, %v5401_v26  ;;  %v1060_v3 = vadd.f32 %v1059_v52, %v5407_v29  ;;  %v5464_v17 = vmul.f32 16.0, %v55_v47  ;;  %v75_v47 = vld [vmem:[%s14509_s0 + $0x218] sm:$0xff] }
  0x14   :  { %v1037_v14 = vadd.f32 %v1036_v56, %v5366_v63  ;;  %v5469_v25 = vmul.f32 16.0, %v37_v49  ;;  %v5471_v27 = vmul.f32 16.0, %v38_v50  ;;  %v5484_v41 = vmul.f32 16.0, %v19_v60  ;;  %v23_v49 = vld [vmem:[%s14509_s0 + $0x78] sm:$0xff] }
  0x15   :  { %15467 = vst [vmem:[#allocation17_spill] sm:$0xff] %v5464_v17  ;;  %1057 = vadd.xlane.f32.xlu1 %v1056_v1  ;;  %v1081_v31 = vadd.f32 %v1080_v2, %v5417_v39  ;;  %v1061_v32 = vadd.f32 %v1060_v3, %v5435_v51  ;;  %v1041_v45 = vadd.f32 %v5447_v0, %v5445_v61  ;;  %v5495_v50 = vmul.f32 16.0, %v20_v4  ;;  %v65_v4 = vld [vmem:[%s14509_s0 + $0x1c8] sm:$0xff] }
  0x16   :  { %15468 = vst [vmem:[#allocation18_spill] sm:$0xff] %v5469_v25  ;;  %v1038_v48 = vadd.f32 %v1037_v14, %v5392_v15  ;;  %v5497_v52 = vmul.f32 16.0, %v72_v9  ;;  %v5499_v56 = vmul.f32 16.0, %v73_v12  ;;  %v5504_v3 = vmul.f32 16.0, %v74_v28  ;;  %v64_v14 = vld [vmem:[%s14509_s0 + $0x1c0] sm:$0xff]  ;;  %v66_v9 = vld [vmem:[%s14509_s0 + $0x1d0] sm:$0xff] }
  0x17   :  { %15469 = vst [vmem:[#allocation19_spill] sm:$0xff] %v5471_v27  ;;  %v1082_v60 = vadd.f32 %v1081_v31, %v5419_v40  ;;  %v1062_v1 = vadd.f32 %v1061_v32, %v5440_v57  ;;  %v1042_v2 = vadd.f32 %v1041_v45, %v5455_v8  ;;  %v5515_v12 = vmul.f32 16.0, %v39_v18  ;;  %v76_v28 = vld [vmem:[%s14509_s0 + $0x220] sm:$0xff]  ;;  %v77_v18 = vld [vmem:[%s14509_s0 + $0x228] sm:$0xff] }
  0x18   :  { %15470 = vst [vmem:[#allocation20_spill] sm:$0xff] %v5497_v52  ;;  %1039 = vadd.xlane.f32.xlu0 %v1038_v48  ;;  %v5517_v31 = vmul.f32 16.0, %v21_v33  ;;  %v5519_v32 = vmul.f32 16.0, %v22_v37  ;;  %v5524_v45 = vmul.f32 16.0, %v75_v47  ;;  %v78_v33 = vld [vmem:[%s14509_s0 + $0x230] sm:$0xff]  ;;  %v1104_v37 = vadd.f32 %v5499_v56, %v5497_v52  ;;  %v67_v47 = vld [vmem:[%s14509_s0 + $0x1d8] sm:$0xff] }
  0x19   :  { %15471 = vst [vmem:[#allocation21_spill] sm:$0xff] %v5499_v56  ;;  %v1083_v40 = vadd.f32 %v1082_v60, %v5464_v17  ;;  %v1063_v39 = vadd.f32 %v1062_v1, %v5469_v25  ;;  %v1043_v26 = vadd.f32 %v1042_v2, %v5484_v41  ;;  %v5540_v48 = vmul.f32 16.0, %v23_v49  ;;  %v56_v17 = vld [vmem:[%s14509_s0 + $0x180] sm:$0xff] }
  0x1a   :  { %15472 = vst [vmem:[#allocation22_spill] sm:$0xff] %v5504_v3  ;;  %v5542_v60 = vmul.f32 16.0, %v64_v14  ;;  %v5544_v1 = vmul.f32 16.0, %v65_v4  ;;  %v5546_v2 = vmul.f32 16.0, %v66_v9  ;;  %v5553_v52 = vmul.f32 16.0, %v76_v28  ;;  %v68_v14 = vld [vmem:[%s14509_s0 + $0x1e0] sm:$0xff] }
  0x1b   :  { %15473 = vst [vmem:[#allocation23_spill] sm:$0xff] %v5515_v12  ;;  %1084 = vadd.xlane.f32.xlu2 %v1083_v40  ;;  %v1064_v36 = vadd.f32 %v1063_v39, %v5471_v27  ;;  %v1044_v56 = vadd.f32 %v1043_v26, %v5495_v50  ;;  %v1105_v49 = vadd.f32 %v1104_v37, %v5504_v3  ;;  %v57_v4 = vld [vmem:[%s14509_s0 + $0x188] sm:$0xff]  ;;  %v58_v40 = vld [vmem:[%s14509_s0 + $0x190] sm:$0xff]  ;;  %v79_v26 = vld [vmem:[%s14509_s0 + $0x238] sm:$0xff]  ;;  %v5568_v39 = vmul.f32 16.0, %v77_v18 }
  0x1c   :  { %15474 = vst [vmem:[#allocation24_spill] sm:$0xff] %v5524_v45  ;;  %v5570_v9 = vmul.f32 16.0, %v78_v33  ;;  %v69_v28 = vld [vmem:[%s14509_s0 + $0x1e8] sm:$0xff]  ;;  %v5575_v37 = vmul.f32 16.0, %v67_v47  ;;  %v1095_v3 = vadd.f32 %v5544_v1, %v5542_v60  ;;  %v70_v18 = vld [vmem:[%s14509_s0 + $0x1f0] sm:$0xff]  ;;  %v59_v33 = vld [vmem:[%s14509_s0 + $0x198] sm:$0xff] }
  0x1d   :  { %15475 = vst [vmem:[#allocation25_spill] sm:$0xff] %v5542_v60  ;;  %v1065_v10 = vadd.f32 %v1064_v36, %v5515_v12  ;;  %v1045_v24 = vadd.f32 %v1044_v56, %v5517_v31  ;;  %v1106_v59 = vadd.f32 %v1105_v49, %v5524_v45  ;;  %v5588_v54 = vmul.f32 16.0, %v56_v17  ;;  %v96_v56 = vld [vmem:[%s14509_s0 + $0x2c0] sm:$0xff]  ;;  %v97_v49 = vld [vmem:[%s14509_s0 + $0x2c8] sm:$0xff] }
  0x1e   :  { %15476 = vst [vmem:[#allocation26_spill] sm:$0xff] %v5544_v1  ;;  %v5590_v47 = vmul.f32 16.0, %v68_v14  ;;  %v1096_v1 = vadd.f32 %v1095_v3, %v5546_v2  ;;  %v5593_v60 = vmul.f32 16.0, %v57_v4  ;;  %v5595_v36 = vmul.f32 16.0, %v58_v40  ;;  %v60_v4 = vld [vmem:[%s14509_s0 + $0x1a0] sm:$0xff]  ;;  %v98_v40 = vld [vmem:[%s14509_s0 + $0x2d0] sm:$0xff] }
  0x1f   :  { %15477 = vst [vmem:[#allocation27_spill] sm:$0xff] %v5546_v2  ;;  %1066 = vadd.xlane.f32.xlu1 %v1065_v10  ;;  %v1046_v17 = vadd.f32 %v1045_v24, %v5519_v32  ;;  %v5604_v45 = vmul.f32 16.0, %v79_v26  ;;  %v1107_v14 = vadd.f32 %v1106_v59, %v5553_v52  ;;  %v5607_v3 = vmul.f32 16.0, %v69_v28  ;;  %v71_v10 = vld [vmem:[%s14509_s0 + $0x1f8] sm:$0xff]  ;;  %v61_v59 = vld [vmem:[%s14509_s0 + $0x1a8] sm:$0xff]  ;;  %v62_v26 = vld [vmem:[%s14509_s0 + $0x1b0] sm:$0xff] }
  0x20   :  { %15478 = vst [vmem:[#allocation28_spill] sm:$0xff] %v5553_v52  ;;  %v5618_v2 = vmul.f32 16.0, %v70_v18  ;;  %v1097_v24 = vadd.f32 %v1096_v1, %v5575_v37  ;;  %v5627_v28 = vmul.f32 16.0, %v59_v33  ;;  %v1086_v52 = vadd.f32 %v5593_v60, %v5588_v54  ;;  %v99_v1 = vld [vmem:[%s14509_s0 + $0x2d8] sm:$0xff] }
  0x21   :  { %15479 = vst [vmem:[#allocation29_spill] sm:$0xff] %v5568_v39  ;;  %v1047_v53 = vadd.f32 %v1046_v17, %v5540_v48  ;;  %v1108_v18 = vadd.f32 %v1107_v14, %v5568_v39  ;;  %v5638_v23 = vmul.f32 16.0, %v97_v49  ;;  %v5641_v22 = vmul.f32 16.0, %v60_v4  ;;  %v100_v17 = vld [vmem:[%s14509_s0 + $0x2e0] sm:$0xff]  ;;  %v90_v39 = vld [vmem:[%s14509_s0 + $0x290] sm:$0xff] }
  0x22   :  { %15480 = vst [vmem:[#allocation30_spill] sm:$0xff] %v5570_v9  ;;  %v1098_v12 = vadd.f32 %v1097_v24, %v5590_v47  ;;  %v1087_v33 = vadd.f32 %v1086_v52, %v5595_v36  ;;  %v88_v14 = vld [vmem:[%s14509_s0 + $0x280] sm:$0xff]  ;;  %v5656_v4 = vmul.f32 16.0, %v71_v10  ;;  %v63_v52 = vld [vmem:[%s14509_s0 + $0x1b8] sm:$0xff]  ;;  %v5661_v24 = vmul.f32 16.0, %v61_v59  ;;  %v101_v10 = vld [vmem:[%s14509_s0 + $0x2e8] sm:$0xff] }
  0x23   :  { %15481 = vst [vmem:[#allocation31_spill] sm:$0xff] %v5575_v37  ;;  %v5636_v37 = vmul.f32 16.0, %v96_v56  ;;  %v89_v56 = vld [vmem:[%s14509_s0 + $0x288] sm:$0xff]  ;;  %1048 = vadd.xlane.f32.xlu0 %v1047_v53  ;;  %v1109_v49 = vadd.f32 %v1108_v18, %v5570_v9  ;;  %v102_v18 = vld [vmem:[%s14509_s0 + $0x2f0] sm:$0xff]  ;;  %v5676_v59 = vmul.f32 16.0, %v99_v1  ;;  %v91_v9 = vld [vmem:[%s14509_s0 + $0x298] sm:$0xff] }
  0x24   :  { %15482 = vst [vmem:[#allocation32_spill] sm:$0xff] %v5588_v54  ;;  %v1088_v53 = vadd.f32 %v1087_v33, %v5627_v28  ;;  %v103_v33 = vld [vmem:[%s14509_s0 + $0x2f8] sm:$0xff]  ;;  %v5689_v54 = vmul.f32 16.0, %v88_v14  ;;  %v82_v14 = vld [vmem:[%s14509_s0 + $0x250] sm:$0xff] }
  0x25   :  { %15483 = vst [vmem:[#allocation33_spill] sm:$0xff] %v5590_v47  ;;  %v5696_v47 = vmul.f32 16.0, %v90_v39  ;;  %v92_v39 = vld [vmem:[%s14509_s0 + $0x2a0] sm:$0xff] }
  0x26   :  { %15484 = vst [vmem:[#allocation34_spill] sm:$0xff] %v5593_v60  ;;  %v5647_v60 = vmul.f32 16.0, %v98_v40  ;;  %v5663_v40 = vmul.f32 16.0, %v62_v26  ;;  %v1131_v26 = vadd.f32 %v5638_v23, %v5636_v37 }
  0x27   :  { %15485 = vst [vmem:[#allocation35_spill] sm:$0xff] %v5595_v36  ;;  %v1099_v36 = vadd.f32 %v1098_v12, %v5607_v3  ;;  %v1110_v12 = vadd.f32 %v1109_v49, %v5604_v45  ;;  %v80_v49 = vld [vmem:[%s14509_s0 + $0x240] sm:$0xff] }
  0x28   :  { %15486 = vst [vmem:[#allocation36_spill] sm:$0xff] %v5604_v45 }
  0x29   :  { %15487 = vst [vmem:[#allocation37_spill] sm:$0xff] %v5607_v3  ;;  %v5691_v3 = vmul.f32 16.0, %v89_v56  ;;  %v1100_v1 = vadd.f32 %v1099_v36, %v5618_v2  ;;  %1111 = vadd.xlane.f32.xlu2 %v1110_v12  ;;  %v5707_v36 = vmul.f32 16.0, %v63_v52  ;;  %v5709_v56 = vmul.f32 16.0, %v101_v10  ;;  %v93_v52 = vld [vmem:[%s14509_s0 + $0x2a8] sm:$0xff]  ;;  %v94_v10 = vld [vmem:[%s14509_s0 + $0x2b0] sm:$0xff] }
  0x2a   :  { %15488 = vst [vmem:[#allocation38_spill] sm:$0xff] %v5618_v2  ;;  %v5732_v12 = vmul.f32 16.0, %v103_v33 }
  0x2b   :  { %15489 = vst [vmem:[#allocation39_spill] sm:$0xff] %v5627_v28  ;;  %v5687_v28 = vmul.f32 16.0, %v100_v17  ;;  %v81_v17 = vld [vmem:[%s14509_s0 + $0x248] sm:$0xff] }
  0x2c   :  { %15490 = vst [vmem:[#allocation40_spill] sm:$0xff] %v5636_v37  ;;  %v1132_v37 = vadd.f32 %v1131_v26, %v5647_v60  ;;  %v5716_v26 = vmul.f32 16.0, %v91_v9  ;;  %v83_v9 = vld [vmem:[%s14509_s0 + $0x258] sm:$0xff] }
  0x2d   :  { %15491 = vst [vmem:[#allocation41_spill] sm:$0xff] %v5638_v23  ;;  %v1089_v23 = vadd.f32 %v1088_v53, %v5641_v22  ;;  %v5711_v53 = vmul.f32 16.0, %v102_v18  ;;  %v1122_v18 = vadd.f32 %v5691_v3, %v5689_v54 }
  0x2e   :  { %15492 = vst [vmem:[#allocation42_spill] sm:$0xff] %v5641_v22  ;;  %v1133_v22 = vadd.f32 %v1132_v37, %v5676_v59  ;;  %v5736_v37 = vmul.f32 16.0, %v81_v17  ;;  %v121_v17 = vld [vmem:[%s14509_s0 + $0x388] sm:$0xff] }
  0x2f   :  { %15493 = vst [vmem:[#allocation43_spill] sm:$0xff] %v5647_v60  ;;  %v1101_v60 = vadd.f32 %v1100_v1, %v5656_v4  ;;  %v1090_v45 = vadd.f32 %v1089_v23, %v5661_v24  ;;  %v5734_v23 = vmul.f32 16.0, %v80_v49  ;;  %v5738_v1 = vmul.f32 16.0, %v82_v14  ;;  %v84_v49 = vld [vmem:[%s14509_s0 + $0x260] sm:$0xff] }
  0x30   :  { %15494 = vst [vmem:[#allocation44_spill] sm:$0xff] %v5656_v4  ;;  %v1123_v33 = vadd.f32 %v1122_v18, %v5696_v47  ;;  %v5762_v14 = vmul.f32 16.0, %v94_v10  ;;  %v5767_v18 = vmul.f32 16.0, %v83_v9  ;;  %v123_v10 = vld [vmem:[%s14509_s0 + $0x398] sm:$0xff]  ;;  %v5782_v9 = vmul.f32 16.0, %v84_v49 }
  0x31   :  { %15495 = vst [vmem:[#allocation45_spill] sm:$0xff] %v5661_v24  ;;  %1102 = vadd.xlane.f32.xlu1 %v1101_v60  ;;  %v1091_v24 = vadd.f32 %v1090_v45, %v5663_v40  ;;  %v122_v60 = vld [vmem:[%s14509_s0 + $0x390] sm:$0xff]  ;;  %v5760_v45 = vmul.f32 16.0, %v93_v52 }
  0x32   :  { %15496 = vst [vmem:[#allocation46_spill] sm:$0xff] %v5663_v40  ;;  %v1124_v4 = vadd.f32 %v1123_v33, %v5716_v26  ;;  %v86_v52 = vld [vmem:[%s14509_s0 + $0x270] sm:$0xff]  ;;  %v113_v33 = vld [vmem:[%s14509_s0 + $0x348] sm:$0xff] }
  0x33   :  { %15497 = vst [vmem:[#allocation47_spill] sm:$0xff] %v5676_v59  ;;  %v120_v59 = vld [vmem:[%s14509_s0 + $0x380] sm:$0xff] }
  0x34   :  { %15498 = vst [vmem:[#allocation48_spill] sm:$0xff] %v5687_v28  ;;  %v5780_v2 = vmul.f32 16.0, %v120_v59 }
  0x35   :  { %15499 = vst [vmem:[#allocation49_spill] sm:$0xff] %v5689_v54  ;;  %v5745_v54 = vmul.f32 16.0, %v92_v39  ;;  %v85_v39 = vld [vmem:[%s14509_s0 + $0x268] sm:$0xff] }
  0x36   :  { %15500 = vst [vmem:[#allocation50_spill] sm:$0xff] %v5691_v3  ;;  %v1134_v3 = vadd.f32 %v1133_v22, %v5687_v28  ;;  %v95_v22 = vld [vmem:[%s14509_s0 + $0x2b8] sm:$0xff]  ;;  %v1113_v28 = vadd.f32 %v5736_v37, %v5734_v23 }
  0x37   :  { %15501 = vst [vmem:[#allocation51_spill] sm:$0xff] %v5696_v47  ;;  %v1092_v47 = vadd.f32 %v1091_v24, %v5707_v36  ;;  %v5787_v24 = vmul.f32 16.0, %v122_v60  ;;  %v1125_v49 = vadd.f32 %v1124_v4, %v5745_v54  ;;  %v114_v60 = vld [vmem:[%s14509_s0 + $0x350] sm:$0xff]  ;;  %v125_v4 = vld [vmem:[%s14509_s0 + $0x3a8] sm:$0xff] }
  0x38   :  { %15502 = vst [vmem:[#allocation52_spill] sm:$0xff] %v5707_v36  ;;  %v1135_v40 = vadd.f32 %v1134_v3, %v5709_v56  ;;  %v112_v3 = vld [vmem:[%s14509_s0 + $0x340] sm:$0xff] }
  0x39   :  { %15503 = vst [vmem:[#allocation53_spill] sm:$0xff] %v5709_v56  ;;  %1093 = vadd.xlane.f32.xlu0 %v1092_v47  ;;  %v5796_v56 = vmul.f32 16.0, %v95_v22  ;;  %v87_v47 = vld [vmem:[%s14509_s0 + $0x278] sm:$0xff]  ;;  %v126_v22 = vld [vmem:[%s14509_s0 + $0x3b0] sm:$0xff] }
  0x3a   :  { %15504 = vst [vmem:[#allocation54_spill] sm:$0xff] %v5711_v53  ;;  %v1136_v59 = vadd.f32 %v1135_v40, %v5711_v53 }
  0x3b   :  { %15505 = vst [vmem:[#allocation55_spill] sm:$0xff] %v5716_v26  ;;  %v5830_v26 = vmul.f32 16.0, %v113_v33 }
  0x3c   :  { %15506 = vst [vmem:[#allocation56_spill] sm:$0xff] %v5732_v12 }
  0x3d   :  { %15507 = vst [vmem:[#allocation57_spill] sm:$0xff] %v5734_v23  ;;  %v5785_v23 = vmul.f32 16.0, %v121_v17  ;;  %v124_v17 = vld [vmem:[%s14509_s0 + $0x3a0] sm:$0xff] }
  0x3e   :  { %15508 = vst [vmem:[#allocation58_spill] sm:$0xff] %v5736_v37  ;;  %v1114_v37 = vadd.f32 %v1113_v28, %v5738_v1  ;;  %v5799_v28 = vmul.f32 16.0, %v85_v39  ;;  %v5819_v39 = vmul.f32 16.0, %v123_v10  ;;  %v5833_v11 = vmul.f32 16.0, %v124_v17 }
  0x3f   :  { %15509 = vst [vmem:[#allocation59_spill] sm:$0xff] %v5738_v1  ;;  %v5810_v1 = vmul.f32 16.0, %v86_v52  ;;  %v1158_v53 = vadd.f32 %v5785_v23, %v5780_v2  ;;  %v1126_v52 = vadd.f32 %v1125_v49, %v5760_v45  ;;  %v104_v49 = vld [vmem:[%s14509_s0 + $0x300] sm:$0xff]  ;;  %v5848_v17 = vmul.f32 16.0, %v87_v47  ;;  %v117_v47 = vld [vmem:[%s14509_s0 + $0x368] sm:$0xff] }
  0x40   :  { %15510 = vst [vmem:[#allocation60_spill] sm:$0xff] %v5745_v54  ;;  %v1115_v40 = vadd.f32 %v1114_v37, %v5767_v18  ;;  %v1137_v54 = vadd.f32 %v1136_v59, %v5732_v12  ;;  %v115_v37 = vld [vmem:[%s14509_s0 + $0x358] sm:$0xff]  ;;  %v116_v59 = vld [vmem:[%s14509_s0 + $0x360] sm:$0xff] }
  0x41   :  { %15511 = vst [vmem:[#allocation61_spill] sm:$0xff] %v5760_v45  ;;  %v1159_v10 = vadd.f32 %v1158_v53, %v5787_v24  ;;  %v1127_v33 = vadd.f32 %v1126_v52, %v5762_v14  ;;  %v127_v53 = vld [vmem:[%s14509_s0 + $0x3b8] sm:$0xff]  ;;  %v118_v52 = vld [vmem:[%s14509_s0 + $0x370] sm:$0xff] }
  0x42   :  { %15512 = vst [vmem:[#allocation62_spill] sm:$0xff] %v5762_v14  ;;  %v1116_v36 = vadd.f32 %v1115_v40, %v5782_v9  ;;  %1138 = vadd.xlane.f32.xlu2 %v1137_v54  ;;  %v5853_v40 = vmul.f32 16.0, %v125_v4  ;;  %v5868_v4 = vmul.f32 16.0, %v115_v37  ;;  %v107_v12 = vld [vmem:[%s14509_s0 + $0x318] sm:$0xff] }
  0x43   :  { %15513 = vst [vmem:[#allocation63_spill] sm:$0xff] %v5767_v18  ;;  %v5828_v18 = vmul.f32 16.0, %v112_v3  ;;  %v105_v3 = vld [vmem:[%s14509_s0 + $0x308] sm:$0xff]  ;;  %v1160_v54 = vadd.f32 %v1159_v10, %v5819_v39  ;;  %v119_v10 = vld [vmem:[%s14509_s0 + $0x378] sm:$0xff] }
  0x44   :  { %15514 = vst [vmem:[#allocation64_spill] sm:$0xff] %v5780_v2  ;;  %v1117_v2 = vadd.f32 %v1116_v36, %v5799_v28  ;;  %v1128_v36 = vadd.f32 %v1127_v33, %v5796_v56  ;;  %v144_v33 = vld [vmem:[%s14509_s0 + $0x440] sm:$0xff] }
  0x45   :  { %15515 = vst [vmem:[#allocation65_spill] sm:$0xff] %v5782_v9  ;;  %v5883_v9 = vmul.f32 16.0, %v105_v3  ;;  %v5901_v3 = vmul.f32 16.0, %v117_v47  ;;  %v110_v47 = vld [vmem:[%s14509_s0 + $0x330] sm:$0xff] }
  0x46   :  { %15516 = vst [vmem:[#allocation66_spill] sm:$0xff] %v5785_v23  ;;  %v5839_v23 = vmul.f32 16.0, %v114_v60  ;;  %v5855_v60 = vmul.f32 16.0, %v126_v22  ;;  %v1149_v22 = vadd.f32 %v5830_v26, %v5828_v18  ;;  %v1118_v37 = vadd.f32 %v1117_v2, %v5810_v1  ;;  %1129 = vadd.xlane.f32.xlu1 %v1128_v36 }
  0x47   :  { %15517 = vst [vmem:[#allocation67_spill] sm:$0xff] %v5787_v24  ;;  %v106_v24 = vld [vmem:[%s14509_s0 + $0x310] sm:$0xff]  ;;  %v5899_v2 = vmul.f32 16.0, %v127_v53  ;;  %v109_v53 = vld [vmem:[%s14509_s0 + $0x328] sm:$0xff]  ;;  %v5924_v36 = vmul.f32 16.0, %v119_v10 }
  0x48   :  { %15518 = vst [vmem:[#allocation68_spill] sm:$0xff] %v5796_v56  ;;  %v5888_v14 = vmul.f32 16.0, %v106_v24  ;;  %v108_v24 = vld [vmem:[%s14509_s0 + $0x320] sm:$0xff] }
  0x49   :  { %15519 = vst [vmem:[#allocation69_spill] sm:$0xff] %v5799_v28  ;;  %v5881_v28 = vmul.f32 16.0, %v104_v49  ;;  %v146_v49 = vld [vmem:[%s14509_s0 + $0x450] sm:$0xff] }
  0x4a   :  { %15520 = vst [vmem:[#allocation70_spill] sm:$0xff] %v5810_v1 }
  0x4b   :  { %15521 = vst [vmem:[#allocation71_spill] sm:$0xff] %v5819_v39  ;;  %v5879_v39 = vmul.f32 16.0, %v116_v59  ;;  %v145_v59 = vld [vmem:[%s14509_s0 + $0x448] sm:$0xff] }
  0x4c   :  { %15522 = vst [vmem:[#allocation72_spill] sm:$0xff] %v5828_v18  ;;  %v1150_v18 = vadd.f32 %v1149_v22, %v5839_v23  ;;  %v5908_v22 = vmul.f32 16.0, %v107_v12  ;;  %v147_v12 = vld [vmem:[%s14509_s0 + $0x458] sm:$0xff] }
  0x4d   :  { %15523 = vst [vmem:[#allocation73_spill] sm:$0xff] %v5830_v26  ;;  %v1161_v26 = vadd.f32 %v1160_v54, %v5833_v11  ;;  %v5903_v54 = vmul.f32 16.0, %v118_v52  ;;  %v1140_v52 = vadd.f32 %v5883_v9, %v5881_v28 }
  0x4e   :  { %15524 = vst [vmem:[#allocation74_spill] sm:$0xff] %v5833_v11  ;;  %v1119_v11 = vadd.f32 %v1118_v37, %v5848_v17  ;;  %v1151_v1 = vadd.f32 %v1150_v18, %v5868_v4  ;;  %v5928_v18 = vmul.f32 16.0, %v145_v59  ;;  %v5930_v37 = vmul.f32 16.0, %v146_v49  ;;  %v137_v59 = vld [vmem:[%s14509_s0 + $0x408] sm:$0xff] }
  0x4f   :  { %15525 = vst [vmem:[#allocation75_spill] sm:$0xff] %v5839_v23  ;;  %v1162_v23 = vadd.f32 %v1161_v26, %v5853_v40  ;;  %v5926_v26 = vmul.f32 16.0, %v144_v33  ;;  %v1141_v10 = vadd.f32 %v1140_v52, %v5888_v14  ;;  %v148_v33 = vld [vmem:[%s14509_s0 + $0x460] sm:$0xff]  ;;  %v5954_v49 = vmul.f32 16.0, %v110_v47  ;;  %v139_v47 = vld [vmem:[%s14509_s0 + $0x418] sm:$0xff] }
  0x50   :  { %15526 = vst [vmem:[#allocation76_spill] sm:$0xff] %v5848_v17  ;;  %1120 = vadd.xlane.f32.xlu0 %v1119_v11  ;;  %v138_v11 = vld [vmem:[%s14509_s0 + $0x410] sm:$0xff]  ;;  %v5959_v52 = vmul.f32 16.0, %v147_v12  ;;  %v5974_v12 = vmul.f32 16.0, %v148_v33 }
  0x51   :  { %15527 = vst [vmem:[#allocation77_spill] sm:$0xff] %v5853_v40  ;;  %v136_v40 = vld [vmem:[%s14509_s0 + $0x400] sm:$0xff]  ;;  %v1142_v17 = vadd.f32 %v1141_v10, %v5908_v22  ;;  %v129_v10 = vld [vmem:[%s14509_s0 + $0x3c8] sm:$0xff] }
  0x52   :  { %15528 = vst [vmem:[#allocation78_spill] sm:$0xff] %v5855_v60  ;;  %v5972_v56 = vmul.f32 16.0, %v136_v40 }
  0x53   :  { %15529 = vst [vmem:[#allocation79_spill] sm:$0xff] %v5868_v4  ;;  %v1163_v4 = vadd.f32 %v1162_v23, %v5855_v60  ;;  %v111_v23 = vld [vmem:[%s14509_s0 + $0x338] sm:$0xff]  ;;  %v1185_v60 = vadd.f32 %v5928_v18, %v5926_v26 }
  0x54   :  { %15530 = vst [vmem:[#allocation80_spill] sm:$0xff] %v5879_v39 }
  0x55   :  { %15531 = vst [vmem:[#allocation81_spill] sm:$0xff] %v5881_v28  ;;  %v5937_v28 = vmul.f32 16.0, %v108_v24  ;;  %v149_v24 = vld [vmem:[%s14509_s0 + $0x468] sm:$0xff] }
  0x56   :  { %15532 = vst [vmem:[#allocation82_spill] sm:$0xff] %v5883_v9  ;;  %v1152_v9 = vadd.f32 %v1151_v1, %v5879_v39  ;;  %v5952_v1 = vmul.f32 16.0, %v109_v53  ;;  %v150_v53 = vld [vmem:[%s14509_s0 + $0x470] sm:$0xff] }
  0x57   :  { %15533 = vst [vmem:[#allocation83_spill] sm:$0xff] %v5888_v14  ;;  %v1164_v14 = vadd.f32 %v1163_v4, %v5899_v2  ;;  %v5979_v4 = vmul.f32 16.0, %v138_v11  ;;  %v1143_v33 = vadd.f32 %v1142_v17, %v5937_v28  ;;  %v130_v11 = vld [vmem:[%s14509_s0 + $0x3d0] sm:$0xff]  ;;  %v141_v17 = vld [vmem:[%s14509_s0 + $0x428] sm:$0xff] }
  0x58   :  { %15534 = vst [vmem:[#allocation84_spill] sm:$0xff] %v5899_v2  ;;  %v1153_v39 = vadd.f32 %v1152_v9, %v5901_v3  ;;  %v128_v9 = vld [vmem:[%s14509_s0 + $0x3c0] sm:$0xff]  ;;  %v5988_v2 = vmul.f32 16.0, %v111_v23  ;;  %v142_v23 = vld [vmem:[%s14509_s0 + $0x430] sm:$0xff] }
  0x59   :  { %15535 = vst [vmem:[#allocation85_spill] sm:$0xff] %v5901_v3  ;;  %1165 = vadd.xlane.f32.xlu2 %v1164_v14  ;;  %v151_v14 = vld [vmem:[%s14509_s0 + $0x478] sm:$0xff] }
  0x5a   :  { %15536 = vst [vmem:[#allocation86_spill] sm:$0xff] %v5903_v54  ;;  %v1154_v40 = vadd.f32 %v1153_v39, %v5903_v54  ;;  %v6022_v54 = vmul.f32 16.0, %v129_v10 }
  0x5b   :  { %15537 = vst [vmem:[#allocation87_spill] sm:$0xff] %v5908_v22 }
  0x5c   :  { %15538 = vst [vmem:[#allocation88_spill] sm:$0xff] %v5924_v36  ;;  %v1155_v22 = vadd.f32 %v1154_v40, %v5924_v36  ;;  %v132_v40 = vld [vmem:[%s14509_s0 + $0x3e0] sm:$0xff] }
  0x5d   :  { %15539 = vst [vmem:[#allocation89_spill] sm:$0xff] %v5926_v26  ;;  %v5977_v26 = vmul.f32 16.0, %v137_v59  ;;  %v140_v59 = vld [vmem:[%s14509_s0 + $0x420] sm:$0xff] }
  0x5e   :  { %15540 = vst [vmem:[#allocation90_spill] sm:$0xff] %v5928_v18  ;;  %v1186_v18 = vadd.f32 %v1185_v60, %v5930_v37  ;;  %v5991_v60 = vmul.f32 16.0, %v149_v24  ;;  %v6011_v24 = vmul.f32 16.0, %v139_v47  ;;  %v6025_v45 = vmul.f32 16.0, %v140_v59  ;;  %1156 = vadd.xlane.f32.xlu1 %v1155_v22 }
  0x5f   :  { %15541 = vst [vmem:[#allocation91_spill] sm:$0xff] %v5930_v37  ;;  %v6002_v37 = vmul.f32 16.0, %v150_v53  ;;  %v1144_v53 = vadd.f32 %v1143_v33, %v5952_v1  ;;  %v168_v33 = vld [vmem:[%s14509_s0 + $0x500] sm:$0xff]  ;;  %v6040_v59 = vmul.f32 16.0, %v151_v14  ;;  %v133_v14 = vld [vmem:[%s14509_s0 + $0x3e8] sm:$0xff] }
  0x60   :  { %15542 = vst [vmem:[#allocation92_spill] sm:$0xff] %v5937_v28  ;;  %v1187_v39 = vadd.f32 %v1186_v18, %v5959_v52  ;;  %v1176_v28 = vadd.f32 %v5977_v26, %v5972_v56  ;;  %v131_v18 = vld [vmem:[%s14509_s0 + $0x3d8] sm:$0xff] }
  0x61   :  { %15543 = vst [vmem:[#allocation93_spill] sm:$0xff] %v5952_v1  ;;  %v1145_v10 = vadd.f32 %v1144_v53, %v5954_v49  ;;  %v134_v53 = vld [vmem:[%s14509_s0 + $0x3f0] sm:$0xff] }
  0x62   :  { %15544 = vst [vmem:[#allocation94_spill] sm:$0xff] %v5954_v49  ;;  %v1188_v3 = vadd.f32 %v1187_v39, %v5974_v12  ;;  %v1177_v47 = vadd.f32 %v1176_v28, %v5979_v4  ;;  %v143_v28 = vld [vmem:[%s14509_s0 + $0x438] sm:$0xff]  ;;  %v6045_v39 = vmul.f32 16.0, %v141_v17  ;;  %v6060_v17 = vmul.f32 16.0, %v131_v18 }
  0x63   :  { %15545 = vst [vmem:[#allocation95_spill] sm:$0xff] %v5959_v52  ;;  %v6020_v52 = vmul.f32 16.0, %v128_v9  ;;  %v169_v9 = vld [vmem:[%s14509_s0 + $0x508] sm:$0xff] }
  0x64   :  { %15546 = vst [vmem:[#allocation96_spill] sm:$0xff] %v5972_v56  ;;  %v1178_v22 = vadd.f32 %v1177_v47, %v6011_v24  ;;  %v171_v56 = vld [vmem:[%s14509_s0 + $0x518] sm:$0xff]  ;;  %v6075_v49 = vmul.f32 16.0, %v169_v9  ;;  %v6093_v9 = vmul.f32 16.0, %v133_v14  ;;  %v174_v14 = vld [vmem:[%s14509_s0 + $0x530] sm:$0xff] }
  0x65   :  { %15547 = vst [vmem:[#allocation97_spill] sm:$0xff] %v5974_v12  ;;  %v170_v12 = vld [vmem:[%s14509_s0 + $0x510] sm:$0xff]  ;;  %v135_v47 = vld [vmem:[%s14509_s0 + $0x3f8] sm:$0xff] }
  0x66   :  { %15548 = vst [vmem:[#allocation98_spill] sm:$0xff] %v5977_v26  ;;  %v6031_v26 = vmul.f32 16.0, %v130_v11  ;;  %v6047_v11 = vmul.f32 16.0, %v142_v23  ;;  %v1167_v23 = vadd.f32 %v6022_v54, %v6020_v52  ;;  %v6080_v1 = vmul.f32 16.0, %v170_v12  ;;  %v172_v12 = vld [vmem:[%s14509_s0 + $0x520] sm:$0xff] }
  0x67   :  { %15549 = vst [vmem:[#allocation99_spill] sm:$0xff] %v5979_v4  ;;  %v1189_v4 = vadd.f32 %v1188_v3, %v5991_v60  ;;  %v1146_v3 = vadd.f32 %v1145_v10, %v5988_v2  ;;  %v160_v10 = vld [vmem:[%s14509_s0 + $0x4c0] sm:$0xff] }
  0x68   :  { %15550 = vst [vmem:[#allocation100_spill] sm:$0xff] %v5988_v2 }
  0x69   :  { %15551 = vst [vmem:[#allocation101_spill] sm:$0xff] %v5991_v60  ;;  %v6071_v60 = vmul.f32 16.0, %v132_v40  ;;  %v1190_v18 = vadd.f32 %v1189_v4, %v6002_v37  ;;  %v161_v40 = vld [vmem:[%s14509_s0 + $0x4c8] sm:$0xff]  ;;  %1147 = vadd.xlane.f32.xlu0 %v1146_v3  ;;  %v6091_v4 = vmul.f32 16.0, %v143_v28  ;;  %v6116_v3 = vmul.f32 16.0, %v135_v47 }
  0x6a   :  { %15552 = vst [vmem:[#allocation102_spill] sm:$0xff] %v6002_v37  ;;  %v173_v28 = vld [vmem:[%s14509_s0 + $0x528] sm:$0xff] }
  0x6b   :  { %15553 = vst [vmem:[#allocation103_spill] sm:$0xff] %v6011_v24  ;;  %v6073_v24 = vmul.f32 16.0, %v168_v33  ;;  %v162_v33 = vld [vmem:[%s14509_s0 + $0x4d0] sm:$0xff]  ;;  %v1191_v37 = vadd.f32 %v1190_v18, %v6040_v59 }
  0x6c   :  { %15554 = vst [vmem:[#allocation104_spill] sm:$0xff] %v6020_v52  ;;  %v1168_v52 = vadd.f32 %v1167_v23, %v6031_v26  ;;  %v6100_v23 = vmul.f32 16.0, %v171_v56  ;;  %v163_v56 = vld [vmem:[%s14509_s0 + $0x4d8] sm:$0xff]  ;;  %v6122_v18 = vmul.f32 16.0, %v162_v33  ;;  %v6146_v33 = vmul.f32 16.0, %v174_v14 }
  0x6d   :  { %15555 = vst [vmem:[#allocation105_spill] sm:$0xff] %v6022_v54  ;;  %v1179_v54 = vadd.f32 %v1178_v22, %v6025_v45  ;;  %v6095_v22 = vmul.f32 16.0, %v134_v53  ;;  %v1212_v53 = vadd.f32 %v6075_v49, %v6073_v24  ;;  %1192 = vadd.xlane.f32.xlu2 %v1191_v37  ;;  %v154_v37 = vld [vmem:[%s14509_s0 + $0x490] sm:$0xff]  ;;  %v155_v14 = vld [vmem:[%s14509_s0 + $0x498] sm:$0xff] }
  0x6e   :  { %15556 = vst [vmem:[#allocation106_spill] sm:$0xff] %v6025_v45  ;;  %v1169_v45 = vadd.f32 %v1168_v52, %v6060_v17  ;;  %v6120_v52 = vmul.f32 16.0, %v161_v40  ;;  %v153_v40 = vld [vmem:[%s14509_s0 + $0x488] sm:$0xff] }
  0x6f   :  { %15557 = vst [vmem:[#allocation107_spill] sm:$0xff] %v6031_v26  ;;  %v1180_v26 = vadd.f32 %v1179_v54, %v6045_v39  ;;  %v6118_v54 = vmul.f32 16.0, %v160_v10  ;;  %v1213_v47 = vadd.f32 %v1212_v53, %v6080_v1  ;;  %v164_v10 = vld [vmem:[%s14509_s0 + $0x4e0] sm:$0xff]  ;;  %v6151_v53 = vmul.f32 16.0, %v163_v56 }
  0x70   :  { %15558 = vst [vmem:[#allocation108_spill] sm:$0xff] %v6040_v59  ;;  %v152_v59 = vld [vmem:[%s14509_s0 + $0x480] sm:$0xff]  ;;  %v6166_v56 = vmul.f32 16.0, %v164_v10 }
  0x71   :  { %15559 = vst [vmem:[#allocation109_spill] sm:$0xff] %v6045_v39  ;;  %v1214_v39 = vadd.f32 %v1213_v47, %v6100_v23  ;;  %v6164_v2 = vmul.f32 16.0, %v152_v59  ;;  %v193_v47 = vld [vmem:[%s14509_s0 + $0x5c8] sm:$0xff] }
  0x72   :  { %15560 = vst [vmem:[#allocation110_spill] sm:$0xff] %v6047_v11 }
  0x73   :  { %15561 = vst [vmem:[#allocation111_spill] sm:$0xff] %v6060_v17  ;;  %v1181_v17 = vadd.f32 %v1180_v26, %v6047_v11  ;;  %v6144_v26 = vmul.f32 16.0, %v173_v28  ;;  %v166_v28 = vld [vmem:[%s14509_s0 + $0x4f0] sm:$0xff] }
  0x74   :  { %15562 = vst [vmem:[#allocation112_spill] sm:$0xff] %v6071_v60 }
  0x75   :  { %15563 = vst [vmem:[#allocation113_spill] sm:$0xff] %v6073_v24  ;;  %v6129_v24 = vmul.f32 16.0, %v172_v12  ;;  %v165_v12 = vld [vmem:[%s14509_s0 + $0x4e8] sm:$0xff] }
  0x76   :  { %15564 = vst [vmem:[#allocation114_spill] sm:$0xff] %v6075_v49  ;;  %v1170_v49 = vadd.f32 %v1169_v45, %v6071_v60  ;;  %v175_v45 = vld [vmem:[%s14509_s0 + $0x538] sm:$0xff]  ;;  %v1182_v60 = vadd.f32 %v1181_v17, %v6091_v4  ;;  %v6171_v17 = vmul.f32 16.0, %v154_v37  ;;  %v194_v37 = vld [vmem:[%s14509_s0 + $0x5d0] sm:$0xff] }
  0x77   :  { %15565 = vst [vmem:[#allocation115_spill] sm:$0xff] %v6080_v1  ;;  %v1203_v1 = vadd.f32 %v6120_v52, %v6118_v54  ;;  %v1215_v10 = vadd.f32 %v1214_v39, %v6129_v24  ;;  %v157_v39 = vld [vmem:[%s14509_s0 + $0x4a8] sm:$0xff] }
  0x78   :  { %15566 = vst [vmem:[#allocation116_spill] sm:$0xff] %v6091_v4  ;;  %v1171_v11 = vadd.f32 %v1170_v49, %v6093_v9  ;;  %v192_v49 = vld [vmem:[%s14509_s0 + $0x5c0] sm:$0xff]  ;;  %1183 = vadd.xlane.f32.xlu1 %v1182_v60  ;;  %v167_v60 = vld [vmem:[%s14509_s0 + $0x4f8] sm:$0xff] }
  0x79   :  { %15567 = vst [vmem:[#allocation117_spill] sm:$0xff] %v6093_v9  ;;  %v6214_v9 = vmul.f32 16.0, %v193_v47 }
  0x7a   :  { %15568 = vst [vmem:[#allocation118_spill] sm:$0xff] %v6095_v22  ;;  %v1172_v59 = vadd.f32 %v1171_v11, %v6095_v22 }
  0x7b   :  { %15569 = vst [vmem:[#allocation119_spill] sm:$0xff] %v6100_v23  ;;  %v6180_v23 = vmul.f32 16.0, %v175_v45  ;;  %v158_v45 = vld [vmem:[%s14509_s0 + $0x4b0] sm:$0xff] }
  0x7c   :  { %15570 = vst [vmem:[#allocation120_spill] sm:$0xff] %v6116_v3  ;;  %v1173_v22 = vadd.f32 %v1172_v59, %v6116_v3  ;;  %v196_v59 = vld [vmem:[%s14509_s0 + $0x5e0] sm:$0xff] }
  0x7d   :  { %15571 = vst [vmem:[#allocation121_spill] sm:$0xff] %v6118_v54  ;;  %v6169_v54 = vmul.f32 16.0, %v153_v40  ;;  %v156_v40 = vld [vmem:[%s14509_s0 + $0x4a0] sm:$0xff] }
  0x7e   :  { %15572 = vst [vmem:[#allocation122_spill] sm:$0xff] %v6120_v52  ;;  %v1204_v52 = vadd.f32 %v1203_v1, %v6122_v18  ;;  %v6183_v1 = vmul.f32 16.0, %v165_v12  ;;  %v6203_v12 = vmul.f32 16.0, %v155_v14  ;;  %v6217_v36 = vmul.f32 16.0, %v156_v40  ;;  %1174 = vadd.xlane.f32.xlu0 %v1173_v22 }
  0x7f   :  { %15573 = vst [vmem:[#allocation123_spill] sm:$0xff] %v6122_v18  ;;  %v6194_v18 = vmul.f32 16.0, %v166_v28  ;;  %v1216_v28 = vadd.f32 %v1215_v10, %v6144_v26  ;;  %v184_v10 = vld [vmem:[%s14509_s0 + $0x580] sm:$0xff]  ;;  %v6232_v40 = vmul.f32 16.0, %v167_v60  ;;  %v197_v60 = vld [vmem:[%s14509_s0 + $0x5e8] sm:$0xff] }
  0x80   :  { %15574 = vst [vmem:[#allocation124_spill] sm:$0xff] %v6129_v24  ;;  %v1205_v11 = vadd.f32 %v1204_v52, %v6151_v53  ;;  %v1194_v24 = vadd.f32 %v6169_v54, %v6164_v2  ;;  %v195_v52 = vld [vmem:[%s14509_s0 + $0x5d8] sm:$0xff] }
  0x81   :  { %15575 = vst [vmem:[#allocation125_spill] sm:$0xff] %v6144_v26  ;;  %v1217_v47 = vadd.f32 %v1216_v28, %v6146_v33  ;;  %v186_v26 = vld [vmem:[%s14509_s0 + $0x590] sm:$0xff] }
  0x82   :  { %15576 = vst [vmem:[#allocation126_spill] sm:$0xff] %v6146_v33  ;;  %v1206_v4 = vadd.f32 %v1205_v11, %v6166_v56  ;;  %v1195_v14 = vadd.f32 %v1194_v24, %v6171_v17  ;;  %v159_v24 = vld [vmem:[%s14509_s0 + $0x4b8] sm:$0xff]  ;;  %v6237_v11 = vmul.f32 16.0, %v157_v39  ;;  %v198_v28 = vld [vmem:[%s14509_s0 + $0x5f0] sm:$0xff]  ;;  %v6252_v39 = vmul.f32 16.0, %v195_v52 }
  0x83   :  { %15577 = vst [vmem:[#allocation127_spill] sm:$0xff] %v6151_v53  ;;  %v6212_v53 = vmul.f32 16.0, %v192_v49  ;;  %v185_v49 = vld [vmem:[%s14509_s0 + $0x588] sm:$0xff]  ;;  %v187_v33 = vld [vmem:[%s14509_s0 + $0x598] sm:$0xff] }
  0x84   :  { %15578 = vst [vmem:[#allocation128_spill] sm:$0xff] %v6164_v2  ;;  %v1196_v22 = vadd.f32 %v1195_v14, %v6203_v12  ;;  %v199_v14 = vld [vmem:[%s14509_s0 + $0x5f8] sm:$0xff]  ;;  %v6265_v2 = vmul.f32 16.0, %v184_v10  ;;  %v178_v10 = vld [vmem:[%s14509_s0 + $0x550] sm:$0xff] }
  0x85   :  { %15579 = vst [vmem:[#allocation129_spill] sm:$0xff] %v6166_v56  ;;  %v6272_v56 = vmul.f32 16.0, %v186_v26  ;;  %v188_v26 = vld [vmem:[%s14509_s0 + $0x5a0] sm:$0xff] }
  0x86   :  { %15580 = vst [vmem:[#allocation130_spill] sm:$0xff] %v6169_v54  ;;  %v6223_v54 = vmul.f32 16.0, %v194_v37  ;;  %v6239_v37 = vmul.f32 16.0, %v158_v45  ;;  %v1239_v45 = vadd.f32 %v6214_v9, %v6212_v53 }
  0x87   :  { %15581 = vst [vmem:[#allocation131_spill] sm:$0xff] %v6171_v17  ;;  %v1207_v17 = vadd.f32 %v1206_v4, %v6183_v1  ;;  %v1218_v4 = vadd.f32 %v1217_v47, %v6180_v23  ;;  %v176_v47 = vld [vmem:[%s14509_s0 + $0x540] sm:$0xff] }
  0x88   :  { %15582 = vst [vmem:[#allocation132_spill] sm:$0xff] %v6180_v23 }
  0x89   :  { %15583 = vst [vmem:[#allocation133_spill] sm:$0xff] %v6183_v1  ;;  %v6267_v1 = vmul.f32 16.0, %v185_v49  ;;  %v1208_v52 = vadd.f32 %v1207_v17, %v6194_v18  ;;  %1219 = vadd.xlane.f32.xlu2 %v1218_v4  ;;  %v6283_v17 = vmul.f32 16.0, %v159_v24  ;;  %v6285_v49 = vmul.f32 16.0, %v197_v60  ;;  %v189_v24 = vld [vmem:[%s14509_s0 + $0x5a8] sm:$0xff]  ;;  %v190_v60 = vld [vmem:[%s14509_s0 + $0x5b0] sm:$0xff] }
  0x8a   :  { %15584 = vst [vmem:[#allocation134_spill] sm:$0xff] %v6194_v18  ;;  %v6308_v4 = vmul.f32 16.0, %v199_v14 }
  0x8b   :  { %15585 = vst [vmem:[#allocation135_spill] sm:$0xff] %v6203_v12  ;;  %v6263_v12 = vmul.f32 16.0, %v196_v59  ;;  %v177_v59 = vld [vmem:[%s14509_s0 + $0x548] sm:$0xff] }
  0x8c   :  { %15586 = vst [vmem:[#allocation136_spill] sm:$0xff] %v6212_v53  ;;  %v1240_v53 = vadd.f32 %v1239_v45, %v6223_v54  ;;  %v6292_v45 = vmul.f32 16.0, %v187_v33  ;;  %v179_v33 = vld [vmem:[%s14509_s0 + $0x558] sm:$0xff] }
  0x8d   :  { %15587 = vst [vmem:[#allocation137_spill] sm:$0xff] %v6214_v9  ;;  %v1197_v9 = vadd.f32 %v1196_v22, %v6217_v36  ;;  %v6287_v22 = vmul.f32 16.0, %v198_v28  ;;  %v1230_v28 = vadd.f32 %v6267_v1, %v6265_v2 }
  0x8e   :  { %15588 = vst [vmem:[#allocation138_spill] sm:$0xff] %v6217_v36  ;;  %v1241_v36 = vadd.f32 %v1240_v53, %v6252_v39  ;;  %v6312_v53 = vmul.f32 16.0, %v177_v59  ;;  %v217_v59 = vld [vmem:[%s14509_s0 + $0x688] sm:$0xff] }
  0x8f   :  { %15589 = vst [vmem:[#allocation139_spill] sm:$0xff] %v6223_v54  ;;  %v1209_v54 = vadd.f32 %v1208_v52, %v6232_v40  ;;  %v1198_v23 = vadd.f32 %v1197_v9, %v6237_v11  ;;  %v6310_v9 = vmul.f32 16.0, %v176_v47  ;;  %v6314_v52 = vmul.f32 16.0, %v178_v10  ;;  %v180_v47 = vld [vmem:[%s14509_s0 + $0x560] sm:$0xff] }
  0x90   :  { %15590 = vst [vmem:[#allocation140_spill] sm:$0xff] %v6232_v40  ;;  %v1231_v14 = vadd.f32 %v1230_v28, %v6272_v56  ;;  %v6338_v10 = vmul.f32 16.0, %v190_v60  ;;  %v6343_v28 = vmul.f32 16.0, %v179_v33  ;;  %v219_v60 = vld [vmem:[%s14509_s0 + $0x698] sm:$0xff]  ;;  %v6358_v33 = vmul.f32 16.0, %v180_v47 }
  0x91   :  { %15591 = vst [vmem:[#allocation141_spill] sm:$0xff] %v6237_v11  ;;  %1210 = vadd.xlane.f32.xlu1 %v1209_v54  ;;  %v1199_v11 = vadd.f32 %v1198_v23, %v6239_v37  ;;  %v218_v54 = vld [vmem:[%s14509_s0 + $0x690] sm:$0xff]  ;;  %v6336_v23 = vmul.f32 16.0, %v189_v24 }
  0x92   :  { %15592 = vst [vmem:[#allocation142_spill] sm:$0xff] %v6239_v37  ;;  %v1232_v40 = vadd.f32 %v1231_v14, %v6292_v45  ;;  %v182_v24 = vld [vmem:[%s14509_s0 + $0x570] sm:$0xff]  ;;  %v209_v14 = vld [vmem:[%s14509_s0 + $0x648] sm:$0xff] }
  0x93   :  { %15593 = vst [vmem:[#allocation143_spill] sm:$0xff] %v6252_v39  ;;  %v216_v39 = vld [vmem:[%s14509_s0 + $0x680] sm:$0xff] }
  0x94   :  { %15594 = vst [vmem:[#allocation144_spill] sm:$0xff] %v6263_v12  ;;  %v6356_v18 = vmul.f32 16.0, %v216_v39 }
  0x95   :  { %15595 = vst [vmem:[#allocation145_spill] sm:$0xff] %v6265_v2  ;;  %v6321_v2 = vmul.f32 16.0, %v188_v26  ;;  %v181_v26 = vld [vmem:[%s14509_s0 + $0x568] sm:$0xff] }
  0x96   :  { %15596 = vst [vmem:[#allocation146_spill] sm:$0xff] %v6267_v1  ;;  %v1242_v1 = vadd.f32 %v1241_v36, %v6263_v12  ;;  %v191_v36 = vld [vmem:[%s14509_s0 + $0x5b8] sm:$0xff]  ;;  %v1221_v12 = vadd.f32 %v6312_v53, %v6310_v9 }
  0x97   :  { %15597 = vst [vmem:[#allocation147_spill] sm:$0xff] %v6272_v56  ;;  %v1200_v56 = vadd.f32 %v1199_v11, %v6283_v17  ;;  %v6363_v11 = vmul.f32 16.0, %v218_v54  ;;  %v1233_v47 = vadd.f32 %v1232_v40, %v6321_v2  ;;  %v210_v54 = vld [vmem:[%s14509_s0 + $0x650] sm:$0xff]  ;;  %v221_v40 = vld [vmem:[%s14509_s0 + $0x6a8] sm:$0xff] }
  0x98   :  { %15598 = vst [vmem:[#allocation148_spill] sm:$0xff] %v6283_v17  ;;  %v1243_v37 = vadd.f32 %v1242_v1, %v6285_v49  ;;  %v208_v1 = vld [vmem:[%s14509_s0 + $0x640] sm:$0xff] }
  0x99   :  { %15599 = vst [vmem:[#allocation149_spill] sm:$0xff] %v6285_v49  ;;  %1201 = vadd.xlane.f32.xlu0 %v1200_v56  ;;  %v6372_v49 = vmul.f32 16.0, %v191_v36  ;;  %v183_v56 = vld [vmem:[%s14509_s0 + $0x578] sm:$0xff]  ;;  %v222_v36 = vld [vmem:[%s14509_s0 + $0x6b0] sm:$0xff] }
  0x9a   :  { %15600 = vst [vmem:[#allocation150_spill] sm:$0xff] %v6287_v22  ;;  %v1244_v39 = vadd.f32 %v1243_v37, %v6287_v22 }
  0x9b   :  { %15601 = vst [vmem:[#allocation151_spill] sm:$0xff] %v6292_v45  ;;  %v6406_v45 = vmul.f32 16.0, %v209_v14 }
  0x9c   :  { %15602 = vst [vmem:[#allocation152_spill] sm:$0xff] %v6308_v4 }
  0x9d   :  { %15603 = vst [vmem:[#allocation153_spill] sm:$0xff] %v6310_v9  ;;  %v6361_v9 = vmul.f32 16.0, %v217_v59  ;;  %v220_v59 = vld [vmem:[%s14509_s0 + $0x6a0] sm:$0xff] }
  0x9e   :  { %15604 = vst [vmem:[#allocation154_spill] sm:$0xff] %v6312_v53  ;;  %v1222_v53 = vadd.f32 %v1221_v12, %v6314_v52  ;;  %v6375_v12 = vmul.f32 16.0, %v181_v26  ;;  %v6395_v26 = vmul.f32 16.0, %v219_v60  ;;  %v6409_v3 = vmul.f32 16.0, %v220_v59 }
  0x9f   :  { %15605 = vst [vmem:[#allocation155_spill] sm:$0xff] %v6314_v52  ;;  %v6386_v52 = vmul.f32 16.0, %v182_v24  ;;  %v1266_v22 = vadd.f32 %v6361_v9, %v6356_v18  ;;  %v1234_v24 = vadd.f32 %v1233_v47, %v6336_v23  ;;  %v200_v47 = vld [vmem:[%s14509_s0 + $0x600] sm:$0xff]  ;;  %v6424_v59 = vmul.f32 16.0, %v183_v56  ;;  %v213_v56 = vld [vmem:[%s14509_s0 + $0x668] sm:$0xff] }
  0xa0   :  { %15606 = vst [vmem:[#allocation156_spill] sm:$0xff] %v6321_v2  ;;  %v1223_v37 = vadd.f32 %v1222_v53, %v6343_v28  ;;  %v1245_v2 = vadd.f32 %v1244_v39, %v6308_v4  ;;  %v211_v53 = vld [vmem:[%s14509_s0 + $0x658] sm:$0xff]  ;;  %v212_v39 = vld [vmem:[%s14509_s0 + $0x660] sm:$0xff] }
  0xa1   :  { %15607 = vst [vmem:[#allocation157_spill] sm:$0xff] %v6336_v23  ;;  %v1267_v60 = vadd.f32 %v1266_v22, %v6363_v11  ;;  %v1235_v14 = vadd.f32 %v1234_v24, %v6338_v10  ;;  %v223_v22 = vld [vmem:[%s14509_s0 + $0x6b8] sm:$0xff]  ;;  %v214_v24 = vld [vmem:[%s14509_s0 + $0x670] sm:$0xff] }
  0xa2   :  { %15608 = vst [vmem:[#allocation158_spill] sm:$0xff] %v6338_v10  ;;  %v1224_v17 = vadd.f32 %v1223_v37, %v6358_v33  ;;  %1246 = vadd.xlane.f32.xlu2 %v1245_v2  ;;  %v6429_v37 = vmul.f32 16.0, %v221_v40  ;;  %v6444_v40 = vmul.f32 16.0, %v211_v53  ;;  %v203_v4 = vld [vmem:[%s14509_s0 + $0x618] sm:$0xff] }
  0xa3   :  { %15609 = vst [vmem:[#allocation159_spill] sm:$0xff] %v6343_v28  ;;  %v6404_v28 = vmul.f32 16.0, %v208_v1  ;;  %v201_v1 = vld [vmem:[%s14509_s0 + $0x608] sm:$0xff]  ;;  %v1268_v2 = vadd.f32 %v1267_v60, %v6395_v26  ;;  %v215_v60 = vld [vmem:[%s14509_s0 + $0x678] sm:$0xff] }
  0xa4   :  { %15610 = vst [vmem:[#allocation160_spill] sm:$0xff] %v6356_v18  ;;  %v1225_v18 = vadd.f32 %v1224_v17, %v6375_v12  ;;  %v1236_v17 = vadd.f32 %v1235_v14, %v6372_v49  ;;  %v240_v14 = vld [vmem:[%s14509_s0 + $0x740] sm:$0xff] }
  0xa5   :  { %15611 = vst [vmem:[#allocation161_spill] sm:$0xff] %v6358_v33  ;;  %v6459_v33 = vmul.f32 16.0, %v201_v1  ;;  %v6477_v1 = vmul.f32 16.0, %v213_v56  ;;  %v206_v56 = vld [vmem:[%s14509_s0 + $0x630] sm:$0xff] }
  0xa6   :  { %15612 = vst [vmem:[#allocation162_spill] sm:$0xff] %v6361_v9  ;;  %v6415_v9 = vmul.f32 16.0, %v210_v54  ;;  %v6431_v54 = vmul.f32 16.0, %v222_v36  ;;  %v1257_v36 = vadd.f32 %v6406_v45, %v6404_v28  ;;  %v1226_v53 = vadd.f32 %v1225_v18, %v6386_v52  ;;  %1237 = vadd.xlane.f32.xlu1 %v1236_v17 }
  0xa7   :  { %15613 = vst [vmem:[#allocation163_spill] sm:$0xff] %v6363_v11  ;;  %v202_v11 = vld [vmem:[%s14509_s0 + $0x610] sm:$0xff]  ;;  %v6475_v18 = vmul.f32 16.0, %v223_v22  ;;  %v205_v22 = vld [vmem:[%s14509_s0 + $0x628] sm:$0xff]  ;;  %v6500_v17 = vmul.f32 16.0, %v215_v60 }
  0xa8   :  { %15614 = vst [vmem:[#allocation164_spill] sm:$0xff] %v6372_v49  ;;  %v6464_v10 = vmul.f32 16.0, %v202_v11  ;;  %v204_v11 = vld [vmem:[%s14509_s0 + $0x620] sm:$0xff] }
  0xa9   :  { %15615 = vst [vmem:[#allocation165_spill] sm:$0xff] %v6375_v12  ;;  %v6457_v12 = vmul.f32 16.0, %v200_v47  ;;  %v242_v47 = vld [vmem:[%s14509_s0 + $0x750] sm:$0xff] }
  0xaa   :  { %15616 = vst [vmem:[#allocation166_spill] sm:$0xff] %v6386_v52 }
  0xab   :  { %15617 = vst [vmem:[#allocation167_spill] sm:$0xff] %v6395_v26  ;;  %v6455_v26 = vmul.f32 16.0, %v212_v39  ;;  %v241_v39 = vld [vmem:[%s14509_s0 + $0x748] sm:$0xff] }
  0xac   :  { %15618 = vst [vmem:[#allocation168_spill] sm:$0xff] %v6404_v28  ;;  %v1258_v28 = vadd.f32 %v1257_v36, %v6415_v9  ;;  %v6484_v36 = vmul.f32 16.0, %v203_v4  ;;  %v243_v4 = vld [vmem:[%s14509_s0 + $0x758] sm:$0xff] }
  0xad   :  { %15619 = vst [vmem:[#allocation169_spill] sm:$0xff] %v6406_v45  ;;  %v1269_v45 = vadd.f32 %v1268_v2, %v6409_v3  ;;  %v6479_v2 = vmul.f32 16.0, %v214_v24  ;;  %v1248_v24 = vadd.f32 %v6459_v33, %v6457_v12 }
  0xae   :  { %15620 = vst [vmem:[#allocation170_spill] sm:$0xff] %v6409_v3  ;;  %v1227_v3 = vadd.f32 %v1226_v53, %v6424_v59  ;;  %v1259_v52 = vadd.f32 %v1258_v28, %v6444_v40  ;;  %v6504_v28 = vmul.f32 16.0, %v241_v39  ;;  %v6506_v53 = vmul.f32 16.0, %v242_v47  ;;  %v233_v39 = vld [vmem:[%s14509_s0 + $0x708] sm:$0xff] }
  0xaf   :  { %15621 = vst [vmem:[#allocation171_spill] sm:$0xff] %v6415_v9  ;;  %v1270_v9 = vadd.f32 %v1269_v45, %v6429_v37  ;;  %v6502_v45 = vmul.f32 16.0, %v240_v14  ;;  %v1249_v60 = vadd.f32 %v1248_v24, %v6464_v10  ;;  %v244_v14 = vld [vmem:[%s14509_s0 + $0x760] sm:$0xff]  ;;  %v6530_v47 = vmul.f32 16.0, %v206_v56  ;;  %v235_v56 = vld [vmem:[%s14509_s0 + $0x718] sm:$0xff] }
  0xb0   :  { %15622 = vst [vmem:[#allocation172_spill] sm:$0xff] %v6424_v59  ;;  %1228 = vadd.xlane.f32.xlu0 %v1227_v3  ;;  %v234_v3 = vld [vmem:[%s14509_s0 + $0x710] sm:$0xff]  ;;  %v6535_v24 = vmul.f32 16.0, %v243_v4  ;;  %v6550_v4 = vmul.f32 16.0, %v244_v14 }
  0xb1   :  { %15623 = vst [vmem:[#allocation173_spill] sm:$0xff] %v6429_v37  ;;  %v232_v37 = vld [vmem:[%s14509_s0 + $0x700] sm:$0xff]  ;;  %v1250_v59 = vadd.f32 %v1249_v60, %v6484_v36  ;;  %v225_v60 = vld [vmem:[%s14509_s0 + $0x6c8] sm:$0xff] }
  0xb2   :  { %15624 = vst [vmem:[#allocation174_spill] sm:$0xff] %v6431_v54  ;;  %v6548_v49 = vmul.f32 16.0, %v232_v37 }
  0xb3   :  { %15625 = vst [vmem:[#allocation175_spill] sm:$0xff] %v6444_v40  ;;  %v1271_v40 = vadd.f32 %v1270_v9, %v6431_v54  ;;  %v207_v9 = vld [vmem:[%s14509_s0 + $0x638] sm:$0xff]  ;;  %v1293_v54 = vadd.f32 %v6504_v28, %v6502_v45 }
  0xb4   :  { %15626 = vst [vmem:[#allocation176_spill] sm:$0xff] %v6455_v26 }
  0xb5   :  { %15627 = vst [vmem:[#allocation177_spill] sm:$0xff] %v6457_v12  ;;  %v6513_v12 = vmul.f32 16.0, %v204_v11  ;;  %v245_v11 = vld [vmem:[%s14509_s0 + $0x768] sm:$0xff] }
  0xb6   :  { %15628 = vst [vmem:[#allocation178_spill] sm:$0xff] %v6459_v33  ;;  %v1260_v33 = vadd.f32 %v1259_v52, %v6455_v26  ;;  %v6528_v52 = vmul.f32 16.0, %v205_v22  ;;  %v246_v22 = vld [vmem:[%s14509_s0 + $0x770] sm:$0xff] }
  0xb7   :  { %15629 = vst [vmem:[#allocation179_spill] sm:$0xff] %v6464_v10  ;;  %v1272_v10 = vadd.f32 %v1271_v40, %v6475_v18  ;;  %v6555_v40 = vmul.f32 16.0, %v234_v3  ;;  %v1251_v14 = vadd.f32 %v1250_v59, %v6513_v12  ;;  %v226_v3 = vld [vmem:[%s14509_s0 + $0x6d0] sm:$0xff]  ;;  %v237_v59 = vld [vmem:[%s14509_s0 + $0x728] sm:$0xff] }
  0xb8   :  { %15630 = vst [vmem:[#allocation180_spill] sm:$0xff] %v6475_v18  ;;  %v1261_v26 = vadd.f32 %v1260_v33, %v6477_v1  ;;  %v224_v33 = vld [vmem:[%s14509_s0 + $0x6c0] sm:$0xff]  ;;  %v6564_v18 = vmul.f32 16.0, %v207_v9  ;;  %v238_v9 = vld [vmem:[%s14509_s0 + $0x730] sm:$0xff] }
  0xb9   :  { %15631 = vst [vmem:[#allocation181_spill] sm:$0xff] %v6477_v1  ;;  %1273 = vadd.xlane.f32.xlu2 %v1272_v10  ;;  %v247_v10 = vld [vmem:[%s14509_s0 + $0x778] sm:$0xff] }
  0xba   :  { %15632 = vst [vmem:[#allocation182_spill] sm:$0xff] %v6479_v2  ;;  %v1262_v37 = vadd.f32 %v1261_v26, %v6479_v2  ;;  %v6598_v2 = vmul.f32 16.0, %v225_v60 }
  0xbb   :  { %15633 = vst [vmem:[#allocation183_spill] sm:$0xff] %v6484_v36 }
  0xbc   :  { %15634 = vst [vmem:[#allocation184_spill] sm:$0xff] %v6500_v17  ;;  %v1263_v36 = vadd.f32 %v1262_v37, %v6500_v17  ;;  %v228_v37 = vld [vmem:[%s14509_s0 + $0x6e0] sm:$0xff] }
  0xbd   :  { %15635 = vst [vmem:[#allocation185_spill] sm:$0xff] %v6502_v45  ;;  %v6553_v45 = vmul.f32 16.0, %v233_v39  ;;  %v236_v39 = vld [vmem:[%s14509_s0 + $0x720] sm:$0xff] }
  0xbe   :  { %15636 = vst [vmem:[#allocation186_spill] sm:$0xff] %v6504_v28  ;;  %v1294_v28 = vadd.f32 %v1293_v54, %v6506_v53  ;;  %v6567_v54 = vmul.f32 16.0, %v245_v11  ;;  %v6587_v11 = vmul.f32 16.0, %v235_v56  ;;  %v6601_v23 = vmul.f32 16.0, %v236_v39  ;;  %1264 = vadd.xlane.f32.xlu1 %v1263_v36  ;;  %v239_v36 = vld [vmem:[%s14509_s0 + $0x738] sm:$0xff] }
  0xbf   :  { %15637 = vst [vmem:[#allocation187_spill] sm:$0xff] %v6506_v53  ;;  %v6578_v53 = vmul.f32 16.0, %v246_v22  ;;  %v1252_v22 = vadd.f32 %v1251_v14, %v6528_v52  ;;  %v264_v14 = vld [vmem:[%s14509_s0 + $0x800] sm:$0xff]  ;;  %v6616_v39 = vmul.f32 16.0, %v247_v10 }
  0xc0   :  { %15638 = vst [vmem:[#allocation188_spill] sm:$0xff] %v6513_v12  ;;  %v1295_v26 = vadd.f32 %v1294_v28, %v6535_v24  ;;  %v1284_v12 = vadd.f32 %v6553_v45, %v6548_v49  ;;  %v227_v28 = vld [vmem:[%s14509_s0 + $0x6d8] sm:$0xff] }
  0xc1   :  { %15639 = vst [vmem:[#allocation189_spill] sm:$0xff] %v6528_v52  ;;  %v1253_v60 = vadd.f32 %v1252_v22, %v6530_v47 }
  0xc2   :  { %15640 = vst [vmem:[#allocation190_spill] sm:$0xff] %v6530_v47  ;;  %v1296_v1 = vadd.f32 %v1295_v26, %v6550_v4  ;;  %v1285_v56 = vadd.f32 %v1284_v12, %v6555_v40  ;;  %v6618_v12 = vmul.f32 16.0, %v237_v59  ;;  %v6620_v26 = vmul.f32 16.0, %v238_v9  ;;  %v230_v59 = vld [vmem:[%s14509_s0 + $0x6f0] sm:$0xff] }
  0xc3   :  { %15641 = vst [vmem:[#allocation191_spill] sm:$0xff] %v6535_v24  ;;  %v6596_v24 = vmul.f32 16.0, %v224_v33  ;;  %v265_v33 = vld [vmem:[%s14509_s0 + $0x808] sm:$0xff]  ;;  %v6636_v9 = vmul.f32 16.0, %v227_v28 }
  0xc4   :  { %15642 = vst [vmem:[#allocation192_spill] sm:$0xff] %v6548_v49  ;;  %v1286_v10 = vadd.f32 %v1285_v56, %v6587_v11  ;;  %v267_v49 = vld [vmem:[%s14509_s0 + $0x818] sm:$0xff]  ;;  %v6647_v56 = vmul.f32 16.0, %v228_v37  ;;  %v6651_v47 = vmul.f32 16.0, %v265_v33  ;;  %v257_v37 = vld [vmem:[%s14509_s0 + $0x7c8] sm:$0xff] }
  0xc5   :  { %15643 = vst [vmem:[#allocation193_spill] sm:$0xff] %v6550_v4  ;;  %v266_v4 = vld [vmem:[%s14509_s0 + $0x810] sm:$0xff]  ;;  %v1275_v22 = vadd.f32 %v6598_v2, %v6596_v24 }
  0xc6   :  { %15644 = vst [vmem:[#allocation194_spill] sm:$0xff] %v6553_v45  ;;  %v6607_v45 = vmul.f32 16.0, %v226_v3  ;;  %v229_v3 = vld [vmem:[%s14509_s0 + $0x6e8] sm:$0xff]  ;;  %v6656_v52 = vmul.f32 16.0, %v266_v4  ;;  %v268_v4 = vld [vmem:[%s14509_s0 + $0x820] sm:$0xff] }
  0xc7   :  { %15645 = vst [vmem:[#allocation195_spill] sm:$0xff] %v6555_v40  ;;  %v1297_v40 = vadd.f32 %v1296_v1, %v6567_v54  ;;  %v1254_v1 = vadd.f32 %v1253_v60, %v6564_v18  ;;  %v256_v60 = vld [vmem:[%s14509_s0 + $0x7c0] sm:$0xff]  ;;  %v6669_v33 = vmul.f32 16.0, %v229_v3  ;;  %v270_v3 = vld [vmem:[%s14509_s0 + $0x830] sm:$0xff] }
  0xc8   :  { %15646 = vst [vmem:[#allocation196_spill] sm:$0xff] %v6564_v18 }
  0xc9   :  { %15647 = vst [vmem:[#allocation197_spill] sm:$0xff] %v6567_v54  ;;  %v231_v54 = vld [vmem:[%s14509_s0 + $0x6f8] sm:$0xff]  ;;  %v1298_v28 = vadd.f32 %v1297_v40, %v6578_v53  ;;  %1255 = vadd.xlane.f32.xlu0 %v1254_v1  ;;  %v6667_v40 = vmul.f32 16.0, %v239_v36  ;;  %v269_v36 = vld [vmem:[%s14509_s0 + $0x828] sm:$0xff] }
  0xca   :  { %15648 = vst [vmem:[#allocation198_spill] sm:$0xff] %v6578_v53  ;;  %v6692_v1 = vmul.f32 16.0, %v231_v54 }
  0xcb   :  { %15649 = vst [vmem:[#allocation199_spill] sm:$0xff] %v6587_v11  ;;  %v6649_v11 = vmul.f32 16.0, %v264_v14  ;;  %v258_v14 = vld [vmem:[%s14509_s0 + $0x7d0] sm:$0xff]  ;;  %v1299_v53 = vadd.f32 %v1298_v28, %v6616_v39 }
  0xcc   :  { %15650 = vst [vmem:[#allocation200_spill] sm:$0xff] %v6596_v24  ;;  %v1276_v24 = vadd.f32 %v1275_v22, %v6607_v45  ;;  %v6676_v22 = vmul.f32 16.0, %v267_v49  ;;  %v259_v49 = vld [vmem:[%s14509_s0 + $0x7d8] sm:$0xff]  ;;  %v6698_v28 = vmul.f32 16.0, %v258_v14  ;;  %v6722_v14 = vmul.f32 16.0, %v270_v3 }
  0xcd   :  { %15651 = vst [vmem:[#allocation201_spill] sm:$0xff] %v6598_v2  ;;  %v1287_v2 = vadd.f32 %v1286_v10, %v6601_v23  ;;  %v6671_v10 = vmul.f32 16.0, %v230_v59  ;;  %v1320_v59 = vadd.f32 %v6651_v47, %v6649_v11  ;;  %1300 = vadd.xlane.f32.xlu2 %v1299_v53  ;;  %v250_v53 = vld [vmem:[%s14509_s0 + $0x790] sm:$0xff]  ;;  %v251_v3 = vld [vmem:[%s14509_s0 + $0x798] sm:$0xff] }
  0xce   :  { %15652 = vst [vmem:[#allocation202_spill] sm:$0xff] %v6601_v23  ;;  %v1277_v23 = vadd.f32 %v1276_v24, %v6636_v9  ;;  %v6696_v24 = vmul.f32 16.0, %v257_v37  ;;  %v249_v37 = vld [vmem:[%s14509_s0 + $0x788] sm:$0xff] }
  0xcf   :  { %15653 = vst [vmem:[#allocation203_spill] sm:$0xff] %v6607_v45  ;;  %v1288_v45 = vadd.f32 %v1287_v2, %v6618_v12  ;;  %v6694_v2 = vmul.f32 16.0, %v256_v60  ;;  %v1321_v54 = vadd.f32 %v1320_v59, %v6656_v52  ;;  %v260_v60 = vld [vmem:[%s14509_s0 + $0x7e0] sm:$0xff]  ;;  %v6727_v59 = vmul.f32 16.0, %v259_v49 }
  0xd0   :  { %15654 = vst [vmem:[#allocation204_spill] sm:$0xff] %v6616_v39  ;;  %v248_v39 = vld [vmem:[%s14509_s0 + $0x780] sm:$0xff]  ;;  %v6742_v49 = vmul.f32 16.0, %v260_v60 }
  0xd1   :  { %15655 = vst [vmem:[#allocation205_spill] sm:$0xff] %v6618_v12  ;;  %v1322_v12 = vadd.f32 %v1321_v54, %v6676_v22  ;;  %v6740_v18 = vmul.f32 16.0, %v248_v39  ;;  %v289_v54 = vld [vmem:[%s14509_s0 + $0x8c8] sm:$0xff] }
  0xd2   :  { %15656 = vst [vmem:[#allocation206_spill] sm:$0xff] %v6620_v26 }
  0xd3   :  { %15657 = vst [vmem:[#allocation207_spill] sm:$0xff] %v6636_v9  ;;  %v1289_v9 = vadd.f32 %v1288_v45, %v6620_v26  ;;  %v6720_v45 = vmul.f32 16.0, %v269_v36  ;;  %v262_v36 = vld [vmem:[%s14509_s0 + $0x7f0] sm:$0xff] }
  0xd4   :  { %15658 = vst [vmem:[#allocation208_spill] sm:$0xff] %v6647_v56 }
  0xd5   :  { %15659 = vst [vmem:[#allocation209_spill] sm:$0xff] %v6649_v11  ;;  %v6705_v11 = vmul.f32 16.0, %v268_v4  ;;  %v261_v4 = vld [vmem:[%s14509_s0 + $0x7e8] sm:$0xff] }
  0xd6   :  { %15660 = vst [vmem:[#allocation210_spill] sm:$0xff] %v6651_v47  ;;  %v1278_v47 = vadd.f32 %v1277_v23, %v6647_v56  ;;  %v271_v23 = vld [vmem:[%s14509_s0 + $0x838] sm:$0xff]  ;;  %v1290_v56 = vadd.f32 %v1289_v9, %v6667_v40  ;;  %v6747_v9 = vmul.f32 16.0, %v250_v53  ;;  %v290_v53 = vld [vmem:[%s14509_s0 + $0x8d0] sm:$0xff] }
  0xd7   :  { %15661 = vst [vmem:[#allocation211_spill] sm:$0xff] %v6656_v52  ;;  %v1311_v52 = vadd.f32 %v6696_v24, %v6694_v2  ;;  %v1323_v60 = vadd.f32 %v1322_v12, %v6705_v11  ;;  %v253_v12 = vld [vmem:[%s14509_s0 + $0x7a8] sm:$0xff] }
  0xd8   :  { %15662 = vst [vmem:[#allocation212_spill] sm:$0xff] %v6667_v40  ;;  %v1279_v26 = vadd.f32 %v1278_v47, %v6669_v33  ;;  %v288_v47 = vld [vmem:[%s14509_s0 + $0x8c0] sm:$0xff]  ;;  %1291 = vadd.xlane.f32.xlu1 %v1290_v56  ;;  %v263_v56 = vld [vmem:[%s14509_s0 + $0x7f8] sm:$0xff] }
  0xd9   :  { %15663 = vst [vmem:[#allocation213_spill] sm:$0xff] %v6669_v33  ;;  %v6790_v33 = vmul.f32 16.0, %v289_v54 }
  0xda   :  { %15664 = vst [vmem:[#allocation214_spill] sm:$0xff] %v6671_v10  ;;  %v1280_v39 = vadd.f32 %v1279_v26, %v6671_v10 }
  0xdb   :  { %15665 = vst [vmem:[#allocation215_spill] sm:$0xff] %v6676_v22  ;;  %v6756_v22 = vmul.f32 16.0, %v271_v23  ;;  %v254_v23 = vld [vmem:[%s14509_s0 + $0x7b0] sm:$0xff] }
  0xdc   :  { %15666 = vst [vmem:[#allocation216_spill] sm:$0xff] %v6692_v1  ;;  %v1281_v10 = vadd.f32 %v1280_v39, %v6692_v1  ;;  %v292_v39 = vld [vmem:[%s14509_s0 + $0x8e0] sm:$0xff] }
  0xdd   :  { %15667 = vst [vmem:[#allocation217_spill] sm:$0xff] %v6694_v2  ;;  %v6745_v2 = vmul.f32 16.0, %v249_v37  ;;  %v252_v37 = vld [vmem:[%s14509_s0 + $0x7a0] sm:$0xff] }
  0xde   :  { %15668 = vst [vmem:[#allocation218_spill] sm:$0xff] %v6696_v24  ;;  %v1312_v24 = vadd.f32 %v1311_v52, %v6698_v28  ;;  %v6759_v52 = vmul.f32 16.0, %v261_v4  ;;  %v6779_v4 = vmul.f32 16.0, %v251_v3  ;;  %v6793_v17 = vmul.f32 16.0, %v252_v37  ;;  %1282 = vadd.xlane.f32.xlu0 %v1281_v10 }
  0xdf   :  { %15669 = vst [vmem:[#allocation219_spill] sm:$0xff] %v6698_v28  ;;  %v6770_v28 = vmul.f32 16.0, %v262_v36  ;;  %v1324_v36 = vadd.f32 %v1323_v60, %v6720_v45  ;;  %v280_v60 = vld [vmem:[%s14509_s0 + $0x880] sm:$0xff]  ;;  %v6808_v37 = vmul.f32 16.0, %v263_v56  ;;  %v293_v56 = vld [vmem:[%s14509_s0 + $0x8e8] sm:$0xff] }
  0xe0   :  { %15670 = vst [vmem:[#allocation220_spill] sm:$0xff] %v6705_v11  ;;  %v1313_v26 = vadd.f32 %v1312_v24, %v6727_v59  ;;  %v1302_v11 = vadd.f32 %v6745_v2, %v6740_v18  ;;  %v291_v24 = vld [vmem:[%s14509_s0 + $0x8d8] sm:$0xff] }
  0xe1   :  { %15671 = vst [vmem:[#allocation221_spill] sm:$0xff] %v6720_v45  ;;  %v1325_v54 = vadd.f32 %v1324_v36, %v6722_v14  ;;  %v282_v45 = vld [vmem:[%s14509_s0 + $0x890] sm:$0xff] }
  0xe2   :  { %15672 = vst [vmem:[#allocation222_spill] sm:$0xff] %v6722_v14  ;;  %v1314_v40 = vadd.f32 %v1313_v26, %v6742_v49  ;;  %v1303_v3 = vadd.f32 %v1302_v11, %v6747_v9  ;;  %v255_v11 = vld [vmem:[%s14509_s0 + $0x7b8] sm:$0xff]  ;;  %v6813_v26 = vmul.f32 16.0, %v253_v12  ;;  %v294_v36 = vld [vmem:[%s14509_s0 + $0x8f0] sm:$0xff]  ;;  %v6828_v12 = vmul.f32 16.0, %v291_v24  ;;  %v272_v24 = vld [vmem:[%s14509_s0 + $0x840] sm:$0xff] }
  0xe3   :  { %15673 = vst [vmem:[#allocation223_spill] sm:$0xff] %v6727_v59  ;;  %v6788_v59 = vmul.f32 16.0, %v288_v47  ;;  %v281_v47 = vld [vmem:[%s14509_s0 + $0x888] sm:$0xff]  ;;  %v283_v14 = vld [vmem:[%s14509_s0 + $0x898] sm:$0xff] }
  0xe4   :  { %15674 = vst [vmem:[#allocation224_spill] sm:$0xff] %v6740_v18  ;;  %v1304_v10 = vadd.f32 %v1303_v3, %v6779_v4  ;;  %v6836_v3 = vmul.f32 16.0, %v292_v39  ;;  %v6840_v18 = vmul.f32 16.0, %v281_v47  ;;  %v6851_v39 = vmul.f32 16.0, %v282_v45  ;;  %v274_v47 = vld [vmem:[%s14509_s0 + $0x850] sm:$0xff]  ;;  %v284_v45 = vld [vmem:[%s14509_s0 + $0x8a0] sm:$0xff] }
  0xe5   :  { %15675 = vst [vmem:[#allocation225_spill] sm:$0xff] %v6742_v49 }
  0xe6   :  { %15676 = vst [vmem:[#allocation226_spill] sm:$0xff] %v6745_v2  ;;  %v6799_v2 = vmul.f32 16.0, %v290_v53  ;;  %v6815_v53 = vmul.f32 16.0, %v254_v23  ;;  %v1347_v23 = vadd.f32 %v6790_v33, %v6788_v59 }
  0xe7   :  { %15677 = vst [vmem:[#allocation227_spill] sm:$0xff] %v6747_v9  ;;  %v1315_v9 = vadd.f32 %v1314_v40, %v6759_v52  ;;  %v1326_v40 = vadd.f32 %v1325_v54, %v6756_v22 }
  0xe8   :  { %15678 = vst [vmem:[#allocation228_spill] sm:$0xff] %v6756_v22  ;;  %v1348_v54 = vadd.f32 %v1347_v23, %v6799_v2  ;;  %v6863_v22 = vmul.f32 16.0, %v294_v36  ;;  %v6868_v23 = vmul.f32 16.0, %v283_v14  ;;  %v275_v14 = vld [vmem:[%s14509_s0 + $0x858] sm:$0xff] }
  0xe9   :  { %15679 = vst [vmem:[#allocation229_spill] sm:$0xff] %v6759_v52  ;;  %v1316_v52 = vadd.f32 %v1315_v9, %v6770_v28  ;;  %1327 = vadd.xlane.f32.xlu2 %v1326_v40  ;;  %v6859_v9 = vmul.f32 16.0, %v255_v11  ;;  %v285_v11 = vld [vmem:[%s14509_s0 + $0x8a8] sm:$0xff] }
  0xea   :  { %15680 = vst [vmem:[#allocation230_spill] sm:$0xff] %v6770_v28  ;;  %v1349_v28 = vadd.f32 %v1348_v54, %v6828_v12  ;;  %v6890_v54 = vmul.f32 16.0, %v274_v47 }
  0xeb   :  { %15681 = vst [vmem:[#allocation231_spill] sm:$0xff] %v6779_v4  ;;  %v6838_v4 = vmul.f32 16.0, %v280_v60  ;;  %v273_v60 = vld [vmem:[%s14509_s0 + $0x848] sm:$0xff] }
  0xec   :  { %15682 = vst [vmem:[#allocation232_spill] sm:$0xff] %v6788_v59  ;;  %v295_v59 = vld [vmem:[%s14509_s0 + $0x8f8] sm:$0xff]  ;;  %v6888_v40 = vmul.f32 16.0, %v273_v60  ;;  %v313_v60 = vld [vmem:[%s14509_s0 + $0x988] sm:$0xff] }
  0xed   :  { %15683 = vst [vmem:[#allocation233_spill] sm:$0xff] %v6790_v33  ;;  %v1305_v33 = vadd.f32 %v1304_v10, %v6793_v17  ;;  %v6861_v10 = vmul.f32 16.0, %v293_v56  ;;  %v286_v56 = vld [vmem:[%s14509_s0 + $0x8b0] sm:$0xff]  ;;  %v1338_v36 = vadd.f32 %v6840_v18, %v6838_v4 }
  0xee   :  { %15684 = vst [vmem:[#allocation234_spill] sm:$0xff] %v6793_v17  ;;  %v6914_v47 = vmul.f32 16.0, %v286_v56  ;;  %v315_v56 = vld [vmem:[%s14509_s0 + $0x998] sm:$0xff] }
  0xef   :  { %15685 = vst [vmem:[#allocation235_spill] sm:$0xff] %v6799_v2  ;;  %v1317_v2 = vadd.f32 %v1316_v52, %v6808_v37  ;;  %v1306_v17 = vadd.f32 %v1305_v33, %v6813_v26  ;;  %v6884_v52 = vmul.f32 16.0, %v295_v59  ;;  %v6886_v33 = vmul.f32 16.0, %v272_v24  ;;  %v276_v24 = vld [vmem:[%s14509_s0 + $0x860] sm:$0xff] }
  0xf0   :  { %15686 = vst [vmem:[#allocation236_spill] sm:$0xff] %v6808_v37  ;;  %v1339_v59 = vadd.f32 %v1338_v36, %v6851_v39  ;;  %v6919_v36 = vmul.f32 16.0, %v275_v14  ;;  %v6934_v14 = vmul.f32 16.0, %v276_v24 }
  0xf1   :  { %15687 = vst [vmem:[#allocation237_spill] sm:$0xff] %v6813_v26  ;;  %1318 = vadd.xlane.f32.xlu1 %v1317_v2  ;;  %v1307_v26 = vadd.f32 %v1306_v17, %v6815_v53  ;;  %v314_v2 = vld [vmem:[%s14509_s0 + $0x990] sm:$0xff]  ;;  %v287_v17 = vld [vmem:[%s14509_s0 + $0x8b8] sm:$0xff] }
  0xf2   :  { %15688 = vst [vmem:[#allocation238_spill] sm:$0xff] %v6815_v53  ;;  %v1340_v37 = vadd.f32 %v1339_v59, %v6868_v23  ;;  %v305_v59 = vld [vmem:[%s14509_s0 + $0x948] sm:$0xff] }
  0xf3   :  { %15689 = vst [vmem:[#allocation239_spill] sm:$0xff] %v6828_v12  ;;  %v312_v12 = vld [vmem:[%s14509_s0 + $0x980] sm:$0xff] }
  0xf4   :  { %15690 = vst [vmem:[#allocation240_spill] sm:$0xff] %v6836_v3  ;;  %v6932_v49 = vmul.f32 16.0, %v312_v12 }
  0xf5   :  { %15691 = vst [vmem:[#allocation241_spill] sm:$0xff] %v6838_v4  ;;  %v6897_v4 = vmul.f32 16.0, %v284_v45  ;;  %v277_v45 = vld [vmem:[%s14509_s0 + $0x868] sm:$0xff] }
  0xf6   :  { %15692 = vst [vmem:[#allocation242_spill] sm:$0xff] %v6840_v18  ;;  %v1350_v18 = vadd.f32 %v1349_v28, %v6836_v3  ;;  %v6912_v28 = vmul.f32 16.0, %v285_v11  ;;  %v1329_v3 = vadd.f32 %v6888_v40, %v6886_v33  ;;  %v278_v11 = vld [vmem:[%s14509_s0 + $0x870] sm:$0xff] }
  0xf7   :  { %15693 = vst [vmem:[#allocation243_spill] sm:$0xff] %v6851_v39  ;;  %v1308_v39 = vadd.f32 %v1307_v26, %v6859_v9  ;;  %v6939_v26 = vmul.f32 16.0, %v314_v2  ;;  %v1341_v24 = vadd.f32 %v1340_v37, %v6897_v4  ;;  %v306_v2 = vld [vmem:[%s14509_s0 + $0x950] sm:$0xff]  ;;  %v317_v37 = vld [vmem:[%s14509_s0 + $0x9a8] sm:$0xff] }
  0xf8   :  { %15694 = vst [vmem:[#allocation244_spill] sm:$0xff] %v6859_v9  ;;  %v1351_v53 = vadd.f32 %v1350_v18, %v6861_v10  ;;  %v304_v18 = vld [vmem:[%s14509_s0 + $0x940] sm:$0xff] }
  0xf9   :  { %15695 = vst [vmem:[#allocation245_spill] sm:$0xff] %v6861_v10  ;;  %1309 = vadd.xlane.f32.xlu0 %v1308_v39  ;;  %v6948_v10 = vmul.f32 16.0, %v287_v17  ;;  %v279_v39 = vld [vmem:[%s14509_s0 + $0x878] sm:$0xff]  ;;  %v318_v17 = vld [vmem:[%s14509_s0 + $0x9b0] sm:$0xff] }
  0xfa   :  { %15696 = vst [vmem:[#allocation246_spill] sm:$0xff] %v6863_v22  ;;  %v1352_v12 = vadd.f32 %v1351_v53, %v6863_v22 }
  0xfb   :  { %15697 = vst [vmem:[#allocation247_spill] sm:$0xff] %v6868_v23  ;;  %v6982_v23 = vmul.f32 16.0, %v305_v59 }
  0xfc   :  { %15698 = vst [vmem:[#allocation248_spill] sm:$0xff] %v6884_v52 }
  0xfd   :  { %15699 = vst [vmem:[#allocation249_spill] sm:$0xff] %v6886_v33  ;;  %v6937_v33 = vmul.f32 16.0, %v313_v60  ;;  %v316_v60 = vld [vmem:[%s14509_s0 + $0x9a0] sm:$0xff] }
  0xfe   :  { %15700 = vst [vmem:[#allocation250_spill] sm:$0xff] %v6888_v40  ;;  %v1330_v40 = vadd.f32 %v1329_v3, %v6890_v54  ;;  %v6951_v3 = vmul.f32 16.0, %v277_v45  ;;  %v6971_v45 = vmul.f32 16.0, %v315_v56  ;;  %v6985_v1 = vmul.f32 16.0, %v316_v60 }
  0xff   :  { %15701 = vst [vmem:[#allocation251_spill] sm:$0xff] %v6890_v54  ;;  %v6962_v54 = vmul.f32 16.0, %v278_v11  ;;  %v1374_v22 = vadd.f32 %v6937_v33, %v6932_v49  ;;  %v1342_v11 = vadd.f32 %v1341_v24, %v6912_v28  ;;  %v296_v24 = vld [vmem:[%s14509_s0 + $0x900] sm:$0xff]  ;;  %v7000_v60 = vmul.f32 16.0, %v279_v39 }
 0x100   :  { %15702 = vst [vmem:[#allocation252_spill] sm:$0xff] %v6897_v4  ;;  %v1331_v53 = vadd.f32 %v1330_v40, %v6919_v36  ;;  %v1353_v4 = vadd.f32 %v1352_v12, %v6884_v52  ;;  %v307_v40 = vld [vmem:[%s14509_s0 + $0x958] sm:$0xff]  ;;  %v308_v12 = vld [vmem:[%s14509_s0 + $0x960] sm:$0xff] }
 0x101   :  { %15703 = vst [vmem:[#allocation253_spill] sm:$0xff] %v6912_v28  ;;  %v1375_v56 = vadd.f32 %v1374_v22, %v6939_v26  ;;  %v1343_v59 = vadd.f32 %v1342_v11, %v6914_v47  ;;  %v7002_v22 = vmul.f32 16.0, %v317_v37  ;;  %v309_v37 = vld [vmem:[%s14509_s0 + $0x968] sm:$0xff]  ;;  %v7023_v11 = vmul.f32 16.0, %v307_v40 }
 0x102   :  { %15704 = vst [vmem:[#allocation254_spill] sm:$0xff] %v6914_v47  ;;  %v1332_v9 = vadd.f32 %v1331_v53, %v6934_v14  ;;  %1354 = vadd.xlane.f32.xlu2 %v1353_v4  ;;  %v7004_v53 = vmul.f32 16.0, %v318_v17  ;;  %v319_v4 = vld [vmem:[%s14509_s0 + $0x9b8] sm:$0xff]  ;;  %v310_v17 = vld [vmem:[%s14509_s0 + $0x970] sm:$0xff] }
 0x103   :  { %15705 = vst [vmem:[#allocation255_spill] sm:$0xff] %v6919_v36  ;;  %v6980_v36 = vmul.f32 16.0, %v304_v18  ;;  %v297_v18 = vld [vmem:[%s14509_s0 + $0x908] sm:$0xff]  ;;  %v1376_v39 = vadd.f32 %v1375_v56, %v6971_v45  ;;  %v7031_v56 = vmul.f32 16.0, %v308_v12 }
 0x104   :  { %15706 = vst [vmem:[#allocation256_spill] sm:$0xff] %v6932_v49  ;;  %v1333_v49 = vadd.f32 %v1332_v9, %v6951_v3  ;;  %v1344_v9 = vadd.f32 %v1343_v59, %v6948_v10  ;;  %v336_v59 = vld [vmem:[%s14509_s0 + $0xa40] sm:$0xff]  ;;  %v337_v12 = vld [vmem:[%s14509_s0 + $0xa48] sm:$0xff] }
 0x105   :  { %15707 = vst [vmem:[#allocation257_spill] sm:$0xff] %v6934_v14  ;;  %v1365_v52 = vadd.f32 %v6982_v23, %v6980_v36  ;;  %v7035_v14 = vmul.f32 16.0, %v297_v18  ;;  %v1377_v40 = vadd.f32 %v1376_v39, %v6985_v1  ;;  %v7053_v18 = vmul.f32 16.0, %v309_v37  ;;  %v302_v37 = vld [vmem:[%s14509_s0 + $0x930] sm:$0xff] }
 0x106   :  { %15708 = vst [vmem:[#allocation258_spill] sm:$0xff] %v6937_v33  ;;  %v6991_v33 = vmul.f32 16.0, %v306_v2  ;;  %v298_v2 = vld [vmem:[%s14509_s0 + $0x910] sm:$0xff]  ;;  %v1334_v47 = vadd.f32 %v1333_v49, %v6962_v54  ;;  %1345 = vadd.xlane.f32.xlu1 %v1344_v9  ;;  %v7051_v49 = vmul.f32 16.0, %v319_v4  ;;  %v301_v4 = vld [vmem:[%s14509_s0 + $0x928] sm:$0xff]  ;;  %v7078_v9 = vmul.f32 16.0, %v336_v59 }
 0x107   :  { %15709 = vst [vmem:[#allocation259_spill] sm:$0xff] %v6939_v26  ;;  %v299_v26 = vld [vmem:[%s14509_s0 + $0x918] sm:$0xff]  ;;  %v7040_v7 = vmul.f32 16.0, %v298_v2  ;;  %v300_v2 = vld [vmem:[%s14509_s0 + $0x920] sm:$0xff] }
 0x108   :  { %15710 = vst [vmem:[#allocation260_spill] sm:$0xff] %v6948_v10  ;;  %v1366_v28 = vadd.f32 %v1365_v52, %v6991_v33  ;;  %v7055_v52 = vmul.f32 16.0, %v310_v17  ;;  %v7060_v39 = vmul.f32 16.0, %v299_v26  ;;  %v339_v26 = vld [vmem:[%s14509_s0 + $0xa58] sm:$0xff]  ;;  %v340_v59 = vld [vmem:[%s14509_s0 + $0xa60] sm:$0xff] }
 0x109   :  { %15711 = vst [vmem:[#allocation261_spill] sm:$0xff] %v6951_v3  ;;  %v311_v3 = vld [vmem:[%s14509_s0 + $0x978] sm:$0xff] }
 0x10a   :  { %15712 = vst [vmem:[#allocation262_spill] sm:$0xff] %v6962_v54 }
 0x10b   :  { %15713 = vst [vmem:[#allocation263_spill] sm:$0xff] %v6971_v45  ;;  %v7033_v45 = vmul.f32 16.0, %v296_v24  ;;  %v338_v24 = vld [vmem:[%s14509_s0 + $0xa50] sm:$0xff] }
 0x10c   :  { %15714 = vst [vmem:[#allocation264_spill] sm:$0xff] %v6980_v36 }
 0x10d   :  { %15715 = vst [vmem:[#allocation265_spill] sm:$0xff] %v6982_v23  ;;  %v1367_v23 = vadd.f32 %v1366_v28, %v7023_v11  ;;  %v1356_v17 = vadd.f32 %v7035_v14, %v7033_v45  ;;  %v7080_v28 = vmul.f32 16.0, %v337_v12  ;;  %v329_v12 = vld [vmem:[%s14509_s0 + $0xa08] sm:$0xff] }
 0x10e   :  { %15716 = vst [vmem:[#allocation266_spill] sm:$0xff] %v6985_v1  ;;  %v1335_v1 = vadd.f32 %v1334_v47, %v7000_v60  ;;  %v7076_v47 = vmul.f32 16.0, %v311_v3 }
 0x10f   :  { %15717 = vst [vmem:[#allocation267_spill] sm:$0xff] %v6991_v33  ;;  %v1378_v33 = vadd.f32 %v1377_v40, %v7002_v22  ;;  %v7082_v40 = vmul.f32 16.0, %v338_v24  ;;  %v1357_v3 = vadd.f32 %v1356_v17, %v7040_v7  ;;  %v7106_v24 = vmul.f32 16.0, %v302_v37  ;;  %v331_v37 = vld [vmem:[%s14509_s0 + $0xa18] sm:$0xff] }
 0x110   :  { %15718 = vst [vmem:[#allocation268_spill] sm:$0xff] %v7000_v60  ;;  %1336 = vadd.xlane.f32.xlu0 %v1335_v1  ;;  %v330_v1 = vld [vmem:[%s14509_s0 + $0xa10] sm:$0xff]  ;;  %v7111_v17 = vmul.f32 16.0, %v339_v26  ;;  %v7126_v26 = vmul.f32 16.0, %v340_v59 }
 0x111   :  { %15719 = vst [vmem:[#allocation269_spill] sm:$0xff] %v7002_v22  ;;  %v328_v22 = vld [vmem:[%s14509_s0 + $0xa00] sm:$0xff]  ;;  %v1358_v36 = vadd.f32 %v1357_v3, %v7060_v39  ;;  %v321_v3 = vld [vmem:[%s14509_s0 + $0x9c8] sm:$0xff] }
 0x112   :  { %15720 = vst [vmem:[#allocation270_spill] sm:$0xff] %v7004_v53  ;;  %v7124_v60 = vmul.f32 16.0, %v328_v22 }
 0x113   :  { %15721 = vst [vmem:[#allocation271_spill] sm:$0xff] %v7023_v11  ;;  %v1379_v11 = vadd.f32 %v1378_v33, %v7004_v53  ;;  %v7104_v33 = vmul.f32 16.0, %v301_v4  ;;  %v1401_v53 = vadd.f32 %v7080_v28, %v7078_v9  ;;  %v342_v4 = vld [vmem:[%s14509_s0 + $0xa70] sm:$0xff] }
 0x114   :  { %15722 = vst [vmem:[#allocation272_spill] sm:$0xff] %v7031_v56 }
 0x115   :  { %15723 = vst [vmem:[#allocation273_spill] sm:$0xff] %v7033_v45  ;;  %v7089_v45 = vmul.f32 16.0, %v300_v2  ;;  %v341_v2 = vld [vmem:[%s14509_s0 + $0xa68] sm:$0xff] }
 0x116   :  { %15724 = vst [vmem:[#allocation274_spill] sm:$0xff] %v7035_v14  ;;  %v1368_v14 = vadd.f32 %v1367_v23, %v7031_v56  ;;  %v303_v23 = vld [vmem:[%s14509_s0 + $0x938] sm:$0xff] }
 0x117   :  { %15725 = vst [vmem:[#allocation275_spill] sm:$0xff] %v7040_v7  ;;  %v1380_v7 = vadd.f32 %v1379_v11, %v7051_v49  ;;  %v7131_v11 = vmul.f32 16.0, %v330_v1  ;;  %v1359_v59 = vadd.f32 %v1358_v36, %v7089_v45  ;;  %v322_v1 = vld [vmem:[%s14509_s0 + $0x9d0] sm:$0xff]  ;;  %v333_v36 = vld [vmem:[%s14509_s0 + $0xa28] sm:$0xff] }
 0x118   :  { %15726 = vst [vmem:[#allocation276_spill] sm:$0xff] %v7051_v49  ;;  %v1369_v56 = vadd.f32 %v1368_v14, %v7053_v18  ;;  %v320_v14 = vld [vmem:[%s14509_s0 + $0x9c0] sm:$0xff]  ;;  %v7140_v49 = vmul.f32 16.0, %v303_v23  ;;  %v334_v23 = vld [vmem:[%s14509_s0 + $0xa30] sm:$0xff] }
 0x119   :  { %15727 = vst [vmem:[#allocation277_spill] sm:$0xff] %v7053_v18  ;;  %1381 = vadd.xlane.f32.xlu2 %v1380_v7  ;;  %v343_v7 = vld [vmem:[%s14509_s0 + $0xa78] sm:$0xff] }
 0x11a   :  { %15728 = vst [vmem:[#allocation278_spill] sm:$0xff] %v7055_v52  ;;  %v1370_v22 = vadd.f32 %v1369_v56, %v7055_v52  ;;  %v7174_v52 = vmul.f32 16.0, %v321_v3 }
 0x11b   :  { %15729 = vst [vmem:[#allocation279_spill] sm:$0xff] %v7060_v39 }
 0x11c   :  { %15730 = vst [vmem:[#allocation280_spill] sm:$0xff] %v7076_v47  ;;  %v1371_v39 = vadd.f32 %v1370_v22, %v7076_v47  ;;  %v324_v22 = vld [vmem:[%s14509_s0 + $0x9e0] sm:$0xff] }
 0x11d   :  { %15731 = vst [vmem:[#allocation281_spill] sm:$0xff] %v7078_v9  ;;  %v7129_v9 = vmul.f32 16.0, %v329_v12  ;;  %v332_v12 = vld [vmem:[%s14509_s0 + $0xa20] sm:$0xff] }
 0x11e   :  { %15732 = vst [vmem:[#allocation282_spill] sm:$0xff] %v7080_v28  ;;  %v1402_v28 = vadd.f32 %v1401_v53, %v7082_v40  ;;  %v7143_v53 = vmul.f32 16.0, %v341_v2  ;;  %v7163_v2 = vmul.f32 16.0, %v331_v37  ;;  %v7177_v54 = vmul.f32 16.0, %v332_v12  ;;  %1372 = vadd.xlane.f32.xlu1 %v1371_v39 }
 0x11f   :  { %15733 = vst [vmem:[#allocation283_spill] sm:$0xff] %v7082_v40  ;;  %v7154_v40 = vmul.f32 16.0, %v342_v4  ;;  %v1360_v4 = vadd.f32 %v1359_v59, %v7104_v33  ;;  %v360_v59 = vld [vmem:[%s14509_s0 + $0xb00] sm:$0xff]  ;;  %v7192_v12 = vmul.f32 16.0, %v343_v7  ;;  %v325_v7 = vld [vmem:[%s14509_s0 + $0x9e8] sm:$0xff] }
 0x120   :  { %15734 = vst [vmem:[#allocation284_spill] sm:$0xff] %v7089_v45  ;;  %v1403_v56 = vadd.f32 %v1402_v28, %v7111_v17  ;;  %v1392_v45 = vadd.f32 %v7129_v9, %v7124_v60  ;;  %v323_v28 = vld [vmem:[%s14509_s0 + $0x9d8] sm:$0xff] }
 0x121   :  { %15735 = vst [vmem:[#allocation285_spill] sm:$0xff] %v7104_v33  ;;  %v1361_v3 = vadd.f32 %v1360_v4, %v7106_v24  ;;  %v363_v4 = vld [vmem:[%s14509_s0 + $0xb18] sm:$0xff] }
 0x122   :  { %15736 = vst [vmem:[#allocation286_spill] sm:$0xff] %v7106_v24  ;;  %v1404_v18 = vadd.f32 %v1403_v56, %v7126_v26  ;;  %v1393_v37 = vadd.f32 %v1392_v45, %v7131_v11  ;;  %v7194_v45 = vmul.f32 16.0, %v333_v36  ;;  %v7196_v56 = vmul.f32 16.0, %v334_v23 }
 0x123   :  { %15737 = vst [vmem:[#allocation287_spill] sm:$0xff] %v7111_v17  ;;  %v7172_v17 = vmul.f32 16.0, %v320_v14  ;;  %v361_v14 = vld [vmem:[%s14509_s0 + $0xb08] sm:$0xff]  ;;  %v7209_v36 = vmul.f32 16.0, %v323_v28 }
 0x124   :  { %15738 = vst [vmem:[#allocation288_spill] sm:$0xff] %v7124_v60  ;;  %v1394_v39 = vadd.f32 %v1393_v37, %v7163_v2  ;;  %v7220_v37 = vmul.f32 16.0, %v324_v22  ;;  %v7224_v60 = vmul.f32 16.0, %v361_v14  ;;  %v353_v22 = vld [vmem:[%s14509_s0 + $0xac8] sm:$0xff]  ;;  %v7242_v14 = vmul.f32 16.0, %v325_v7 }
 0x125   :  { %15739 = vst [vmem:[#allocation289_spill] sm:$0xff] %v7126_v26  ;;  %v1405_v26 = vadd.f32 %v1404_v18, %v7143_v53  ;;  %v1383_v23 = vadd.f32 %v7174_v52, %v7172_v17  ;;  %v1362_v18 = vadd.f32 %v1361_v3, %v7140_v49  ;;  %v352_v3 = vld [vmem:[%s14509_s0 + $0xac0] sm:$0xff] }
 0x126   :  { %15740 = vst [vmem:[#allocation290_spill] sm:$0xff] %v7129_v9  ;;  %v7183_v9 = vmul.f32 16.0, %v322_v1  ;;  %v362_v1 = vld [vmem:[%s14509_s0 + $0xb10] sm:$0xff] }
 0x127   :  { %15741 = vst [vmem:[#allocation291_spill] sm:$0xff] %v7131_v11  ;;  %v335_v11 = vld [vmem:[%s14509_s0 + $0xa38] sm:$0xff]  ;;  %v1406_v28 = vadd.f32 %v1405_v26, %v7154_v40  ;;  %v7229_v24 = vmul.f32 16.0, %v362_v1  ;;  %1363 = vadd.xlane.f32.xlu0 %v1362_v18  ;;  %v364_v1 = vld [vmem:[%s14509_s0 + $0xb20] sm:$0xff] }
 0x128   :  { %15742 = vst [vmem:[#allocation292_spill] sm:$0xff] %v7140_v49  ;;  %v7240_v26 = vmul.f32 16.0, %v335_v11  ;;  %v365_v11 = vld [vmem:[%s14509_s0 + $0xb28] sm:$0xff] }
 0x129   :  { %15743 = vst [vmem:[#allocation293_spill] sm:$0xff] %v7143_v53  ;;  %v326_v53 = vld [vmem:[%s14509_s0 + $0x9f0] sm:$0xff] }
 0x12a   :  { %15744 = vst [vmem:[#allocation294_spill] sm:$0xff] %v7154_v40 }
 0x12b   :  { %15745 = vst [vmem:[#allocation295_spill] sm:$0xff] %v7163_v2  ;;  %v7222_v2 = vmul.f32 16.0, %v360_v59  ;;  %v354_v59 = vld [vmem:[%s14509_s0 + $0xad0] sm:$0xff] }
 0x12c   :  { %15746 = vst [vmem:[#allocation296_spill] sm:$0xff] %v7172_v17  ;;  %v1384_v17 = vadd.f32 %v1383_v23, %v7183_v9  ;;  %v1407_v23 = vadd.f32 %v1406_v28, %v7192_v12  ;;  %v7263_v28 = vmul.f32 16.0, %v326_v53 }
 0x12d   :  { %15747 = vst [vmem:[#allocation297_spill] sm:$0xff] %v7174_v52  ;;  %v1395_v52 = vadd.f32 %v1394_v39, %v7177_v54  ;;  %v7247_v39 = vmul.f32 16.0, %v363_v4  ;;  %v1428_v7 = vadd.f32 %v7224_v60, %v7222_v2  ;;  %v355_v4 = vld [vmem:[%s14509_s0 + $0xad8] sm:$0xff] }
 0x12e   :  { %15748 = vst [vmem:[#allocation298_spill] sm:$0xff] %v7177_v54  ;;  %v1385_v18 = vadd.f32 %v1384_v17, %v7209_v36  ;;  %v344_v17 = vld [vmem:[%s14509_s0 + $0xa80] sm:$0xff]  ;;  %1408 = vadd.xlane.f32.xlu2 %v1407_v23  ;;  %v357_v54 = vld [vmem:[%s14509_s0 + $0xae8] sm:$0xff] }
 0x12f   :  { %15749 = vst [vmem:[#allocation299_spill] sm:$0xff] %v7183_v9  ;;  %v1396_v40 = vadd.f32 %v1395_v52, %v7194_v45  ;;  %v327_v9 = vld [vmem:[%s14509_s0 + $0x9f8] sm:$0xff]  ;;  %v7265_v52 = vmul.f32 16.0, %v352_v3  ;;  %v1429_v53 = vadd.f32 %v1428_v7, %v7229_v24  ;;  %v356_v3 = vld [vmem:[%s14509_s0 + $0xae0] sm:$0xff]  ;;  %v7298_v7 = vmul.f32 16.0, %v355_v4  ;;  %v358_v4 = vld [vmem:[%s14509_s0 + $0xaf0] sm:$0xff] }
 0x130   :  { %15750 = vst [vmem:[#allocation300_spill] sm:$0xff] %v7192_v12  ;;  %v7267_v12 = vmul.f32 16.0, %v353_v22  ;;  %v345_v22 = vld [vmem:[%s14509_s0 + $0xa88] sm:$0xff]  ;;  %v7288_v23 = vmul.f32 16.0, %v327_v9  ;;  %v7311_v49 = vmul.f32 16.0, %v344_v17 }
 0x131   :  { %15751 = vst [vmem:[#allocation301_spill] sm:$0xff] %v7194_v45  ;;  %v7269_v45 = vmul.f32 16.0, %v354_v59  ;;  %v346_v59 = vld [vmem:[%s14509_s0 + $0xa90] sm:$0xff] }
 0x132   :  { %15752 = vst [vmem:[#allocation302_spill] sm:$0xff] %v7196_v56 }
 0x133   :  { %15753 = vst [vmem:[#allocation303_spill] sm:$0xff] %v7209_v36  ;;  %v1397_v36 = vadd.f32 %v1396_v40, %v7196_v56  ;;  %v366_v40 = vld [vmem:[%s14509_s0 + $0xb30] sm:$0xff]  ;;  %v1430_v56 = vadd.f32 %v1429_v53, %v7247_v39  ;;  %v7321_v53 = vmul.f32 16.0, %v346_v59  ;;  %v7341_v59 = vmul.f32 16.0, %v357_v54  ;;  %v349_v54 = vld [vmem:[%s14509_s0 + $0xaa8] sm:$0xff] }
 0x134   :  { %15754 = vst [vmem:[#allocation304_spill] sm:$0xff] %v7220_v37 }
 0x135   :  { %15755 = vst [vmem:[#allocation305_spill] sm:$0xff] %v7222_v2  ;;  %v7276_v2 = vmul.f32 16.0, %v364_v1  ;;  %v367_v1 = vld [vmem:[%s14509_s0 + $0xb38] sm:$0xff] }
 0x136   :  { %15756 = vst [vmem:[#allocation306_spill] sm:$0xff] %v7224_v60  ;;  %v1386_v60 = vadd.f32 %v1385_v18, %v7220_v37  ;;  %v7296_v18 = vmul.f32 16.0, %v365_v11  ;;  %v1398_v37 = vadd.f32 %v1397_v36, %v7240_v26  ;;  %v347_v11 = vld [vmem:[%s14509_s0 + $0xa98] sm:$0xff]  ;;  %v7319_v36 = vmul.f32 16.0, %v345_v22  ;;  %v385_v22 = vld [vmem:[%s14509_s0 + $0xbc8] sm:$0xff] }
 0x137   :  { %15757 = vst [vmem:[#allocation307_spill] sm:$0xff] %v7229_v24  ;;  %v1419_v24 = vadd.f32 %v7267_v12, %v7265_v52 }
 0x138   :  { %15758 = vst [vmem:[#allocation308_spill] sm:$0xff] %v7240_v26  ;;  %v1387_v9 = vadd.f32 %v1386_v60, %v7242_v14  ;;  %1399 = vadd.xlane.f32.xlu1 %v1398_v37  ;;  %v359_v37 = vld [vmem:[%s14509_s0 + $0xaf8] sm:$0xff] }
 0x139   :  { %15759 = vst [vmem:[#allocation309_spill] sm:$0xff] %v7242_v14  ;;  %v1420_v60 = vadd.f32 %v1419_v24, %v7269_v45  ;;  %v7329_v14 = vmul.f32 16.0, %v367_v1  ;;  %v348_v24 = vld [vmem:[%s14509_s0 + $0xaa0] sm:$0xff]  ;;  %v7344_v1 = vmul.f32 16.0, %v347_v11 }
 0x13a   :  { %15760 = vst [vmem:[#allocation310_spill] sm:$0xff] %v7247_v39  ;;  %v384_v39 = vld [vmem:[%s14509_s0 + $0xbc0] sm:$0xff]  ;;  %v1388_v17 = vadd.f32 %v1387_v9, %v7263_v28  ;;  %v386_v9 = vld [vmem:[%s14509_s0 + $0xbd0] sm:$0xff] }
 0x13b   :  { %15761 = vst [vmem:[#allocation311_spill] sm:$0xff] %v7263_v28  ;;  %v7353_v28 = vmul.f32 16.0, %v358_v4  ;;  %v376_v4 = vld [vmem:[%s14509_s0 + $0xb80] sm:$0xff] }
 0x13c   :  { %15762 = vst [vmem:[#allocation312_spill] sm:$0xff] %v7265_v52  ;;  %v7327_v52 = vmul.f32 16.0, %v366_v40  ;;  %v1421_v40 = vadd.f32 %v1420_v60, %v7298_v7  ;;  %v7358_v60 = vmul.f32 16.0, %v384_v39 }
 0x13d   :  { %15763 = vst [vmem:[#allocation313_spill] sm:$0xff] %v7267_v12  ;;  %v7316_v12 = vmul.f32 16.0, %v356_v3  ;;  %v1431_v3 = vadd.f32 %v1430_v56, %v7276_v2  ;;  %v1410_v56 = vadd.f32 %v7319_v36, %v7311_v49 }
 0x13e   :  { %15764 = vst [vmem:[#allocation314_spill] sm:$0xff] %v7269_v45 }
 0x13f   :  { %15765 = vst [vmem:[#allocation315_spill] sm:$0xff] %v7276_v2  ;;  %v1389_v2 = vadd.f32 %v1388_v17, %v7288_v23  ;;  %v1432_v45 = vadd.f32 %v1431_v3, %v7296_v18  ;;  %v1422_v11 = vadd.f32 %v1421_v40, %v7316_v12  ;;  %v387_v17 = vld [vmem:[%s14509_s0 + $0xbd8] sm:$0xff]  ;;  %v7373_v3 = vmul.f32 16.0, %v359_v37  ;;  %v378_v37 = vld [vmem:[%s14509_s0 + $0xb90] sm:$0xff] }
 0x140   :  { %15766 = vst [vmem:[#allocation316_spill] sm:$0xff] %v7288_v23  ;;  %v7378_v40 = vmul.f32 16.0, %v386_v9 }
 0x141   :  { %15767 = vst [vmem:[#allocation317_spill] sm:$0xff] %v7296_v18  ;;  %1390 = vadd.xlane.f32.xlu0 %v1389_v2  ;;  %v1433_v39 = vadd.f32 %v1432_v45, %v7327_v52  ;;  %v7384_v18 = vmul.f32 16.0, %v349_v54  ;;  %v388_v45 = vld [vmem:[%s14509_s0 + $0xbe0] sm:$0xff] }
 0x142   :  { %15768 = vst [vmem:[#allocation318_spill] sm:$0xff] %v7298_v7  ;;  %v7361_v7 = vmul.f32 16.0, %v348_v24  ;;  %v350_v24 = vld [vmem:[%s14509_s0 + $0xab0] sm:$0xff] }
 0x143   :  { %15769 = vst [vmem:[#allocation319_spill] sm:$0xff] %v7311_v49  ;;  %v7367_v49 = vmul.f32 16.0, %v385_v22  ;;  %v377_v22 = vld [vmem:[%s14509_s0 + $0xb88] sm:$0xff]  ;;  %v1434_v9 = vadd.f32 %v1433_v39, %v7329_v14 }
 0x144   :  { %15770 = vst [vmem:[#allocation320_spill] sm:$0xff] %v7316_v12  ;;  %v389_v39 = vld [vmem:[%s14509_s0 + $0xbe8] sm:$0xff] }
 0x145   :  { %15771 = vst [vmem:[#allocation321_spill] sm:$0xff] %v7319_v36  ;;  %v1411_v36 = vadd.f32 %v1410_v56, %v7321_v53  ;;  %v1423_v56 = vadd.f32 %v1422_v11, %v7341_v59  ;;  %v1455_v54 = vadd.f32 %v7367_v49, %v7358_v60  ;;  %1435 = vadd.xlane.f32.xlu2 %v1434_v9  ;;  %v380_v9 = vld [vmem:[%s14509_s0 + $0xba0] sm:$0xff] }
 0x146   :  { %15772 = vst [vmem:[#allocation322_spill] sm:$0xff] %v7321_v53  ;;  %v7397_v53 = vmul.f32 16.0, %v387_v17  ;;  %v379_v17 = vld [vmem:[%s14509_s0 + $0xb98] sm:$0xff] }
 0x147   :  { %15773 = vst [vmem:[#allocation323_spill] sm:$0xff] %v7327_v52  ;;  %v1412_v2 = vadd.f32 %v1411_v36, %v7344_v1  ;;  %v351_v52 = vld [vmem:[%s14509_s0 + $0xab8] sm:$0xff]  ;;  %v7401_v36 = vmul.f32 16.0, %v376_v4  ;;  %v1424_v11 = vadd.f32 %v1423_v56, %v7353_v28  ;;  %v1456_v4 = vadd.f32 %v1455_v54, %v7378_v40 }
 0x148   :  { %15774 = vst [vmem:[#allocation324_spill] sm:$0xff] %v7329_v14  ;;  %v7413_v14 = vmul.f32 16.0, %v377_v22  ;;  %v7418_v56 = vmul.f32 16.0, %v378_v37  ;;  %v390_v37 = vld [vmem:[%s14509_s0 + $0xbf0] sm:$0xff]  ;;  %v7436_v54 = vmul.f32 16.0, %v389_v39  ;;  %v381_v39 = vld [vmem:[%s14509_s0 + $0xba8] sm:$0xff] }
 0x149   :  { %15775 = vst [vmem:[#allocation325_spill] sm:$0xff] %v7341_v59  ;;  %v1413_v59 = vadd.f32 %v1412_v2, %v7361_v7  ;;  %v369_v2 = vld [vmem:[%s14509_s0 + $0xb48] sm:$0xff] }
 0x14a   :  { %15776 = vst [vmem:[#allocation326_spill] sm:$0xff] %v7344_v1  ;;  %v7404_v1 = vmul.f32 16.0, %v350_v24  ;;  %v368_v24 = vld [vmem:[%s14509_s0 + $0xb40] sm:$0xff] }
 0x14b   :  { %15777 = vst [vmem:[#allocation327_spill] sm:$0xff] %v7353_v28  ;;  %v1414_v22 = vadd.f32 %v1413_v59, %v7384_v18  ;;  %v7439_v28 = vmul.f32 16.0, %v379_v17  ;;  %v370_v59 = vld [vmem:[%s14509_s0 + $0xb50] sm:$0xff]  ;;  %v7453_v17 = vmul.f32 16.0, %v368_v24 }
 0x14c   :  { %15778 = vst [vmem:[#allocation328_spill] sm:$0xff] %v7358_v60  ;;  %v1425_v60 = vadd.f32 %v1424_v11, %v7373_v3  ;;  %v382_v24 = vld [vmem:[%s14509_s0 + $0xbb0] sm:$0xff] }
 0x14d   :  { %15779 = vst [vmem:[#allocation329_spill] sm:$0xff] %v7361_v7  ;;  %v7427_v7 = vmul.f32 16.0, %v351_v52  ;;  %v1446_v52 = vadd.f32 %v7413_v14, %v7401_v36  ;;  %v1415_v11 = vadd.f32 %v1414_v22, %v7404_v1  ;;  %v371_v22 = vld [vmem:[%s14509_s0 + $0xb58] sm:$0xff] }
 0x14e   :  { %15780 = vst [vmem:[#allocation330_spill] sm:$0xff] %v7367_v49  ;;  %v7415_v49 = vmul.f32 16.0, %v388_v45  ;;  %v5206_v45 = vmov 1024.0   ;;  %1426 = vadd.xlane.f32.xlu1 %v1425_v60 }
 0x14f   :  { %15781 = vst [vmem:[#allocation331_spill] sm:$0xff] %v7373_v3  ;;  %5076 = vrcp.f32 %v5206_v45  ;;  %v391_v45 = vld [vmem:[%s14509_s0 + $0xbf8] sm:$0xff]  ;;  %v1447_v60 = vadd.f32 %v1446_v52, %v7418_v56 }
 0x150   :  { %15782 = vst [vmem:[#allocation332_spill] sm:$0xff] %v7378_v40  ;;  %v1457_v40 = vadd.f32 %v1456_v4, %v7397_v53  ;;  %v7455_v4 = vmul.f32 16.0, %v369_v2  ;;  %v7470_v2 = vmul.f32 16.0, %v370_v59  ;;  %v409_v59 = vld [vmem:[%s14509_s0 + $0xc88] sm:$0xff] }
 0x151   :  { %15783 = vst [vmem:[#allocation333_spill] sm:$0xff] %v7384_v18  ;;  %v1448_v52 = vadd.f32 %v1447_v60, %v7439_v28 }
 0x152   :  { %15784 = vst [vmem:[#allocation334_spill] sm:$0xff] %v7397_v53  ;;  %v7457_v53 = vmul.f32 16.0, %v390_v37  ;;  %v7472_v37 = vmul.f32 16.0, %v391_v45  ;;  %v1437_v60 = vadd.f32 %v7455_v4, %v7453_v17 }
 0x153   :  { %15785 = vst [vmem:[#allocation335_spill] sm:$0xff] %v7401_v36  ;;  %v7460_v36 = vmul.f32 16.0, %v380_v9  ;;  %v7475_v9 = vmul.f32 16.0, %v381_v39  ;;  %v7492_v39 = vmul.f32 16.0, %v371_v22  ;;  %v374_v22 = vld [vmem:[%s14509_s0 + $0xb70] sm:$0xff] }
 0x154   :  { %15786 = vst [vmem:[#allocation336_spill] sm:$0xff] %v7404_v1  ;;  %v1416_v1 = vadd.f32 %v1415_v11, %v7427_v7  ;;  %v408_v11 = vld [vmem:[%s14509_s0 + $0xc80] sm:$0xff] }
 0x155   :  { %15787 = vst [vmem:[#allocation337_spill] sm:$0xff] %v7413_v14  ;;  %v1458_v14 = vadd.f32 %v1457_v40, %v7415_v49  ;;  %v7487_v45 = vpop.eup %5076 }
 0x156   :  { %15788 = vst [vmem:[#allocation338_spill] sm:$0xff] %v7415_v49  ;;  %v372_v49 = vld [vmem:[%s14509_s0 + $0xb60] sm:$0xff]  ;;  %1417 = vadd.xlane.f32.xlu0 %v1416_v1  ;;  %v410_v1 = vld [vmem:[%s14509_s0 + $0xc90] sm:$0xff]  ;;  %vm1613_vm0 = vweird.f32 %v7487_v45 }
 0x157   :  { %15789 = vst [vmem:[#allocation339_spill] sm:$0xff] %v7418_v56  ;;  %v1459_v40 = vadd.f32 %v1458_v14, %v7436_v54  ;;  %v383_v14 = vld [vmem:[%s14509_s0 + $0xbb8] sm:$0xff]  ;;  %v1449_v56 = vadd.f32 %v1448_v52, %v7460_v36  ;;  %v7509_v18 = vmul.f32 16.0, %v372_v49  ;;  %v7515_v52 = vmul.f32 16.0, %v408_v11  ;;  %v400_v49 = vld [vmem:[%s14509_s0 + $0xc40] sm:$0xff] }
 0x158   :  { %15790 = vst [vmem:[#allocation340_spill] sm:$0xff] %v7427_v7  ;;  %v373_v7 = vld [vmem:[%s14509_s0 + $0xb68] sm:$0xff] }
 0x159   :  { %15791 = vst [vmem:[#allocation341_spill] sm:$0xff] %v7436_v54  ;;  %v1460_v54 = vadd.f32 %v1459_v40, %v7457_v53  ;;  %v1438_v40 = vadd.f32 %v1437_v60, %v7470_v2  ;;  %v1450_v3 = vadd.f32 %v1449_v56, %v7475_v9  ;;  %v401_v60 = vld [vmem:[%s14509_s0 + $0xc48] sm:$0xff]  ;;  %v7530_v11 = vmul.f32 16.0, %v373_v7  ;;  %v412_v7 = vld [vmem:[%s14509_s0 + $0xca0] sm:$0xff] }
 0x15a   :  { %15792 = vst [vmem:[#allocation342_spill] sm:$0xff] %v7439_v28  ;;  %v7497_v28 = vmul.f32 16.0, %v382_v24  ;;  %v411_v24 = vld [vmem:[%s14509_s0 + $0xc98] sm:$0xff]  ;;  %v7580_v12 = vmul.f32 16.0, %v412_v7 }
 0x15b   :  { %15793 = vst [vmem:[#allocation343_spill] sm:$0xff] %v7453_v17  ;;  %v1461_v17 = vadd.f32 %v1460_v54, %v7472_v37  ;;  %v402_v54 = vld [vmem:[%s14509_s0 + $0xc50] sm:$0xff] }
 0x15c   :  { %15794 = vst [vmem:[#allocation344_spill] sm:$0xff] %v7455_v4  ;;  %v1609_v4 = vmul.f32 1024.0, %v7487_v45  ;;  %v1451_v56 = vadd.f32 %v1450_v3, %v7497_v28  ;;  %v403_v3 = vld [vmem:[%s14509_s0 + $0xc58] sm:$0xff] }
 0x15d   :  { %15795 = vst [vmem:[#allocation345_spill] sm:$0xff] %v7457_v53  ;;  %v7517_v53 = vmul.f32 16.0, %v409_v59  ;;  %v1439_v59 = vadd.f32 %v1438_v40, %v7492_v39  ;;  %1462 = vadd.xlane.f32.xlu2 %v1461_v17  ;;  %v7547_v40 = vmul.f32 16.0, %v411_v24  ;;  %v7555_v17 = vmul.f32 16.0, %v400_v49  ;;  %v393_v24 = vld [vmem:[%s14509_s0 + $0xc08] sm:$0xff]  ;;  %v394_v49 = vld [vmem:[%s14509_s0 + $0xc10] sm:$0xff] }
 0x15e   :  { %15796 = vst [vmem:[#allocation346_spill] sm:$0xff] %v7460_v36  ;;  %v7521_v36 = vmul.f32 16.0, %v383_v14  ;;  %v375_v14 = vld [vmem:[%s14509_s0 + $0xb78] sm:$0xff]  ;;  %v7595_v7 = vmul.f32 16.0, %v393_v24  ;;  %v7610_v24 = vmul.f32 16.0, %v394_v49 }
 0x15f   :  { %15797 = vst [vmem:[#allocation347_spill] sm:$0xff] %v7470_v2  ;;  %v7533_v2 = vmul.f32 16.0, %v410_v1  ;;  %v1440_v1 = vadd.f32 %v1439_v59, %v7509_v18  ;;  %v1610_v59 = vsub.f32 1.0, %v1609_v4  ;;  %v414_v4 = vld [vmem:[%s14509_s0 + $0xcb0] sm:$0xff] }
 0x160   :  { %15798 = vst [vmem:[#allocation348_spill] sm:$0xff] %v7472_v37  ;;  %v7542_v37 = vmul.f32 16.0, %v374_v22  ;;  %v392_v22 = vld [vmem:[%s14509_s0 + $0xc00] sm:$0xff] }
 0x161   :  { %15799 = vst [vmem:[#allocation349_spill] sm:$0xff] %v7475_v9  ;;  %v1441_v9 = vadd.f32 %v1440_v1, %v7530_v11  ;;  %v395_v1 = vld [vmem:[%s14509_s0 + $0xc18] sm:$0xff] }
 0x162   :  { %15800 = vst [vmem:[#allocation350_spill] sm:$0xff] %v7492_v39  ;;  %v1482_v39 = vadd.f32 %v7517_v53, %v7515_v52 }
 0x163   :  { %15801 = vst [vmem:[#allocation351_spill] sm:$0xff] %v7497_v28  ;;  %v7557_v28 = vmul.f32 16.0, %v401_v60  ;;  %v7574_v60 = vmul.f32 16.0, %v375_v14 }
 0x164   :  { %15802 = vst [vmem:[#allocation352_spill] sm:$0xff] %v7509_v18  ;;  %v1452_v18 = vadd.f32 %v1451_v56, %v7521_v36  ;;  %v1483_v56 = vadd.f32 %v1482_v39, %v7533_v2  ;;  %v1442_v39 = vadd.f32 %v1441_v9, %v7542_v37  ;;  %v1611_v9 = vmul.f32 %v7487_v45, %v1610_v59  ;;  %v406_v59 = vld [vmem:[%s14509_s0 + $0xc70] sm:$0xff] }
 0x165   :  { %15803 = vst [vmem:[#allocation353_spill] sm:$0xff] %v7515_v52  ;;  %v7569_v52 = vmul.f32 16.0, %v402_v54  ;;  %v404_v54 = vld [vmem:[%s14509_s0 + $0xc60] sm:$0xff]  ;;  %v1473_v14 = vadd.f32 %v7557_v28, %v7555_v17 }
 0x166   :  { %15804 = vst [vmem:[#allocation354_spill] sm:$0xff] %v7517_v53  ;;  %v413_v53 = vld [vmem:[%s14509_s0 + $0xca8] sm:$0xff]  ;;  %1453 = vadd.xlane.f32.xlu1 %v1452_v18  ;;  %v1443_v23 = vadd.f32 %v1442_v39, %v7574_v60  ;;  %v407_v39 = vld [vmem:[%s14509_s0 + $0xc78] sm:$0xff] }
 0x167   :  { %15805 = vst [vmem:[#allocation355_spill] sm:$0xff] %v7521_v36  ;;  %v7586_v36 = vmul.f32 16.0, %v403_v3  ;;  %v7601_v18 = vmul.f32 16.0, %v413_v53  ;;  %v1484_v3 = vadd.f32 %v1483_v56, %v7547_v40  ;;  %v1474_v53 = vadd.f32 %v1473_v14, %v7569_v52  ;;  %v432_v56 = vld [vmem:[%s14509_s0 + $0xd40] sm:$0xff]  ;;  %v434_v14 = vld [vmem:[%s14509_s0 + $0xd50] sm:$0xff] }
 0x168   :  { %15806 = vst [vmem:[#allocation356_spill] sm:$0xff] %v7530_v11  ;;  %v7593_v11 = vmul.f32 16.0, %v392_v22  ;;  %v396_v22 = vld [vmem:[%s14509_s0 + $0xc20] sm:$0xff]  ;;  %1444 = vadd.xlane.f32.xlu0 %v1443_v23  ;;  %v7655_v26 = vmul.f32 16.0, %v432_v56 }
 0x169   :  { %15807 = vst [vmem:[#allocation357_spill] sm:$0xff] %v7533_v2  ;;  %v415_v2 = vld [vmem:[%s14509_s0 + $0xcb8] sm:$0xff]  ;;  %v1485_v49 = vadd.f32 %v1484_v3, %v7580_v12 }
 0x16a   :  { %15808 = vst [vmem:[#allocation358_spill] sm:$0xff] %v7542_v37  ;;  %v7615_v37 = vmul.f32 16.0, %v404_v54  ;;  %v1464_v54 = vadd.f32 %v7595_v7, %v7593_v11 }
 0x16b   :  { %15809 = vst [vmem:[#allocation359_spill] sm:$0xff] %v7547_v40  ;;  %v433_v40 = vld [vmem:[%s14509_s0 + $0xd48] sm:$0xff] }
 0x16c   :  { %15810 = vst [vmem:[#allocation360_spill] sm:$0xff] %v7555_v17  ;;  %v7613_v17 = vmul.f32 16.0, %v414_v4  ;;  %v7629_v4 = vmul.f32 16.0, %v395_v1  ;;  %v1475_v1 = vadd.f32 %v1474_v53, %v7586_v36  ;;  %v424_v53 = vld [vmem:[%s14509_s0 + $0xd00] sm:$0xff] }
 0x16d   :  { %15811 = vst [vmem:[#allocation361_spill] sm:$0xff] %v7557_v28  ;;  %v405_v28 = vld [vmem:[%s14509_s0 + $0xc68] sm:$0xff] }
 0x16e   :  { %15812 = vst [vmem:[#allocation362_spill] sm:$0xff] %v7569_v52  ;;  %v7637_v52 = vmul.f32 16.0, %v415_v2  ;;  %v7642_v3 = vmul.f32 16.0, %v405_v28  ;;  %v1465_v2 = vadd.f32 %v1464_v54, %v7610_v24  ;;  %v7657_v28 = vmul.f32 16.0, %v433_v40  ;;  %v425_v40 = vld [vmem:[%s14509_s0 + $0xd08] sm:$0xff] }
 0x16f   :  { %15813 = vst [vmem:[#allocation363_spill] sm:$0xff] %v7574_v60  ;;  %v435_v60 = vld [vmem:[%s14509_s0 + $0xd58] sm:$0xff]  ;;  %v1476_v23 = vadd.f32 %v1475_v1, %v7615_v37  ;;  %v7669_v54 = vmul.f32 16.0, %v434_v14  ;;  %v426_v14 = vld [vmem:[%s14509_s0 + $0xd10] sm:$0xff]  ;;  %v7706_v33 = vmul.f32 16.0, %v425_v40 }
 0x170   :  { %15814 = vst [vmem:[#allocation364_spill] sm:$0xff] %v7580_v12  ;;  %v397_v12 = vld [vmem:[%s14509_s0 + $0xc28] sm:$0xff]  ;;  %v418_v40 = vld [vmem:[%s14509_s0 + $0xcd0] sm:$0xff] }
 0x171   :  { %15815 = vst [vmem:[#allocation365_spill] sm:$0xff] %v7586_v36  ;;  %v7663_v36 = vmul.f32 16.0, %v406_v59  ;;  %v436_v59 = vld [vmem:[%s14509_s0 + $0xd60] sm:$0xff]  ;;  %v1477_v1 = vadd.f32 %v1476_v23, %v7642_v3 }
 0x172   :  { %15816 = vst [vmem:[#allocation366_spill] sm:$0xff] %v7593_v11  ;;  %v1486_v11 = vadd.f32 %v1485_v49, %v7601_v18  ;;  %v398_v49 = vld [vmem:[%s14509_s0 + $0xc30] sm:$0xff] }
 0x173   :  { %15817 = vst [vmem:[#allocation367_spill] sm:$0xff] %v7595_v7  ;;  %v7648_v7 = vmul.f32 16.0, %v396_v22  ;;  %v1612_v22 = vadd.f32 %v7487_v45, %v1611_v9  ;;  %v1466_v9 = vadd.f32 %v1465_v2, %v7629_v4  ;;  %v1509_v2 = vadd.f32 %v7657_v28, %v7655_v26 }
 0x174   :  { %15818 = vst [vmem:[#allocation368_spill] sm:$0xff] %v7601_v18  ;;  %v1487_v56 = vadd.f32 %v1486_v11, %v7613_v17  ;;  %v7675_v18 = vmul.f32 16.0, %v407_v39  ;;  %v399_v11 = vld [vmem:[%s14509_s0 + $0xc38] sm:$0xff]  ;;  %v7693_v39 = vmul.f32 16.0, %v435_v60  ;;  %v416_v60 = vld [vmem:[%s14509_s0 + $0xcc0] sm:$0xff] }
 0x175   :  { %15819 = vst [vmem:[#allocation369_spill] sm:$0xff] %v7610_v24  ;;  %v7677_v24 = vmul.f32 16.0, %v397_v12  ;;  %v437_v12 = vld [vmem:[%s14509_s0 + $0xd68] sm:$0xff]  ;;  %v1510_v47 = vadd.f32 %v1509_v2, %v7669_v54 }
 0x176   :  { %15820 = vst [vmem:[#allocation370_spill] sm:$0xff] %v7613_v17  ;;  %v427_v17 = vld [vmem:[%s14509_s0 + $0xd18] sm:$0xff]  ;;  %v1488_v23 = vadd.f32 %v1487_v56, %v7637_v52  ;;  %v7723_v56 = vmul.f32 16.0, %v399_v11 }
 0x177   :  { %15821 = vst [vmem:[#allocation371_spill] sm:$0xff] %v7615_v37  ;;  %v1467_v37 = vadd.f32 %v1466_v9, %v7648_v7  ;;  %v7734_v2 = vmul.f32 16.0, %v427_v17  ;;  %v439_v17 = vld [vmem:[%s14509_s0 + $0xd78] sm:$0xff] }
 0x178   :  { %15822 = vst [vmem:[#allocation372_spill] sm:$0xff] %v7629_v4  ;;  %v7700_v4 = vmul.f32 16.0, %v424_v53  ;;  %v7715_v53 = vmul.f32 16.0, %v426_v14  ;;  %1489 = vadd.xlane.f32.xlu2 %v1488_v23  ;;  %v428_v14 = vld [vmem:[%s14509_s0 + $0xd20] sm:$0xff]  ;;  %v1511_v23 = vadd.f32 %v1510_v47, %v7693_v39 }
 0x179   :  { %15823 = vst [vmem:[#allocation373_spill] sm:$0xff] %v7637_v52  ;;  %v1468_v9 = vadd.f32 %v1467_v37, %v7677_v24  ;;  %v419_v37 = vld [vmem:[%s14509_s0 + $0xcd8] sm:$0xff]  ;;  %v7743_v52 = vmul.f32 16.0, %v416_v60 }
 0x17a   :  { %15824 = vst [vmem:[#allocation374_spill] sm:$0xff] %v7642_v3  ;;  %v7703_v3 = vmul.f32 16.0, %v398_v49  ;;  %v417_v49 = vld [vmem:[%s14509_s0 + $0xcc8] sm:$0xff]  ;;  %v1500_v11 = vadd.f32 %v7706_v33, %v7700_v4 }
 0x17b   :  { %15825 = vst [vmem:[#allocation375_spill] sm:$0xff] %v7648_v7  ;;  %v7752_v47 = vmul.f32 16.0, %v417_v49  ;;  %v456_v49 = vld [vmem:[%s14509_s0 + $0xe00] sm:$0xff] }
 0x17c   :  { %15826 = vst [vmem:[#allocation376_spill] sm:$0xff] %v7655_v26  ;;  %v7712_v26 = vmul.f32 16.0, %v436_v59  ;;  %v438_v59 = vld [vmem:[%s14509_s0 + $0xd70] sm:$0xff] }
 0x17d   :  { %15827 = vst [vmem:[#allocation377_spill] sm:$0xff] %v7657_v28  ;;  %v1478_v28 = vadd.f32 %v1477_v1, %v7663_v36  ;;  %v7729_v1 = vmul.f32 16.0, %v437_v12  ;;  %v1469_v12 = vadd.f32 %v1468_v9, %v7703_v3  ;;  %v1501_v9 = vadd.f32 %v1500_v11, %v7715_v53 }
 0x17e   :  { %15828 = vst [vmem:[#allocation378_spill] sm:$0xff] %v7663_v36  ;;  %v1512_v60 = vadd.f32 %v1511_v23, %v7712_v26  ;;  %v7780_v23 = vmul.f32 16.0, %v419_v37  ;;  %v1491_v11 = vadd.f32 %v7752_v47, %v7743_v52 }
 0x17f   :  { %15829 = vst [vmem:[#allocation379_spill] sm:$0xff] %v7669_v54  ;;  %v1479_v54 = vadd.f32 %v1478_v28, %v7675_v18  ;;  %v429_v28 = vld [vmem:[%s14509_s0 + $0xd28] sm:$0xff]  ;;  %v1502_v37 = vadd.f32 %v1501_v9, %v7734_v2 }
 0x180   :  { %15830 = vst [vmem:[#allocation380_spill] sm:$0xff] %v7675_v18  ;;  %v1040_v18 = vpop.xlane.xlu0 %1039 }
 0x181   :  { %15831 = vst [vmem:[#allocation381_spill] sm:$0xff] %v7677_v24  ;;  %1480 = vadd.xlane.f32.xlu1 %v1479_v54  ;;  %v457_v54 = vld [vmem:[%s14509_s0 + $0xe08] sm:$0xff]  ;;  %v7787_v24 = vmul.f32 16.0, %v439_v17 }
 0x182   :  { %15832 = vst [vmem:[#allocation382_spill] sm:$0xff] %v7693_v39  ;;  %v7754_v39 = vmul.f32 16.0, %v418_v40  ;;  %v7774_v40 = vsel %vm1613_vm0, %v7487_v45, %v1612_v22  ;;  %v1513_v45 = vadd.f32 %v1512_v60, %v7729_v1  ;;  %v431_v22 = vld [vmem:[%s14509_s0 + $0xd38] sm:$0xff] }
 0x183   :  { %15833 = vst [vmem:[#allocation383_spill] sm:$0xff] %v7700_v4  ;;  %v7759_v4 = vmul.f32 16.0, %v428_v14  ;;  %v430_v14 = vld [vmem:[%s14509_s0 + $0xd30] sm:$0xff]  ;;  %v459_v60 = vld [vmem:[%s14509_s0 + $0xe18] sm:$0xff] }
 0x184   :  { %15834 = vst [vmem:[#allocation384_spill] sm:$0xff] %v7703_v3  ;;  %v420_v3 = vld [vmem:[%s14509_s0 + $0xce0] sm:$0xff]  ;;  %v1492_v17 = vadd.f32 %v1491_v11, %v7754_v39  ;;  %v7810_v9 = vmul.f32 16.0, %v430_v14  ;;  %v7827_v14 = vmul.f32 16.0, %v431_v22  ;;  %v7846_v22 = vmul.f32 16.0, %v459_v60 }
 0x185   :  { %15835 = vst [vmem:[#allocation385_spill] sm:$0xff] %v7706_v33  ;;  %v7756_v33 = vmul.f32 16.0, %v438_v59  ;;  %v1470_v59 = vadd.f32 %v1469_v12, %v7723_v56  ;;  %v7793_v12 = vmul.f32 16.0, %v429_v28  ;;  %v448_v11 = vld [vmem:[%s14509_s0 + $0xdc0] sm:$0xff] }
 0x186   :  { %15836 = vst [vmem:[#allocation386_spill] sm:$0xff] %v7712_v26  ;;  %v458_v26 = vld [vmem:[%s14509_s0 + $0xe10] sm:$0xff]  ;;  %v440_v60 = vld [vmem:[%s14509_s0 + $0xd80] sm:$0xff] }
 0x187   :  { %15837 = vst [vmem:[#allocation387_spill] sm:$0xff] %v7715_v53  ;;  %v1076_v53 = vpop.xlane.xlu2 %1075  ;;  %1471 = vadd.xlane.f32.xlu0 %v1470_v59  ;;  %v1514_v28 = vadd.f32 %v1513_v45, %v7756_v33  ;;  %v7816_v59 = vmul.f32 16.0, %v458_v26  ;;  %v460_v26 = vld [vmem:[%s14509_s0 + $0xe20] sm:$0xff] }
 0x188   :  { %15838 = vst [vmem:[#allocation388_spill] sm:$0xff] %v7723_v56  ;;  %v7807_v56 = vmul.f32 16.0, %v457_v54  ;;  %v7825_v54 = vmul.f32 %v7774_v40, %v1076_v53  ;;  %v423_v53 = vld [vmem:[%s14509_s0 + $0xcf8] sm:$0xff] }
 0x189   :  { %15839 = vst [vmem:[#allocation389_spill] sm:$0xff] %v7729_v1  ;;  %v7805_v1 = vmul.f32 16.0, %v456_v49  ;;  %v449_v49 = vld [vmem:[%s14509_s0 + $0xdc8] sm:$0xff] }
 0x18a   :  { %15840 = vst [vmem:[#allocation390_spill] sm:$0xff] %v7734_v2  ;;  %v1503_v2 = vadd.f32 %v1502_v37, %v7759_v4  ;;  %v1493_v37 = vadd.f32 %v1492_v17, %v7780_v23  ;;  %v7858_v7 = vmul.f32 16.0, %v449_v49  ;;  %v442_v49 = vld [vmem:[%s14509_s0 + $0xd90] sm:$0xff] }
 0x18b   :  { %15841 = vst [vmem:[#allocation391_spill] sm:$0xff] %v7743_v52  ;;  %v7799_v52 = vmul.f32 16.0, %v420_v3  ;;  %v422_v3 = vld [vmem:[%s14509_s0 + $0xcf0] sm:$0xff]  ;;  %v1536_v17 = vadd.f32 %v7807_v56, %v7805_v1 }
 0x18c   :  { %15842 = vst [vmem:[#allocation392_spill] sm:$0xff] %v7752_v47  ;;  %v421_v47 = vld [vmem:[%s14509_s0 + $0xce8] sm:$0xff] }
 0x18d   :  { %15843 = vst [vmem:[#allocation393_spill] sm:$0xff] %v7754_v39  ;;  %v7829_v45 = vmul.f32 16.0, %v421_v47  ;;  %v1515_v39 = vadd.f32 %v1514_v28, %v7787_v24  ;;  %v461_v47 = vld [vmem:[%s14509_s0 + $0xe28] sm:$0xff]  ;;  %v1058_v28 = vpop.xlane.xlu1 %1057  ;;  %v1537_v36 = vadd.f32 %v1536_v17, %v7816_v59 }
 0x18e   :  { %15844 = vst [vmem:[#allocation394_spill] sm:$0xff] %v7756_v33  ;;  %v450_v33 = vld [vmem:[%s14509_s0 + $0xdd0] sm:$0xff] }
 0x18f   :  { %15845 = vst [vmem:[#allocation395_spill] sm:$0xff] %v7759_v4  ;;  %v1504_v4 = vadd.f32 %v1503_v2, %v7793_v12  ;;  %v1494_v2 = vadd.f32 %v1493_v37, %v7799_v52  ;;  %1516 = vadd.xlane.f32.xlu2 %v1515_v39  ;;  %v7875_v37 = vmul.f32 16.0, %v423_v53 }
 0x190   :  { %15846 = vst [vmem:[#allocation396_spill] sm:$0xff] %v7780_v23  ;;  %v451_v23 = vld [vmem:[%s14509_s0 + $0xdd8] sm:$0xff] }
 0x191   :  { %15847 = vst [vmem:[#allocation397_spill] sm:$0xff] %v7787_v24  ;;  %v7853_v24 = vmul.f32 16.0, %v422_v3  ;;  %v7867_v3 = vmul.f32 16.0, %v450_v33  ;;  %v1495_v39 = vadd.f32 %v1494_v2, %v7829_v45  ;;  %v452_v33 = vld [vmem:[%s14509_s0 + $0xde0] sm:$0xff]  ;;  %v7886_v17 = vmul.f32 16.0, %v451_v23  ;;  %v443_v2 = vld [vmem:[%s14509_s0 + $0xd98] sm:$0xff] }
 0x192   :  { %15848 = vst [vmem:[#allocation398_spill] sm:$0xff] %v7793_v12  ;;  %v7856_v12 = vmul.f32 16.0, %v448_v11  ;;  %v441_v11 = vld [vmem:[%s14509_s0 + $0xd88] sm:$0xff] }
 0x193   :  { %15849 = vst [vmem:[#allocation399_spill] sm:$0xff] %v7799_v52  ;;  %v1538_v52 = vadd.f32 %v1537_v36, %v7846_v22  ;;  %v453_v36 = vld [vmem:[%s14509_s0 + $0xde8] sm:$0xff]  ;;  %v7907_v23 = vmul.f32 16.0, %v441_v11  ;;  %v480_v11 = vld [vmem:[%s14509_s0 + $0xec0] sm:$0xff] }
 0x194   :  { %15850 = vst [vmem:[#allocation400_spill] sm:$0xff] %v7805_v1  ;;  %v7864_v1 = vmul.f32 16.0, %v460_v26  ;;  %v7881_v26 = vmul.f32 16.0, %v461_v47  ;;  %v1527_v53 = vadd.f32 %v7858_v7, %v7856_v12  ;;  %v7898_v47 = vmul.f32 %v7774_v40, %v1058_v28 }
 0x195   :  { %15851 = vst [vmem:[#allocation401_spill] sm:$0xff] %v7807_v56  ;;  %v1505_v56 = vadd.f32 %v1504_v4, %v7810_v9  ;;  %v462_v4 = vld [vmem:[%s14509_s0 + $0xe30] sm:$0xff] }
 0x196   :  { %15852 = vst [vmem:[#allocation402_spill] sm:$0xff] %v7810_v9  ;;  %v1496_v9 = vadd.f32 %v1495_v39, %v7853_v24  ;;  %v1539_v28 = vadd.f32 %v1538_v52, %v7864_v1  ;;  %v1528_v39 = vadd.f32 %v1527_v53, %v7867_v3 }
 0x197   :  { %15853 = vst [vmem:[#allocation403_spill] sm:$0xff] %v7816_v59  ;;  %v1506_v59 = vadd.f32 %v1505_v56, %v7827_v14  ;;  %v463_v56 = vld [vmem:[%s14509_s0 + $0xe38] sm:$0xff] }
 0x198   :  { %15854 = vst [vmem:[#allocation404_spill] sm:$0xff] %v7827_v14  ;;  %v1497_v52 = vadd.f32 %v1496_v9, %v7875_v37  ;;  %v455_v9 = vld [vmem:[%s14509_s0 + $0xdf8] sm:$0xff] }
 0x199   :  { %15855 = vst [vmem:[#allocation405_spill] sm:$0xff] %v7829_v45  ;;  %v7895_v45 = vmul.f32 16.0, %v440_v60  ;;  %1507 = vadd.xlane.f32.xlu1 %v1506_v59  ;;  %v7911_v60 = vmul.f32 16.0, %v462_v4  ;;  %v481_v59 = vld [vmem:[%s14509_s0 + $0xec8] sm:$0xff]  ;;  %v454_v4 = vld [vmem:[%s14509_s0 + $0xdf0] sm:$0xff] }
 0x19a   :  { %15856 = vst [vmem:[#allocation406_spill] sm:$0xff] %v7846_v22  ;;  %v7909_v22 = vmul.f32 16.0, %v442_v49  ;;  %v7927_v49 = vmul.f32 %v7774_v40, %v1040_v18  ;;  %v1540_v18 = vadd.f32 %v1539_v28, %v7881_v26  ;;  %1498 = vadd.xlane.f32.xlu0 %v1497_v52  ;;  %v483_v28 = vld [vmem:[%s14509_s0 + $0xed8] sm:$0xff]  ;;  %v7960_v14 = vmul.f32 16.0, %v481_v59 }
 0x19b   :  { %15857 = vst [vmem:[#allocation407_spill] sm:$0xff] %v7853_v24  ;;  %v1518_v53 = vadd.f32 %v7907_v23, %v7895_v45  ;;  %v7940_v24 = vmul.f32 16.0, %v463_v56 }
 0x19c   :  { %15858 = vst [vmem:[#allocation408_spill] sm:$0xff] %v7856_v12  ;;  %v444_v12 = vld [vmem:[%s14509_s0 + $0xda0] sm:$0xff] }
 0x19d   :  { %15859 = vst [vmem:[#allocation409_spill] sm:$0xff] %v7858_v7  ;;  %v7914_v7 = vmul.f32 16.0, %v452_v33  ;;  %v7933_v33 = vmul.f32 16.0, %v443_v2  ;;  %v1529_v2 = vadd.f32 %v1528_v39, %v7886_v17  ;;  %v1519_v56 = vadd.f32 %v1518_v53, %v7909_v22  ;;  %v472_v53 = vld [vmem:[%s14509_s0 + $0xe80] sm:$0xff] }
 0x19e   :  { %15860 = vst [vmem:[#allocation410_spill] sm:$0xff] %v7864_v1  ;;  %v482_v1 = vld [vmem:[%s14509_s0 + $0xed0] sm:$0xff]  ;;  %v7963_v39 = vmul.f32 16.0, %v454_v4  ;;  %v1067_v4 = vpop.xlane.xlu1 %1066 }
 0x19f   :  { %15861 = vst [vmem:[#allocation411_spill] sm:$0xff] %v7867_v3  ;;  %v1085_v3 = vpop.xlane.xlu2 %1084  ;;  %v7969_v52 = vmul.f32 16.0, %v482_v1  ;;  %v484_v1 = vld [vmem:[%s14509_s0 + $0xee0] sm:$0xff] }
 0x1a0   :  { %15862 = vst [vmem:[#allocation412_spill] sm:$0xff] %v7875_v37  ;;  %v7946_v37 = vmul.f32 16.0, %v453_v36  ;;  %v1541_v36 = vadd.f32 %v1540_v18, %v7911_v60  ;;  %v7978_v59 = vmul.f32 %v7774_v40, %v1085_v3  ;;  %v7980_v18 = vmul.f32 16.0, %v455_v9  ;;  %v485_v9 = vld [vmem:[%s14509_s0 + $0xee8] sm:$0xff] }
 0x1a1   :  { %15863 = vst [vmem:[#allocation413_spill] sm:$0xff] %v7881_v26  ;;  %v7958_v26 = vmul.f32 16.0, %v480_v11  ;;  %v473_v11 = vld [vmem:[%s14509_s0 + $0xe88] sm:$0xff] }
 0x1a2   :  { %15864 = vst [vmem:[#allocation414_spill] sm:$0xff] %v7886_v17  ;;  %v1530_v17 = vadd.f32 %v1529_v2, %v7914_v7  ;;  %v1542_v10 = vadd.f32 %v1541_v36, %v7940_v24 }
 0x1a3   :  { %15865 = vst [vmem:[#allocation415_spill] sm:$0xff] %v7895_v45  ;;  %v7952_v45 = vmul.f32 16.0, %v444_v12  ;;  %v446_v12 = vld [vmem:[%s14509_s0 + $0xdb0] sm:$0xff] }
 0x1a4   :  { %15866 = vst [vmem:[#allocation416_spill] sm:$0xff] %v7907_v23  ;;  %v445_v23 = vld [vmem:[%s14509_s0 + $0xda8] sm:$0xff]  ;;  %v1531_v3 = vadd.f32 %v1530_v17, %v7946_v37  ;;  %v8006_v36 = vmul.f32 16.0, %v446_v12  ;;  %1543 = vadd.xlane.f32.xlu2 %v1542_v10  ;;  %v466_v12 = vld [vmem:[%s14509_s0 + $0xe50] sm:$0xff] }
 0x1a5   :  { %15867 = vst [vmem:[#allocation417_spill] sm:$0xff] %v7909_v22  ;;  %v7982_v2 = vmul.f32 16.0, %v445_v23  ;;  %v474_v22 = vld [vmem:[%s14509_s0 + $0xe90] sm:$0xff]  ;;  %v447_v23 = vld [vmem:[%s14509_s0 + $0xdb8] sm:$0xff] }
 0x1a6   :  { %15868 = vst [vmem:[#allocation418_spill] sm:$0xff] %v7911_v60  ;;  %v1520_v60 = vadd.f32 %v1519_v56, %v7933_v33  ;;  %v7999_v56 = vmul.f32 16.0, %v483_v28  ;;  %v464_v28 = vld [vmem:[%s14509_s0 + $0xe40] sm:$0xff]  ;;  %v1532_v27 = vadd.f32 %v1531_v3, %v7963_v39  ;;  %v8020_v25 = vmul.f32 16.0, %v474_v22 }
 0x1a7   :  { %15869 = vst [vmem:[#allocation419_spill] sm:$0xff] %v7914_v7  ;;  %v1049_v7 = vpop.xlane.xlu0 %1048  ;;  %v476_v22 = vld [vmem:[%s14509_s0 + $0xea0] sm:$0xff] }
 0x1a8   :  { %15870 = vst [vmem:[#allocation420_spill] sm:$0xff] %v7933_v33  ;;  %v1563_v33 = vadd.f32 %v7960_v14, %v7958_v26  ;;  %v1521_v17 = vadd.f32 %v1520_v60, %v7952_v45  ;;  %v465_v60 = vld [vmem:[%s14509_s0 + $0xe48] sm:$0xff]  ;;  %v1533_v3 = vadd.f32 %v1532_v27, %v7980_v18  ;;  %v487_v27 = vld [vmem:[%s14509_s0 + $0xef8] sm:$0xff] }
 0x1a9   :  { %15871 = vst [vmem:[#allocation421_spill] sm:$0xff] %v7940_v24  ;;  %v8009_v24 = vmul.f32 16.0, %v472_v53  ;;  %v8028_v53 = vmul.f32 16.0, %v447_v23 }
 0x1aa   :  { %15872 = vst [vmem:[#allocation422_spill] sm:$0xff] %v7946_v37  ;;  %v8011_v37 = vmul.f32 16.0, %v473_v11  ;;  %v1522_v10 = vadd.f32 %v1521_v17, %v7982_v2  ;;  %v486_v11 = vld [vmem:[%s14509_s0 + $0xef0] sm:$0xff]  ;;  %v467_v17 = vld [vmem:[%s14509_s0 + $0xe58] sm:$0xff]  ;;  %1534 = vadd.xlane.f32.xlu1 %v1533_v3 }
 0x1ab   :  { %15873 = vst [vmem:[#allocation423_spill] sm:$0xff] %v7952_v45  ;;  %v8086_v3 = vmul.f32 16.0, %v467_v17 }
 0x1ac   :  { %15874 = vst [vmem:[#allocation424_spill] sm:$0xff] %v7958_v26  ;;  %v1564_v26 = vadd.f32 %v1563_v33, %v7969_v52  ;;  %v1554_v23 = vadd.f32 %v8011_v37, %v8009_v24  ;;  %v1523_v45 = vadd.f32 %v1522_v10, %v8006_v36 }
 0x1ad   :  { %15875 = vst [vmem:[#allocation425_spill] sm:$0xff] %v7960_v14  ;;  %v8017_v14 = vmul.f32 16.0, %v484_v1  ;;  %v8034_v1 = vmul.f32 16.0, %v485_v9  ;;  %v8051_v9 = vmul.f32 %v7774_v40, %v1067_v4 }
 0x1ae   :  { %15876 = vst [vmem:[#allocation426_spill] sm:$0xff] %v7963_v39  ;;  %v1555_v10 = vadd.f32 %v1554_v23, %v8020_v25 }
 0x1af   :  { %15877 = vst [vmem:[#allocation427_spill] sm:$0xff] %v7969_v52  ;;  %v1565_v52 = vadd.f32 %v1564_v26, %v7999_v56  ;;  %v477_v26 = vld [vmem:[%s14509_s0 + $0xea8] sm:$0xff]  ;;  %v1094_v39 = vpop.xlane.xlu0 %1093 }
 0x1b0   :  { %15878 = vst [vmem:[#allocation428_spill] sm:$0xff] %v7978_v59  ;;  %v475_v59 = vld [vmem:[%s14509_s0 + $0xe98] sm:$0xff] }
 0x1b1   :  { %15879 = vst [vmem:[#allocation429_spill] sm:$0xff] %v7980_v18  ;;  %v8039_v33 = vmul.f32 16.0, %v475_v59  ;;  %v8060_v59 = vmul.f32 16.0, %v465_v60  ;;  %v1566_v4 = vadd.f32 %v1565_v52, %v8017_v14  ;;  %v504_v60 = vld [vmem:[%s14509_s0 + $0xf80] sm:$0xff]  ;;  %v1524_v52 = vadd.f32 %v1523_v45, %v8028_v53  ;;  %v479_v45 = vld [vmem:[%s14509_s0 + $0xeb8] sm:$0xff] }
 0x1b2   :  { %15880 = vst [vmem:[#allocation430_spill] sm:$0xff] %v7982_v2  ;;  %v8048_v2 = vmul.f32 16.0, %v464_v28  ;;  %v8064_v28 = vmul.f32 16.0, %v486_v11  ;;  %v8080_v11 = vmul.f32 %v7774_v40, %v1049_v7 }
 0x1b3   :  { %15881 = vst [vmem:[#allocation431_spill] sm:$0xff] %v7999_v56  ;;  %v8062_v56 = vmul.f32 16.0, %v466_v12  ;;  %v505_v12 = vld [vmem:[%s14509_s0 + $0xf88] sm:$0xff]  ;;  %v1567_v7 = vadd.f32 %v1566_v4, %v8034_v1  ;;  %v1556_v17 = vadd.f32 %v1555_v10, %v8039_v33  ;;  %1525 = vadd.xlane.f32.xlu0 %v1524_v52  ;;  %v507_v4 = vld [vmem:[%s14509_s0 + $0xf98] sm:$0xff] }
 0x1b4   :  { %15882 = vst [vmem:[#allocation432_spill] sm:$0xff] %v8006_v36  ;;  %v468_v36 = vld [vmem:[%s14509_s0 + $0xe60] sm:$0xff]  ;;  %v1545_v23 = vadd.f32 %v8060_v59, %v8048_v2 }
 0x1b5   :  { %15883 = vst [vmem:[#allocation433_spill] sm:$0xff] %v8009_v24  ;;  %v8067_v24 = vmul.f32 16.0, %v476_v22  ;;  %v478_v22 = vld [vmem:[%s14509_s0 + $0xeb0] sm:$0xff]  ;;  %v8105_v18 = vmul.f32 16.0, %v468_v36  ;;  %v1568_v10 = vadd.f32 %v1567_v7, %v8064_v28 }
 0x1b6   :  { %15884 = vst [vmem:[#allocation434_spill] sm:$0xff] %v8011_v37  ;;  %v1112_v37 = vpop.xlane.xlu2 %1111  ;;  %v470_v36 = vld [vmem:[%s14509_s0 + $0xe70] sm:$0xff] }
 0x1b7   :  { %15885 = vst [vmem:[#allocation435_spill] sm:$0xff] %v8017_v14  ;;  %v506_v14 = vld [vmem:[%s14509_s0 + $0xf90] sm:$0xff]  ;;  %v1557_v6 = vadd.f32 %v1556_v17, %v8067_v24 }
 0x1b8   :  { %15886 = vst [vmem:[#allocation436_spill] sm:$0xff] %v8020_v25  ;;  %v8093_v25 = vmul.f32 16.0, %v487_v27  ;;  %v1546_v27 = vadd.f32 %v1545_v23, %v8062_v56  ;;  %v8122_v52 = vmul.f32 16.0, %v506_v14  ;;  %v8131_v23 = vmul.f32 %v7774_v40, %v1112_v37  ;;  %v508_v14 = vld [vmem:[%s14509_s0 + $0xfa0] sm:$0xff]  ;;  %v471_v37 = vld [vmem:[%s14509_s0 + $0xe78] sm:$0xff] }
 0x1b9   :  { %15887 = vst [vmem:[#allocation437_spill] sm:$0xff] %v8028_v53  ;;  %v8099_v53 = vmul.f32 16.0, %v477_v26  ;;  %v8113_v26 = vmul.f32 16.0, %v505_v12  ;;  %v497_v12 = vld [vmem:[%s14509_s0 + $0xf48] sm:$0xff] }
 0x1ba   :  { %15888 = vst [vmem:[#allocation438_spill] sm:$0xff] %v8034_v1  ;;  %v8111_v1 = vmul.f32 16.0, %v504_v60  ;;  %v496_v60 = vld [vmem:[%s14509_s0 + $0xf40] sm:$0xff]  ;;  %v1547_v17 = vadd.f32 %v1546_v27, %v8086_v3 }
 0x1bb   :  { %15889 = vst [vmem:[#allocation439_spill] sm:$0xff] %v8039_v33  ;;  %v8116_v33 = vmul.f32 16.0, %v478_v22  ;;  %v8133_v22 = vmul.f32 16.0, %v479_v45  ;;  %v8152_v45 = vmul.f32 16.0, %v507_v4  ;;  %v488_v4 = vld [vmem:[%s14509_s0 + $0xf00] sm:$0xff] }
 0x1bc   :  { %15890 = vst [vmem:[#allocation440_spill] sm:$0xff] %v8048_v2  ;;  %v1103_v2 = vpop.xlane.xlu1 %1102  ;;  %v1590_v27 = vadd.f32 %v8113_v26, %v8111_v1 }
 0x1bd   :  { %15891 = vst [vmem:[#allocation441_spill] sm:$0xff] %v8060_v59  ;;  %v469_v59 = vld [vmem:[%s14509_s0 + $0xe68] sm:$0xff] }
 0x1be   :  { %15892 = vst [vmem:[#allocation442_spill] sm:$0xff] %v8062_v56  ;;  %v8135_v7 = vmul.f32 16.0, %v469_v59  ;;  %v1569_v56 = vadd.f32 %v1568_v10, %v8093_v25  ;;  %v509_v59 = vld [vmem:[%s14509_s0 + $0xfa8] sm:$0xff]  ;;  %v8159_v10 = vmul.f32 16.0, %v470_v36 }
 0x1bf   :  { %15893 = vst [vmem:[#allocation443_spill] sm:$0xff] %v8064_v28  ;;  %v498_v28 = vld [vmem:[%s14509_s0 + $0xf50] sm:$0xff]  ;;  %v489_v36 = vld [vmem:[%s14509_s0 + $0xf08] sm:$0xff] }
 0x1c0   :  { %15894 = vst [vmem:[#allocation444_spill] sm:$0xff] %v8067_v24  ;;  %v1558_v24 = vadd.f32 %v1557_v6, %v8099_v53  ;;  %v1548_v6 = vadd.f32 %v1547_v17, %v8105_v18  ;;  %1570 = vadd.xlane.f32.xlu2 %v1569_v56  ;;  %v8173_v5 = vmul.f32 16.0, %v498_v28  ;;  %v8187_v17 = vmul.f32 16.0, %v509_v59  ;;  %v500_v28 = vld [vmem:[%s14509_s0 + $0xf60] sm:$0xff] }
 0x1c1   :  { %15895 = vst [vmem:[#allocation445_spill] sm:$0xff] %v8086_v3  ;;  %v499_v3 = vld [vmem:[%s14509_s0 + $0xf58] sm:$0xff]  ;;  %v8201_v59 = vmul.f32 16.0, %v488_v4 }
 0x1c2   :  { %15896 = vst [vmem:[#allocation446_spill] sm:$0xff] %v8093_v25  ;;  %v8162_v25 = vmul.f32 16.0, %v496_v60  ;;  %v490_v60 = vld [vmem:[%s14509_s0 + $0xf10] sm:$0xff]  ;;  %v1549_v56 = vadd.f32 %v1548_v6, %v8135_v7 }
 0x1c3   :  { %15897 = vst [vmem:[#allocation447_spill] sm:$0xff] %v8099_v53  ;;  %v8164_v53 = vmul.f32 16.0, %v497_v12  ;;  %v8181_v12 = vmul.f32 16.0, %v471_v37 }
 0x1c4   :  { %15898 = vst [vmem:[#allocation448_spill] sm:$0xff] %v8105_v18  ;;  %v8204_v18 = vmul.f32 %v7774_v40, %v1103_v2 }
 0x1c5   :  { %15899 = vst [vmem:[#allocation449_spill] sm:$0xff] %v8111_v1  ;;  %v1591_v1 = vadd.f32 %v1590_v27, %v8122_v52  ;;  %v1139_v27 = vpop.xlane.xlu2 %1138  ;;  %v1581_v6 = vadd.f32 %v8164_v53, %v8162_v25 }
 0x1c6   :  { %15900 = vst [vmem:[#allocation450_spill] sm:$0xff] %v8113_v26  ;;  %v8170_v26 = vmul.f32 16.0, %v508_v14  ;;  %v8192_v14 = vmul.f32 16.0, %v499_v3  ;;  %v1550_v3 = vadd.f32 %v1549_v56, %v8159_v10 }
 0x1c7   :  { %15901 = vst [vmem:[#allocation451_spill] sm:$0xff] %v8116_v33  ;;  %v1592_v37 = vadd.f32 %v1591_v1, %v8152_v45  ;;  %v501_v1 = vld [vmem:[%s14509_s0 + $0xf68] sm:$0xff]  ;;  %v1582_v56 = vadd.f32 %v1581_v6, %v8173_v5 }
 0x1c8   :  { %15902 = vst [vmem:[#allocation452_spill] sm:$0xff] %v8122_v52 }
 0x1c9   :  { %15903 = vst [vmem:[#allocation453_spill] sm:$0xff] %v8131_v23  ;;  %v1559_v23 = vadd.f32 %v1558_v24, %v8116_v33  ;;  %v510_v24 = vld [vmem:[%s14509_s0 + $0xfb0] sm:$0xff]  ;;  %v1593_v2 = vadd.f32 %v1592_v37, %v8170_v26 }
 0x1ca   :  { %15904 = vst [vmem:[#allocation454_spill] sm:$0xff] %v8133_v22  ;;  %v8217_v4 = vmul.f32 16.0, %v510_v24  ;;  %v1130_v24 = vpop.xlane.xlu1 %1129  ;;  %v502_v37 = vld [vmem:[%s14509_s0 + $0xf70] sm:$0xff] }
 0x1cb   :  { %15905 = vst [vmem:[#allocation455_spill] sm:$0xff] %v8135_v7  ;;  %v1560_v52 = vadd.f32 %v1559_v23, %v8133_v22  ;;  %v491_v7 = vld [vmem:[%s14509_s0 + $0xf18] sm:$0xff]  ;;  %v1121_v22 = vpop.xlane.xlu0 %1120 }
 0x1cc   :  { %15906 = vst [vmem:[#allocation456_spill] sm:$0xff] %v8152_v45  ;;  %v511_v23 = vld [vmem:[%s14509_s0 + $0xfb8] sm:$0xff]  ;;  %v8213_v45 = vmul.f32 16.0, %v489_v36  ;;  %v512_v36 = vld [vmem:[%s14509_s0 + $0xfc0] sm:$0xff]  ;;  %v8239_v6 = vmul.f32 16.0, %v491_v7  ;;  %v1583_v7 = vadd.f32 %v1582_v56, %v8192_v14  ;;  %v8269_v56 = vmul.f32 16.0, %v502_v37 }
 0x1cd   :  { %15907 = vst [vmem:[#allocation457_spill] sm:$0xff] %v8159_v10  ;;  %1561 = vadd.xlane.f32.xlu1 %v1560_v52  ;;  %v492_v10 = vld [vmem:[%s14509_s0 + $0xf20] sm:$0xff]  ;;  %v513_v52 = vld [vmem:[%s14509_s0 + $0xfc8] sm:$0xff]  ;;  %v8246_v33 = vmul.f32 16.0, %v511_v23 }
 0x1ce   :  { %15908 = vst [vmem:[#allocation458_spill] sm:$0xff] %v8162_v25  ;;  %v8220_v25 = vmul.f32 16.0, %v500_v28  ;;  %v1551_v28 = vadd.f32 %v1550_v3, %v8181_v12  ;;  %v503_v3 = vld [vmem:[%s14509_s0 + $0xf78] sm:$0xff]  ;;  %v516_v37 = vld [vmem:[%s14509_s0 + $0xfe0] sm:$0xff] }
 0x1cf   :  { %15909 = vst [vmem:[#allocation459_spill] sm:$0xff] %v8164_v53  ;;  %v8215_v53 = vmul.f32 16.0, %v490_v60  ;;  %v8233_v60 = vmul.f32 %v7774_v40, %v1094_v39  ;;  %v1594_v39 = vadd.f32 %v1593_v2, %v8187_v17  ;;  %v515_v2 = vld [vmem:[%s14509_s0 + $0xfd8] sm:$0xff] }
 0x1d0   :  { %15910 = vst [vmem:[#allocation460_spill] sm:$0xff] %v8170_v26  ;;  %v1572_v26 = vadd.f32 %v8213_v45, %v8201_v59  ;;  %1552 = vadd.xlane.f32.xlu0 %v1551_v28 }
 0x1d1   :  { %15911 = vst [vmem:[#allocation461_spill] sm:$0xff] %v8173_v5  ;;  %v514_v5 = vld [vmem:[%s14509_s0 + $0xfd0] sm:$0xff] }
 0x1d2   :  { %15912 = vst [vmem:[#allocation462_spill] sm:$0xff] %v8181_v12  ;;  %v8252_v12 = vmul.f32 16.0, %v501_v1  ;;  %v1573_v23 = vadd.f32 %v1572_v26, %v8215_v53  ;;  %v1595_v1 = vadd.f32 %v1594_v39, %v8217_v4  ;;  %v8275_v28 = vmul.f32 16.0, %v514_v5  ;;  %v495_v5 = vld [vmem:[%s14509_s0 + $0xf38] sm:$0xff] }
 0x1d3   :  { %15913 = vst [vmem:[#allocation463_spill] sm:$0xff] %v8187_v17  ;;  %v8264_v17 = vmul.f32 16.0, %v512_v36  ;;  %v8278_v26 = vmul.f32 %v7774_v40, %v1139_v27  ;;  %v517_v27 = vld [vmem:[%s14509_s0 + $0xfe8] sm:$0xff] }
 0x1d4   :  { %15914 = vst [vmem:[#allocation464_spill] sm:$0xff] %v8192_v14  ;;  %v1584_v14 = vadd.f32 %v1583_v7, %v8220_v25  ;;  %v1596_v39 = vadd.f32 %v1595_v1, %v8246_v33  ;;  %v8309_v1 = vsub.f32 %v5306_v35, %v7927_v49 }
 0x1d5   :  { %15915 = vst [vmem:[#allocation465_spill] sm:$0xff] %v8201_v59  ;;  %v8258_v59 = vmul.f32 16.0, %v492_v10  ;;  %v494_v10 = vld [vmem:[%s14509_s0 + $0xf30] sm:$0xff] }
 0x1d6   :  { %15916 = vst [vmem:[#allocation466_spill] sm:$0xff] %v8213_v45  ;;  %v493_v45 = vld [vmem:[%s14509_s0 + $0xf28] sm:$0xff]  ;;  %v1585_v7 = vadd.f32 %v1584_v14, %v8252_v12  ;;  %v8305_v14 = vsub.f32 %v5304_v34, %v7927_v49  ;;  %1597 = vadd.xlane.f32.xlu2 %v1596_v39  ;;  %v8322_v34 = vmul.f32 16.0, %v495_v5  ;;  %v518_v39 = vld [vmem:[%s14509_s0 + $0xff0] sm:$0xff]  ;;  %v8337_v5 = vmul.f32 %v7774_v40, %v1121_v22 }
 0x1d7   :  { %15917 = vst [vmem:[#allocation467_spill] sm:$0xff] %v8215_v53  ;;  %v8280_v53 = vmul.f32 16.0, %v503_v3  ;;  %v8282_v36 = vmul.f32 16.0, %v493_v45  ;;  %v8296_v45 = vmul.f32 16.0, %v515_v2 }
 0x1d8   :  { %15918 = vst [vmem:[#allocation468_spill] sm:$0xff] %v8217_v4  ;;  %v1586_v2 = vadd.f32 %v1585_v7, %v8269_v56  ;;  %v8328_v7 = vmul.f32 16.0, %v517_v27 }
 0x1d9   :  { %15919 = vst [vmem:[#allocation469_spill] sm:$0xff] %v8220_v25 }
 0x1da   :  { %15920 = vst [vmem:[#allocation470_spill] sm:$0xff] %v8233_v60  ;;  %v8266_v60 = vmul.f32 16.0, %v513_v52  ;;  %v1574_v52 = vadd.f32 %v1573_v23, %v8239_v6  ;;  %v8300_v23 = vmul.f32 16.0, %v494_v10  ;;  %v8317_v10 = vsub.f32 %v5322_v42, %v7927_v49 }
 0x1db   :  { %15921 = vst [vmem:[#allocation471_spill] sm:$0xff] %v8239_v6  ;;  %v8312_v6 = vmul.f32 16.0, %v516_v37  ;;  %v1587_v37 = vadd.f32 %v1586_v2, %v8280_v53  ;;  %v2191_v42 = vmul.f32 %v8305_v14, %v8305_v14  ;;  %v8345_v2 = vsub.f32 %v5329_v46, %v7927_v49 }
 0x1dc   :  { %15922 = vst [vmem:[#allocation472_spill] sm:$0xff] %v8246_v33  ;;  %v1599_v3 = vadd.f32 %v8266_v60, %v8264_v17  ;;  %v1575_v4 = vadd.f32 %v1574_v52, %v8258_v59  ;;  %v1166_v33 = vpop.xlane.xlu2 %1165  ;;  %v8320_v52 = vmul.f32 %v7774_v40, %v1130_v24  ;;  %v2192_v24 = vmul.f32 %v8309_v1, %v8309_v1 }
 0x1dd   :  { %15923 = vst [vmem:[#allocation473_spill] sm:$0xff] %v8252_v12  ;;  %1588 = vadd.xlane.f32.xlu1 %v1587_v37  ;;  %v8362_v37 = vsub.f32 %v5445_v61, %v8080_v11 }
 0x1de   :  { %15924 = vst [vmem:[#allocation474_spill] sm:$0xff] %v8258_v59  ;;  %v1576_v35 = vadd.f32 %v1575_v4, %v8282_v36  ;;  %v8340_v4 = vmul.f32 %v7774_v40, %v1166_v33  ;;  %v8355_v33 = vsub.f32 %v5356_v58, %v7927_v49 }
 0x1df   :  { %15925 = vst [vmem:[#allocation475_spill] sm:$0xff] %v8264_v17  ;;  %v8350_v17 = vmul.f32 16.0, %v518_v39  ;;  %v8366_v39 = vsub.f32 %v5447_v0, %v8080_v11  ;;  %v2194_v0 = vmul.f32 %v8345_v2, %v8345_v2 }
 0x1e0   :  { %15926 = vst [vmem:[#allocation476_spill] sm:$0xff] %v8266_v60  ;;  %v1600_v60 = vadd.f32 %v1599_v3, %v8275_v28  ;;  %v1577_v27 = vadd.f32 %v1576_v35, %v8300_v23  ;;  %v2193_v35 = vmul.f32 %v8317_v10, %v8317_v10 }
 0x1e1   :  { %15927 = vst [vmem:[#allocation477_spill] sm:$0xff] %v8269_v56  ;;  %v15959_v56 = vld [vmem:[#allocation7_spill] sm:$0xff] }
 0x1e2   :  { %15928 = vst [vmem:[#allocation478_spill] sm:$0xff] %v8275_v28  ;;  %v1601_v3 = vadd.f32 %v1600_v60, %v8296_v45  ;;  %v1157_v28 = vpop.xlane.xlu1 %1156  ;;  %v1148_v60 = vpop.xlane.xlu0 %1147  ;;  %v1578_v46 = vadd.f32 %v1577_v27, %v8322_v34  ;;  %v8564_v12 = vsub.f32 %v15959_v56, %v7825_v54  ;;  %v15964_v56 = vld [vmem:[#allocation11_spill] sm:$0xff] }
 0x1e3   :  { %15929 = vst [vmem:[#allocation479_spill] sm:$0xff] %v8280_v53  ;;  %v8381_v61 = vmul.f32 %v7774_v40, %v1148_v60  ;;  %v2200_v60 = vmul.f32 %v8366_v39, %v8366_v39 }
 0x1e4   :  { %15930 = vst [vmem:[#allocation480_spill] sm:$0xff] %v8282_v36  ;;  %v1602_v22 = vadd.f32 %v1601_v3, %v8312_v6  ;;  %v8369_v3 = vmul.f32 %v7774_v40, %v1157_v28  ;;  %1579 = vadd.xlane.f32.xlu0 %v1578_v46  ;;  %v8410_v46 = vsub.f32 %v5495_v50, %v8080_v11 }
 0x1e5   :  { %15931 = vst [vmem:[#allocation481_spill] sm:$0xff] %v8296_v45  ;;  %v519_v45 = vld [vmem:[%s14509_s0 + $0xff8] sm:$0xff] }
 0x1e6   :  { %15932 = vst [vmem:[#allocation482_spill] sm:$0xff] %v8300_v23  ;;  %v2703_v23 = vadd.f32 %v2192_v24, %v2191_v42  ;;  %v1603_v58 = vadd.f32 %v1602_v22, %v8328_v7  ;;  %v8378_v42 = vsub.f32 %v5455_v8, %v8080_v11  ;;  %v8383_v24 = vmul.f32 16.0, %v519_v45 }
 0x1e7   :  { %15933 = vst [vmem:[#allocation483_spill] sm:$0xff] %v8312_v6  ;;  %v8374_v6 = vsub.f32 %v5364_v62, %v7927_v49  ;;  %v8390_v62 = vsub.f32 %v5484_v41, %v8080_v11  ;;  %v2199_v8 = vmul.f32 %v8362_v37, %v8362_v37  ;;  %v8398_v45 = vsub.f32 %v5366_v63, %v7927_v49 }
 0x1e8   :  { %15934 = vst [vmem:[#allocation484_spill] sm:$0xff] %v8322_v34  ;;  %v2704_v28 = vadd.f32 %v2703_v23, %v2193_v35  ;;  %v1604_v27 = vadd.f32 %v1603_v58, %v8350_v17  ;;  %v8402_v22 = vsub.f32 %v5392_v15, %v7927_v49  ;;  %v2195_v23 = vmul.f32 %v8355_v33, %v8355_v33 }
 0x1e9   :  { %15935 = vst [vmem:[#allocation485_spill] sm:$0xff] %v8328_v7  ;;  %v2196_v41 = vmul.f32 %v8374_v6, %v8374_v6  ;;  %v2201_v58 = vmul.f32 %v8378_v42, %v8378_v42  ;;  %v2712_v63 = vadd.f32 %v2200_v60, %v2199_v8  ;;  %v8417_v15 = vsub.f32 %v5517_v31, %v8080_v11 }
 0x1ea   :  { %15936 = vst [vmem:[#allocation486_spill] sm:$0xff] %v8350_v17  ;;  %v2705_v35 = vadd.f32 %v2704_v28, %v2194_v0  ;;  %v1605_v17 = vadd.f32 %v1604_v27, %v8383_v24  ;;  %v8421_v49 = vsub.f32 %v5519_v32, %v8080_v11  ;;  %v2202_v0 = vmul.f32 %v8390_v62, %v8390_v62 }
 0x1eb   :  { %15937 = vst [vmem:[#allocation487_spill] sm:$0xff] %v8383_v24  ;;  %v2713_v50 = vadd.f32 %v2712_v63, %v2201_v58  ;;  %v8427_v28 = vsub.f32 %v5260_v16, %v7898_v47  ;;  %v8431_v27 = vsub.f32 %v5271_v20, %v7898_v47  ;;  %v2197_v31 = vmul.f32 %v8398_v45, %v8398_v45 }
 0x1ec   :  { %v2706_v7 = vadd.f32 %v2705_v35, %v2195_v23  ;;  %v2198_v8 = vmul.f32 %v8402_v22, %v8402_v22  ;;  %v8439_v60 = vsub.f32 %v5273_v21, %v7898_v47  ;;  %v8443_v23 = vsub.f32 %v5540_v48, %v8080_v11  ;;  %1606 = vadd.xlane.f32.xlu0 %v1605_v17  ;;  %v1193_v11 = vpop.xlane.xlu2 %1192 }
 0x1ed   :  { %15938 = vst [vmem:[#allocation488_spill] sm:$0xff] %v8427_v28  ;;  %v2203_v16 = vmul.f32 %v8410_v46, %v8410_v46  ;;  %v2714_v20 = vadd.f32 %v2713_v50, %v2202_v0  ;;  %v2207_v35 = vmul.f32 %v8427_v28, %v8427_v28  ;;  %v8453_v21 = vsub.f32 %v5294_v30, %v7898_v47 }
 0x1ee   :  { %15939 = vst [vmem:[#allocation489_spill] sm:$0xff] %v8431_v27  ;;  %v2707_v32 = vadd.f32 %v2706_v7, %v2196_v41  ;;  %v2204_v7 = vmul.f32 %v8417_v15, %v8417_v15  ;;  %v2208_v48 = vmul.f32 %v8431_v27, %v8431_v27  ;;  %v2205_v41 = vmul.f32 %v8421_v49, %v8421_v49 }
 0x1ef   :  { %15940 = vst [vmem:[#allocation490_spill] sm:$0xff] %v8439_v60  ;;  %v2715_v63 = vadd.f32 %v2714_v20, %v2203_v16  ;;  %v8461_v0 = vsub.f32 %v5311_v38, %v7898_v47  ;;  %v8465_v17 = vsub.f32 %v5324_v43, %v7898_v47  ;;  %v2209_v30 = vmul.f32 %v8439_v60, %v8439_v60 }
 0x1f0   :  { %v2708_v58 = vadd.f32 %v2707_v32, %v2197_v31  ;;  %15941 = vst [vmem:[#allocation491_spill] sm:$0xff] %v8453_v21  ;;  %v2721_v31 = vadd.f32 %v2208_v48, %v2207_v35  ;;  %v8471_v32 = vsub.f32 %v5389_v13, %v8051_v9  ;;  %v8475_v16 = vsub.f32 %v5326_v44, %v7898_v47 }
 0x1f1   :  { %15942 = vst [vmem:[#allocation492_spill] sm:$0xff] %v8461_v0  ;;  %v2716_v24 = vadd.f32 %v2715_v63, %v2204_v7  ;;  %v8479_v38 = vsub.f32 %v5398_v19, %v8051_v9  ;;  %v8483_v43 = vsub.f32 %v5407_v29, %v8051_v9  ;;  %v2206_v13 = vmul.f32 %v8443_v23, %v8443_v23 }
 0x1f2   :  { %15943 = vst [vmem:[#allocation493_spill] sm:$0xff] %v8465_v17  ;;  %v2709_v50 = vadd.f32 %v2708_v58, %v2198_v8  ;;  %v8486_v8 = vmul.f32 %v7774_v40, %v1193_v11  ;;  %v2210_v20 = vmul.f32 %v8453_v21, %v8453_v21  ;;  %v2722_v44 = vadd.f32 %v2721_v31, %v2209_v30  ;;  %v15946_v31 = vld [vmem:[#allocation2_spill] sm:$0xff] }
 0x1f3   :  { %15944 = vst [vmem:[#allocation494_spill] sm:$0xff] %v8475_v16  ;;  %v2717_v35 = vadd.f32 %v2716_v24, %v2205_v41  ;;  %v8494_v19 = vsub.f32 %v5350_v55, %v7898_v47  ;;  %v2215_v29 = vmul.f32 %v8471_v32, %v8471_v32  ;;  %v2216_v58 = vmul.f32 %v8479_v38, %v8479_v38 }
 0x1f4   :  { %2710 = vadd.xlane.f32.xlu1 %v2709_v50  ;;  %v2211_v7 = vmul.f32 %v8461_v0, %v8461_v0  ;;  %v2212_v48 = vmul.f32 %v8465_v17, %v8465_v17  ;;  %v2723_v11 = vadd.f32 %v2722_v44, %v2210_v20  ;;  %v8506_v24 = vsub.f32 %v5435_v51, %v8051_v9  ;;  %v15948_v51 = vld [vmem:[#allocation3_spill] sm:$0xff]  ;;  %v15962_v17 = vld [vmem:[#allocation10_spill] sm:$0xff] }
 0x1f5   :  { %15945 = vst [vmem:[#allocation495_spill] sm:$0xff] %v8494_v19  ;;  %v2718_v41 = vadd.f32 %v2717_v35, %v2206_v13  ;;  %v2213_v55 = vmul.f32 %v8475_v16, %v8475_v16  ;;  %v8512_v47 = vsub.f32 %v5440_v57, %v8051_v9  ;;  %v2217_v63 = vmul.f32 %v8483_v43, %v8483_v43  ;;  %v15950_v13 = vld [vmem:[#allocation18_spill] sm:$0xff]  ;;  %v15951_v57 = vld [vmem:[#allocation19_spill] sm:$0xff]  ;;  %v15961_v16 = vld [vmem:[#allocation428_spill] sm:$0xff] }
 0x1f6   :  { %v2724_v50 = vadd.f32 %v2723_v11, %v2211_v7  ;;  %v2730_v30 = vadd.f32 %v2216_v58, %v2215_v29  ;;  %v8518_v20 = vsub.f32 %v15946_v31, %v7825_v54  ;;  %v8522_v44 = vsub.f32 %v15948_v51, %v7825_v54  ;;  %v15952_v7 = vld [vmem:[#allocation4_spill] sm:$0xff]  ;;  %v15954_v58 = vld [vmem:[#allocation5_spill] sm:$0xff] }
 0x1f7   :  { %2719 = vadd.xlane.f32.xlu2 %v2718_v41  ;;  %v8526_v35 = vsub.f32 %v15950_v13, %v8051_v9  ;;  %v8530_v34 = vsub.f32 %v15951_v57, %v8051_v9  ;;  %v8534_v29 = vsub.f32 %v15952_v7, %v7825_v54  ;;  %v8538_v11 = vsub.f32 %v15954_v58, %v7825_v54  ;;  %v15956_v13 = vld [vmem:[#allocation6_spill] sm:$0xff]  ;;  %v15958_v58 = vld [vmem:[#allocation23_spill] sm:$0xff] }
 0x1f8   :  { %15947 = vst [vmem:[#allocation2_spill] sm:$0xff] %v8518_v20  ;;  %v2725_v31 = vadd.f32 %v2724_v50, %v2212_v48  ;;  %v2218_v41 = vmul.f32 %v8506_v24, %v8506_v24  ;;  %v2731_v51 = vadd.f32 %v2730_v30, %v2217_v63  ;;  %v8544_v36 = vsub.f32 %v15956_v13, %v7825_v54 }
 0x1f9   :  { %15949 = vst [vmem:[#allocation3_spill] sm:$0xff] %v8522_v44  ;;  %v2214_v57 = vmul.f32 %v8494_v19, %v8494_v19  ;;  %v2223_v7 = vmul.f32 %v8518_v20, %v8518_v20  ;;  %v2224_v59 = vmul.f32 %v8522_v44, %v8522_v44  ;;  %v2225_v48 = vmul.f32 %v8534_v29, %v8534_v29 }
 0x1fa   :  { %15953 = vst [vmem:[#allocation18_spill] sm:$0xff] %v8534_v29  ;;  %v2726_v50 = vadd.f32 %v2725_v31, %v2213_v55  ;;  %v8556_v63 = vsub.f32 %v15958_v58, %v8051_v9  ;;  %v2219_v30 = vmul.f32 %v8512_v47, %v8512_v47  ;;  %v2732_v13 = vadd.f32 %v2731_v51, %v2218_v41  ;;  %v1184_v55 = vpop.xlane.xlu1 %1183 }
 0x1fb   :  { %15955 = vst [vmem:[#allocation19_spill] sm:$0xff] %v8538_v11  ;;  %v2220_v53 = vmul.f32 %v8526_v35, %v8526_v35  ;;  %v2226_v25 = vmul.f32 %v8538_v11, %v8538_v11  ;;  %v2739_v19 = vadd.f32 %v2224_v59, %v2223_v7  ;;  %v2221_v9 = vmul.f32 %v8530_v34, %v8530_v34  ;;  %v15966_v59 = vld [vmem:[#allocation12_spill] sm:$0xff] }
 0x1fc   :  { %15957 = vst [vmem:[#allocation4_spill] sm:$0xff] %v8544_v36  ;;  %v2727_v31 = vadd.f32 %v2726_v50, %v2214_v57  ;;  %v2733_v58 = vadd.f32 %v2732_v13, %v2219_v30  ;;  %v2227_v41 = vmul.f32 %v8544_v36, %v8544_v36  ;;  %v8574_v0 = vsub.f32 %v15962_v17, %v15961_v16  ;;  %v1175_v57 = vpop.xlane.xlu0 %1174  ;;  %v15970_v17 = vld [vmem:[#allocation13_spill] sm:$0xff]  ;;  %v15980_v36 = vld [vmem:[#allocation26_spill] sm:$0xff] }
 0x1fd   :  { %15960 = vst [vmem:[#allocation5_spill] sm:$0xff] %v8564_v12  ;;  %v2740_v51 = vadd.f32 %v2739_v19, %v2225_v48  ;;  %v8578_v21 = vsub.f32 %v15964_v56, %v15961_v16  ;;  %v8582_v7 = vsub.f32 %v15966_v59, %v15961_v16  ;;  %v2222_v50 = vmul.f32 %v8556_v63, %v8556_v63  ;;  %v15968_v19 = vld [vmem:[#allocation8_spill] sm:$0xff]  ;;  %v15972_v56 = vld [vmem:[#allocation9_spill] sm:$0xff] }
 0x1fe   :  { %15963 = vst [vmem:[#allocation6_spill] sm:$0xff] %v8574_v0  ;;  %2728 = vadd.xlane.f32.xlu0 %v2727_v31  ;;  %v2734_v30 = vadd.f32 %v2733_v58, %v2220_v53  ;;  %v8588_v48 = vsub.f32 %v15968_v19, %v7825_v54  ;;  %v8592_v13 = vsub.f32 %v15970_v17, %v15961_v16  ;;  %v15974_v58 = vld [vmem:[#allocation14_spill] sm:$0xff] }
 0x1ff   :  { %15965 = vst [vmem:[#allocation23_spill] sm:$0xff] %v8578_v21  ;;  %v8596_v60 = vsub.f32 %v15972_v56, %v7825_v54  ;;  %v2228_v59 = vmul.f32 %v8564_v12, %v8564_v12  ;;  %v2741_v31 = vadd.f32 %v2740_v51, %v2226_v25  ;;  %v2231_v27 = vmul.f32 %v8574_v0, %v8574_v0  ;;  %v1220_v25 = vpop.xlane.xlu2 %1219  ;;  %v15978_v12 = vld [vmem:[#allocation25_spill] sm:$0xff] }
 0x200   :  { %15967 = vst [vmem:[#allocation7_spill] sm:$0xff] %v8582_v7  ;;  %v2735_v53 = vadd.f32 %v2734_v30, %v2221_v9  ;;  %v8604_v19 = vsub.f32 %v15974_v58, %v15961_v16  ;;  %v2232_v17 = vmul.f32 %v8578_v21, %v8578_v21  ;;  %v2233_v28 = vmul.f32 %v8582_v7, %v8582_v7  ;;  %v15976_v9 = vld [vmem:[#allocation15_spill] sm:$0xff] }
 0x201   :  { %15969 = vst [vmem:[#allocation428_spill] sm:$0xff] %v8588_v48  ;;  %v8611_v54 = vmul.f32 %v7774_v40, %v1184_v55  ;;  %v8614_v56 = vmul.f32 %v7774_v40, %v1175_v57  ;;  %v2742_v51 = vadd.f32 %v2741_v31, %v2227_v41  ;;  %v8618_v30 = vsub.f32 %v15976_v9, %v15961_v16  ;;  %v15982_v31 = vld [vmem:[#allocation27_spill] sm:$0xff] }
 0x202   :  { %15971 = vst [vmem:[#allocation10_spill] sm:$0xff] %v8592_v13  ;;  %v2736_v58 = vadd.f32 %v2735_v53, %v2222_v50  ;;  %v2234_v0 = vmul.f32 %v8592_v13, %v8592_v13  ;;  %v2748_v21 = vadd.f32 %v2232_v17, %v2231_v27  ;;  %v8624_v7 = vsub.f32 %v15978_v12, %v8204_v18  ;;  %v15984_v17 = vld [vmem:[#allocation16_spill] sm:$0xff] }
 0x203   :  { %15973 = vst [vmem:[#allocation11_spill] sm:$0xff] %v8596_v60  ;;  %v2229_v55 = vmul.f32 %v8588_v48, %v8588_v48  ;;  %v2743_v57 = vadd.f32 %v2742_v51, %v2228_v59  ;;  %v8630_v41 = vsub.f32 %v15980_v36, %v8204_v18  ;;  %v8634_v9 = vsub.f32 %v15982_v31, %v8204_v18  ;;  %v1211_v31 = vpop.xlane.xlu1 %1210 }
 0x204   :  { %15975 = vst [vmem:[#allocation12_spill] sm:$0xff] %v8604_v19  ;;  %v8637_v50 = vmul.f32 %v7774_v40, %v1220_v25  ;;  %2737 = vadd.xlane.f32.xlu1 %v2736_v58  ;;  %v2230_v12 = vmul.f32 %v8596_v60, %v8596_v60  ;;  %v2235_v27 = vmul.f32 %v8604_v19, %v8604_v19  ;;  %v15986_v58 = vld [vmem:[#allocation17_spill] sm:$0xff] }
 0x205   :  { %15977 = vst [vmem:[#allocation8_spill] sm:$0xff] %v8618_v30  ;;  %v2749_v53 = vadd.f32 %v2748_v21, %v2233_v28  ;;  %v2744_v59 = vadd.f32 %v2743_v57, %v2229_v55  ;;  %v8645_v36 = vsub.f32 %v15984_v17, %v15961_v16  ;;  %v2247_v51 = vmul.f32 %v8624_v7, %v8624_v7  ;;  %v15988_v21 = vld [vmem:[#allocation31_spill] sm:$0xff]  ;;  %v15990_v17 = vld [vmem:[#allocation33_spill] sm:$0xff] }
 0x206   :  { %15979 = vst [vmem:[#allocation13_spill] sm:$0xff] %v8624_v7  ;;  %v2248_v25 = vmul.f32 %v8630_v41, %v8630_v41  ;;  %v8653_v13 = vsub.f32 %v15986_v58, %v15961_v16  ;;  %v2236_v19 = vmul.f32 %v8618_v30, %v8618_v30  ;;  %v8659_v55 = vsub.f32 %v15988_v21, %v8204_v18  ;;  %v15994_v30 = vld [vmem:[#allocation470_spill] sm:$0xff] }
 0x207   :  { %15981 = vst [vmem:[#allocation9_spill] sm:$0xff] %v8630_v41  ;;  %v2750_v28 = vadd.f32 %v2749_v53, %v2234_v0  ;;  %v2745_v57 = vadd.f32 %v2744_v59, %v2230_v12  ;;  %v8663_v7 = vsub.f32 %v15990_v17, %v8204_v18  ;;  %v15992_v41 = vld [vmem:[#allocation37_spill] sm:$0xff]  ;;  %v2249_v16 = vmul.f32 %v8634_v9, %v8634_v9  ;;  %v15995_v0 = vld [vmem:[#allocation32_spill] sm:$0xff]  ;;  %v15997_v21 = vld [vmem:[#allocation34_spill] sm:$0xff] }
 0x208   :  { %15983 = vst [vmem:[#allocation14_spill] sm:$0xff] %v8634_v9  ;;  %v8667_v60 = vsub.f32 %v15992_v41, %v8204_v18  ;;  %v2766_v48 = vadd.f32 %v2248_v25, %v2247_v51  ;;  %v8673_v53 = vsub.f32 %v15995_v0, %v15994_v30  ;;  %v8677_v12 = vsub.f32 %v15997_v21, %v15994_v30  ;;  %v15999_v17 = vld [vmem:[#allocation38_spill] sm:$0xff] }
 0x209   :  { %15985 = vst [vmem:[#allocation15_spill] sm:$0xff] %v8645_v36  ;;  %v2751_v58 = vadd.f32 %v2750_v28, %v2235_v27  ;;  %v8680_v59 = vmul.f32 %v7774_v40, %v1211_v31  ;;  %2746 = vadd.xlane.f32.xlu2 %v2745_v57  ;;  %v2237_v41 = vmul.f32 %v8645_v36, %v8645_v36  ;;  %v16001_v27 = vld [vmem:[#allocation35_spill] sm:$0xff]  ;;  %v16005_v36 = vld [vmem:[#allocation44_spill] sm:$0xff] }
 0x20a   :  { %15987 = vst [vmem:[#allocation25_spill] sm:$0xff] %v8653_v13  ;;  %v8686_v9 = vsub.f32 %v15999_v17, %v8204_v18  ;;  %v8690_v51 = vsub.f32 %v16001_v27, %v15994_v30  ;;  %v2250_v28 = vmul.f32 %v8659_v55, %v8659_v55  ;;  %v2767_v0 = vadd.f32 %v2766_v48, %v2249_v16  ;;  %v16003_v31 = vld [vmem:[#allocation39_spill] sm:$0xff] }
 0x20b   :  { %15989 = vst [vmem:[#allocation26_spill] sm:$0xff] %v8659_v55  ;;  %v2752_v25 = vadd.f32 %v2751_v58, %v2236_v19  ;;  %v8696_v21 = vsub.f32 %v16003_v31, %v15994_v30  ;;  %v2238_v57 = vmul.f32 %v8653_v13, %v8653_v13  ;;  %v8702_v17 = vsub.f32 %v16005_v36, %v8204_v18  ;;  %v16007_v18 = vld [vmem:[#allocation42_spill] sm:$0xff] }
 0x20c   :  { %15991 = vst [vmem:[#allocation27_spill] sm:$0xff] %v8663_v7  ;;  %v2239_v27 = vmul.f32 %v8673_v53, %v8673_v53  ;;  %v2240_v19 = vmul.f32 %v8677_v12, %v8677_v12  ;;  %v2251_v48 = vmul.f32 %v8663_v7, %v8663_v7  ;;  %v2252_v16 = vmul.f32 %v8667_v60, %v8667_v60 }
 0x20d   :  { %15993 = vst [vmem:[#allocation16_spill] sm:$0xff] %v8667_v60  ;;  %v2753_v58 = vadd.f32 %v2752_v25, %v2237_v41  ;;  %v2768_v31 = vadd.f32 %v2767_v0, %v2250_v28  ;;  %v2253_v13 = vmul.f32 %v8686_v9, %v8686_v9  ;;  %v8716_v36 = vsub.f32 %v16007_v18, %v15994_v30  ;;  %v16009_v25 = vld [vmem:[#allocation45_spill] sm:$0xff] }
 0x20e   :  { %15996 = vst [vmem:[#allocation17_spill] sm:$0xff] %v8673_v53  ;;  %v2241_v53 = vmul.f32 %v8690_v51, %v8690_v51  ;;  %v2757_v55 = vadd.f32 %v2240_v19, %v2239_v27  ;;  %v8722_v7 = vsub.f32 %v16009_v25, %v15994_v30  ;;  %v2242_v28 = vmul.f32 %v8696_v21, %v8696_v21  ;;  %v16011_v60 = vld [vmem:[#allocation453_spill] sm:$0xff]  ;;  %v16016_v27 = vld [vmem:[#allocation22_spill] sm:$0xff]  ;;  %v1202_v19 = vpop.xlane.xlu0 %1201  ;;  %v16022_v25 = vld [vmem:[#allocation52_spill] sm:$0xff] }
 0x20f   :  { %15998 = vst [vmem:[#allocation31_spill] sm:$0xff] %v8677_v12  ;;  %v2754_v12 = vadd.f32 %v2753_v58, %v2238_v57  ;;  %v2769_v41 = vadd.f32 %v2768_v31, %v2251_v48  ;;  %v16014_v18 = vld [vmem:[#allocation21_spill] sm:$0xff]  ;;  %v8736_v57 = vsub.f32 %v16016_v27, %v16011_v60  ;;  %v2254_v58 = vmul.f32 %v8702_v17, %v8702_v17 }
 0x210   :  { %16000 = vst [vmem:[#allocation33_spill] sm:$0xff] %v8686_v9  ;;  %v2758_v0 = vadd.f32 %v2757_v55, %v2241_v53  ;;  %v16012_v9 = vld [vmem:[#allocation20_spill] sm:$0xff]  ;;  %v8732_v29 = vsub.f32 %v16014_v18, %v16011_v60  ;;  %v16018_v55 = vld [vmem:[#allocation46_spill] sm:$0xff]  ;;  %v8750_v18 = vsub.f32 %v16022_v25, %v15994_v30  ;;  %v2243_v27 = vmul.f32 %v8716_v36, %v8716_v36  ;;  %v1247_v25 = vpop.xlane.xlu2 %1246 }
 0x211   :  { %16002 = vst [vmem:[#allocation37_spill] sm:$0xff] %v8690_v51  ;;  %v8728_v11 = vsub.f32 %v16012_v9, %v16011_v60  ;;  %2755 = vadd.xlane.f32.xlu0 %v2754_v12  ;;  %v2770_v48 = vadd.f32 %v2769_v41, %v2252_v16  ;;  %v8742_v53 = vsub.f32 %v16018_v55, %v15994_v30  ;;  %v16020_v9 = vld [vmem:[#allocation24_spill] sm:$0xff] }
 0x212   :  { %16004 = vst [vmem:[#allocation470_spill] sm:$0xff] %v8696_v21  ;;  %v8746_v31 = vsub.f32 %v16020_v9, %v16011_v60  ;;  %v2759_v12 = vadd.f32 %v2758_v0, %v2242_v28  ;;  %v16024_v41 = vld [vmem:[#allocation28_spill] sm:$0xff]  ;;  %v2256_v9 = vmul.f32 %v8732_v29, %v8732_v29  ;;  %v2257_v51 = vmul.f32 %v8736_v57, %v8736_v57 }
 0x213   :  { %16006 = vst [vmem:[#allocation32_spill] sm:$0xff] %v8702_v17  ;;  %v2255_v21 = vmul.f32 %v8728_v11, %v8728_v11  ;;  %v2771_v16 = vadd.f32 %v2770_v48, %v2253_v13  ;;  %v8758_v55 = vsub.f32 %v16024_v41, %v16011_v60  ;;  %v8765_v30 = vmul.f32 %v7774_v40, %v1202_v19  ;;  %v16026_v13 = vld [vmem:[#allocation29_spill] sm:$0xff] }
 0x214   :  { %16008 = vst [vmem:[#allocation34_spill] sm:$0xff] %v8716_v36  ;;  %v2244_v28 = vmul.f32 %v8722_v7, %v8722_v7  ;;  %v2760_v0 = vadd.f32 %v2759_v12, %v2243_v27  ;;  %v8771_v48 = vsub.f32 %v16026_v13, %v16011_v60  ;;  %v16028_v36 = vld [vmem:[#allocation49_spill] sm:$0xff]  ;;  %v2245_v19 = vmul.f32 %v8742_v53, %v8742_v53  ;;  %v16032_v12 = vld [vmem:[#allocation51_spill] sm:$0xff] }
 0x215   :  { %16010 = vst [vmem:[#allocation38_spill] sm:$0xff] %v8722_v7  ;;  %v2772_v41 = vadd.f32 %v2771_v16, %v2254_v58  ;;  %v16030_v7 = vld [vmem:[#allocation50_spill] sm:$0xff]  ;;  %v8787_v13 = vsub.f32 %v16032_v12, %v8320_v52  ;;  %v8790_v58 = vmul.f32 %v7774_v40, %v1247_v25  ;;  %v1238_v12 = vpop.xlane.xlu1 %1237 }
 0x216   :  { %16013 = vst [vmem:[#allocation35_spill] sm:$0xff] %v8728_v11  ;;  %v2258_v11 = vmul.f32 %v8746_v31, %v8746_v31  ;;  %v2761_v17 = vadd.f32 %v2760_v0, %v2244_v28  ;;  %v8783_v27 = vsub.f32 %v16030_v7, %v8320_v52  ;;  %v16034_v28 = vld [vmem:[#allocation30_spill] sm:$0xff] }
 0x217   :  { %16015 = vst [vmem:[#allocation39_spill] sm:$0xff] %v8732_v29  ;;  %v2775_v29 = vadd.f32 %v2256_v9, %v2255_v21  ;;  %2773 = vadd.xlane.f32.xlu2 %v2772_v41  ;;  %v2246_v21 = vmul.f32 %v8750_v18, %v8750_v18  ;;  %v8798_v7 = vsub.f32 %v16034_v28, %v16011_v60  ;;  %v16036_v41 = vld [vmem:[#allocation36_spill] sm:$0xff] }
 0x218   :  { %16017 = vst [vmem:[#allocation44_spill] sm:$0xff] %v8736_v57  ;;  %v8777_v57 = vsub.f32 %v16028_v36, %v8320_v52  ;;  %v2259_v36 = vmul.f32 %v8758_v55, %v8758_v55  ;;  %v2762_v9 = vadd.f32 %v2761_v17, %v2245_v19  ;;  %v2272_v25 = vmul.f32 %v8783_v27, %v8783_v27  ;;  %v16040_v28 = vld [vmem:[#allocation60_spill] sm:$0xff] }
 0x219   :  { %16019 = vst [vmem:[#allocation42_spill] sm:$0xff] %v8742_v53  ;;  %v2776_v16 = vadd.f32 %v2775_v29, %v2257_v51  ;;  %v16038_v51 = vld [vmem:[#allocation55_spill] sm:$0xff] }
 0x21a   :  { %16021 = vst [vmem:[#allocation45_spill] sm:$0xff] %v8746_v31  ;;  %v2271_v0 = vmul.f32 %v8777_v57, %v8777_v57  ;;  %v8806_v31 = vsub.f32 %v16036_v41, %v16011_v60  ;;  %v8812_v17 = vsub.f32 %v16038_v51, %v8320_v52  ;;  %v2763_v19 = vadd.f32 %v2762_v9, %v2246_v21  ;;  %v16046_v51 = vld [vmem:[#allocation58_spill] sm:$0xff] }
 0x21b   :  { %16023 = vst [vmem:[#allocation453_spill] sm:$0xff] %v8750_v18  ;;  %v2777_v29 = vadd.f32 %v2776_v16, %v2258_v11  ;;  %v2273_v60 = vmul.f32 %v8787_v13, %v8787_v13  ;;  %v16044_v11 = vld [vmem:[#allocation57_spill] sm:$0xff]  ;;  %v8830_v21 = vsub.f32 %v16046_v51, %v8337_v5  ;;  %v8833_v9 = vmul.f32 %v7774_v40, %v1238_v12  ;;  %v16052_v12 = vld [vmem:[#allocation63_spill] sm:$0xff] }
 0x21c   :  { %16025 = vst [vmem:[#allocation20_spill] sm:$0xff] %v8758_v55  ;;  %v2260_v55 = vmul.f32 %v8771_v48, %v8771_v48  ;;  %v2793_v53 = vadd.f32 %v2272_v25, %v2271_v0  ;;  %v8826_v16 = vsub.f32 %v16044_v11, %v8337_v5  ;;  %2764 = vadd.xlane.f32.xlu1 %v2763_v19 }
 0x21d   :  { %16027 = vst [vmem:[#allocation21_spill] sm:$0xff] %v8771_v48  ;;  %v2778_v41 = vadd.f32 %v2777_v29, %v2259_v36  ;;  %v16050_v36 = vld [vmem:[#allocation59_spill] sm:$0xff]  ;;  %v2274_v29 = vmul.f32 %v8812_v17, %v8812_v17  ;;  %v8849_v51 = vsub.f32 %v16052_v12, %v8337_v5  ;;  %v2262_v19 = vmul.f32 %v8806_v31, %v8806_v31 }
 0x21e   :  { %16029 = vst [vmem:[#allocation22_spill] sm:$0xff] %v8777_v57  ;;  %v8816_v57 = vsub.f32 %v16040_v28, %v8320_v52  ;;  %v16048_v28 = vld [vmem:[#allocation62_spill] sm:$0xff]  ;;  %v8843_v0 = vsub.f32 %v16050_v36, %v8337_v5  ;;  %v2794_v11 = vadd.f32 %v2793_v53, %v2273_v60  ;;  %v2263_v36 = vmul.f32 %v8826_v16, %v8826_v16 }
 0x21f   :  { %16031 = vst [vmem:[#allocation46_spill] sm:$0xff] %v8783_v27  ;;  %v16042_v27 = vld [vmem:[#allocation61_spill] sm:$0xff]  ;;  %v8839_v48 = vsub.f32 %v16048_v28, %v8320_v52  ;;  %v2779_v25 = vadd.f32 %v2778_v41, %v2260_v55  ;;  %v2264_v55 = vmul.f32 %v8830_v21, %v8830_v21 }
 0x220   :  { %16033 = vst [vmem:[#allocation24_spill] sm:$0xff] %v8787_v13  ;;  %v8820_v18 = vsub.f32 %v16042_v27, %v8320_v52  ;;  %v2261_v27 = vmul.f32 %v8798_v7, %v8798_v7  ;;  %v2275_v53 = vmul.f32 %v8816_v57, %v8816_v57  ;;  %v2795_v12 = vadd.f32 %v2794_v11, %v2274_v29 }
 0x221   :  { %16035 = vst [vmem:[#allocation52_spill] sm:$0xff] %v8798_v7  ;;  %v16054_v7 = vld [vmem:[#allocation68_spill] sm:$0xff]  ;;  %v2266_v29 = vmul.f32 %v8849_v51, %v8849_v51 }
 0x222   :  { %16037 = vst [vmem:[#allocation28_spill] sm:$0xff] %v8806_v31  ;;  %v8855_v28 = vsub.f32 %v16054_v7, %v8320_v52  ;;  %v2780_v41 = vadd.f32 %v2779_v25, %v2261_v27  ;;  %v2276_v60 = vmul.f32 %v8820_v18, %v8820_v18  ;;  %v2277_v31 = vmul.f32 %v8839_v48, %v8839_v48  ;;  %v16056_v52 = vld [vmem:[#allocation65_spill] sm:$0xff] }
 0x223   :  { %16039 = vst [vmem:[#allocation29_spill] sm:$0xff] %v8812_v17  ;;  %v8869_v7 = vsub.f32 %v16056_v52, %v8337_v5  ;;  %v2784_v17 = vadd.f32 %v2264_v55, %v2263_v36  ;;  %v2796_v27 = vadd.f32 %v2795_v12, %v2275_v53  ;;  %v16058_v25 = vld [vmem:[#allocation69_spill] sm:$0xff]  ;;  %v16064_v36 = vld [vmem:[#allocation43_spill] sm:$0xff]  ;;  %v1229_v55 = vpop.xlane.xlu0 %1228 }
 0x224   :  { %16041 = vst [vmem:[#allocation49_spill] sm:$0xff] %v8816_v57  ;;  %v8875_v57 = vsub.f32 %v16058_v25, %v8337_v5  ;;  %v16062_v52 = vld [vmem:[#allocation41_spill] sm:$0xff]  ;;  %v16070_v25 = vld [vmem:[#allocation76_spill] sm:$0xff] }
 0x225   :  { %16043 = vst [vmem:[#allocation50_spill] sm:$0xff] %v8820_v18  ;;  %v8885_v13 = vsub.f32 %v16062_v52, %v8278_v26  ;;  %v2797_v53 = vadd.f32 %v2796_v27, %v2276_v60  ;;  %v8903_v52 = vsub.f32 %v16070_v25, %v8337_v5  ;;  %v16072_v27 = vld [vmem:[#allocation48_spill] sm:$0xff]  ;;  %v1274_v25 = vpop.xlane.xlu2 %1273 }
 0x226   :  { %16045 = vst [vmem:[#allocation51_spill] sm:$0xff] %v8826_v16  ;;  %v2265_v16 = vmul.f32 %v8843_v0, %v8843_v0 }
 0x227   :  { %16047 = vst [vmem:[#allocation30_spill] sm:$0xff] %v8830_v21  ;;  %v2781_v21 = vadd.f32 %v2780_v41, %v2262_v19  ;;  %v8889_v19 = vsub.f32 %v16064_v36, %v8278_v26  ;;  %v2278_v41 = vmul.f32 %v8855_v28, %v8855_v28  ;;  %v2267_v36 = vmul.f32 %v8869_v7, %v8869_v7 }
 0x228   :  { %16049 = vst [vmem:[#allocation36_spill] sm:$0xff] %v8839_v48  ;;  %v2785_v11 = vadd.f32 %v2784_v17, %v2265_v16  ;;  %v16060_v48 = vld [vmem:[#allocation40_spill] sm:$0xff]  ;;  %v16066_v17 = vld [vmem:[#allocation70_spill] sm:$0xff]  ;;  %v2798_v60 = vadd.f32 %v2797_v53, %v2277_v31  ;;  %v16074_v31 = vld [vmem:[#allocation53_spill] sm:$0xff] }
 0x229   :  { %16051 = vst [vmem:[#allocation55_spill] sm:$0xff] %v8843_v0  ;;  %v8881_v18 = vsub.f32 %v16060_v48, %v8278_v26  ;;  %2782 = vadd.xlane.f32.xlu0 %v2781_v21  ;;  %v8895_v16 = vsub.f32 %v16066_v17, %v8337_v5  ;;  %v16068_v48 = vld [vmem:[#allocation47_spill] sm:$0xff]  ;;  %v8911_v17 = vsub.f32 %v16072_v27, %v8278_v26 }
 0x22a   :  { %16053 = vst [vmem:[#allocation60_spill] sm:$0xff] %v8849_v51  ;;  %v8899_v12 = vsub.f32 %v16068_v48, %v8278_v26  ;;  %v2786_v21 = vadd.f32 %v2785_v11, %v2266_v29  ;;  %v2280_v48 = vmul.f32 %v8885_v13, %v8885_v13  ;;  %v2281_v0 = vmul.f32 %v8889_v19, %v8889_v19 }
 0x22b   :  { %16055 = vst [vmem:[#allocation61_spill] sm:$0xff] %v8855_v28  ;;  %v2279_v51 = vmul.f32 %v8881_v18, %v8881_v18  ;;  %v8918_v5 = vmul.f32 %v7774_v40, %v1229_v55  ;;  %v2268_v29 = vmul.f32 %v8875_v57, %v8875_v57  ;;  %v8924_v53 = vsub.f32 %v16074_v31, %v8278_v26 }
 0x22c   :  { %16057 = vst [vmem:[#allocation57_spill] sm:$0xff] %v8869_v7  ;;  %v2787_v11 = vadd.f32 %v2786_v21, %v2267_v36  ;;  %v2799_v27 = vadd.f32 %v2798_v60, %v2278_v41  ;;  %v16076_v7 = vld [vmem:[#allocation72_spill] sm:$0xff]  ;;  %v2269_v55 = vmul.f32 %v8895_v16, %v8895_v16  ;;  %v16080_v21 = vld [vmem:[#allocation75_spill] sm:$0xff]  ;;  %v8943_v41 = vmul.f32 %v7774_v40, %v1274_v25 }
 0x22d   :  { %16059 = vst [vmem:[#allocation58_spill] sm:$0xff] %v8875_v57  ;;  %v16078_v57 = vld [vmem:[#allocation73_spill] sm:$0xff]  ;;  %v8940_v31 = vsub.f32 %v16080_v21, %v8369_v3  ;;  %v1265_v21 = vpop.xlane.xlu1 %1264 }
 0x22e   :  { %16061 = vst [vmem:[#allocation62_spill] sm:$0xff] %v8881_v18  ;;  %v2282_v18 = vmul.f32 %v8899_v12, %v8899_v12  ;;  %v2788_v28 = vadd.f32 %v2787_v11, %v2268_v29  ;;  %v8936_v36 = vsub.f32 %v16078_v57, %v8369_v3  ;;  %2800 = vadd.xlane.f32.xlu2 %v2799_v27  ;;  %v16082_v29 = vld [vmem:[#allocation54_spill] sm:$0xff]  ;;  %v16084_v27 = vld [vmem:[#allocation56_spill] sm:$0xff] }
 0x22f   :  { %16063 = vst [vmem:[#allocation59_spill] sm:$0xff] %v8885_v13  ;;  %v2802_v13 = vadd.f32 %v2280_v48, %v2279_v51  ;;  %v2270_v51 = vmul.f32 %v8903_v52, %v8903_v52  ;;  %v8951_v57 = vsub.f32 %v16082_v29, %v8278_v26  ;;  %v16088_v29 = vld [vmem:[#allocation80_spill] sm:$0xff] }
 0x230   :  { %16065 = vst [vmem:[#allocation63_spill] sm:$0xff] %v8889_v19  ;;  %v8930_v19 = vsub.f32 %v16076_v7, %v8369_v3  ;;  %v2283_v7 = vmul.f32 %v8911_v17, %v8911_v17  ;;  %v2789_v48 = vadd.f32 %v2788_v28, %v2269_v55  ;;  %v2296_v25 = vmul.f32 %v8936_v36, %v8936_v36 }
 0x231   :  { %16067 = vst [vmem:[#allocation68_spill] sm:$0xff] %v8895_v16  ;;  %v2803_v60 = vadd.f32 %v2802_v13, %v2281_v0  ;;  %v16086_v0 = vld [vmem:[#allocation79_spill] sm:$0xff] }
 0x232   :  { %16069 = vst [vmem:[#allocation65_spill] sm:$0xff] %v8899_v12  ;;  %v2295_v11 = vmul.f32 %v8930_v19, %v8930_v19  ;;  %v8959_v12 = vsub.f32 %v16084_v27, %v8278_v26  ;;  %v8965_v28 = vsub.f32 %v16086_v0, %v8369_v3  ;;  %v2790_v55 = vadd.f32 %v2789_v48, %v2270_v51  ;;  %v16094_v0 = vld [vmem:[#allocation82_spill] sm:$0xff] }
 0x233   :  { %16071 = vst [vmem:[#allocation69_spill] sm:$0xff] %v8903_v52  ;;  %v2804_v13 = vadd.f32 %v2803_v60, %v2282_v18  ;;  %v2297_v26 = vmul.f32 %v8940_v31, %v8940_v31  ;;  %v16092_v18 = vld [vmem:[#allocation81_spill] sm:$0xff]  ;;  %v8983_v51 = vsub.f32 %v16094_v0, %v8381_v61  ;;  %v8986_v48 = vmul.f32 %v7774_v40, %v1265_v21  ;;  %v16100_v21 = vld [vmem:[#allocation87_spill] sm:$0xff] }
 0x234   :  { %16073 = vst [vmem:[#allocation40_spill] sm:$0xff] %v8911_v17  ;;  %v2284_v17 = vmul.f32 %v8924_v53, %v8924_v53  ;;  %v2820_v16 = vadd.f32 %v2296_v25, %v2295_v11  ;;  %v8979_v60 = vsub.f32 %v16092_v18, %v8381_v61  ;;  %2791 = vadd.xlane.f32.xlu1 %v2790_v55 }
 0x235   :  { %16075 = vst [vmem:[#allocation41_spill] sm:$0xff] %v8924_v53  ;;  %v2805_v27 = vadd.f32 %v2804_v13, %v2283_v7  ;;  %v16098_v7 = vld [vmem:[#allocation83_spill] sm:$0xff]  ;;  %v2298_v13 = vmul.f32 %v8965_v28, %v8965_v28  ;;  %v9002_v0 = vsub.f32 %v16100_v21, %v8381_v61  ;;  %v2286_v55 = vmul.f32 %v8959_v12, %v8959_v12 }
 0x236   :  { %16077 = vst [vmem:[#allocation43_spill] sm:$0xff] %v8930_v19  ;;  %v8969_v19 = vsub.f32 %v16088_v29, %v8369_v3  ;;  %v16096_v29 = vld [vmem:[#allocation86_spill] sm:$0xff]  ;;  %v8996_v11 = vsub.f32 %v16098_v7, %v8381_v61  ;;  %v2821_v18 = vadd.f32 %v2820_v16, %v2297_v26  ;;  %v2287_v7 = vmul.f32 %v8979_v60, %v8979_v60 }
 0x237   :  { %16079 = vst [vmem:[#allocation70_spill] sm:$0xff] %v8936_v36  ;;  %v16090_v36 = vld [vmem:[#allocation85_spill] sm:$0xff]  ;;  %v8992_v53 = vsub.f32 %v16096_v29, %v8369_v3  ;;  %v2806_v25 = vadd.f32 %v2805_v27, %v2284_v17  ;;  %v2288_v17 = vmul.f32 %v8983_v51, %v8983_v51 }
 0x238   :  { %16081 = vst [vmem:[#allocation47_spill] sm:$0xff] %v8940_v31  ;;  %v8973_v52 = vsub.f32 %v16090_v36, %v8369_v3  ;;  %v2285_v36 = vmul.f32 %v8951_v57, %v8951_v57  ;;  %v2299_v16 = vmul.f32 %v8969_v19, %v8969_v19  ;;  %v2822_v21 = vadd.f32 %v2821_v18, %v2298_v13 }
 0x239   :  { %16083 = vst [vmem:[#allocation76_spill] sm:$0xff] %v8951_v57  ;;  %v16102_v57 = vld [vmem:[#allocation88_spill] sm:$0xff]  ;;  %v2290_v13 = vmul.f32 %v9002_v0, %v9002_v0 }
 0x23a   :  { %16085 = vst [vmem:[#allocation48_spill] sm:$0xff] %v8959_v12  ;;  %v9008_v29 = vsub.f32 %v16102_v57, %v8369_v3  ;;  %v2807_v27 = vadd.f32 %v2806_v25, %v2285_v36  ;;  %v2300_v26 = vmul.f32 %v8973_v52, %v8973_v52  ;;  %v2301_v12 = vmul.f32 %v8992_v53, %v8992_v53  ;;  %v16104_v3 = vld [vmem:[#allocation92_spill] sm:$0xff]  ;;  %v16106_v25 = vld [vmem:[#allocation93_spill] sm:$0xff] }
 0x23b   :  { %16087 = vst [vmem:[#allocation53_spill] sm:$0xff] %v8965_v28  ;;  %v9022_v57 = vsub.f32 %v16104_v3, %v8381_v61  ;;  %v2811_v28 = vadd.f32 %v2288_v17, %v2287_v7  ;;  %v2823_v36 = vadd.f32 %v2822_v21, %v2299_v16  ;;  %v16110_v3 = vld [vmem:[#allocation66_spill] sm:$0xff]  ;;  %v16112_v7 = vld [vmem:[#allocation67_spill] sm:$0xff]  ;;  %v1256_v17 = vpop.xlane.xlu0 %1255 }
 0x23c   :  { %16089 = vst [vmem:[#allocation72_spill] sm:$0xff] %v8969_v19  ;;  %v9028_v19 = vsub.f32 %v16106_v25, %v8381_v61  ;;  %v9038_v31 = vsub.f32 %v16110_v3, %v8340_v4  ;;  %v16118_v25 = vld [vmem:[#allocation100_spill] sm:$0xff] }
 0x23d   :  { %16091 = vst [vmem:[#allocation73_spill] sm:$0xff] %v8973_v52  ;;  %v2824_v16 = vadd.f32 %v2823_v36, %v2300_v26  ;;  %v9056_v3 = vsub.f32 %v16118_v25, %v8381_v61  ;;  %v16120_v36 = vld [vmem:[#allocation74_spill] sm:$0xff]  ;;  %v1301_v25 = vpop.xlane.xlu2 %1300 }
 0x23e   :  { %16093 = vst [vmem:[#allocation75_spill] sm:$0xff] %v8979_v60  ;;  %v2289_v60 = vmul.f32 %v8996_v11, %v8996_v11 }
 0x23f   :  { %16095 = vst [vmem:[#allocation54_spill] sm:$0xff] %v8983_v51  ;;  %v2808_v51 = vadd.f32 %v2807_v27, %v2286_v55  ;;  %v9042_v55 = vsub.f32 %v16112_v7, %v8340_v4  ;;  %v2302_v27 = vmul.f32 %v9008_v29, %v9008_v29  ;;  %v2291_v7 = vmul.f32 %v9022_v57, %v9022_v57 }
 0x240   :  { %16097 = vst [vmem:[#allocation56_spill] sm:$0xff] %v8992_v53  ;;  %v2812_v18 = vadd.f32 %v2811_v28, %v2289_v60  ;;  %v16108_v53 = vld [vmem:[#allocation64_spill] sm:$0xff]  ;;  %v16114_v28 = vld [vmem:[#allocation94_spill] sm:$0xff]  ;;  %v2825_v26 = vadd.f32 %v2824_v16, %v2301_v12  ;;  %v16122_v12 = vld [vmem:[#allocation77_spill] sm:$0xff] }
 0x241   :  { %16099 = vst [vmem:[#allocation79_spill] sm:$0xff] %v8996_v11  ;;  %v9034_v52 = vsub.f32 %v16108_v53, %v8340_v4  ;;  %2809 = vadd.xlane.f32.xlu0 %v2808_v51  ;;  %v9048_v60 = vsub.f32 %v16114_v28, %v8381_v61  ;;  %v16116_v53 = vld [vmem:[#allocation71_spill] sm:$0xff]  ;;  %v9064_v28 = vsub.f32 %v16120_v36, %v8340_v4 }
 0x242   :  { %16101 = vst [vmem:[#allocation80_spill] sm:$0xff] %v9002_v0  ;;  %v9052_v21 = vsub.f32 %v16116_v53, %v8340_v4  ;;  %v2813_v51 = vadd.f32 %v2812_v18, %v2290_v13  ;;  %v2304_v53 = vmul.f32 %v9038_v31, %v9038_v31  ;;  %v2305_v11 = vmul.f32 %v9042_v55, %v9042_v55 }
 0x243   :  { %16103 = vst [vmem:[#allocation85_spill] sm:$0xff] %v9008_v29  ;;  %v2303_v0 = vmul.f32 %v9034_v52, %v9034_v52  ;;  %v9071_v61 = vmul.f32 %v7774_v40, %v1256_v17  ;;  %v2292_v13 = vmul.f32 %v9028_v19, %v9028_v19  ;;  %v9077_v16 = vsub.f32 %v16122_v12, %v8340_v4 }
 0x244   :  { %16105 = vst [vmem:[#allocation81_spill] sm:$0xff] %v9022_v57  ;;  %v2814_v18 = vadd.f32 %v2813_v51, %v2291_v7  ;;  %v2826_v36 = vadd.f32 %v2825_v26, %v2302_v27  ;;  %v16124_v57 = vld [vmem:[#allocation96_spill] sm:$0xff]  ;;  %v2293_v17 = vmul.f32 %v9048_v60, %v9048_v60  ;;  %v16128_v51 = vld [vmem:[#allocation99_spill] sm:$0xff]  ;;  %v9096_v27 = vmul.f32 %v7774_v40, %v1301_v25 }
 0x245   :  { %16107 = vst [vmem:[#allocation82_spill] sm:$0xff] %v9028_v19  ;;  %v16126_v19 = vld [vmem:[#allocation98_spill] sm:$0xff]  ;;  %v9093_v12 = vsub.f32 %v16128_v51, %v8611_v54  ;;  %v1292_v51 = vpop.xlane.xlu1 %1291 }
 0x246   :  { %16109 = vst [vmem:[#allocation86_spill] sm:$0xff] %v9034_v52  ;;  %v2306_v52 = vmul.f32 %v9052_v21, %v9052_v21  ;;  %v2815_v29 = vadd.f32 %v2814_v18, %v2292_v13  ;;  %v9089_v7 = vsub.f32 %v16126_v19, %v8611_v54  ;;  %2827 = vadd.xlane.f32.xlu2 %v2826_v36  ;;  %v16130_v13 = vld [vmem:[#allocation78_spill] sm:$0xff]  ;;  %v16132_v36 = vld [vmem:[#allocation84_spill] sm:$0xff] }
 0x247   :  { %16111 = vst [vmem:[#allocation83_spill] sm:$0xff] %v9038_v31  ;;  %v2829_v31 = vadd.f32 %v2304_v53, %v2303_v0  ;;  %v2294_v0 = vmul.f32 %v9056_v3, %v9056_v3  ;;  %v9104_v19 = vsub.f32 %v16130_v13, %v8340_v4  ;;  %v16136_v13 = vld [vmem:[#allocation106_spill] sm:$0xff] }
 0x248   :  { %16113 = vst [vmem:[#allocation87_spill] sm:$0xff] %v9042_v55  ;;  %v9083_v55 = vsub.f32 %v16124_v57, %v8611_v54  ;;  %v2307_v57 = vmul.f32 %v9064_v28, %v9064_v28  ;;  %v2816_v53 = vadd.f32 %v2815_v29, %v2293_v17  ;;  %v2320_v25 = vmul.f32 %v9089_v7, %v9089_v7 }
 0x249   :  { %16115 = vst [vmem:[#allocation88_spill] sm:$0xff] %v9048_v60  ;;  %v2830_v26 = vadd.f32 %v2829_v31, %v2305_v11  ;;  %v16134_v11 = vld [vmem:[#allocation103_spill] sm:$0xff] }
 0x24a   :  { %16117 = vst [vmem:[#allocation92_spill] sm:$0xff] %v9052_v21  ;;  %v2319_v18 = vmul.f32 %v9083_v55, %v9083_v55  ;;  %v9112_v21 = vsub.f32 %v16132_v36, %v8340_v4  ;;  %v9118_v29 = vsub.f32 %v16134_v11, %v8611_v54  ;;  %v2817_v17 = vadd.f32 %v2816_v53, %v2294_v0  ;;  %v16142_v11 = vld [vmem:[#allocation105_spill] sm:$0xff] }
 0x24b   :  { %16119 = vst [vmem:[#allocation93_spill] sm:$0xff] %v9056_v3  ;;  %v2831_v31 = vadd.f32 %v2830_v26, %v2306_v52  ;;  %v2321_v4 = vmul.f32 %v9093_v12, %v9093_v12  ;;  %v16140_v52 = vld [vmem:[#allocation104_spill] sm:$0xff]  ;;  %v9136_v0 = vsub.f32 %v16142_v11, %v8614_v56  ;;  %v9139_v53 = vmul.f32 %v7774_v40, %v1292_v51  ;;  %v16148_v51 = vld [vmem:[#allocation111_spill] sm:$0xff] }
 0x24c   :  { %16121 = vst [vmem:[#allocation64_spill] sm:$0xff] %v9064_v28  ;;  %v2308_v28 = vmul.f32 %v9077_v16, %v9077_v16  ;;  %v2847_v60 = vadd.f32 %v2320_v25, %v2319_v18  ;;  %v9132_v26 = vsub.f32 %v16140_v52, %v8614_v56  ;;  %2818 = vadd.xlane.f32.xlu1 %v2817_v17 }
 0x24d   :  { %16123 = vst [vmem:[#allocation66_spill] sm:$0xff] %v9077_v16  ;;  %v2832_v36 = vadd.f32 %v2831_v31, %v2307_v57  ;;  %v16146_v57 = vld [vmem:[#allocation107_spill] sm:$0xff]  ;;  %v2322_v31 = vmul.f32 %v9118_v29, %v9118_v29  ;;  %v9155_v11 = vsub.f32 %v16148_v51, %v8614_v56  ;;  %v2310_v17 = vmul.f32 %v9112_v21, %v9112_v21 }
 0x24e   :  { %16125 = vst [vmem:[#allocation67_spill] sm:$0xff] %v9083_v55  ;;  %v9122_v55 = vsub.f32 %v16136_v13, %v8611_v54  ;;  %v16144_v13 = vld [vmem:[#allocation110_spill] sm:$0xff]  ;;  %v9149_v18 = vsub.f32 %v16146_v57, %v8614_v56  ;;  %v2848_v52 = vadd.f32 %v2847_v60, %v2321_v4  ;;  %v2311_v57 = vmul.f32 %v9132_v26, %v9132_v26 }
 0x24f   :  { %16127 = vst [vmem:[#allocation94_spill] sm:$0xff] %v9089_v7  ;;  %v16138_v7 = vld [vmem:[#allocation109_spill] sm:$0xff]  ;;  %v9145_v16 = vsub.f32 %v16144_v13, %v8611_v54  ;;  %v2833_v25 = vadd.f32 %v2832_v36, %v2308_v28  ;;  %v2312_v28 = vmul.f32 %v9136_v0, %v9136_v0 }
 0x250   :  { %16129 = vst [vmem:[#allocation71_spill] sm:$0xff] %v9093_v12  ;;  %v9126_v3 = vsub.f32 %v16138_v7, %v8611_v54  ;;  %v2309_v7 = vmul.f32 %v9104_v19, %v9104_v19  ;;  %v2323_v60 = vmul.f32 %v9122_v55, %v9122_v55  ;;  %v2849_v51 = vadd.f32 %v2848_v52, %v2322_v31 }
 0x251   :  { %16131 = vst [vmem:[#allocation100_spill] sm:$0xff] %v9104_v19  ;;  %v16150_v19 = vld [vmem:[#allocation116_spill] sm:$0xff]  ;;  %v2314_v31 = vmul.f32 %v9155_v11, %v9155_v11 }
 0x252   :  { %16133 = vst [vmem:[#allocation74_spill] sm:$0xff] %v9112_v21  ;;  %v9161_v13 = vsub.f32 %v16150_v19, %v8611_v54  ;;  %v2834_v36 = vadd.f32 %v2833_v25, %v2309_v7  ;;  %v2324_v4 = vmul.f32 %v9126_v3, %v9126_v3  ;;  %v2325_v21 = vmul.f32 %v9145_v16, %v9145_v16  ;;  %v16152_v54 = vld [vmem:[#allocation112_spill] sm:$0xff]  ;;  %v16154_v25 = vld [vmem:[#allocation117_spill] sm:$0xff] }
 0x253   :  { %16135 = vst [vmem:[#allocation77_spill] sm:$0xff] %v9118_v29  ;;  %v9175_v19 = vsub.f32 %v16152_v54, %v8614_v56  ;;  %v2838_v29 = vadd.f32 %v2312_v28, %v2311_v57  ;;  %v2850_v7 = vadd.f32 %v2849_v51, %v2323_v60  ;;  %v16158_v54 = vld [vmem:[#allocation90_spill] sm:$0xff]  ;;  %v16160_v57 = vld [vmem:[#allocation91_spill] sm:$0xff]  ;;  %v1283_v28 = vpop.xlane.xlu0 %1282 }
 0x254   :  { %16137 = vst [vmem:[#allocation96_spill] sm:$0xff] %v9122_v55  ;;  %v9181_v55 = vsub.f32 %v16154_v25, %v8614_v56  ;;  %v9191_v12 = vsub.f32 %v16158_v54, %v8486_v8  ;;  %v16166_v25 = vld [vmem:[#allocation120_spill] sm:$0xff] }
 0x255   :  { %16139 = vst [vmem:[#allocation98_spill] sm:$0xff] %v9126_v3  ;;  %v2851_v60 = vadd.f32 %v2850_v7, %v2324_v4  ;;  %v9209_v54 = vsub.f32 %v16166_v25, %v8614_v56  ;;  %v16168_v7 = vld [vmem:[#allocation97_spill] sm:$0xff]  ;;  %v1328_v25 = vpop.xlane.xlu2 %1327 }
 0x256   :  { %16141 = vst [vmem:[#allocation99_spill] sm:$0xff] %v9132_v26  ;;  %v2313_v26 = vmul.f32 %v9149_v18, %v9149_v18 }
 0x257   :  { %16143 = vst [vmem:[#allocation78_spill] sm:$0xff] %v9136_v0  ;;  %v2835_v0 = vadd.f32 %v2834_v36, %v2310_v17  ;;  %v9195_v17 = vsub.f32 %v16160_v57, %v8486_v8  ;;  %v2326_v36 = vmul.f32 %v9161_v13, %v9161_v13  ;;  %v2315_v57 = vmul.f32 %v9175_v19, %v9175_v19 }
 0x258   :  { %16145 = vst [vmem:[#allocation84_spill] sm:$0xff] %v9145_v16  ;;  %v2839_v52 = vadd.f32 %v2838_v29, %v2313_v26  ;;  %v16156_v16 = vld [vmem:[#allocation89_spill] sm:$0xff]  ;;  %v16162_v29 = vld [vmem:[#allocation118_spill] sm:$0xff]  ;;  %v2852_v4 = vadd.f32 %v2851_v60, %v2325_v21 }
 0x259   :  { %16147 = vst [vmem:[#allocation103_spill] sm:$0xff] %v9149_v18  ;;  %v9187_v3 = vsub.f32 %v16156_v16, %v8486_v8  ;;  %2836 = vadd.xlane.f32.xlu0 %v2835_v0  ;;  %v9201_v26 = vsub.f32 %v16162_v29, %v8614_v56  ;;  %v16164_v16 = vld [vmem:[#allocation95_spill] sm:$0xff]  ;;  %v9217_v29 = vsub.f32 %v16168_v7, %v8486_v8  ;;  %v16170_v21 = vld [vmem:[#allocation101_spill] sm:$0xff] }
 0x25a   :  { %16149 = vst [vmem:[#allocation106_spill] sm:$0xff] %v9155_v11  ;;  %v9205_v51 = vsub.f32 %v16164_v16, %v8486_v8  ;;  %v2840_v0 = vadd.f32 %v2839_v52, %v2314_v31  ;;  %v2328_v16 = vmul.f32 %v9191_v12, %v9191_v12  ;;  %v2329_v18 = vmul.f32 %v9195_v17, %v9195_v17 }
 0x25b   :  { %16151 = vst [vmem:[#allocation109_spill] sm:$0xff] %v9161_v13  ;;  %v2327_v11 = vmul.f32 %v9187_v3, %v9187_v3  ;;  %v9224_v56 = vmul.f32 %v7774_v40, %v1283_v28  ;;  %v2316_v31 = vmul.f32 %v9181_v55, %v9181_v55  ;;  %v9230_v60 = vsub.f32 %v16170_v21, %v8486_v8 }
 0x25c   :  { %16153 = vst [vmem:[#allocation104_spill] sm:$0xff] %v9175_v19  ;;  %v2841_v52 = vadd.f32 %v2840_v0, %v2315_v57  ;;  %v2853_v7 = vadd.f32 %v2852_v4, %v2326_v36  ;;  %v16172_v19 = vld [vmem:[#allocation121_spill] sm:$0xff]  ;;  %v2317_v28 = vmul.f32 %v9201_v26, %v9201_v26  ;;  %v16176_v0 = vld [vmem:[#allocation123_spill] sm:$0xff]  ;;  %v9249_v36 = vmul.f32 %v7774_v40, %v1328_v25 }
 0x25d   :  { %16155 = vst [vmem:[#allocation105_spill] sm:$0xff] %v9181_v55  ;;  %v16174_v55 = vld [vmem:[#allocation122_spill] sm:$0xff]  ;;  %v9246_v21 = vsub.f32 %v16176_v0, %v8680_v59  ;;  %v1319_v0 = vpop.xlane.xlu1 %1318 }
 0x25e   :  { %16157 = vst [vmem:[#allocation110_spill] sm:$0xff] %v9187_v3  ;;  %v2330_v3 = vmul.f32 %v9205_v51, %v9205_v51  ;;  %v2842_v13 = vadd.f32 %v2841_v52, %v2316_v31  ;;  %v9242_v57 = vsub.f32 %v16174_v55, %v8680_v59  ;;  %2854 = vadd.xlane.f32.xlu2 %v2853_v7  ;;  %v16178_v31 = vld [vmem:[#allocation102_spill] sm:$0xff]  ;;  %v16180_v7 = vld [vmem:[#allocation108_spill] sm:$0xff] }
 0x25f   :  { %16159 = vst [vmem:[#allocation107_spill] sm:$0xff] %v9191_v12  ;;  %v2856_v12 = vadd.f32 %v2328_v16, %v2327_v11  ;;  %v2318_v11 = vmul.f32 %v9209_v54, %v9209_v54  ;;  %v9257_v55 = vsub.f32 %v16178_v31, %v8486_v8  ;;  %v16184_v31 = vld [vmem:[#allocation129_spill] sm:$0xff] }
 0x260   :  { %16161 = vst [vmem:[#allocation111_spill] sm:$0xff] %v9195_v17  ;;  %v9236_v17 = vsub.f32 %v16172_v19, %v8680_v59  ;;  %v2331_v19 = vmul.f32 %v9217_v29, %v9217_v29  ;;  %v2843_v16 = vadd.f32 %v2842_v13, %v2317_v28  ;;  %v2344_v25 = vmul.f32 %v9242_v57, %v9242_v57 }
 0x261   :  { %16163 = vst [vmem:[#allocation116_spill] sm:$0xff] %v9201_v26  ;;  %v2857_v4 = vadd.f32 %v2856_v12, %v2329_v18  ;;  %v16182_v18 = vld [vmem:[#allocation127_spill] sm:$0xff] }
 0x262   :  { %16165 = vst [vmem:[#allocation112_spill] sm:$0xff] %v9205_v51  ;;  %v2343_v52 = vmul.f32 %v9236_v17, %v9236_v17  ;;  %v9265_v51 = vsub.f32 %v16180_v7, %v8486_v8  ;;  %v9271_v13 = vsub.f32 %v16182_v18, %v8680_v59  ;;  %v2844_v28 = vadd.f32 %v2843_v16, %v2318_v11  ;;  %v16190_v18 = vld [vmem:[#allocation130_spill] sm:$0xff] }
 0x263   :  { %16167 = vst [vmem:[#allocation117_spill] sm:$0xff] %v9209_v54  ;;  %v2858_v12 = vadd.f32 %v2857_v4, %v2330_v3  ;;  %v2345_v8 = vmul.f32 %v9246_v21, %v9246_v21  ;;  %v16188_v3 = vld [vmem:[#allocation128_spill] sm:$0xff]  ;;  %v9289_v11 = vsub.f32 %v16190_v18, %v8765_v30  ;;  %v9292_v16 = vmul.f32 %v7774_v40, %v1319_v0  ;;  %v16196_v0 = vld [vmem:[#allocation135_spill] sm:$0xff] }
 0x264   :  { %16169 = vst [vmem:[#allocation89_spill] sm:$0xff] %v9217_v29  ;;  %v2332_v29 = vmul.f32 %v9230_v60, %v9230_v60  ;;  %v2874_v26 = vadd.f32 %v2344_v25, %v2343_v52  ;;  %v9285_v4 = vsub.f32 %v16188_v3, %v8765_v30  ;;  %2845 = vadd.xlane.f32.xlu1 %v2844_v28 }
 0x265   :  { %16171 = vst [vmem:[#allocation90_spill] sm:$0xff] %v9230_v60  ;;  %v2859_v7 = vadd.f32 %v2858_v12, %v2331_v19  ;;  %v16194_v19 = vld [vmem:[#allocation131_spill] sm:$0xff]  ;;  %v2346_v12 = vmul.f32 %v9271_v13, %v9271_v13  ;;  %v9308_v18 = vsub.f32 %v16196_v0, %v8765_v30  ;;  %v2334_v28 = vmul.f32 %v9265_v51, %v9265_v51 }
 0x266   :  { %16173 = vst [vmem:[#allocation91_spill] sm:$0xff] %v9236_v17  ;;  %v9275_v17 = vsub.f32 %v16184_v31, %v8680_v59  ;;  %v16192_v31 = vld [vmem:[#allocation134_spill] sm:$0xff]  ;;  %v9302_v52 = vsub.f32 %v16194_v19, %v8765_v30  ;;  %v2875_v3 = vadd.f32 %v2874_v26, %v2345_v8  ;;  %v2335_v19 = vmul.f32 %v9285_v4, %v9285_v4 }
 0x267   :  { %16175 = vst [vmem:[#allocation118_spill] sm:$0xff] %v9242_v57  ;;  %v16186_v57 = vld [vmem:[#allocation133_spill] sm:$0xff]  ;;  %v9298_v60 = vsub.f32 %v16192_v31, %v8680_v59  ;;  %v2860_v25 = vadd.f32 %v2859_v7, %v2332_v29  ;;  %v2336_v29 = vmul.f32 %v9289_v11, %v9289_v11 }
 0x268   :  { %16177 = vst [vmem:[#allocation95_spill] sm:$0xff] %v9246_v21  ;;  %v9279_v54 = vsub.f32 %v16186_v57, %v8680_v59  ;;  %v2333_v57 = vmul.f32 %v9257_v55, %v9257_v55  ;;  %v2347_v26 = vmul.f32 %v9275_v17, %v9275_v17  ;;  %v2876_v0 = vadd.f32 %v2875_v3, %v2346_v12 }
 0x269   :  { %16179 = vst [vmem:[#allocation120_spill] sm:$0xff] %v9257_v55  ;;  %v16198_v55 = vld [vmem:[#allocation140_spill] sm:$0xff]  ;;  %v2338_v12 = vmul.f32 %v9308_v18, %v9308_v18 }
 0x26a   :  { %16181 = vst [vmem:[#allocation97_spill] sm:$0xff] %v9265_v51  ;;  %v9314_v31 = vsub.f32 %v16198_v55, %v8680_v59  ;;  %v2861_v7 = vadd.f32 %v2860_v25, %v2333_v57  ;;  %v2348_v8 = vmul.f32 %v9279_v54, %v9279_v54  ;;  %v2349_v51 = vmul.f32 %v9298_v60, %v9298_v60  ;;  %v16200_v59 = vld [vmem:[#allocation138_spill] sm:$0xff]  ;;  %v16202_v25 = vld [vmem:[#allocation141_spill] sm:$0xff] }
 0x26b   :  { %16183 = vst [vmem:[#allocation101_spill] sm:$0xff] %v9271_v13  ;;  %v9328_v55 = vsub.f32 %v16200_v59, %v8765_v30  ;;  %v2865_v13 = vadd.f32 %v2336_v29, %v2335_v19  ;;  %v2877_v57 = vadd.f32 %v2876_v0, %v2347_v26  ;;  %v16206_v59 = vld [vmem:[#allocation114_spill] sm:$0xff]  ;;  %v16208_v19 = vld [vmem:[#allocation115_spill] sm:$0xff]  ;;  %v1310_v29 = vpop.xlane.xlu0 %1309 }
 0x26c   :  { %16185 = vst [vmem:[#allocation121_spill] sm:$0xff] %v9275_v17  ;;  %v9334_v17 = vsub.f32 %v16202_v25, %v8765_v30  ;;  %v9344_v21 = vsub.f32 %v16206_v59, %v8637_v50  ;;  %v16214_v25 = vld [vmem:[#allocation148_spill] sm:$0xff] }
 0x26d   :  { %16187 = vst [vmem:[#allocation122_spill] sm:$0xff] %v9279_v54  ;;  %v2878_v26 = vadd.f32 %v2877_v57, %v2348_v8  ;;  %v9362_v59 = vsub.f32 %v16214_v25, %v8765_v30  ;;  %v16216_v57 = vld [vmem:[#allocation124_spill] sm:$0xff]  ;;  %v1355_v25 = vpop.xlane.xlu2 %1354 }
 0x26e   :  { %16189 = vst [vmem:[#allocation123_spill] sm:$0xff] %v9285_v4  ;;  %v2337_v4 = vmul.f32 %v9302_v52, %v9302_v52 }
 0x26f   :  { %16191 = vst [vmem:[#allocation102_spill] sm:$0xff] %v9289_v11  ;;  %v2862_v11 = vadd.f32 %v2861_v7, %v2334_v28  ;;  %v9348_v28 = vsub.f32 %v16208_v19, %v8637_v50  ;;  %v2350_v7 = vmul.f32 %v9314_v31, %v9314_v31  ;;  %v2339_v19 = vmul.f32 %v9328_v55, %v9328_v55 }
 0x270   :  { %16193 = vst [vmem:[#allocation108_spill] sm:$0xff] %v9298_v60  ;;  %v2866_v3 = vadd.f32 %v2865_v13, %v2337_v4  ;;  %v16204_v60 = vld [vmem:[#allocation113_spill] sm:$0xff]  ;;  %v16210_v13 = vld [vmem:[#allocation142_spill] sm:$0xff]  ;;  %v2879_v8 = vadd.f32 %v2878_v26, %v2349_v51 }
 0x271   :  { %16195 = vst [vmem:[#allocation127_spill] sm:$0xff] %v9302_v52  ;;  %v9340_v54 = vsub.f32 %v16204_v60, %v8637_v50  ;;  %2863 = vadd.xlane.f32.xlu0 %v2862_v11  ;;  %v9354_v4 = vsub.f32 %v16210_v13, %v8765_v30  ;;  %v16212_v60 = vld [vmem:[#allocation119_spill] sm:$0xff]  ;;  %v9370_v13 = vsub.f32 %v16216_v57, %v8637_v50  ;;  %v16218_v51 = vld [vmem:[#allocation125_spill] sm:$0xff] }
 0x272   :  { %16197 = vst [vmem:[#allocation129_spill] sm:$0xff] %v9308_v18  ;;  %v9358_v0 = vsub.f32 %v16212_v60, %v8637_v50  ;;  %v2867_v11 = vadd.f32 %v2866_v3, %v2338_v12  ;;  %v2352_v60 = vmul.f32 %v9344_v21, %v9344_v21  ;;  %v2353_v52 = vmul.f32 %v9348_v28, %v9348_v28 }
 0x273   :  { %16199 = vst [vmem:[#allocation133_spill] sm:$0xff] %v9314_v31  ;;  %v2351_v18 = vmul.f32 %v9340_v54, %v9340_v54  ;;  %v9377_v30 = vmul.f32 %v7774_v40, %v1310_v29  ;;  %v2340_v12 = vmul.f32 %v9334_v17, %v9334_v17  ;;  %v9383_v26 = vsub.f32 %v16218_v51, %v8637_v50 }
 0x274   :  { %16201 = vst [vmem:[#allocation128_spill] sm:$0xff] %v9328_v55  ;;  %v2868_v3 = vadd.f32 %v2867_v11, %v2339_v19  ;;  %v2880_v57 = vadd.f32 %v2879_v8, %v2350_v7  ;;  %v16220_v55 = vld [vmem:[#allocation145_spill] sm:$0xff]  ;;  %v2341_v29 = vmul.f32 %v9354_v4, %v9354_v4  ;;  %v16224_v11 = vld [vmem:[#allocation147_spill] sm:$0xff]  ;;  %v9402_v7 = vmul.f32 %v7774_v40, %v1355_v25 }
 0x275   :  { %16203 = vst [vmem:[#allocation130_spill] sm:$0xff] %v9334_v17  ;;  %v16222_v17 = vld [vmem:[#allocation146_spill] sm:$0xff]  ;;  %v9399_v51 = vsub.f32 %v16224_v11, %v8833_v9  ;;  %v1346_v11 = vpop.xlane.xlu1 %1345 }
 0x276   :  { %16205 = vst [vmem:[#allocation134_spill] sm:$0xff] %v9340_v54  ;;  %v2354_v54 = vmul.f32 %v9358_v0, %v9358_v0  ;;  %v2869_v31 = vadd.f32 %v2868_v3, %v2340_v12  ;;  %v9395_v19 = vsub.f32 %v16222_v17, %v8833_v9  ;;  %2881 = vadd.xlane.f32.xlu2 %v2880_v57  ;;  %v16226_v12 = vld [vmem:[#allocation126_spill] sm:$0xff]  ;;  %v16228_v57 = vld [vmem:[#allocation132_spill] sm:$0xff] }
 0x277   :  { %16207 = vst [vmem:[#allocation131_spill] sm:$0xff] %v9344_v21  ;;  %v2883_v21 = vadd.f32 %v2352_v60, %v2351_v18  ;;  %v2342_v18 = vmul.f32 %v9362_v59, %v9362_v59  ;;  %v9410_v17 = vsub.f32 %v16226_v12, %v8637_v50  ;;  %v16232_v12 = vld [vmem:[#allocation156_spill] sm:$0xff] }
 0x278   :  { %16209 = vst [vmem:[#allocation135_spill] sm:$0xff] %v9348_v28  ;;  %v9389_v28 = vsub.f32 %v16220_v55, %v8833_v9  ;;  %v2355_v55 = vmul.f32 %v9370_v13, %v9370_v13  ;;  %v2870_v60 = vadd.f32 %v2869_v31, %v2341_v29  ;;  %v2368_v25 = vmul.f32 %v9395_v19, %v9395_v19 }
 0x279   :  { %16211 = vst [vmem:[#allocation140_spill] sm:$0xff] %v9354_v4  ;;  %v2884_v8 = vadd.f32 %v2883_v21, %v2353_v52  ;;  %v16230_v52 = vld [vmem:[#allocation151_spill] sm:$0xff] }
 0x27a   :  { %16213 = vst [vmem:[#allocation138_spill] sm:$0xff] %v9358_v0  ;;  %v2367_v3 = vmul.f32 %v9389_v28, %v9389_v28  ;;  %v9418_v0 = vsub.f32 %v16228_v57, %v8637_v50  ;;  %v9424_v31 = vsub.f32 %v16230_v52, %v8833_v9  ;;  %v2871_v29 = vadd.f32 %v2870_v60, %v2342_v18  ;;  %v16238_v52 = vld [vmem:[#allocation154_spill] sm:$0xff] }
 0x27b   :  { %16215 = vst [vmem:[#allocation141_spill] sm:$0xff] %v9362_v59  ;;  %v2885_v21 = vadd.f32 %v2884_v8, %v2354_v54  ;;  %v2369_v50 = vmul.f32 %v9399_v51, %v9399_v51  ;;  %v16236_v54 = vld [vmem:[#allocation153_spill] sm:$0xff]  ;;  %v9442_v18 = vsub.f32 %v16238_v52, %v8918_v5  ;;  %v9445_v60 = vmul.f32 %v7774_v40, %v1346_v11  ;;  %v16244_v11 = vld [vmem:[#allocation159_spill] sm:$0xff] }
 0x27c   :  { %16217 = vst [vmem:[#allocation113_spill] sm:$0xff] %v9370_v13  ;;  %v2356_v13 = vmul.f32 %v9383_v26, %v9383_v26  ;;  %v2901_v4 = vadd.f32 %v2368_v25, %v2367_v3  ;;  %v9438_v8 = vsub.f32 %v16236_v54, %v8918_v5  ;;  %2872 = vadd.xlane.f32.xlu1 %v2871_v29 }
 0x27d   :  { %16219 = vst [vmem:[#allocation114_spill] sm:$0xff] %v9383_v26  ;;  %v2886_v57 = vadd.f32 %v2885_v21, %v2355_v55  ;;  %v16242_v55 = vld [vmem:[#allocation155_spill] sm:$0xff]  ;;  %v2370_v21 = vmul.f32 %v9424_v31, %v9424_v31  ;;  %v9461_v52 = vsub.f32 %v16244_v11, %v8918_v5  ;;  %v2358_v29 = vmul.f32 %v9418_v0, %v9418_v0 }
 0x27e   :  { %16221 = vst [vmem:[#allocation115_spill] sm:$0xff] %v9389_v28  ;;  %v9428_v28 = vsub.f32 %v16232_v12, %v8833_v9  ;;  %v16240_v12 = vld [vmem:[#allocation158_spill] sm:$0xff]  ;;  %v9455_v3 = vsub.f32 %v16242_v55, %v8918_v5  ;;  %v2902_v54 = vadd.f32 %v2901_v4, %v2369_v50  ;;  %v2359_v55 = vmul.f32 %v9438_v8, %v9438_v8 }
 0x27f   :  { %16223 = vst [vmem:[#allocation142_spill] sm:$0xff] %v9395_v19  ;;  %v16234_v19 = vld [vmem:[#allocation157_spill] sm:$0xff]  ;;  %v9451_v26 = vsub.f32 %v16240_v12, %v8833_v9  ;;  %v2887_v25 = vadd.f32 %v2886_v57, %v2356_v13  ;;  %v2360_v13 = vmul.f32 %v9442_v18, %v9442_v18 }
 0x280   :  { %16225 = vst [vmem:[#allocation119_spill] sm:$0xff] %v9399_v51  ;;  %v9432_v59 = vsub.f32 %v16234_v19, %v8833_v9  ;;  %v2357_v19 = vmul.f32 %v9410_v17, %v9410_v17  ;;  %v2371_v4 = vmul.f32 %v9428_v28, %v9428_v28  ;;  %v2903_v11 = vadd.f32 %v2902_v54, %v2370_v21 }
 0x281   :  { %16227 = vst [vmem:[#allocation148_spill] sm:$0xff] %v9410_v17  ;;  %v16246_v17 = vld [vmem:[#allocation164_spill] sm:$0xff]  ;;  %v2362_v21 = vmul.f32 %v9461_v52, %v9461_v52 }
 0x282   :  { %16229 = vst [vmem:[#allocation124_spill] sm:$0xff] %v9418_v0  ;;  %v9467_v12 = vsub.f32 %v16246_v17, %v8833_v9  ;;  %v2888_v57 = vadd.f32 %v2887_v25, %v2357_v19  ;;  %v2372_v50 = vmul.f32 %v9432_v59, %v9432_v59  ;;  %v2373_v0 = vmul.f32 %v9451_v26, %v9451_v26  ;;  %v16248_v9 = vld [vmem:[#allocation161_spill] sm:$0xff] }
 0x283   :  { %16231 = vst [vmem:[#allocation125_spill] sm:$0xff] %v9424_v31  ;;  %v9481_v17 = vsub.f32 %v16248_v9, %v8918_v5  ;;  %v2892_v31 = vadd.f32 %v2360_v13, %v2359_v55  ;;  %v2904_v19 = vadd.f32 %v2903_v11, %v2371_v4  ;;  %v16250_v25 = vld [vmem:[#allocation165_spill] sm:$0xff]  ;;  %v16256_v55 = vld [vmem:[#allocation139_spill] sm:$0xff]  ;;  %v1337_v13 = vpop.xlane.xlu0 %1336 }
 0x284   :  { %16233 = vst [vmem:[#allocation145_spill] sm:$0xff] %v9428_v28  ;;  %v9487_v28 = vsub.f32 %v16250_v25, %v8918_v5  ;;  %v16254_v9 = vld [vmem:[#allocation137_spill] sm:$0xff]  ;;  %v16262_v25 = vld [vmem:[#allocation172_spill] sm:$0xff] }
 0x285   :  { %16235 = vst [vmem:[#allocation146_spill] sm:$0xff] %v9432_v59  ;;  %v9497_v51 = vsub.f32 %v16254_v9, %v8790_v58  ;;  %v2905_v4 = vadd.f32 %v2904_v19, %v2372_v50  ;;  %v9515_v9 = vsub.f32 %v16262_v25, %v8918_v5  ;;  %v16264_v19 = vld [vmem:[#allocation144_spill] sm:$0xff]  ;;  %v1382_v25 = vpop.xlane.xlu2 %1381 }
 0x286   :  { %16237 = vst [vmem:[#allocation147_spill] sm:$0xff] %v9438_v8  ;;  %v2361_v8 = vmul.f32 %v9455_v3, %v9455_v3 }
 0x287   :  { %16239 = vst [vmem:[#allocation126_spill] sm:$0xff] %v9442_v18  ;;  %v2889_v18 = vadd.f32 %v2888_v57, %v2358_v29  ;;  %v9501_v29 = vsub.f32 %v16256_v55, %v8790_v58  ;;  %v2374_v57 = vmul.f32 %v9467_v12, %v9467_v12  ;;  %v2363_v55 = vmul.f32 %v9481_v17, %v9481_v17 }
 0x288   :  { %16241 = vst [vmem:[#allocation132_spill] sm:$0xff] %v9451_v26  ;;  %v2893_v54 = vadd.f32 %v2892_v31, %v2361_v8  ;;  %v16252_v26 = vld [vmem:[#allocation136_spill] sm:$0xff]  ;;  %v16258_v31 = vld [vmem:[#allocation166_spill] sm:$0xff]  ;;  %v2906_v50 = vadd.f32 %v2905_v4, %v2373_v0  ;;  %v16266_v0 = vld [vmem:[#allocation149_spill] sm:$0xff] }
 0x289   :  { %16243 = vst [vmem:[#allocation151_spill] sm:$0xff] %v9455_v3  ;;  %v9493_v59 = vsub.f32 %v16252_v26, %v8790_v58  ;;  %2890 = vadd.xlane.f32.xlu0 %v2889_v18  ;;  %v9507_v8 = vsub.f32 %v16258_v31, %v8918_v5  ;;  %v16260_v26 = vld [vmem:[#allocation143_spill] sm:$0xff]  ;;  %v9523_v31 = vsub.f32 %v16264_v19, %v8790_v58 }
 0x28a   :  { %16245 = vst [vmem:[#allocation156_spill] sm:$0xff] %v9461_v52  ;;  %v9511_v11 = vsub.f32 %v16260_v26, %v8790_v58  ;;  %v2894_v18 = vadd.f32 %v2893_v54, %v2362_v21  ;;  %v2376_v26 = vmul.f32 %v9497_v51, %v9497_v51  ;;  %v2377_v3 = vmul.f32 %v9501_v29, %v9501_v29 }
 0x28b   :  { %16247 = vst [vmem:[#allocation157_spill] sm:$0xff] %v9467_v12  ;;  %v2375_v52 = vmul.f32 %v9493_v59, %v9493_v59  ;;  %v9530_v5 = vmul.f32 %v7774_v40, %v1337_v13  ;;  %v2364_v21 = vmul.f32 %v9487_v28, %v9487_v28  ;;  %v9536_v4 = vsub.f32 %v16266_v0, %v8790_v58 }
 0x28c   :  { %16249 = vst [vmem:[#allocation153_spill] sm:$0xff] %v9481_v17  ;;  %v2895_v54 = vadd.f32 %v2894_v18, %v2363_v55  ;;  %v2907_v19 = vadd.f32 %v2906_v50, %v2374_v57  ;;  %v16268_v17 = vld [vmem:[#allocation168_spill] sm:$0xff]  ;;  %v2365_v13 = vmul.f32 %v9507_v8, %v9507_v8  ;;  %v16272_v18 = vld [vmem:[#allocation171_spill] sm:$0xff]  ;;  %v9555_v57 = vmul.f32 %v7774_v40, %v1382_v25 }
 0x28d   :  { %16251 = vst [vmem:[#allocation154_spill] sm:$0xff] %v9487_v28  ;;  %v16270_v28 = vld [vmem:[#allocation169_spill] sm:$0xff]  ;;  %v9552_v0 = vsub.f32 %v16272_v18, %v8986_v48  ;;  %v1373_v18 = vpop.xlane.xlu1 %1372 }
 0x28e   :  { %16253 = vst [vmem:[#allocation158_spill] sm:$0xff] %v9493_v59  ;;  %v2378_v59 = vmul.f32 %v9511_v11, %v9511_v11  ;;  %v2896_v12 = vadd.f32 %v2895_v54, %v2364_v21  ;;  %v9548_v55 = vsub.f32 %v16270_v28, %v8986_v48  ;;  %2908 = vadd.xlane.f32.xlu2 %v2907_v19  ;;  %v16274_v21 = vld [vmem:[#allocation150_spill] sm:$0xff]  ;;  %v16276_v19 = vld [vmem:[#allocation152_spill] sm:$0xff] }
 0x28f   :  { %16255 = vst [vmem:[#allocation155_spill] sm:$0xff] %v9497_v51  ;;  %v2910_v51 = vadd.f32 %v2376_v26, %v2375_v52  ;;  %v2366_v52 = vmul.f32 %v9515_v9, %v9515_v9  ;;  %v9563_v28 = vsub.f32 %v16274_v21, %v8790_v58  ;;  %v16280_v21 = vld [vmem:[#allocation176_spill] sm:$0xff] }
 0x290   :  { %16257 = vst [vmem:[#allocation159_spill] sm:$0xff] %v9501_v29  ;;  %v9542_v29 = vsub.f32 %v16268_v17, %v8986_v48  ;;  %v2379_v17 = vmul.f32 %v9523_v31, %v9523_v31  ;;  %v2897_v26 = vadd.f32 %v2896_v12, %v2365_v13  ;;  %v2392_v25 = vmul.f32 %v9548_v55, %v9548_v55 }
 0x291   :  { %16259 = vst [vmem:[#allocation164_spill] sm:$0xff] %v9507_v8  ;;  %v2911_v50 = vadd.f32 %v2910_v51, %v2377_v3  ;;  %v16278_v3 = vld [vmem:[#allocation175_spill] sm:$0xff] }
 0x292   :  { %16261 = vst [vmem:[#allocation161_spill] sm:$0xff] %v9511_v11  ;;  %v2391_v54 = vmul.f32 %v9542_v29, %v9542_v29  ;;  %v9571_v11 = vsub.f32 %v16276_v19, %v8790_v58  ;;  %v9577_v12 = vsub.f32 %v16278_v3, %v8986_v48  ;;  %v2898_v13 = vadd.f32 %v2897_v26, %v2366_v52  ;;  %v16286_v3 = vld [vmem:[#allocation178_spill] sm:$0xff] }
 0x293   :  { %16263 = vst [vmem:[#allocation165_spill] sm:$0xff] %v9515_v9  ;;  %v2912_v51 = vadd.f32 %v2911_v50, %v2378_v59  ;;  %v2393_v58 = vmul.f32 %v9552_v0, %v9552_v0  ;;  %v16284_v59 = vld [vmem:[#allocation177_spill] sm:$0xff]  ;;  %v9595_v52 = vsub.f32 %v16286_v3, %v9071_v61  ;;  %v9598_v26 = vmul.f32 %v7774_v40, %v1373_v18  ;;  %v16292_v18 = vld [vmem:[#allocation183_spill] sm:$0xff] }
 0x294   :  { %16265 = vst [vmem:[#allocation136_spill] sm:$0xff] %v9523_v31  ;;  %v2380_v31 = vmul.f32 %v9536_v4, %v9536_v4  ;;  %v2928_v8 = vadd.f32 %v2392_v25, %v2391_v54  ;;  %v9591_v50 = vsub.f32 %v16284_v59, %v9071_v61  ;;  %2899 = vadd.xlane.f32.xlu1 %v2898_v13 }
 0x295   :  { %16267 = vst [vmem:[#allocation137_spill] sm:$0xff] %v9536_v4  ;;  %v2913_v19 = vadd.f32 %v2912_v51, %v2379_v17  ;;  %v16290_v17 = vld [vmem:[#allocation179_spill] sm:$0xff]  ;;  %v2394_v51 = vmul.f32 %v9577_v12, %v9577_v12  ;;  %v9614_v3 = vsub.f32 %v16292_v18, %v9071_v61  ;;  %v2382_v13 = vmul.f32 %v9571_v11, %v9571_v11 }
 0x296   :  { %16269 = vst [vmem:[#allocation139_spill] sm:$0xff] %v9542_v29  ;;  %v9581_v29 = vsub.f32 %v16280_v21, %v8986_v48  ;;  %v16288_v21 = vld [vmem:[#allocation182_spill] sm:$0xff]  ;;  %v9608_v54 = vsub.f32 %v16290_v17, %v9071_v61  ;;  %v2929_v59 = vadd.f32 %v2928_v8, %v2393_v58  ;;  %v2383_v17 = vmul.f32 %v9591_v50, %v9591_v50 }
 0x297   :  { %16271 = vst [vmem:[#allocation166_spill] sm:$0xff] %v9548_v55  ;;  %v16282_v55 = vld [vmem:[#allocation181_spill] sm:$0xff]  ;;  %v9604_v4 = vsub.f32 %v16288_v21, %v8986_v48  ;;  %v2914_v25 = vadd.f32 %v2913_v19, %v2380_v31  ;;  %v2384_v31 = vmul.f32 %v9595_v52, %v9595_v52 }
 0x298   :  { %16273 = vst [vmem:[#allocation143_spill] sm:$0xff] %v9552_v0  ;;  %v9585_v9 = vsub.f32 %v16282_v55, %v8986_v48  ;;  %v2381_v55 = vmul.f32 %v9563_v28, %v9563_v28  ;;  %v2395_v8 = vmul.f32 %v9581_v29, %v9581_v29  ;;  %v2930_v18 = vadd.f32 %v2929_v59, %v2394_v51 }
 0x299   :  { %16275 = vst [vmem:[#allocation172_spill] sm:$0xff] %v9563_v28  ;;  %v16294_v28 = vld [vmem:[#allocation184_spill] sm:$0xff]  ;;  %v2386_v51 = vmul.f32 %v9614_v3, %v9614_v3 }
 0x29a   :  { %16277 = vst [vmem:[#allocation144_spill] sm:$0xff] %v9571_v11  ;;  %v9620_v21 = vsub.f32 %v16294_v28, %v8986_v48  ;;  %v2915_v19 = vadd.f32 %v2914_v25, %v2381_v55  ;;  %v2396_v58 = vmul.f32 %v9585_v9, %v9585_v9  ;;  %v2397_v11 = vmul.f32 %v9604_v4, %v9604_v4  ;;  %v16296_v48 = vld [vmem:[#allocation188_spill] sm:$0xff]  ;;  %v16298_v25 = vld [vmem:[#allocation189_spill] sm:$0xff] }
 0x29b   :  { %16279 = vst [vmem:[#allocation149_spill] sm:$0xff] %v9577_v12  ;;  %v9634_v28 = vsub.f32 %v16296_v48, %v9071_v61  ;;  %v2919_v12 = vadd.f32 %v2384_v31, %v2383_v17  ;;  %v2931_v55 = vadd.f32 %v2930_v18, %v2395_v8  ;;  %v16302_v48 = vld [vmem:[#allocation162_spill] sm:$0xff]  ;;  %v16304_v17 = vld [vmem:[#allocation163_spill] sm:$0xff]  ;;  %v1364_v31 = vpop.xlane.xlu0 %1363 }
 0x29c   :  { %16281 = vst [vmem:[#allocation168_spill] sm:$0xff] %v9581_v29  ;;  %v9640_v29 = vsub.f32 %v16298_v25, %v9071_v61  ;;  %v9650_v0 = vsub.f32 %v16302_v48, %v8943_v41  ;;  %v16310_v25 = vld [vmem:[#allocation196_spill] sm:$0xff] }
 0x29d   :  { %16283 = vst [vmem:[#allocation169_spill] sm:$0xff] %v9585_v9  ;;  %v2932_v8 = vadd.f32 %v2931_v55, %v2396_v58  ;;  %v9668_v48 = vsub.f32 %v16310_v25, %v9071_v61  ;;  %v16312_v55 = vld [vmem:[#allocation170_spill] sm:$0xff]  ;;  %v1409_v25 = vpop.xlane.xlu2 %1408 }
 0x29e   :  { %16285 = vst [vmem:[#allocation171_spill] sm:$0xff] %v9591_v50  ;;  %v2385_v50 = vmul.f32 %v9608_v54, %v9608_v54 }
 0x29f   :  { %16287 = vst [vmem:[#allocation150_spill] sm:$0xff] %v9595_v52  ;;  %v2916_v52 = vadd.f32 %v2915_v19, %v2382_v13  ;;  %v9654_v13 = vsub.f32 %v16304_v17, %v8943_v41  ;;  %v2398_v19 = vmul.f32 %v9620_v21, %v9620_v21  ;;  %v2387_v17 = vmul.f32 %v9634_v28, %v9634_v28 }
 0x2a0   :  { %16289 = vst [vmem:[#allocation152_spill] sm:$0xff] %v9604_v4  ;;  %v2920_v59 = vadd.f32 %v2919_v12, %v2385_v50  ;;  %v16300_v4 = vld [vmem:[#allocation160_spill] sm:$0xff]  ;;  %v16306_v12 = vld [vmem:[#allocation190_spill] sm:$0xff]  ;;  %v2933_v58 = vadd.f32 %v2932_v8, %v2397_v11  ;;  %v16314_v11 = vld [vmem:[#allocation173_spill] sm:$0xff] }
 0x2a1   :  { %16291 = vst [vmem:[#allocation175_spill] sm:$0xff] %v9608_v54  ;;  %v9646_v9 = vsub.f32 %v16300_v4, %v8943_v41  ;;  %2917 = vadd.xlane.f32.xlu0 %v2916_v52  ;;  %v9660_v50 = vsub.f32 %v16306_v12, %v9071_v61  ;;  %v16308_v4 = vld [vmem:[#allocation167_spill] sm:$0xff]  ;;  %v9676_v12 = vsub.f32 %v16312_v55, %v8943_v41 }
 0x2a2   :  { %16293 = vst [vmem:[#allocation176_spill] sm:$0xff] %v9614_v3  ;;  %v9664_v18 = vsub.f32 %v16308_v4, %v8943_v41  ;;  %v2921_v52 = vadd.f32 %v2920_v59, %v2386_v51  ;;  %v2400_v4 = vmul.f32 %v9650_v0, %v9650_v0  ;;  %v2401_v54 = vmul.f32 %v9654_v13, %v9654_v13 }
 0x2a3   :  { %16295 = vst [vmem:[#allocation181_spill] sm:$0xff] %v9620_v21  ;;  %v2399_v3 = vmul.f32 %v9646_v9, %v9646_v9  ;;  %v9683_v61 = vmul.f32 %v7774_v40, %v1364_v31  ;;  %v2388_v51 = vmul.f32 %v9640_v29, %v9640_v29  ;;  %v9689_v8 = vsub.f32 %v16314_v11, %v8943_v41 }
 0x2a4   :  { %16297 = vst [vmem:[#allocation177_spill] sm:$0xff] %v9634_v28  ;;  %v2922_v59 = vadd.f32 %v2921_v52, %v2387_v17  ;;  %v2934_v55 = vadd.f32 %v2933_v58, %v2398_v19  ;;  %v16316_v28 = vld [vmem:[#allocation192_spill] sm:$0xff]  ;;  %v2389_v31 = vmul.f32 %v9660_v50, %v9660_v50  ;;  %v16320_v52 = vld [vmem:[#allocation195_spill] sm:$0xff]  ;;  %v9708_v19 = vmul.f32 %v7774_v40, %v1409_v25 }
 0x2a5   :  { %16299 = vst [vmem:[#allocation178_spill] sm:$0xff] %v9640_v29  ;;  %v16318_v29 = vld [vmem:[#allocation194_spill] sm:$0xff]  ;;  %v9705_v11 = vsub.f32 %v16320_v52, %v9139_v53  ;;  %v1400_v52 = vpop.xlane.xlu1 %1399 }
 0x2a6   :  { %16301 = vst [vmem:[#allocation182_spill] sm:$0xff] %v9646_v9  ;;  %v2402_v9 = vmul.f32 %v9664_v18, %v9664_v18  ;;  %v2923_v21 = vadd.f32 %v2922_v59, %v2388_v51  ;;  %v9701_v17 = vsub.f32 %v16318_v29, %v9139_v53  ;;  %2935 = vadd.xlane.f32.xlu2 %v2934_v55  ;;  %v16322_v51 = vld [vmem:[#allocation174_spill] sm:$0xff]  ;;  %v16324_v55 = vld [vmem:[#allocation180_spill] sm:$0xff] }
 0x2a7   :  { %16303 = vst [vmem:[#allocation179_spill] sm:$0xff] %v9650_v0  ;;  %v2937_v0 = vadd.f32 %v2400_v4, %v2399_v3  ;;  %v2390_v3 = vmul.f32 %v9668_v48, %v9668_v48  ;;  %v9716_v29 = vsub.f32 %v16322_v51, %v8943_v41  ;;  %v16328_v51 = vld [vmem:[#allocation202_spill] sm:$0xff] }
 0x2a8   :  { %16305 = vst [vmem:[#allocation183_spill] sm:$0xff] %v9654_v13  ;;  %v9695_v13 = vsub.f32 %v16316_v28, %v9139_v53  ;;  %v2403_v28 = vmul.f32 %v9676_v12, %v9676_v12  ;;  %v2924_v4 = vadd.f32 %v2923_v21, %v2389_v31  ;;  %v2416_v25 = vmul.f32 %v9701_v17, %v9701_v17 }
 0x2a9   :  { %16307 = vst [vmem:[#allocation184_spill] sm:$0xff] %v9660_v50  ;;  %v2938_v58 = vadd.f32 %v2937_v0, %v2401_v54  ;;  %v16326_v54 = vld [vmem:[#allocation199_spill] sm:$0xff] }
 0x2aa   :  { %16309 = vst [vmem:[#allocation188_spill] sm:$0xff] %v9664_v18  ;;  %v2415_v59 = vmul.f32 %v9695_v13, %v9695_v13  ;;  %v9724_v18 = vsub.f32 %v16324_v55, %v8943_v41  ;;  %v9730_v21 = vsub.f32 %v16326_v54, %v9139_v53  ;;  %v2925_v31 = vadd.f32 %v2924_v4, %v2390_v3  ;;  %v16334_v54 = vld [vmem:[#allocation201_spill] sm:$0xff] }
 0x2ab   :  { %16311 = vst [vmem:[#allocation189_spill] sm:$0xff] %v9668_v48  ;;  %v2939_v0 = vadd.f32 %v2938_v58, %v2402_v9  ;;  %v2417_v41 = vmul.f32 %v9705_v11, %v9705_v11  ;;  %v16332_v9 = vld [vmem:[#allocation200_spill] sm:$0xff]  ;;  %v9748_v3 = vsub.f32 %v16334_v54, %v9224_v56  ;;  %v9751_v4 = vmul.f32 %v7774_v40, %v1400_v52  ;;  %v16340_v52 = vld [vmem:[#allocation207_spill] sm:$0xff] }
 0x2ac   :  { %16313 = vst [vmem:[#allocation160_spill] sm:$0xff] %v9676_v12  ;;  %v2404_v12 = vmul.f32 %v9689_v8, %v9689_v8  ;;  %v2955_v50 = vadd.f32 %v2416_v25, %v2415_v59  ;;  %v9744_v58 = vsub.f32 %v16332_v9, %v9224_v56  ;;  %2926 = vadd.xlane.f32.xlu1 %v2925_v31 }
 0x2ad   :  { %16315 = vst [vmem:[#allocation162_spill] sm:$0xff] %v9689_v8  ;;  %v2940_v55 = vadd.f32 %v2939_v0, %v2403_v28  ;;  %v16338_v28 = vld [vmem:[#allocation203_spill] sm:$0xff]  ;;  %v2418_v0 = vmul.f32 %v9730_v21, %v9730_v21  ;;  %v9767_v54 = vsub.f32 %v16340_v52, %v9224_v56  ;;  %v2406_v31 = vmul.f32 %v9724_v18, %v9724_v18 }
 0x2ae   :  { %16317 = vst [vmem:[#allocation163_spill] sm:$0xff] %v9695_v13  ;;  %v9734_v13 = vsub.f32 %v16328_v51, %v9139_v53  ;;  %v16336_v51 = vld [vmem:[#allocation206_spill] sm:$0xff]  ;;  %v9761_v59 = vsub.f32 %v16338_v28, %v9224_v56  ;;  %v2956_v9 = vadd.f32 %v2955_v50, %v2417_v41  ;;  %v2407_v28 = vmul.f32 %v9744_v58, %v9744_v58 }
 0x2af   :  { %16319 = vst [vmem:[#allocation190_spill] sm:$0xff] %v9701_v17  ;;  %v16330_v17 = vld [vmem:[#allocation205_spill] sm:$0xff]  ;;  %v9757_v8 = vsub.f32 %v16336_v51, %v9139_v53  ;;  %v2941_v25 = vadd.f32 %v2940_v55, %v2404_v12  ;;  %v2408_v12 = vmul.f32 %v9748_v3, %v9748_v3 }
 0x2b0   :  { %16321 = vst [vmem:[#allocation167_spill] sm:$0xff] %v9705_v11  ;;  %v9738_v48 = vsub.f32 %v16330_v17, %v9139_v53  ;;  %v2405_v17 = vmul.f32 %v9716_v29, %v9716_v29  ;;  %v2419_v50 = vmul.f32 %v9734_v13, %v9734_v13  ;;  %v2957_v52 = vadd.f32 %v2956_v9, %v2418_v0 }
 0x2b1   :  { %16323 = vst [vmem:[#allocation196_spill] sm:$0xff] %v9716_v29  ;;  %v16342_v29 = vld [vmem:[#allocation212_spill] sm:$0xff]  ;;  %v2410_v0 = vmul.f32 %v9767_v54, %v9767_v54 }
 0x2b2   :  { %16325 = vst [vmem:[#allocation170_spill] sm:$0xff] %v9724_v18  ;;  %v9773_v51 = vsub.f32 %v16342_v29, %v9139_v53  ;;  %v2942_v55 = vadd.f32 %v2941_v25, %v2405_v17  ;;  %v2420_v41 = vmul.f32 %v9738_v48, %v9738_v48  ;;  %v2421_v18 = vmul.f32 %v9757_v8, %v9757_v8  ;;  %v16344_v53 = vld [vmem:[#allocation208_spill] sm:$0xff]  ;;  %v16346_v25 = vld [vmem:[#allocation213_spill] sm:$0xff] }
 0x2b3   :  { %16327 = vst [vmem:[#allocation173_spill] sm:$0xff] %v9730_v21  ;;  %v9787_v29 = vsub.f32 %v16344_v53, %v9224_v56  ;;  %v2946_v21 = vadd.f32 %v2408_v12, %v2407_v28  ;;  %v2958_v17 = vadd.f32 %v2957_v52, %v2419_v50  ;;  %v16350_v53 = vld [vmem:[#allocation186_spill] sm:$0xff]  ;;  %v16352_v28 = vld [vmem:[#allocation187_spill] sm:$0xff]  ;;  %v1391_v12 = vpop.xlane.xlu0 %1390 }
 0x2b4   :  { %16329 = vst [vmem:[#allocation192_spill] sm:$0xff] %v9734_v13  ;;  %v9793_v13 = vsub.f32 %v16346_v25, %v9224_v56  ;;  %v9803_v11 = vsub.f32 %v16350_v53, %v9096_v27  ;;  %v16358_v25 = vld [vmem:[#allocation216_spill] sm:$0xff] }
 0x2b5   :  { %16331 = vst [vmem:[#allocation194_spill] sm:$0xff] %v9738_v48  ;;  %v2959_v50 = vadd.f32 %v2958_v17, %v2420_v41  ;;  %v9821_v53 = vsub.f32 %v16358_v25, %v9224_v56  ;;  %v16360_v17 = vld [vmem:[#allocation193_spill] sm:$0xff]  ;;  %v1436_v25 = vpop.xlane.xlu2 %1435 }
 0x2b6   :  { %16333 = vst [vmem:[#allocation195_spill] sm:$0xff] %v9744_v58  ;;  %v2409_v58 = vmul.f32 %v9761_v59, %v9761_v59 }
 0x2b7   :  { %16335 = vst [vmem:[#allocation174_spill] sm:$0xff] %v9748_v3  ;;  %v2943_v3 = vadd.f32 %v2942_v55, %v2406_v31  ;;  %v9807_v31 = vsub.f32 %v16352_v28, %v9096_v27  ;;  %v2422_v55 = vmul.f32 %v9773_v51, %v9773_v51  ;;  %v2411_v28 = vmul.f32 %v9787_v29, %v9787_v29 }
 0x2b8   :  { %16337 = vst [vmem:[#allocation180_spill] sm:$0xff] %v9757_v8  ;;  %v2947_v9 = vadd.f32 %v2946_v21, %v2409_v58  ;;  %v16348_v8 = vld [vmem:[#allocation185_spill] sm:$0xff]  ;;  %v16354_v21 = vld [vmem:[#allocation214_spill] sm:$0xff]  ;;  %v2960_v41 = vadd.f32 %v2959_v50, %v2421_v18 }
 0x2b9   :  { %16339 = vst [vmem:[#allocation199_spill] sm:$0xff] %v9761_v59  ;;  %v9799_v48 = vsub.f32 %v16348_v8, %v9096_v27  ;;  %2944 = vadd.xlane.f32.xlu0 %v2943_v3  ;;  %v9813_v58 = vsub.f32 %v16354_v21, %v9224_v56  ;;  %v16356_v8 = vld [vmem:[#allocation191_spill] sm:$0xff]  ;;  %v9829_v21 = vsub.f32 %v16360_v17, %v9096_v27  ;;  %v16362_v18 = vld [vmem:[#allocation197_spill] sm:$0xff] }
 0x2ba   :  { %16341 = vst [vmem:[#allocation202_spill] sm:$0xff] %v9767_v54  ;;  %v9817_v52 = vsub.f32 %v16356_v8, %v9096_v27  ;;  %v2948_v3 = vadd.f32 %v2947_v9, %v2410_v0  ;;  %v2424_v8 = vmul.f32 %v9803_v11, %v9803_v11  ;;  %v2425_v59 = vmul.f32 %v9807_v31, %v9807_v31 }
 0x2bb   :  { %16343 = vst [vmem:[#allocation205_spill] sm:$0xff] %v9773_v51  ;;  %v2423_v54 = vmul.f32 %v9799_v48, %v9799_v48  ;;  %v9836_v56 = vmul.f32 %v7774_v40, %v1391_v12  ;;  %v2412_v0 = vmul.f32 %v9793_v13, %v9793_v13  ;;  %v9842_v50 = vsub.f32 %v16362_v18, %v9096_v27 }
 0x2bc   :  { %16345 = vst [vmem:[#allocation200_spill] sm:$0xff] %v9787_v29  ;;  %v2949_v9 = vadd.f32 %v2948_v3, %v2411_v28  ;;  %v2961_v17 = vadd.f32 %v2960_v41, %v2422_v55  ;;  %v16364_v29 = vld [vmem:[#allocation217_spill] sm:$0xff]  ;;  %v2413_v12 = vmul.f32 %v9813_v58, %v9813_v58  ;;  %v16368_v3 = vld [vmem:[#allocation219_spill] sm:$0xff]  ;;  %v9861_v55 = vmul.f32 %v7774_v40, %v1436_v25 }
 0x2bd   :  { %16347 = vst [vmem:[#allocation201_spill] sm:$0xff] %v9793_v13  ;;  %v16366_v13 = vld [vmem:[#allocation218_spill] sm:$0xff]  ;;  %v9858_v18 = vsub.f32 %v16368_v3, %v9292_v16  ;;  %v1427_v3 = vpop.xlane.xlu1 %1426 }
 0x2be   :  { %16349 = vst [vmem:[#allocation206_spill] sm:$0xff] %v9799_v48  ;;  %v2426_v48 = vmul.f32 %v9817_v52, %v9817_v52  ;;  %v2950_v51 = vadd.f32 %v2949_v9, %v2412_v0  ;;  %v9854_v28 = vsub.f32 %v16366_v13, %v9292_v16  ;;  %2962 = vadd.xlane.f32.xlu2 %v2961_v17  ;;  %v16370_v0 = vld [vmem:[#allocation198_spill] sm:$0xff]  ;;  %v16372_v17 = vld [vmem:[#allocation204_spill] sm:$0xff] }
 0x2bf   :  { %16351 = vst [vmem:[#allocation203_spill] sm:$0xff] %v9803_v11  ;;  %v2964_v11 = vadd.f32 %v2424_v8, %v2423_v54  ;;  %v2414_v54 = vmul.f32 %v9821_v53, %v9821_v53  ;;  %v9869_v13 = vsub.f32 %v16370_v0, %v9096_v27  ;;  %v16376_v0 = vld [vmem:[#allocation225_spill] sm:$0xff] }
 0x2c0   :  { %16353 = vst [vmem:[#allocation207_spill] sm:$0xff] %v9807_v31  ;;  %v9848_v31 = vsub.f32 %v16364_v29, %v9292_v16  ;;  %v2427_v29 = vmul.f32 %v9829_v21, %v9829_v21  ;;  %v2951_v8 = vadd.f32 %v2950_v51, %v2413_v12  ;;  %v2440_v25 = vmul.f32 %v9854_v28, %v9854_v28 }
 0x2c1   :  { %16355 = vst [vmem:[#allocation212_spill] sm:$0xff] %v9813_v58  ;;  %v2965_v41 = vadd.f32 %v2964_v11, %v2425_v59  ;;  %v16374_v59 = vld [vmem:[#allocation223_spill] sm:$0xff] }
 0x2c2   :  { %16357 = vst [vmem:[#allocation208_spill] sm:$0xff] %v9817_v52  ;;  %v2439_v9 = vmul.f32 %v9848_v31, %v9848_v31  ;;  %v9877_v52 = vsub.f32 %v16372_v17, %v9096_v27  ;;  %v9883_v51 = vsub.f32 %v16374_v59, %v9292_v16  ;;  %v2952_v12 = vadd.f32 %v2951_v8, %v2414_v54  ;;  %v16382_v59 = vld [vmem:[#allocation226_spill] sm:$0xff] }
 0x2c3   :  { %16359 = vst [vmem:[#allocation213_spill] sm:$0xff] %v9821_v53  ;;  %v2966_v11 = vadd.f32 %v2965_v41, %v2426_v48  ;;  %v2441_v27 = vmul.f32 %v9858_v18, %v9858_v18  ;;  %v16380_v48 = vld [vmem:[#allocation224_spill] sm:$0xff]  ;;  %v9901_v54 = vsub.f32 %v16382_v59, %v9377_v30  ;;  %v9904_v8 = vmul.f32 %v7774_v40, %v1427_v3  ;;  %v16388_v3 = vld [vmem:[#allocation231_spill] sm:$0xff] }
 0x2c4   :  { %16361 = vst [vmem:[#allocation185_spill] sm:$0xff] %v9829_v21  ;;  %v2428_v21 = vmul.f32 %v9842_v50, %v9842_v50  ;;  %v2982_v58 = vadd.f32 %v2440_v25, %v2439_v9  ;;  %v9897_v41 = vsub.f32 %v16380_v48, %v9377_v30  ;;  %2953 = vadd.xlane.f32.xlu1 %v2952_v12 }
 0x2c5   :  { %16363 = vst [vmem:[#allocation186_spill] sm:$0xff] %v9842_v50  ;;  %v2967_v17 = vadd.f32 %v2966_v11, %v2427_v29  ;;  %v16386_v29 = vld [vmem:[#allocation227_spill] sm:$0xff]  ;;  %v2442_v11 = vmul.f32 %v9883_v51, %v9883_v51  ;;  %v9920_v59 = vsub.f32 %v16388_v3, %v9377_v30  ;;  %v2430_v12 = vmul.f32 %v9877_v52, %v9877_v52 }
 0x2c6   :  { %16365 = vst [vmem:[#allocation187_spill] sm:$0xff] %v9848_v31  ;;  %v9887_v31 = vsub.f32 %v16376_v0, %v9292_v16  ;;  %v16384_v0 = vld [vmem:[#allocation230_spill] sm:$0xff]  ;;  %v9914_v9 = vsub.f32 %v16386_v29, %v9377_v30  ;;  %v2983_v48 = vadd.f32 %v2982_v58, %v2441_v27  ;;  %v2431_v29 = vmul.f32 %v9897_v41, %v9897_v41 }
 0x2c7   :  { %16367 = vst [vmem:[#allocation214_spill] sm:$0xff] %v9854_v28  ;;  %v16378_v28 = vld [vmem:[#allocation229_spill] sm:$0xff]  ;;  %v9910_v50 = vsub.f32 %v16384_v0, %v9292_v16  ;;  %v2968_v25 = vadd.f32 %v2967_v17, %v2428_v21  ;;  %v2432_v21 = vmul.f32 %v9901_v54, %v9901_v54 }
 0x2c8   :  { %16369 = vst [vmem:[#allocation191_spill] sm:$0xff] %v9858_v18  ;;  %v9891_v53 = vsub.f32 %v16378_v28, %v9292_v16  ;;  %v2429_v28 = vmul.f32 %v9869_v13, %v9869_v13  ;;  %v2443_v58 = vmul.f32 %v9887_v31, %v9887_v31  ;;  %v2984_v3 = vadd.f32 %v2983_v48, %v2442_v11 }
 0x2c9   :  { %16371 = vst [vmem:[#allocation216_spill] sm:$0xff] %v9869_v13  ;;  %v16390_v13 = vld [vmem:[#allocation236_spill] sm:$0xff]  ;;  %v2434_v11 = vmul.f32 %v9920_v59, %v9920_v59 }
 0x2ca   :  { %16373 = vst [vmem:[#allocation193_spill] sm:$0xff] %v9877_v52  ;;  %v9926_v0 = vsub.f32 %v16390_v13, %v9292_v16  ;;  %v2969_v17 = vadd.f32 %v2968_v25, %v2429_v28  ;;  %v2444_v27 = vmul.f32 %v9891_v53, %v9891_v53  ;;  %v2445_v52 = vmul.f32 %v9910_v50, %v9910_v50  ;;  %v16392_v16 = vld [vmem:[#allocation234_spill] sm:$0xff]  ;;  %v16394_v25 = vld [vmem:[#allocation237_spill] sm:$0xff] }
 0x2cb   :  { %16375 = vst [vmem:[#allocation197_spill] sm:$0xff] %v9883_v51  ;;  %v9940_v13 = vsub.f32 %v16392_v16, %v9377_v30  ;;  %v2973_v51 = vadd.f32 %v2432_v21, %v2431_v29  ;;  %v2985_v28 = vadd.f32 %v2984_v3, %v2443_v58  ;;  %v16398_v16 = vld [vmem:[#allocation210_spill] sm:$0xff]  ;;  %v16400_v29 = vld [vmem:[#allocation211_spill] sm:$0xff]  ;;  %v1418_v21 = vpop.xlane.xlu0 %1417 }
 0x2cc   :  { %16377 = vst [vmem:[#allocation217_spill] sm:$0xff] %v9887_v31  ;;  %v9946_v31 = vsub.f32 %v16394_v25, %v9377_v30  ;;  %v9956_v18 = vsub.f32 %v16398_v16, %v9249_v36  ;;  %v16406_v25 = vld [vmem:[#allocation244_spill] sm:$0xff] }
 0x2cd   :  { %16379 = vst [vmem:[#allocation218_spill] sm:$0xff] %v9891_v53  ;;  %v2986_v58 = vadd.f32 %v2985_v28, %v2444_v27  ;;  %v9974_v16 = vsub.f32 %v16406_v25, %v9377_v30  ;;  %v16408_v28 = vld [vmem:[#allocation220_spill] sm:$0xff]  ;;  %v1463_v25 = vpop.xlane.xlu2 %1462 }
 0x2ce   :  { %16381 = vst [vmem:[#allocation219_spill] sm:$0xff] %v9897_v41  ;;  %v2433_v41 = vmul.f32 %v9914_v9, %v9914_v9 }
 0x2cf   :  { %16383 = vst [vmem:[#allocation198_spill] sm:$0xff] %v9901_v54  ;;  %v2970_v54 = vadd.f32 %v2969_v17, %v2430_v12  ;;  %v9960_v12 = vsub.f32 %v16400_v29, %v9249_v36  ;;  %v2446_v17 = vmul.f32 %v9926_v0, %v9926_v0  ;;  %v2435_v29 = vmul.f32 %v9940_v13, %v9940_v13 }
 0x2d0   :  { %16385 = vst [vmem:[#allocation204_spill] sm:$0xff] %v9910_v50  ;;  %v2974_v48 = vadd.f32 %v2973_v51, %v2433_v41  ;;  %v16396_v50 = vld [vmem:[#allocation209_spill] sm:$0xff]  ;;  %v16402_v51 = vld [vmem:[#allocation238_spill] sm:$0xff]  ;;  %v2987_v27 = vadd.f32 %v2986_v58, %v2445_v52 }
 0x2d1   :  { %16387 = vst [vmem:[#allocation223_spill] sm:$0xff] %v9914_v9  ;;  %v9952_v53 = vsub.f32 %v16396_v50, %v9249_v36  ;;  %2971 = vadd.xlane.f32.xlu0 %v2970_v54  ;;  %v9966_v41 = vsub.f32 %v16402_v51, %v9377_v30  ;;  %v16404_v50 = vld [vmem:[#allocation215_spill] sm:$0xff]  ;;  %v9982_v51 = vsub.f32 %v16408_v28, %v9249_v36  ;;  %v16410_v52 = vld [vmem:[#allocation221_spill] sm:$0xff] }
 0x2d2   :  { %16389 = vst [vmem:[#allocation225_spill] sm:$0xff] %v9920_v59  ;;  %v9970_v3 = vsub.f32 %v16404_v50, %v9249_v36  ;;  %v2975_v54 = vadd.f32 %v2974_v48, %v2434_v11  ;;  %v2448_v50 = vmul.f32 %v9956_v18, %v9956_v18  ;;  %v2449_v9 = vmul.f32 %v9960_v12, %v9960_v12 }
 0x2d3   :  { %16391 = vst [vmem:[#allocation229_spill] sm:$0xff] %v9926_v0  ;;  %v2447_v59 = vmul.f32 %v9952_v53, %v9952_v53  ;;  %v9989_v30 = vmul.f32 %v7774_v40, %v1418_v21  ;;  %v2436_v11 = vmul.f32 %v9946_v31, %v9946_v31  ;;  %v9995_v58 = vsub.f32 %v16410_v52, %v9249_v36 }
 0x2d4   :  { %16393 = vst [vmem:[#allocation224_spill] sm:$0xff] %v9940_v13  ;;  %v2976_v48 = vadd.f32 %v2975_v54, %v2435_v29  ;;  %v2988_v28 = vadd.f32 %v2987_v27, %v2446_v17  ;;  %v16412_v13 = vld [vmem:[#allocation241_spill] sm:$0xff]  ;;  %v2437_v21 = vmul.f32 %v9966_v41, %v9966_v41  ;;  %v16416_v54 = vld [vmem:[#allocation243_spill] sm:$0xff]  ;;  %v10014_v17 = vmul.f32 %v7774_v40, %v1463_v25 }
 0x2d5   :  { %16395 = vst [vmem:[#allocation226_spill] sm:$0xff] %v9946_v31  ;;  %v16414_v31 = vld [vmem:[#allocation242_spill] sm:$0xff]  ;;  %v10011_v52 = vsub.f32 %v16416_v54, %v9445_v60  ;;  %v2451_v27 = vmul.f32 %v9982_v51, %v9982_v51 }
 0x2d6   :  { %16397 = vst [vmem:[#allocation230_spill] sm:$0xff] %v9952_v53  ;;  %v2450_v53 = vmul.f32 %v9970_v3, %v9970_v3  ;;  %v2977_v0 = vadd.f32 %v2976_v48, %v2436_v11  ;;  %v10007_v29 = vsub.f32 %v16414_v31, %v9445_v60  ;;  %2989 = vadd.xlane.f32.xlu2 %v2988_v28  ;;  %v16418_v31 = vld [vmem:[#allocation222_spill] sm:$0xff]  ;;  %v16420_v28 = vld [vmem:[#allocation228_spill] sm:$0xff] }
 0x2d7   :  { %16399 = vst [vmem:[#allocation227_spill] sm:$0xff] %v9956_v18  ;;  %v2991_v18 = vadd.f32 %v2448_v50, %v2447_v59  ;;  %v1454_v59 = vpop.xlane.xlu1 %1453  ;;  %v10022_v48 = vsub.f32 %v16418_v31, %v9249_v36 }
 0x2d8   :  { %16401 = vst [vmem:[#allocation231_spill] sm:$0xff] %v9960_v12  ;;  %v10001_v12 = vsub.f32 %v16412_v13, %v9445_v60  ;;  %v2438_v13 = vmul.f32 %v9974_v16, %v9974_v16  ;;  %v2978_v11 = vadd.f32 %v2977_v0, %v2437_v21  ;;  %v2464_v25 = vmul.f32 %v10007_v29, %v10007_v29  ;;  %v16424_v21 = vld [vmem:[#allocation252_spill] sm:$0xff] }
 0x2d9   :  { %16403 = vst [vmem:[#allocation236_spill] sm:$0xff] %v9966_v41  ;;  %v2992_v50 = vadd.f32 %v2991_v18, %v2449_v9  ;;  %v16422_v18 = vld [vmem:[#allocation247_spill] sm:$0xff]  ;;  %v10040_v31 = vsub.f32 %v16424_v21, %v9445_v60  ;;  %v16432_v21 = vld [vmem:[#allocation254_spill] sm:$0xff] }
 0x2da   :  { %16405 = vst [vmem:[#allocation234_spill] sm:$0xff] %v9970_v3  ;;  %v2463_v54 = vmul.f32 %v10001_v12, %v10001_v12  ;;  %v10030_v3 = vsub.f32 %v16420_v28, %v9249_v36  ;;  %v10036_v9 = vsub.f32 %v16422_v18, %v9445_v60  ;;  %v2979_v0 = vadd.f32 %v2978_v11, %v2438_v13  ;;  %v16430_v18 = vld [vmem:[#allocation250_spill] sm:$0xff] }
 0x2db   :  { %16407 = vst [vmem:[#allocation237_spill] sm:$0xff] %v9974_v16  ;;  %v2452_v16 = vmul.f32 %v9995_v58, %v9995_v58  ;;  %v2465_v36 = vmul.f32 %v10011_v52, %v10011_v52  ;;  %v10054_v13 = vsub.f32 %v16430_v18, %v9530_v5  ;;  %v10057_v11 = vmul.f32 %v7774_v40, %v1454_v59  ;;  %v16436_v59 = vld [vmem:[#allocation255_spill] sm:$0xff] }
 0x2dc   :  { %16409 = vst [vmem:[#allocation209_spill] sm:$0xff] %v9982_v51  ;;  %v2993_v51 = vadd.f32 %v2992_v50, %v2450_v53  ;;  %v3009_v41 = vadd.f32 %v2464_v25, %v2463_v54  ;;  %v16428_v53 = vld [vmem:[#allocation249_spill] sm:$0xff]  ;;  %2980 = vadd.xlane.f32.xlu1 %v2979_v0  ;;  %v2466_v25 = vmul.f32 %v10036_v9, %v10036_v9 }
 0x2dd   :  { %16411 = vst [vmem:[#allocation210_spill] sm:$0xff] %v9995_v58  ;;  %v10050_v50 = vsub.f32 %v16428_v53, %v9530_v5  ;;  %v10063_v58 = vsub.f32 %v16432_v21, %v9445_v60  ;;  %v10073_v18 = vsub.f32 %v16436_v59, %v9530_v5  ;;  %v2454_v0 = vmul.f32 %v10030_v3, %v10030_v3 }
 0x2de   :  { %16413 = vst [vmem:[#allocation211_spill] sm:$0xff] %v10001_v12  ;;  %v16426_v12 = vld [vmem:[#allocation253_spill] sm:$0xff]  ;;  %v2994_v28 = vadd.f32 %v2993_v51, %v2451_v27  ;;  %v16434_v51 = vld [vmem:[#allocation251_spill] sm:$0xff]  ;;  %v3010_v53 = vadd.f32 %v3009_v41, %v2465_v36  ;;  %v2467_v41 = vmul.f32 %v10040_v31, %v10040_v31 }
 0x2df   :  { %16415 = vst [vmem:[#allocation238_spill] sm:$0xff] %v10007_v29  ;;  %v10044_v29 = vsub.f32 %v16426_v12, %v9445_v60  ;;  %v2453_v12 = vmul.f32 %v10022_v48, %v10022_v48  ;;  %v10067_v27 = vsub.f32 %v16434_v51, %v9530_v5  ;;  %v2455_v51 = vmul.f32 %v10050_v50, %v10050_v50 }
 0x2e0   :  { %16417 = vst [vmem:[#allocation215_spill] sm:$0xff] %v10011_v52  ;;  %v2995_v54 = vadd.f32 %v2994_v28, %v2452_v16  ;;  %v2456_v16 = vmul.f32 %v10054_v13, %v10054_v13  ;;  %v3011_v59 = vadd.f32 %v3010_v53, %v2466_v25  ;;  %v2458_v25 = vmul.f32 %v10073_v18, %v10073_v18 }
 0x2e1   :  { %16419 = vst [vmem:[#allocation244_spill] sm:$0xff] %v10022_v48  ;;  %v16438_v48 = vld [vmem:[#allocation260_spill] sm:$0xff]  ;;  %v2468_v36 = vmul.f32 %v10044_v29, %v10044_v29 }
 0x2e2   :  { %16421 = vst [vmem:[#allocation220_spill] sm:$0xff] %v10030_v3  ;;  %v10079_v21 = vsub.f32 %v16438_v48, %v9445_v60  ;;  %v2996_v28 = vadd.f32 %v2995_v54, %v2453_v12  ;;  %v2469_v3 = vmul.f32 %v10063_v58, %v10063_v58  ;;  %v16440_v60 = vld [vmem:[#allocation257_spill] sm:$0xff]  ;;  %v3012_v54 = vadd.f32 %v3011_v59, %v2467_v41 }
 0x2e3   :  { %16423 = vst [vmem:[#allocation221_spill] sm:$0xff] %v10036_v9  ;;  %v10093_v48 = vsub.f32 %v16440_v60, %v9530_v5  ;;  %v3000_v9 = vadd.f32 %v2456_v16, %v2455_v51  ;;  %v16446_v60 = vld [vmem:[#allocation233_spill] sm:$0xff]  ;;  %v16448_v51 = vld [vmem:[#allocation235_spill] sm:$0xff]  ;;  %v1445_v16 = vpop.xlane.xlu0 %1444 }
 0x2e4   :  { %16425 = vst [vmem:[#allocation241_spill] sm:$0xff] %v10040_v31  ;;  %v2997_v12 = vadd.f32 %v2996_v28, %v2454_v0  ;;  %v16442_v31 = vld [vmem:[#allocation261_spill] sm:$0xff]  ;;  %v10109_v44 = vsub.f32 %v16446_v60, %v9402_v7  ;;  %v10113_v0 = vsub.f32 %v16448_v51, %v9402_v7  ;;  %v1490_v28 = vpop.xlane.xlu2 %1489  ;;  %v3013_v41 = vadd.f32 %v3012_v54, %v2468_v36  ;;  %v16454_v60 = vld [vmem:[#allocation268_spill] sm:$0xff] }
 0x2e5   :  { %16427 = vst [vmem:[#allocation242_spill] sm:$0xff] %v10044_v29  ;;  %v10099_v52 = vsub.f32 %v16442_v31, %v9530_v5  ;;  %v2470_v31 = vmul.f32 %v10079_v21, %v10079_v21  ;;  %v2459_v51 = vmul.f32 %v10093_v48, %v10093_v48  ;;  %v16456_v54 = vld [vmem:[#allocation240_spill] sm:$0xff] }
 0x2e6   :  { %16429 = vst [vmem:[#allocation243_spill] sm:$0xff] %v10050_v50  ;;  %v2457_v50 = vmul.f32 %v10067_v27, %v10067_v27  ;;  %2998 = vadd.xlane.f32.xlu0 %v2997_v12  ;;  %v3014_v36 = vadd.f32 %v3013_v41, %v2469_v3 }
 0x2e7   :  { %16431 = vst [vmem:[#allocation222_spill] sm:$0xff] %v10054_v13  ;;  %v1481_v13 = vpop.xlane.xlu1 %1480 }
 0x2e8   :  { %16433 = vst [vmem:[#allocation228_spill] sm:$0xff] %v10063_v58  ;;  %v3001_v53 = vadd.f32 %v3000_v9, %v2457_v50  ;;  %v16444_v58 = vld [vmem:[#allocation232_spill] sm:$0xff]  ;;  %v16450_v9 = vld [vmem:[#allocation262_spill] sm:$0xff]  ;;  %v3015_v41 = vadd.f32 %v3014_v36, %v2470_v31  ;;  %v10167_v31 = vmul.f32 %v7774_v40, %v1490_v28 }
 0x2e9   :  { %16435 = vst [vmem:[#allocation247_spill] sm:$0xff] %v10067_v27  ;;  %v10105_v29 = vsub.f32 %v16444_v58, %v9402_v7  ;;  %v10119_v50 = vsub.f32 %v16450_v9, %v9530_v5  ;;  %v16452_v58 = vld [vmem:[#allocation239_spill] sm:$0xff]  ;;  %v10135_v9 = vsub.f32 %v16456_v54, %v9402_v7 }
 0x2ea   :  { %16437 = vst [vmem:[#allocation252_spill] sm:$0xff] %v10073_v18  ;;  %v10123_v59 = vsub.f32 %v16452_v58, %v9402_v7  ;;  %v10127_v18 = vsub.f32 %v16454_v60, %v9530_v5  ;;  %v3002_v12 = vadd.f32 %v3001_v53, %v2458_v25  ;;  %v2472_v58 = vmul.f32 %v10109_v44, %v10109_v44  ;;  %v16458_v60 = vld [vmem:[#allocation245_spill] sm:$0xff] }
 0x2eb   :  { %16439 = vst [vmem:[#allocation253_spill] sm:$0xff] %v10079_v21  ;;  %v2471_v27 = vmul.f32 %v10105_v29, %v10105_v29  ;;  %v2473_v21 = vmul.f32 %v10113_v0, %v10113_v0  ;;  %v10142_v5 = vmul.f32 %v7774_v40, %v1445_v16  ;;  %v2460_v25 = vmul.f32 %v10099_v52, %v10099_v52 }
 0x2ec   :  { %16441 = vst [vmem:[#allocation249_spill] sm:$0xff] %v10093_v48  ;;  %v3003_v53 = vadd.f32 %v3002_v12, %v2459_v51  ;;  %v10148_v3 = vsub.f32 %v16458_v60, %v9402_v7  ;;  %v2474_v54 = vmul.f32 %v10123_v59, %v10123_v59  ;;  %v2461_v16 = vmul.f32 %v10119_v50, %v10119_v50  ;;  %v16464_v12 = vld [vmem:[#allocation267_spill] sm:$0xff] }
 0x2ed   :  { %16443 = vst [vmem:[#allocation250_spill] sm:$0xff] %v10099_v52  ;;  %v16462_v52 = vld [vmem:[#allocation265_spill] sm:$0xff]  ;;  %v10164_v60 = vsub.f32 %v16464_v12, %v9598_v26  ;;  %3016 = vadd.xlane.f32.xlu2 %v3015_v41  ;;  %v16469_v41 = vld [vmem:[#allocation248_spill] sm:$0xff] }
 0x2ee   :  { %16445 = vst [vmem:[#allocation254_spill] sm:$0xff] %v10105_v29  ;;  %v3018_v29 = vadd.f32 %v2472_v58, %v2471_v27  ;;  %v10160_v51 = vsub.f32 %v16462_v52, %v9598_v26  ;;  %v2475_v27 = vmul.f32 %v10135_v9, %v10135_v9 }
 0x2ef   :  { %16447 = vst [vmem:[#allocation251_spill] sm:$0xff] %v10109_v44  ;;  %v16460_v44 = vld [vmem:[#allocation264_spill] sm:$0xff]  ;;  %v10181_v12 = vpop.xlane.xlu1 %1507 }
 0x2f0   :  { %16449 = vst [vmem:[#allocation255_spill] sm:$0xff] %v10113_v0  ;;  %v10154_v48 = vsub.f32 %v16460_v44, %v9598_v26  ;;  %v3004_v0 = vadd.f32 %v3003_v53, %v2460_v25  ;;  %v2462_v44 = vmul.f32 %v10127_v18, %v10127_v18  ;;  %v3019_v36 = vadd.f32 %v3018_v29, %v2473_v21  ;;  %v16467_v25 = vld [vmem:[#allocation246_spill] sm:$0xff] }
 0x2f1   :  { %16451 = vst [vmem:[#allocation260_spill] sm:$0xff] %v10119_v50  ;;  %v10175_v52 = vsub.f32 %v16467_v25, %v9402_v7  ;;  %v2488_v28 = vmul.f32 %v10160_v51, %v10160_v51  ;;  %v2476_v29 = vmul.f32 %v10148_v3, %v10148_v3 }
 0x2f2   :  { %16453 = vst [vmem:[#allocation257_spill] sm:$0xff] %v10123_v59  ;;  %v3005_v58 = vadd.f32 %v3004_v0, %v2461_v16  ;;  %v2487_v53 = vmul.f32 %v10154_v48, %v10154_v48  ;;  %v10185_v59 = vsub.f32 %v16469_v41, %v9402_v7  ;;  %v3020_v21 = vadd.f32 %v3019_v36, %v2474_v54  ;;  %v16471_v0 = vld [vmem:[#allocation271_spill] sm:$0xff]  ;;  %v1517_v41 = vpop.xlane.xlu2 %1516  ;;  %v16477_v54 = vld [vmem:[#allocation273_spill] sm:$0xff] }
 0x2f3   :  { %16455 = vst [vmem:[#allocation261_spill] sm:$0xff] %v10127_v18  ;;  %v10191_v16 = vsub.f32 %v16471_v0, %v9598_v26  ;;  %v2489_v7 = vmul.f32 %v10164_v60, %v10164_v60  ;;  %v10205_v36 = vsub.f32 %v16477_v54, %v9683_v61  ;;  %v16481_v0 = vld [vmem:[#allocation278_spill] sm:$0xff] }
 0x2f4   :  { %16457 = vst [vmem:[#allocation232_spill] sm:$0xff] %v10135_v9  ;;  %v3006_v25 = vadd.f32 %v3005_v58, %v2462_v44  ;;  %v16473_v9 = vld [vmem:[#allocation272_spill] sm:$0xff]  ;;  %v3021_v50 = vadd.f32 %v3020_v21, %v2475_v27  ;;  %v16479_v44 = vld [vmem:[#allocation274_spill] sm:$0xff]  ;;  %v16483_v27 = vld [vmem:[#allocation275_spill] sm:$0xff] }
 0x2f5   :  { %16459 = vst [vmem:[#allocation233_spill] sm:$0xff] %v10148_v3  ;;  %v3036_v3 = vadd.f32 %v2488_v28, %v2487_v53  ;;  %v10209_v58 = vsub.f32 %v16479_v44, %v9683_v61  ;;  %v10222_v53 = vsub.f32 %v16483_v27, %v9683_v61  ;;  %v2490_v21 = vmul.f32 %v10191_v16, %v10191_v16 }
 0x2f6   :  { %16461 = vst [vmem:[#allocation235_spill] sm:$0xff] %v10154_v48  ;;  %v10195_v48 = vsub.f32 %v16473_v9, %v9598_v26  ;;  %v10212_v9 = vmul.f32 %v7774_v40, %v1481_v13  ;;  %3007 = vadd.xlane.f32.xlu1 %v3006_v25  ;;  %v3022_v28 = vadd.f32 %v3021_v50, %v2476_v29  ;;  %v16485_v13 = vld [vmem:[#allocation279_spill] sm:$0xff] }
 0x2f7   :  { %16463 = vst [vmem:[#allocation262_spill] sm:$0xff] %v10160_v51  ;;  %v16475_v51 = vld [vmem:[#allocation277_spill] sm:$0xff]  ;;  %v3037_v54 = vadd.f32 %v3036_v3, %v2489_v7  ;;  %v10228_v44 = vsub.f32 %v16485_v13, %v9683_v61  ;;  %v2478_v25 = vmul.f32 %v10185_v59, %v10185_v59  ;;  %v2479_v27 = vmul.f32 %v10205_v36, %v10205_v36 }
 0x2f8   :  { %16465 = vst [vmem:[#allocation239_spill] sm:$0xff] %v10164_v60  ;;  %v10199_v18 = vsub.f32 %v16475_v51, %v9598_v26  ;;  %v2477_v51 = vmul.f32 %v10175_v52, %v10175_v52  ;;  %v10218_v60 = vsub.f32 %v16481_v0, %v9598_v26  ;;  %v2480_v50 = vmul.f32 %v10209_v58, %v10209_v58 }
 0x2f9   :  { %16466 = vst [vmem:[#allocation268_spill] sm:$0xff] %v10167_v31  ;;  %v2491_v3 = vmul.f32 %v10195_v48, %v10195_v48  ;;  %v3038_v13 = vadd.f32 %v3037_v54, %v2490_v21  ;;  %v2482_v21 = vmul.f32 %v10228_v44, %v10228_v44 }
 0x2fa   :  { %16468 = vst [vmem:[#allocation240_spill] sm:$0xff] %v10175_v52  ;;  %v16487_v52 = vld [vmem:[#allocation280_spill] sm:$0xff]  ;;  %v3023_v29 = vadd.f32 %v3022_v28, %v2477_v51  ;;  %v2492_v7 = vmul.f32 %v10199_v18, %v10199_v18  ;;  %v16491_v28 = vld [vmem:[#allocation285_spill] sm:$0xff] }
 0x2fb   :  { %16470 = vst [vmem:[#allocation245_spill] sm:$0xff] %v10185_v59  ;;  %v10234_v0 = vsub.f32 %v16487_v52, %v9598_v26  ;;  %v2493_v59 = vmul.f32 %v10218_v60, %v10218_v60  ;;  %v16489_v26 = vld [vmem:[#allocation284_spill] sm:$0xff]  ;;  %v3039_v51 = vadd.f32 %v3038_v13, %v2491_v3  ;;  %v16501_v13 = vld [vmem:[#allocation263_spill] sm:$0xff] }
 0x2fc   :  { %16472 = vst [vmem:[#allocation264_spill] sm:$0xff] %v10191_v16  ;;  %v10248_v52 = vsub.f32 %v16489_v26, %v9683_v61  ;;  %v3027_v16 = vadd.f32 %v2480_v50, %v2479_v27  ;;  %v16495_v26 = vld [vmem:[#allocation258_spill] sm:$0xff]  ;;  %v16497_v27 = vld [vmem:[#allocation259_spill] sm:$0xff]  ;;  %v1472_v50 = vpop.xlane.xlu0 %1471 }
 0x2fd   :  { %16474 = vst [vmem:[#allocation265_spill] sm:$0xff] %v10195_v48  ;;  %v10254_v48 = vsub.f32 %v16491_v28, %v9683_v61  ;;  %v10264_v31 = vsub.f32 %v16495_v26, %v9555_v57  ;;  %v2494_v3 = vmul.f32 %v10234_v0, %v10234_v0  ;;  %v10280_v28 = vsub.f32 %v16501_v13, %v9555_v57  ;;  %v16503_v26 = vld [vmem:[#allocation292_spill] sm:$0xff] }
 0x2fe   :  { %16476 = vst [vmem:[#allocation267_spill] sm:$0xff] %v10199_v18 }
 0x2ff   :  { %16478 = vst [vmem:[#allocation246_spill] sm:$0xff] %v10205_v36  ;;  %v2481_v36 = vmul.f32 %v10222_v53, %v10222_v53  ;;  %v2496_v13 = vmul.f32 %v10264_v31, %v10264_v31 }
 0x300   :  { %16480 = vst [vmem:[#allocation248_spill] sm:$0xff] %v10209_v58  ;;  %v3024_v58 = vadd.f32 %v3023_v29, %v2478_v25  ;;  %v10268_v25 = vsub.f32 %v16497_v27, %v9555_v57  ;;  %v10270_v29 = vpop.xlane.xlu1 %1534  ;;  %v10284_v27 = vsub.f32 %v16503_v26, %v9683_v61  ;;  %v10301_v26 = vmul.f32 %v7774_v40, %v1472_v50 }
 0x301   :  { %16482 = vst [vmem:[#allocation271_spill] sm:$0xff] %v10218_v60  ;;  %v3028_v54 = vadd.f32 %v3027_v16, %v2481_v36  ;;  %v16493_v60 = vld [vmem:[#allocation256_spill] sm:$0xff]  ;;  %v3040_v16 = vadd.f32 %v3039_v51, %v2492_v7  ;;  %v16499_v36 = vld [vmem:[#allocation286_spill] sm:$0xff]  ;;  %v10290_v7 = vpop.xlane.xlu2 %1543 }
 0x302   :  { %16484 = vst [vmem:[#allocation272_spill] sm:$0xff] %v10222_v53  ;;  %v10260_v18 = vsub.f32 %v16493_v60, %v9555_v57  ;;  %3025 = vadd.xlane.f32.xlu0 %v3024_v58  ;;  %v10276_v60 = vsub.f32 %v16499_v36, %v9683_v61  ;;  %v16505_v36 = vld [vmem:[#allocation266_spill] sm:$0xff]  ;;  %v2497_v61 = vmul.f32 %v10268_v25, %v10268_v25 }
 0x303   :  { %16486 = vst [vmem:[#allocation277_spill] sm:$0xff] %v10228_v44  ;;  %v2483_v44 = vmul.f32 %v10248_v52, %v10248_v52  ;;  %v3029_v58 = vadd.f32 %v3028_v54, %v2482_v21  ;;  %v3041_v51 = vadd.f32 %v3040_v16, %v2493_v59  ;;  %v2484_v21 = vmul.f32 %v10254_v48, %v10254_v48 }
 0x304   :  { %16488 = vst [vmem:[#allocation273_spill] sm:$0xff] %v10234_v0  ;;  %v2495_v53 = vmul.f32 %v10260_v18, %v10260_v18  ;;  %v10294_v0 = vsub.f32 %v16505_v36, %v9555_v57  ;;  %v2498_v36 = vmul.f32 %v10280_v28, %v10280_v28  ;;  %v2485_v50 = vmul.f32 %v10276_v60, %v10276_v60 }
 0x305   :  { %16490 = vst [vmem:[#allocation274_spill] sm:$0xff] %v10248_v52  ;;  %v3030_v54 = vadd.f32 %v3029_v58, %v2483_v44  ;;  %v3042_v16 = vadd.f32 %v3041_v51, %v2494_v3  ;;  %v10326_v3 = vmul.f32 %v7774_v40, %v1517_v41 }
 0x306   :  { %16492 = vst [vmem:[#allocation278_spill] sm:$0xff] %v10254_v48  ;;  %v3045_v52 = vadd.f32 %v2496_v13, %v2495_v53  ;;  %v16511_v48 = vld [vmem:[#allocation290_spill] sm:$0xff]  ;;  %v2499_v53 = vmul.f32 %v10294_v0, %v10294_v0 }
 0x307   :  { %16494 = vst [vmem:[#allocation275_spill] sm:$0xff] %v10260_v18  ;;  %v16507_v18 = vld [vmem:[#allocation269_spill] sm:$0xff]  ;;  %v10319_v44 = vsub.f32 %v16511_v48, %v9751_v4  ;;  %3043 = vadd.xlane.f32.xlu2 %v3042_v16  ;;  %v16518_v16 = vld [vmem:[#allocation276_spill] sm:$0xff] }
 0x308   :  { %16496 = vst [vmem:[#allocation279_spill] sm:$0xff] %v10264_v31  ;;  %v10307_v59 = vsub.f32 %v16507_v18, %v9555_v57  ;;  %v16509_v31 = vld [vmem:[#allocation288_spill] sm:$0xff]  ;;  %v16513_v18 = vld [vmem:[#allocation291_spill] sm:$0xff]  ;;  %v3046_v51 = vadd.f32 %v3045_v52, %v2497_v61 }
 0x309   :  { %16498 = vst [vmem:[#allocation280_spill] sm:$0xff] %v10268_v25  ;;  %v10313_v20 = vsub.f32 %v16509_v31, %v9751_v4  ;;  %v3031_v25 = vadd.f32 %v3030_v54, %v2484_v21  ;;  %v10323_v58 = vsub.f32 %v16513_v18, %v9751_v4  ;;  %v2486_v31 = vmul.f32 %v10284_v27, %v10284_v27  ;;  %v16516_v21 = vld [vmem:[#allocation270_spill] sm:$0xff]  ;;  %v16520_v52 = vld [vmem:[#allocation295_spill] sm:$0xff] }
 0x30a   :  { %16500 = vst [vmem:[#allocation284_spill] sm:$0xff] %v10276_v60  ;;  %v10334_v48 = vsub.f32 %v16516_v21, %v9555_v57  ;;  %v2512_v41 = vmul.f32 %v10319_v44, %v10319_v44  ;;  %v10342_v18 = vsub.f32 %v16518_v16, %v9555_v57  ;;  %v10360_v16 = vpop.xlane.xlu1 %1561 }
 0x30b   :  { %16502 = vst [vmem:[#allocation285_spill] sm:$0xff] %v10280_v28  ;;  %v3032_v13 = vadd.f32 %v3031_v25, %v2485_v50  ;;  %v2511_v54 = vmul.f32 %v10313_v20, %v10313_v20  ;;  %v2500_v28 = vmul.f32 %v10307_v59, %v10307_v59  ;;  %v10348_v25 = vsub.f32 %v16520_v52, %v9751_v4  ;;  %v16522_v50 = vld [vmem:[#allocation298_spill] sm:$0xff] }
 0x30c   :  { %16504 = vst [vmem:[#allocation256_spill] sm:$0xff] %v10284_v27  ;;  %v10352_v21 = vsub.f32 %v16522_v50, %v9751_v4  ;;  %v2513_v57 = vmul.f32 %v10323_v58, %v10323_v58  ;;  %v10372_v50 = vmul.f32 %v7774_v40, %v10181_v12 }
 0x30d   :  { %16506 = vst [vmem:[#allocation258_spill] sm:$0xff] %v10294_v0  ;;  %v3047_v0 = vadd.f32 %v3046_v51, %v2498_v36  ;;  %v3033_v61 = vadd.f32 %v3032_v13, %v2486_v31  ;;  %v3063_v36 = vadd.f32 %v2512_v41, %v2511_v54  ;;  %v16526_v51 = vld [vmem:[#allocation296_spill] sm:$0xff]  ;;  %v16528_v31 = vld [vmem:[#allocation297_spill] sm:$0xff]  ;;  %v10384_v41 = vpop.xlane.xlu2 %1570 }
 0x30e   :  { %16508 = vst [vmem:[#allocation259_spill] sm:$0xff] %v10307_v59  ;;  %v10364_v52 = vsub.f32 %v16526_v51, %v9836_v56  ;;  %v10368_v13 = vsub.f32 %v16528_v31, %v9836_v56  ;;  %v2514_v31 = vmul.f32 %v10348_v25, %v10348_v25 }
 0x30f   :  { %16510 = vst [vmem:[#allocation286_spill] sm:$0xff] %v10313_v20  ;;  %v16524_v20 = vld [vmem:[#allocation301_spill] sm:$0xff]  ;;  %v3048_v59 = vadd.f32 %v3047_v0, %v2499_v53  ;;  %3034 = vadd.xlane.f32.xlu1 %v3033_v61  ;;  %v16533_v53 = vld [vmem:[#allocation299_spill] sm:$0xff]  ;;  %v3064_v12 = vadd.f32 %v3063_v36, %v2513_v57  ;;  %v2515_v57 = vmul.f32 %v10352_v21, %v10352_v21 }
 0x310   :  { %16512 = vst [vmem:[#allocation263_spill] sm:$0xff] %v10319_v44  ;;  %v10356_v44 = vsub.f32 %v16524_v20, %v9751_v4  ;;  %v2501_v20 = vmul.f32 %v10334_v48, %v10334_v48  ;;  %v10382_v54 = vsub.f32 %v16533_v53, %v9836_v56  ;;  %v16535_v61 = vld [vmem:[#allocation303_spill] sm:$0xff]  ;;  %v2503_v53 = vmul.f32 %v10364_v52, %v10364_v52 }
 0x311   :  { %16514 = vst [vmem:[#allocation292_spill] sm:$0xff] %v10323_v58  ;;  %v16531_v58 = vld [vmem:[#allocation302_spill] sm:$0xff]  ;;  %v3049_v51 = vadd.f32 %v3048_v59, %v2500_v28  ;;  %v10390_v27 = vsub.f32 %v16535_v61, %v9836_v56  ;;  %v2504_v28 = vmul.f32 %v10368_v13, %v10368_v13  ;;  %v3065_v61 = vadd.f32 %v3064_v12, %v2514_v31 }
 0x312   :  { %16515 = vst [vmem:[#allocation266_spill] sm:$0xff] %v10326_v3  ;;  %v10378_v0 = vsub.f32 %v16531_v58, %v9751_v4  ;;  %v16537_v58 = vld [vmem:[#allocation308_spill] sm:$0xff]  ;;  %v2516_v36 = vmul.f32 %v10356_v44, %v10356_v44 }
 0x313   :  { %16517 = vst [vmem:[#allocation269_spill] sm:$0xff] %v10334_v48  ;;  %v2502_v48 = vmul.f32 %v10342_v18, %v10342_v18  ;;  %v10396_v60 = vsub.f32 %v16537_v58, %v9751_v4  ;;  %v3050_v59 = vadd.f32 %v3049_v51, %v2501_v20  ;;  %v16539_v4 = vld [vmem:[#allocation304_spill] sm:$0xff]  ;;  %v3066_v20 = vadd.f32 %v3065_v61, %v2515_v57  ;;  %v16541_v51 = vld [vmem:[#allocation309_spill] sm:$0xff] }
 0x314   :  { %16519 = vst [vmem:[#allocation288_spill] sm:$0xff] %v10342_v18  ;;  %v2517_v18 = vmul.f32 %v10378_v0, %v10378_v0  ;;  %v10410_v58 = vsub.f32 %v16539_v4, %v9836_v56  ;;  %v2506_v31 = vmul.f32 %v10390_v27, %v10390_v27  ;;  %v16545_v4 = vld [vmem:[#allocation282_spill] sm:$0xff] }
 0x315   :  { %16521 = vst [vmem:[#allocation290_spill] sm:$0xff] %v10348_v25  ;;  %v3054_v25 = vadd.f32 %v2504_v28, %v2503_v53  ;;  %v10426_v3 = vsub.f32 %v16545_v4, %v9708_v19  ;;  %v16547_v53 = vld [vmem:[#allocation283_spill] sm:$0xff]  ;;  %v1499_v28 = vpop.xlane.xlu0 %1498  ;;  %v3067_v57 = vadd.f32 %v3066_v20, %v2516_v36  ;;  %v10450_v20 = vpop.xlane.xlu1 %1588 }
 0x316   :  { %16523 = vst [vmem:[#allocation291_spill] sm:$0xff] %v10352_v21  ;;  %v10416_v21 = vsub.f32 %v16541_v51, %v9836_v56  ;;  %v16553_v51 = vld [vmem:[#allocation316_spill] sm:$0xff] }
 0x317   :  { %16525 = vst [vmem:[#allocation270_spill] sm:$0xff] %v10356_v44  ;;  %v10444_v4 = vsub.f32 %v16553_v51, %v9836_v56  ;;  %v3068_v36 = vadd.f32 %v3067_v57, %v2517_v18  ;;  %v10461_v51 = vmul.f32 %v7774_v40, %v1499_v28  ;;  %v16559_v18 = vld [vmem:[#allocation293_spill] sm:$0xff] }
 0x318   :  { %16527 = vst [vmem:[#allocation276_spill] sm:$0xff] %v10364_v52  ;;  %v2505_v52 = vmul.f32 %v10382_v54, %v10382_v54  ;;  %v10467_v57 = vsub.f32 %v16559_v18, %v9708_v19 }
 0x319   :  { %16529 = vst [vmem:[#allocation295_spill] sm:$0xff] %v10368_v13  ;;  %v3051_v13 = vadd.f32 %v3050_v59, %v2502_v48  ;;  %v10430_v48 = vsub.f32 %v16547_v53, %v9708_v19  ;;  %v2518_v59 = vmul.f32 %v10396_v60, %v10396_v60  ;;  %v2507_v53 = vmul.f32 %v10410_v58, %v10410_v58 }
 0x31a   :  { %16530 = vst [vmem:[#allocation298_spill] sm:$0xff] %v10372_v50  ;;  %v3055_v12 = vadd.f32 %v3054_v25, %v2505_v52  ;;  %v16549_v25 = vld [vmem:[#allocation311_spill] sm:$0xff]  ;;  %v16596_v50 = vld [vmem:[#allocation306_spill] sm:$0xff] }
 0x31b   :  { %16532 = vst [vmem:[#allocation301_spill] sm:$0xff] %v10378_v0  ;;  %v16543_v0 = vld [vmem:[#allocation281_spill] sm:$0xff]  ;;  %3052 = vadd.xlane.f32.xlu0 %v3051_v13  ;;  %v10436_v52 = vsub.f32 %v16549_v25, %v9836_v56  ;;  %v2521_v56 = vmul.f32 %v10430_v48, %v10430_v48 }
 0x31c   :  { %16534 = vst [vmem:[#allocation296_spill] sm:$0xff] %v10382_v54  ;;  %v10422_v44 = vsub.f32 %v16543_v0, %v9708_v19  ;;  %v16551_v0 = vld [vmem:[#allocation287_spill] sm:$0xff]  ;;  %v3056_v13 = vadd.f32 %v3055_v12, %v2506_v31  ;;  %v16556_v25 = vld [vmem:[#allocation289_spill] sm:$0xff]  ;;  %v2508_v31 = vmul.f32 %v10416_v21, %v10416_v21 }
 0x31d   :  { %16536 = vst [vmem:[#allocation297_spill] sm:$0xff] %v10390_v27  ;;  %v10440_v61 = vsub.f32 %v16551_v0, %v9708_v19  ;;  %v10454_v54 = vsub.f32 %v16556_v25, %v9708_v19  ;;  %v2520_v0 = vmul.f32 %v10426_v3, %v10426_v3  ;;  %v10469_v25 = vpop.xlane.xlu2 %1597  ;;  %v2509_v28 = vmul.f32 %v10436_v52, %v10436_v52 }
 0x31e   :  { %16538 = vst [vmem:[#allocation302_spill] sm:$0xff] %v10396_v60  ;;  %v2519_v27 = vmul.f32 %v10422_v44, %v10422_v44  ;;  %v3057_v12 = vadd.f32 %v3056_v13, %v2507_v53  ;;  %v16564_v53 = vld [vmem:[#allocation313_spill] sm:$0xff] }
 0x31f   :  { %16540 = vst [vmem:[#allocation299_spill] sm:$0xff] %v10410_v58  ;;  %v10481_v13 = vsub.f32 %v16564_v53, %v9904_v8  ;;  %v2523_v18 = vmul.f32 %v10454_v54, %v10454_v54  ;;  %v16570_v53 = vld [vmem:[#allocation300_spill] sm:$0xff] }
 0x320   :  { %16542 = vst [vmem:[#allocation303_spill] sm:$0xff] %v10416_v21  ;;  %v3072_v58 = vadd.f32 %v2520_v0, %v2519_v27  ;;  %v3058_v21 = vadd.f32 %v3057_v12, %v2508_v31  ;;  %v2510_v27 = vmul.f32 %v10444_v4, %v10444_v4  ;;  %v16568_v0 = vld [vmem:[#allocation294_spill] sm:$0xff] }
 0x321   :  { %16544 = vst [vmem:[#allocation308_spill] sm:$0xff] %v10422_v44  ;;  %v3069_v44 = vadd.f32 %v3068_v36, %v2518_v59  ;;  %v16566_v59 = vld [vmem:[#allocation314_spill] sm:$0xff] }
 0x322   :  { %16546 = vst [vmem:[#allocation304_spill] sm:$0xff] %v10426_v3  ;;  %v2522_v3 = vmul.f32 %v10440_v61, %v10440_v61  ;;  %v10485_v36 = vsub.f32 %v16566_v59, %v9904_v8  ;;  %v3073_v31 = vadd.f32 %v3072_v58, %v2521_v56  ;;  %v3059_v12 = vadd.f32 %v3058_v21, %v2509_v28  ;;  %v16574_v21 = vld [vmem:[#allocation320_spill] sm:$0xff]  ;;  %v16576_v56 = vld [vmem:[#allocation325_spill] sm:$0xff] }
 0x323   :  { %16548 = vst [vmem:[#allocation309_spill] sm:$0xff] %v10430_v48  ;;  %v16562_v48 = vld [vmem:[#allocation312_spill] sm:$0xff]  ;;  %3070 = vadd.xlane.f32.xlu2 %v3069_v44  ;;  %v2536_v44 = vmul.f32 %v10481_v13, %v10481_v13  ;;  %v10511_v58 = vsub.f32 %v16574_v21, %v9904_v8  ;;  %v10515_v28 = vsub.f32 %v16576_v56, %v9904_v8 }
 0x324   :  { %16550 = vst [vmem:[#allocation281_spill] sm:$0xff] %v10436_v52  ;;  %v10475_v60 = vsub.f32 %v16562_v48, %v9904_v8  ;;  %v10491_v48 = vsub.f32 %v16568_v0, %v9708_v19  ;;  %v3074_v0 = vadd.f32 %v3073_v31, %v2522_v3  ;;  %v16572_v52 = vld [vmem:[#allocation318_spill] sm:$0xff]  ;;  %v2537_v3 = vmul.f32 %v10485_v36, %v10485_v36  ;;  %v1526_v31 = vpop.xlane.xlu0 %1525 }
 0x325   :  { %16552 = vst [vmem:[#allocation282_spill] sm:$0xff] %v10440_v61  ;;  %v10497_v61 = vsub.f32 %v16570_v53, %v9708_v19  ;;  %v3060_v19 = vadd.f32 %v3059_v12, %v2510_v27  ;;  %v16578_v53 = vld [vmem:[#allocation327_spill] sm:$0xff]  ;;  %v16582_v27 = vld [vmem:[#allocation321_spill] sm:$0xff] }
 0x326   :  { %16554 = vst [vmem:[#allocation283_spill] sm:$0xff] %v10444_v4  ;;  %v2535_v59 = vmul.f32 %v10475_v60, %v10475_v60  ;;  %v2524_v4 = vmul.f32 %v10467_v57, %v10467_v57  ;;  %v10529_v12 = vsub.f32 %v16582_v27, %v9989_v30  ;;  %v2525_v21 = vmul.f32 %v10491_v48, %v10491_v48 }
 0x327   :  { %16555 = vst [vmem:[#allocation311_spill] sm:$0xff] %v10450_v20  ;;  %v10507_v20 = vsub.f32 %v16572_v52, %v9904_v8  ;;  %3061 = vadd.xlane.f32.xlu1 %v3060_v19  ;;  %v2526_v56 = vmul.f32 %v10497_v61, %v10497_v61  ;;  %v16588_v19 = vld [vmem:[#allocation326_spill] sm:$0xff] }
 0x328   :  { %16557 = vst [vmem:[#allocation287_spill] sm:$0xff] %v10454_v54  ;;  %v10519_v54 = vsub.f32 %v16578_v53, %v9904_v8  ;;  %v3090_v52 = vadd.f32 %v2536_v44, %v2535_v59  ;;  %v16584_v53 = vld [vmem:[#allocation331_spill] sm:$0xff]  ;;  %v10547_v27 = vsub.f32 %v16588_v19, %v9989_v30 }
 0x329   :  { %16558 = vst [vmem:[#allocation316_spill] sm:$0xff] %v10461_v51  ;;  %v2538_v44 = vmul.f32 %v10507_v20, %v10507_v20 }
 0x32a   :  { %16560 = vst [vmem:[#allocation289_spill] sm:$0xff] %v10467_v57  ;;  %v3075_v57 = vadd.f32 %v3074_v0, %v2523_v18  ;;  %v16586_v18 = vld [vmem:[#allocation322_spill] sm:$0xff]  ;;  %v3091_v0 = vadd.f32 %v3090_v52, %v2537_v3  ;;  %v2541_v3 = vmul.f32 %v10519_v54, %v10519_v54 }
 0x32b   :  { %16561 = vst [vmem:[#allocation293_spill] sm:$0xff] %v10469_v25  ;;  %v10541_v59 = vsub.f32 %v16586_v18, %v9989_v30  ;;  %v16590_v18 = vld [vmem:[#allocation329_spill] sm:$0xff] }
 0x32c   :  { %16563 = vst [vmem:[#allocation312_spill] sm:$0xff] %v10475_v60  ;;  %v3092_v52 = vadd.f32 %v3091_v0, %v2538_v44  ;;  %v10561_v19 = vsub.f32 %v16590_v18, %v9989_v30  ;;  %v2530_v44 = vmul.f32 %v10547_v27, %v10547_v27  ;;  %v16594_v25 = vld [vmem:[#allocation305_spill] sm:$0xff] }
 0x32d   :  { %16565 = vst [vmem:[#allocation313_spill] sm:$0xff] %v10481_v13  ;;  %v16580_v13 = vld [vmem:[#allocation319_spill] sm:$0xff] }
 0x32e   :  { %16567 = vst [vmem:[#allocation314_spill] sm:$0xff] %v10485_v36  ;;  %v10525_v60 = vsub.f32 %v16580_v13, %v9989_v30  ;;  %v10537_v36 = vsub.f32 %v16584_v53, %v9904_v8  ;;  %v3076_v13 = vadd.f32 %v3075_v57, %v2524_v4  ;;  %v2540_v8 = vmul.f32 %v10515_v28, %v10515_v28 }
 0x32f   :  { %16569 = vst [vmem:[#allocation294_spill] sm:$0xff] %v10491_v48  ;;  %v2711_v48 = vpop.xlane.xlu1 %2710  ;;  %v2528_v4 = vmul.f32 %v10529_v12, %v10529_v12 }
 0x330   :  { %16571 = vst [vmem:[#allocation300_spill] sm:$0xff] %v10497_v61  ;;  %v2539_v61 = vmul.f32 %v10511_v58, %v10511_v58  ;;  %v2527_v53 = vmul.f32 %v10525_v60, %v10525_v60  ;;  %v3077_v57 = vadd.f32 %v3076_v13, %v2525_v21 }
 0x331   :  { %16573 = vst [vmem:[#allocation318_spill] sm:$0xff] %v10507_v20  ;;  %v2720_v20 = vpop.xlane.xlu2 %2719 }
 0x332   :  { %16575 = vst [vmem:[#allocation320_spill] sm:$0xff] %v10511_v58  ;;  %v16592_v58 = vld [vmem:[#allocation333_spill] sm:$0xff]  ;;  %v3078_v21 = vadd.f32 %v3077_v57, %v2526_v56  ;;  %v3093_v13 = vadd.f32 %v3092_v52, %v2539_v61  ;;  %v3280_v0 = vmul.f32 %v2720_v20, %v7774_v40  ;;  %v2542_v61 = vmul.f32 %v10537_v36, %v10537_v36  ;;  %v16598_v20 = vld [vmem:[#allocation307_spill] sm:$0xff]  ;;  %v16604_v52 = vld [vmem:[#allocation310_spill] sm:$0xff] }
 0x333   :  { %16577 = vst [vmem:[#allocation325_spill] sm:$0xff] %v10515_v28  ;;  %v10565_v51 = vsub.f32 %v16592_v58, %v9989_v30  ;;  %v3081_v28 = vadd.f32 %v2528_v4, %v2527_v53  ;;  %v10577_v58 = vsub.f32 %v16594_v25, %v9861_v55  ;;  %v2531_v25 = vmul.f32 %v10561_v19, %v10561_v19  ;;  %v10598_v53 = vpop.xlane.xlu0 %1552 }
 0x334   :  { %16579 = vst [vmem:[#allocation327_spill] sm:$0xff] %v10519_v54  ;;  %3079 = vadd.xlane.f32.xlu0 %v3078_v21  ;;  %v10585_v56 = vadd.f32 1e-05, %v3280_v0  ;;  %v10607_v21 = vsub.f32 %v16604_v52, %v9861_v55 }
 0x335   :  { %16581 = vst [vmem:[#allocation319_spill] sm:$0xff] %v10525_v60  ;;  %v2529_v60 = vmul.f32 %v10541_v59, %v10541_v59 }
 0x336   :  { %16583 = vst [vmem:[#allocation321_spill] sm:$0xff] %v10529_v12  ;;  %v3279_v12 = vmul.f32 %v2711_v48, %v7774_v40  ;;  %v3094_v48 = vadd.f32 %v3093_v13, %v2540_v8  ;;  %v16602_v8 = vld [vmem:[#allocation340_spill] sm:$0xff]  ;;  %v2532_v13 = vmul.f32 %v10565_v51, %v10565_v51  ;;  %v2546_v52 = vmul.f32 %v10607_v21, %v10607_v21 }
 0x337   :  { %16585 = vst [vmem:[#allocation331_spill] sm:$0xff] %v10537_v36  ;;  %v3082_v18 = vadd.f32 %v3081_v28, %v2529_v60  ;;  %v10589_v60 = vsub.f32 %v16598_v20, %v9861_v55  ;;  %v16600_v28 = vld [vmem:[#allocation336_spill] sm:$0xff]  ;;  %v10602_v57 = vsub.f32 %v16602_v8, %v9989_v30  ;;  %vm3423_vm2 = vweird.f32 %v10585_v56 }
 0x338   :  { %16587 = vst [vmem:[#allocation322_spill] sm:$0xff] %v10541_v59  ;;  %v10573_v54 = vadd.f32 1e-05, %v3279_v12  ;;  %v10581_v59 = vsub.f32 %v16596_v50, %v9861_v55  ;;  %v10593_v12 = vsub.f32 %v16600_v28, %v9989_v30  ;;  %v3095_v4 = vadd.f32 %v3094_v48, %v2541_v3  ;;  %v16606_v48 = vld [vmem:[#allocation315_spill] sm:$0xff] }
 0x339   :  { %16589 = vst [vmem:[#allocation326_spill] sm:$0xff] %v10547_v27  ;;  %v3083_v50 = vadd.f32 %v3082_v18, %v2530_v44  ;;  %v2543_v44 = vmul.f32 %v10577_v58, %v10577_v58  ;;  %v10617_v30 = vmul.f32 %v7774_v40, %v10290_v7  ;;  %v10621_v20 = vsub.f32 %v16606_v48, %v9861_v55 }
 0x33a   :  { %16591 = vst [vmem:[#allocation329_spill] sm:$0xff] %v10561_v19  ;;  %5078 = vrsqrt.f32 %v10573_v54  ;;  %v2544_v3 = vmul.f32 %v10581_v59, %v10581_v59  ;;  %v3096_v18 = vadd.f32 %v3095_v4, %v2542_v61  ;;  %v2545_v28 = vmul.f32 %v10589_v60, %v10589_v60  ;;  %v16608_v61 = vld [vmem:[#allocation317_spill] sm:$0xff] }
 0x33b   :  { %16593 = vst [vmem:[#allocation333_spill] sm:$0xff] %v10565_v51  ;;  %5080 = vrsqrt.f32 %v10585_v56  ;;  %v3084_v0 = vadd.f32 %v3083_v50, %v2531_v25  ;;  %v10627_v25 = vmul.f32 %v7774_v40, %v10270_v29  ;;  %v10630_v50 = vmul.f32 %v7774_v40, %v1526_v31 }
 0x33c   :  { %16595 = vst [vmem:[#allocation305_spill] sm:$0xff] %v10577_v58  ;;  %v2533_v8 = vmul.f32 %v10593_v12, %v10593_v12  ;;  %3097 = vadd.xlane.f32.xlu2 %v3096_v18  ;;  %v10636_v4 = vsub.f32 %v16608_v61, %v9861_v55  ;;  %v3099_v48 = vadd.f32 %v2544_v3, %v2543_v44  ;;  %v16614_v18 = vld [vmem:[#allocation337_spill] sm:$0xff]  ;;  %v16616_v3 = vld [vmem:[#allocation324_spill] sm:$0xff]  ;;  %vm3413_vm1 = vweird.f32 %v10573_v54 }
 0x33d   :  { %16597 = vst [vmem:[#allocation306_spill] sm:$0xff] %v10581_v59  ;;  %v3085_v7 = vadd.f32 %v3084_v0, %v2532_v13  ;;  %v2534_v31 = vmul.f32 %v10602_v57, %v10602_v57  ;;  %v16612_v13 = vld [vmem:[#allocation323_spill] sm:$0xff]  ;;  %v10652_v61 = vsub.f32 %v16614_v18, %v10057_v11 }
 0x33e   :  { %16599 = vst [vmem:[#allocation307_spill] sm:$0xff] %v10589_v60  ;;  %v16610_v60 = vld [vmem:[#allocation335_spill] sm:$0xff]  ;;  %v10648_v0 = vsub.f32 %v16612_v13, %v9861_v55  ;;  %v2548_v19 = vmul.f32 %v10636_v4, %v10636_v4 }
 0x33f   :  { %16601 = vst [vmem:[#allocation336_spill] sm:$0xff] %v10593_v12  ;;  %v10642_v29 = vsub.f32 %v16610_v60, %v10057_v11  ;;  %v3086_v58 = vadd.f32 %v3085_v7, %v2533_v8  ;;  %v10657_v60 = vsub.f32 %v16616_v3, %v9861_v55  ;;  %v16618_v13 = vld [vmem:[#allocation339_spill] sm:$0xff] }
 0x340   :  { %16603 = vst [vmem:[#allocation340_spill] sm:$0xff] %v10602_v57  ;;  %v5079_v59 = vpop.eup %5078  ;;  %v3100_v57 = vadd.f32 %v3099_v48, %v2545_v28  ;;  %v10665_v18 = vsub.f32 %v16618_v13, %v10057_v11  ;;  %v2560_v48 = vmul.f32 %v10652_v61, %v10652_v61  ;;  %v16621_v13 = vld [vmem:[#allocation346_spill] sm:$0xff] }
 0x341   :  { %16605 = vst [vmem:[#allocation310_spill] sm:$0xff] %v10607_v21  ;;  %v5081_v12 = vpop.eup %5080  ;;  %v3408_v44 = vmul.f32 %v5079_v59, %v10573_v54  ;;  %v2547_v21 = vmul.f32 %v10621_v20, %v10621_v20  ;;  %v3087_v8 = vadd.f32 %v3086_v58, %v2534_v31  ;;  %v2559_v55 = vmul.f32 %v10642_v29, %v10642_v29  ;;  %v16620_v58 = vld [vmem:[#allocation342_spill] sm:$0xff]  ;;  %v10678_v31 = vpop.xlane.xlu0 %1579 }
 0x342   :  { %16607 = vst [vmem:[#allocation315_spill] sm:$0xff] %v10621_v20  ;;  %v3418_v7 = vmul.f32 %v5081_v12, %v10585_v56  ;;  %v3101_v27 = vadd.f32 %v3100_v57, %v2546_v52  ;;  %v10674_v28 = vsub.f32 %v16620_v58, %v10057_v11  ;;  %v2549_v57 = vmul.f32 %v10648_v0, %v10648_v0 }
 0x343   :  { %16609 = vst [vmem:[#allocation317_spill] sm:$0xff] %v10636_v4  ;;  %v3409_v51 = vmul.f32 %v5079_v59, %v3408_v44  ;;  %3088 = vadd.xlane.f32.xlu1 %v3087_v8  ;;  %v2550_v52 = vmul.f32 %v10657_v60, %v10657_v60  ;;  %v10686_v4 = vsub.f32 %v16621_v13, %v10057_v11  ;;  %vm3414_vm3 = vweird.f32 %v5079_v59 }
 0x344   :  { %16611 = vst [vmem:[#allocation335_spill] sm:$0xff] %v10642_v29  ;;  %v3419_v3 = vmul.f32 %v5081_v12, %v3418_v7  ;;  %v3102_v8 = vadd.f32 %v3101_v27, %v2547_v21  ;;  %v2561_v58 = vmul.f32 %v10665_v18, %v10665_v18  ;;  %v3117_v20 = vadd.f32 %v2560_v48, %v2559_v55  ;;  %v16624_v55 = vld [vmem:[#allocation343_spill] sm:$0xff]  ;;  %vm3415_vm5 = vmor %vm3413_vm1, %vm3414_vm3 }
 0x345   :  { %16613 = vst [vmem:[#allocation323_spill] sm:$0xff] %v10648_v0  ;;  %v3410_v44 = vmul.f32 0.5, %v3409_v51  ;;  %v16622_v51 = vld [vmem:[#allocation349_spill] sm:$0xff]  ;;  %v2562_v21 = vmul.f32 %v10674_v28, %v10674_v28  ;;  %vm3424_vm4 = vweird.f32 %v5081_v12  ;;  %v10702_v48 = vsub.f32 %v16624_v55, %v10142_v5 }
 0x346   :  { %16615 = vst [vmem:[#allocation337_spill] sm:$0xff] %v10652_v61  ;;  %v3420_v7 = vmul.f32 0.5, %v3419_v3  ;;  %v3103_v29 = vadd.f32 %v3102_v8, %v2548_v19  ;;  %v10692_v36 = vsub.f32 %v16622_v51, %v10057_v11  ;;  %v3118_v3 = vadd.f32 %v3117_v20, %v2561_v58  ;;  %vm3425_vm6 = vmor %vm3423_vm2, %vm3424_vm4 }
 0x347   :  { %16617 = vst [vmem:[#allocation324_spill] sm:$0xff] %v10657_v60  ;;  %v3411_v61 = vsub.f32 1.5, %v3410_v44  ;;  %v16623_v60 = vld [vmem:[#allocation351_spill] sm:$0xff] }
 0x348   :  { %16619 = vst [vmem:[#allocation339_spill] sm:$0xff] %v10665_v18  ;;  %v3421_v0 = vsub.f32 1.5, %v3420_v7  ;;  %v10696_v27 = vsub.f32 %v16623_v60, %v10057_v11  ;;  %v3104_v18 = vadd.f32 %v3103_v29, %v2549_v57  ;;  %v16625_v44 = vld [vmem:[#allocation355_spill] sm:$0xff]  ;;  %v3119_v60 = vadd.f32 %v3118_v3, %v2562_v21  ;;  %v16626_v7 = vld [vmem:[#allocation344_spill] sm:$0xff] }
 0x349   :  { %v3412_v13 = vmul.f32 %v5079_v59, %v3411_v61  ;;  %v10708_v8 = vsub.f32 %v16625_v44, %v10057_v11  ;;  %v10712_v51 = vsub.f32 %v16626_v7, %v10142_v5  ;;  %v2563_v29 = vmul.f32 %v10686_v4, %v10686_v4  ;;  %v10747_v55 = vpop.xlane.xlu0 %1606  ;;  %v16629_v44 = vld [vmem:[#allocation352_spill] sm:$0xff] }
 0x34a   :  { %v3422_v19 = vmul.f32 %v5081_v12, %v3421_v0  ;;  %v3105_v61 = vadd.f32 %v3104_v18, %v2550_v52  ;;  %v2564_v57 = vmul.f32 %v10692_v36, %v10692_v36  ;;  %v2565_v58 = vmul.f32 %v10696_v27, %v10696_v27 }
 0x34b   :  { %v3416_v20 = vsel %vm3415_vm5, %v5079_v59, %v3412_v13  ;;  %v16627_v59 = vld [vmem:[#allocation347_spill] sm:$0xff]  ;;  %v3120_v56 = vadd.f32 %v3119_v60, %v2563_v29  ;;  %v2552_v3 = vmul.f32 %v10712_v51, %v10712_v51  ;;  %v10753_v7 = vsub.f32 %v16629_v44, %v10142_v5  ;;  %v2738_v60 = vpop.xlane.xlu1 %2737  ;;  %v16631_v29 = vld [vmem:[#allocation358_spill] sm:$0xff] }
 0x34c   :  { %v4047_v54 = vmul.f32 %v3416_v20, %v8305_v14  ;;  %v4048_v0 = vmul.f32 %v3416_v20, %v8309_v1  ;;  %v4049_v11 = vmul.f32 %v3416_v20, %v8317_v10  ;;  %v4050_v21 = vmul.f32 %v3416_v20, %v8345_v2  ;;  %3106 = vadd.xlane.f32.xlu0 %v3105_v61  ;;  %v16628_v14 = vld [vmem:[#allocation350_spill] sm:$0xff] }
 0x34d   :  { %v10729_v18 = vsub.f32 %v16627_v59, %v10142_v5  ;;  %v10733_v52 = vsub.f32 %v16628_v14, %v10142_v5  ;;  %v2551_v1 = vmul.f32 %v10702_v48, %v10702_v48  ;;  %v4051_v10 = vmul.f32 %v3416_v20, %v8355_v33 }
 0x34e   :  { %4559 = vst [vmem:[%s14510_s1] sm:$0xff] %v4047_v54  ;;  %v3426_v2 = vsel %vm3425_vm6, %v5081_v12, %v3422_v19  ;;  %v4052_v13 = vmul.f32 %v3416_v20, %v8374_v6  ;;  %v2566_v33 = vmul.f32 %v10708_v8, %v10708_v8  ;;  %v16630_v12 = vld [vmem:[#allocation356_spill] sm:$0xff]  ;;  %v4053_v6 = vmul.f32 %v3416_v20, %v8398_v45 }
 0x34f   :  { %4560 = vst [vmem:[%s14510_s1 + $0x8] sm:$0xff] %v4048_v0  ;;  %v10757_v19 = vsub.f32 %v16630_v12, %v10142_v5  ;;  %v4054_v61 = vmul.f32 %v3416_v20, %v8402_v22  ;;  %v10766_v54 = vsub.f32 %v16631_v29, %v10142_v5  ;;  %v16632_v0 = vld [vmem:[#allocation363_spill] sm:$0xff]  ;;  %v4055_v45 = vmul.f32 %v3426_v2, %v8362_v37 }
 0x350   :  { %4561 = vst [vmem:[%s14510_s1 + $0x10] sm:$0xff] %v4049_v11  ;;  %v10770_v59 = vsub.f32 %v16632_v0, %v10142_v5  ;;  %v3121_v14 = vadd.f32 %v3120_v56, %v2564_v57  ;;  %v2553_v22 = vmul.f32 %v10729_v18, %v10729_v18  ;;  %v2554_v20 = vmul.f32 %v10733_v52, %v10733_v52  ;;  %v2747_v11 = vpop.xlane.xlu2 %2746  ;;  %v16633_v56 = vld [vmem:[#allocation328_spill] sm:$0xff] }
 0x351   :  { %4562 = vst [vmem:[%s14510_s1 + $0x18] sm:$0xff] %v4050_v21  ;;  %v4056_v5 = vmul.f32 %v3426_v2, %v8366_v39  ;;  %v3108_v44 = vadd.f32 %v2552_v3, %v2551_v1  ;;  %v3282_v12 = vmul.f32 %v2738_v60, %v7774_v40  ;;  %v3283_v21 = vmul.f32 %v2747_v11, %v7774_v40 }
 0x352   :  { %4563 = vst [vmem:[%s14510_s1 + $0x20] sm:$0xff] %v4051_v10  ;;  %v4057_v37 = vmul.f32 %v3426_v2, %v8378_v42  ;;  %v3122_v57 = vadd.f32 %v3121_v14, %v2565_v58  ;;  %v10792_v29 = vsub.f32 %v16633_v56, %v10014_v17  ;;  %v16635_v10 = vld [vmem:[#allocation330_spill] sm:$0xff]  ;;  %v16637_v42 = vld [vmem:[#allocation332_spill] sm:$0xff]  ;;  %v4059_v60 = vmul.f32 %v3426_v2, %v8410_v46 }
 0x353   :  { %4564 = vst [vmem:[%s14510_s1 + $0x28] sm:$0xff] %v4052_v13  ;;  %v10796_v0 = vsub.f32 %v16635_v10, %v10014_v17  ;;  %v3109_v39 = vadd.f32 %v3108_v44, %v2553_v22  ;;  %v10801_v1 = vadd.f32 1e-05, %v3282_v12  ;;  %v10803_v3 = vadd.f32 1e-05, %v3283_v21 }
 0x354   :  { %16634 = vst [vmem:[#allocation342_spill] sm:$0xff] %v10792_v29  ;;  %v10807_v58 = vsub.f32 %v16637_v42, %v10014_v17  ;;  %v4058_v13 = vmul.f32 %v3426_v2, %v8390_v62  ;;  %v3123_v14 = vadd.f32 %v3122_v57, %v2566_v33  ;;  %v4060_v11 = vmul.f32 %v3426_v2, %v8417_v15  ;;  %v16641_v62 = vld [vmem:[#allocation338_spill] sm:$0xff]  ;;  %v2729_v57 = vpop.xlane.xlu0 %2728 }
 0x355   :  { %16636 = vst [vmem:[#allocation346_spill] sm:$0xff] %v10796_v0  ;;  %v2555_v44 = vmul.f32 %v10753_v7, %v10753_v7  ;;  %v3110_v12 = vadd.f32 %v3109_v39, %v2554_v20  ;;  %5082 = vrsqrt.f32 %v10801_v1  ;;  %v10831_v46 = vsub.f32 %v16641_v62, %v10014_v17 }
 0x356   :  { %4565 = vst [vmem:[%s14510_s1 + $0x30] sm:$0xff] %v4053_v6  ;;  %v16639_v6 = vld [vmem:[#allocation334_spill] sm:$0xff]  ;;  %3124 = vadd.xlane.f32.xlu2 %v3123_v14  ;;  %5084 = vrsqrt.f32 %v10803_v3  ;;  %v2567_v15 = vmul.f32 %v10792_v29, %v10792_v29  ;;  %v2568_v33 = vmul.f32 %v10796_v0, %v10796_v0  ;;  %v4062_v21 = vmul.f32 %v3426_v2, %v8443_v23  ;;  %v16680_v29 = vld [vmem:[#allocation268_spill] sm:$0xff] }
 0x357   :  { %16638 = vst [vmem:[#allocation349_spill] sm:$0xff] %v10807_v58  ;;  %v10816_v22 = vsub.f32 %v16639_v6, %v10014_v17  ;;  %v3111_v20 = vadd.f32 %v3110_v12, %v2555_v44  ;;  %v10857_v39 = vmul.f32 %v7774_v40, %v10384_v41  ;;  %v2557_v23 = vmul.f32 %v10766_v54, %v10766_v54  ;;  %v16645_v6 = vld [vmem:[#allocation360_spill] sm:$0xff] }
 0x358   :  { %4566 = vst [vmem:[%s14510_s1 + $0x38] sm:$0xff] %v4054_v61  ;;  %v4061_v61 = vmul.f32 %v3426_v2, %v8421_v49  ;;  %v16643_v49 = vld [vmem:[#allocation341_spill] sm:$0xff]  ;;  %v3126_v10 = vadd.f32 %v2568_v33, %v2567_v15  ;;  %v3281_v42 = vmul.f32 %v2729_v57, %v7774_v40  ;;  %v2571_v41 = vmul.f32 %v10831_v46, %v10831_v46 }
 0x359   :  { %16640 = vst [vmem:[#allocation351_spill] sm:$0xff] %v10816_v22  ;;  %v10851_v56 = vsub.f32 %v16643_v49, %v10014_v17  ;;  %v16648_v33 = vld [vmem:[#allocation361_spill] sm:$0xff]  ;;  %vm3443_vm7 = vweird.f32 %v10801_v1  ;;  %vm3453_vm10 = vweird.f32 %v10803_v3 }
 0x35a   :  { %4567 = vst [vmem:[%s14510_s1 + $0x40] sm:$0xff] %v4055_v45  ;;  %v2556_v45 = vmul.f32 %v10757_v19, %v10757_v19  ;;  %v10879_v62 = vadd.f32 1e-05, %v3281_v42  ;;  %v16651_v42 = vld [vmem:[#allocation362_spill] sm:$0xff] }
 0x35b   :  { %4568 = vst [vmem:[%s14510_s1 + $0x48] sm:$0xff] %v4056_v5  ;;  %v2569_v5 = vmul.f32 %v10807_v58, %v10807_v58  ;;  %v5083_v44 = vpop.eup %5082  ;;  %v2572_v49 = vmul.f32 %v10851_v56, %v10851_v56  ;;  %v16676_v58 = vld [vmem:[#allocation388_spill] sm:$0xff] }
 0x35c   :  { %16642 = vst [vmem:[#allocation343_spill] sm:$0xff] %v10831_v46  ;;  %v3112_v2 = vadd.f32 %v3111_v20, %v2556_v45  ;;  %v10887_v45 = vsub.f32 %v16648_v33, %v10212_v9  ;;  %v10889_v20 = vpop.eup %5084  ;;  %5086 = vrsqrt.f32 %v10879_v62  ;;  %vm3444_vm8 = vweird.f32 %v5083_v44 }
 0x35d   :  { %4569 = vst [vmem:[%s14510_s1 + $0x50] sm:$0xff] %v4057_v37  ;;  %v2570_v37 = vmul.f32 %v10816_v22, %v10816_v22  ;;  %v3127_v14 = vadd.f32 %v3126_v10, %v2569_v5  ;;  %v3438_v5 = vmul.f32 %v5083_v44, %v10801_v1  ;;  %vm3445_vm9 = vmor %vm3443_vm7, %vm3444_vm8  ;;  %vm3454_vm11 = vweird.f32 %v10889_v20 }
 0x35e   :  { %4570 = vst [vmem:[%s14510_s1 + $0x58] sm:$0xff] %v4058_v13  ;;  %v2558_v13 = vmul.f32 %v10770_v59, %v10770_v59  ;;  %v3113_v12 = vadd.f32 %v3112_v2, %v2557_v23  ;;  %v3448_v2 = vmul.f32 %v10889_v20, %v10803_v3  ;;  %vm3433_vm12 = vweird.f32 %v10879_v62  ;;  %vm3455_vm13 = vmor %vm3453_vm10, %vm3454_vm11 }
 0x35f   :  { %16644 = vst [vmem:[#allocation355_spill] sm:$0xff] %v10851_v56  ;;  %v3128_v10 = vadd.f32 %v3127_v14, %v2570_v37  ;;  %v10916_v37 = vmul.f32 %v7774_v40, %v10598_v53  ;;  %v16652_v14 = vld [vmem:[#allocation365_spill] sm:$0xff]  ;;  %v16653_v56 = vld [vmem:[#allocation371_spill] sm:$0xff]  ;;  %v11045_v0 = vsub.f32 %v16676_v58, %v10301_v26 }
 0x360   :  { %4571 = vst [vmem:[%s14510_s1 + $0x60] sm:$0xff] %v4059_v60  ;;  %v10874_v60 = vsub.f32 %v16645_v6, %v10212_v9  ;;  %v3114_v23 = vadd.f32 %v3113_v12, %v2558_v13  ;;  %v10906_v6 = vsub.f32 %v16651_v42, %v10212_v9  ;;  %v3449_v13 = vmul.f32 %v10889_v20, %v3448_v2 }
 0x361   :  { %4572 = vst [vmem:[%s14510_s1 + $0x68] sm:$0xff] %v4060_v11  ;;  %v16646_v11 = vld [vmem:[#allocation345_spill] sm:$0xff]  ;;  %v10921_v12 = vsub.f32 %v16652_v14, %v10212_v9 }
 0x362   :  { %4573 = vst [vmem:[%s14510_s1 + $0x70] sm:$0xff] %v4061_v61  ;;  %v10883_v15 = vsub.f32 %v16646_v11, %v10014_v17  ;;  %v16649_v61 = vld [vmem:[#allocation348_spill] sm:$0xff]  ;;  %v3129_v11 = vadd.f32 %v3128_v10, %v2571_v41  ;;  %v2583_v33 = vmul.f32 %v10874_v60, %v10874_v60  ;;  %3115 = vadd.xlane.f32.xlu1 %v3114_v23  ;;  %v3450_v10 = vmul.f32 0.5, %v3449_v13  ;;  %v10936_v46 = vpop.eup %5086 }
 0x363   :  { %4574 = vst [vmem:[%s14510_s1 + $0x78] sm:$0xff] %v4062_v21  ;;  %v10897_v57 = vsub.f32 %v16649_v61, %v10014_v17  ;;  %v10910_v21 = vmul.f32 %v7774_v40, %v10360_v16  ;;  %v3439_v17 = vmul.f32 %v5083_v44, %v3438_v5  ;;  %v2584_v16 = vmul.f32 %v10887_v45, %v10887_v45 }
 0x364   :  { %16647 = vst [vmem:[#allocation344_spill] sm:$0xff] %v10883_v15  ;;  %v2573_v41 = vmul.f32 %v10883_v15, %v10883_v15  ;;  %v3130_v5 = vadd.f32 %v3129_v11, %v2572_v49  ;;  %v2585_v23 = vmul.f32 %v10906_v6, %v10906_v6  ;;  %v3451_v22 = vsub.f32 1.5, %v3450_v10  ;;  %v16654_v49 = vld [vmem:[#allocation374_spill] sm:$0xff] }
 0x365   :  { %16650 = vst [vmem:[#allocation347_spill] sm:$0xff] %v10897_v57  ;;  %v3440_v61 = vmul.f32 0.5, %v3439_v17  ;;  %v2574_v53 = vmul.f32 %v10897_v57, %v10897_v57  ;;  %v3144_v2 = vadd.f32 %v2584_v16, %v2583_v33  ;;  %v10934_v17 = vsub.f32 %v16653_v56, %v10212_v9 }
 0x366   :  { %v3131_v14 = vadd.f32 %v3130_v5, %v2573_v41  ;;  %v10940_v11 = vsub.f32 %v16654_v49, %v10212_v9  ;;  %v2586_v13 = vmul.f32 %v10921_v12, %v10921_v12  ;;  %v3428_v33 = vmul.f32 %v10936_v46, %v10879_v62  ;;  %v16656_v41 = vld [vmem:[#allocation380_spill] sm:$0xff]  ;;  %16677 = vst [vmem:[#allocation334_spill] sm:$0xff] %v11045_v0  ;;  %v16687_v62 = vld [vmem:[#allocation357_spill] sm:$0xff] }
 0x367   :  { %v3441_v42 = vsub.f32 1.5, %v3440_v61  ;;  %v3145_v57 = vadd.f32 %v3144_v2, %v2585_v23  ;;  %v16655_v61 = vld [vmem:[#allocation378_spill] sm:$0xff]  ;;  %v10956_v5 = vsub.f32 %v16656_v41, %v10212_v9  ;;  %v3452_v2 = vmul.f32 %v10889_v20, %v3451_v22 }
 0x368   :  { %v3132_v16 = vadd.f32 %v3131_v14, %v2574_v53  ;;  %v10948_v56 = vsub.f32 %v16655_v61, %v10212_v9  ;;  %v3429_v53 = vmul.f32 %v10936_v46, %v3428_v33  ;;  %v2587_v9 = vmul.f32 %v10934_v17, %v10934_v17 }
 0x369   :  { %v3442_v15 = vmul.f32 %v5083_v44, %v3441_v42  ;;  %16657 = vst [vmem:[#allocation350_spill] sm:$0xff] %v10956_v5  ;;  %v3146_v10 = vadd.f32 %v3145_v57, %v2586_v13  ;;  %v16658_v42 = vld [vmem:[#allocation366_spill] sm:$0xff]  ;;  %v2588_v22 = vmul.f32 %v10940_v11, %v10940_v11  ;;  %v16660_v57 = vld [vmem:[#allocation367_spill] sm:$0xff]  ;;  %vm3434_vm14 = vweird.f32 %v10936_v46 }
 0x36a   :  { %3133 = vadd.xlane.f32.xlu0 %v3132_v16  ;;  %v10962_v14 = vsub.f32 %v16658_v42, %v10301_v26  ;;  %v16662_v16 = vld [vmem:[#allocation369_spill] sm:$0xff]  ;;  %vm3435_vm15 = vmor %vm3433_vm12, %vm3434_vm14 }
 0x36b   :  { %v3446_v23 = vsel %vm3445_vm9, %v5083_v44, %v3442_v15  ;;  %v2589_v15 = vmul.f32 %v10948_v56, %v10948_v56  ;;  %v3147_v13 = vadd.f32 %v3146_v10, %v2587_v9  ;;  %v10996_v41 = vsub.f32 %v16662_v16, %v10301_v26  ;;  %v16668_v9 = vld [vmem:[#allocation2_spill] sm:$0xff]  ;;  %v16669_v16 = vld [vmem:[#allocation3_spill] sm:$0xff] }
 0x36c   :  { %16659 = vst [vmem:[#allocation352_spill] sm:$0xff] %v10962_v14  ;;  %v4071_v1 = vmul.f32 %v3446_v23, %v8471_v32  ;;  %v4072_v49 = vmul.f32 %v3446_v23, %v8479_v38  ;;  %v4073_v61 = vmul.f32 %v3446_v23, %v8483_v43  ;;  %v4074_v44 = vmul.f32 %v3446_v23, %v8506_v24 }
 0x36d   :  { %v10977_v32 = vsub.f32 %v16660_v57, %v10301_v26  ;;  %v4075_v38 = vmul.f32 %v3446_v23, %v8512_v47  ;;  %v3430_v43 = vmul.f32 0.5, %v3429_v53  ;;  %v2590_v24 = vmul.f32 %v10956_v5, %v10956_v5  ;;  %16663 = vst [vmem:[#allocation358_spill] sm:$0xff] %v10996_v41 }
 0x36e   :  { %4583 = vst [vmem:[%s14510_s1 + $0xc0] sm:$0xff] %v4071_v1  ;;  %v4076_v33 = vmul.f32 %v3446_v23, %v8526_v35  ;;  %v3456_v47 = vsel %vm3455_vm13, %v10889_v20, %v3452_v2  ;;  %v2575_v3 = vmul.f32 %v10962_v14, %v10962_v14  ;;  %v4077_v53 = vmul.f32 %v3446_v23, %v8530_v34  ;;  %v16664_v35 = vld [vmem:[#allocation372_spill] sm:$0xff]  ;;  %v16666_v20 = vld [vmem:[#allocation375_spill] sm:$0xff]  ;;  %v16801_v14 = vld [vmem:[#allocation29_spill] sm:$0xff] }
 0x36f   :  { %16661 = vst [vmem:[#allocation356_spill] sm:$0xff] %v10977_v32  ;;  %v11007_v10 = vsub.f32 %v16664_v35, %v10301_v26  ;;  %v11011_v2 = vsub.f32 %v16666_v20, %v10301_v26  ;;  %v4078_v42 = vmul.f32 %v3446_v23, %v8556_v63  ;;  %v3431_v34 = vsub.f32 1.5, %v3430_v43  ;;  %v16670_v63 = vld [vmem:[#allocation381_spill] sm:$0xff] }
 0x370   :  { %4584 = vst [vmem:[%s14510_s1 + $0xc8] sm:$0xff] %v4072_v49  ;;  %v3148_v1 = vadd.f32 %v3147_v13, %v2588_v22  ;;  %v2576_v49 = vmul.f32 %v10977_v32, %v10977_v32  ;;  %v4079_v57 = vmul.f32 %v3456_v47, %v16668_v9  ;;  %v4080_v35 = vmul.f32 %v3456_v47, %v16669_v16  ;;  %v16674_v9 = vld [vmem:[#allocation18_spill] sm:$0xff] }
 0x371   :  { %4585 = vst [vmem:[%s14510_s1 + $0xd0] sm:$0xff] %v4073_v61  ;;  %v2774_v61 = vpop.xlane.xlu2 %2773  ;;  %v11026_v23 = vsub.f32 %v16670_v63, %v10301_v26  ;;  %v3432_v22 = vmul.f32 %v10936_v46, %v3431_v34  ;;  %v4081_v16 = vmul.f32 %v3456_v47, %v16674_v9  ;;  %v16675_v63 = vld [vmem:[#allocation19_spill] sm:$0xff]  ;;  %v16679_v34 = vld [vmem:[#allocation5_spill] sm:$0xff] }
 0x372   :  { %16665 = vst [vmem:[#allocation363_spill] sm:$0xff] %v11007_v10  ;;  %v3149_v13 = vadd.f32 %v3148_v1, %v2589_v15  ;;  %v3135_v20 = vadd.f32 %v2576_v49, %v2575_v3  ;;  %v16678_v15 = vld [vmem:[#allocation4_spill] sm:$0xff]  ;;  %v4084_v1 = vmul.f32 %v3456_v47, %v16679_v34  ;;  %v16681_v9 = vld [vmem:[#allocation353_spill] sm:$0xff]  ;;  %v2582_v34 = vmul.f32 %v11045_v0, %v11045_v0 }
 0x373   :  { %16667 = vst [vmem:[#allocation328_spill] sm:$0xff] %v11011_v2  ;;  %v4083_v3 = vmul.f32 %v3456_v47, %v16678_v15  ;;  %v11080_v15 = vsub.f32 %v16687_v62, %v16680_v29  ;;  %v16695_v62 = vld [vmem:[#allocation490_spill] sm:$0xff] }
 0x374   :  { %4586 = vst [vmem:[%s14510_s1 + $0xd8] sm:$0xff] %v4074_v44  ;;  %v16672_v44 = vld [vmem:[#allocation384_spill] sm:$0xff] }
 0x375   :  { %4587 = vst [vmem:[%s14510_s1 + $0xe0] sm:$0xff] %v4075_v38  ;;  %v11030_v43 = vsub.f32 %v16672_v44, %v10301_v26  ;;  %v2577_v38 = vmul.f32 %v10996_v41, %v10996_v41  ;;  %v4082_v44 = vmul.f32 %v3456_v47, %v16675_v63  ;;  %v11055_v41 = vsub.f32 %v16681_v9, %v16680_v29  ;;  %v16683_v63 = vld [vmem:[#allocation428_spill] sm:$0xff]  ;;  %v16684_v26 = vld [vmem:[#allocation11_spill] sm:$0xff] }
 0x376   :  { %16671 = vst [vmem:[#allocation330_spill] sm:$0xff] %v11026_v23  ;;  %v4085_v32 = vmul.f32 %v3456_v47, %v16683_v63  ;;  %v4086_v58 = vmul.f32 %v3456_v47, %v16684_v26  ;;  %v2579_v47 = vmul.f32 %v11011_v2, %v11011_v2  ;;  %v16692_v26 = vld [vmem:[#allocation489_spill] sm:$0xff] }
 0x377   :  { %16673 = vst [vmem:[#allocation332_spill] sm:$0xff] %v11030_v43  ;;  %v3136_v49 = vadd.f32 %v3135_v20, %v2577_v38  ;;  %v3436_v38 = vsel %vm3435_vm15, %v10936_v46, %v3432_v22 }
 0x378   :  { %4588 = vst [vmem:[%s14510_s1 + $0xe8] sm:$0xff] %v4076_v33  ;;  %v3286_v33 = vmul.f32 %v2774_v61, %v7774_v40  ;;  %v2578_v61 = vmul.f32 %v11007_v10, %v11007_v10 }
 0x379   :  { %4589 = vst [vmem:[%s14510_s1 + $0xf0] sm:$0xff] %v4077_v53  ;;  %v2765_v53 = vpop.xlane.xlu1 %2764 }
 0x37a   :  { %4590 = vst [vmem:[%s14510_s1 + $0xf8] sm:$0xff] %v4078_v42  ;;  %v3150_v42 = vadd.f32 %v3149_v13, %v2590_v24  ;;  %v2580_v24 = vmul.f32 %v11026_v23, %v11026_v23  ;;  %v3137_v46 = vadd.f32 %v3136_v49, %v2578_v61  ;;  %v3285_v22 = vmul.f32 %v2765_v53, %v7774_v40  ;;  %v16691_v49 = vld [vmem:[#allocation488_spill] sm:$0xff]  ;;  %v16706_v23 = vld [vmem:[#allocation494_spill] sm:$0xff] }
 0x37b   :  { %16682 = vst [vmem:[#allocation338_spill] sm:$0xff] %v11055_v41  ;;  %v2581_v13 = vmul.f32 %v11030_v43, %v11030_v43  ;;  %v4063_v53 = vmul.f32 %v3436_v38, %v16691_v49  ;;  %v16693_v61 = vld [vmem:[#allocation364_spill] sm:$0xff] }
 0x37c   :  { %4591 = vst [vmem:[%s14510_s1 + $0x100] sm:$0xff] %v4079_v57  ;;  %v16685_v57 = vld [vmem:[#allocation354_spill] sm:$0xff]  ;;  %3151 = vadd.xlane.f32.xlu2 %v3150_v42  ;;  %v11108_v63 = vadd.f32 1e-05, %v3285_v22  ;;  %v4064_v42 = vmul.f32 %v3436_v38, %v16692_v26  ;;  %v16696_v22 = vld [vmem:[#allocation491_spill] sm:$0xff]  ;;  %v16697_v49 = vld [vmem:[#allocation492_spill] sm:$0xff] }
 0x37d   :  { %4592 = vst [vmem:[%s14510_s1 + $0x108] sm:$0xff] %v4080_v35  ;;  %v11076_v20 = vsub.f32 %v16685_v57, %v16680_v29  ;;  %v11087_v35 = vadd.f32 1e-05, %v3286_v33  ;;  %v2591_v33 = vmul.f32 %v11055_v41, %v11055_v41  ;;  %v11116_v57 = vsub.f32 %v16693_v61, %v16680_v29  ;;  %v2756_v61 = vpop.xlane.xlu0 %2755 }
 0x37e   :  { %16688 = vst [vmem:[#allocation360_spill] sm:$0xff] %v11080_v15  ;;  %v4067_v26 = vmul.f32 %v3436_v38, %v16697_v49  ;;  %v16703_v49 = vld [vmem:[#allocation385_spill] sm:$0xff]  ;;  %vm3473_vm1 = vweird.f32 %v11108_v63 }
 0x37f   :  { %16686 = vst [vmem:[#allocation341_spill] sm:$0xff] %v11076_v20  ;;  %5088 = vrsqrt.f32 %v11087_v35  ;;  %vm3483_vm0 = vweird.f32 %v11087_v35 }
 0x380   :  { %4593 = vst [vmem:[%s14510_s1 + $0x110] sm:$0xff] %v4081_v16  ;;  %v16689_v16 = vld [vmem:[#allocation359_spill] sm:$0xff]  ;;  %5090 = vrsqrt.f32 %v11108_v63 }
 0x381   :  { %4594 = vst [vmem:[%s14510_s1 + $0x118] sm:$0xff] %v4082_v44  ;;  %v11099_v9 = vsub.f32 %v16689_v16, %v16680_v29  ;;  %v3138_v44 = vadd.f32 %v3137_v46, %v2579_v47  ;;  %v2593_v47 = vmul.f32 %v11080_v15, %v11080_v15  ;;  %v4065_v46 = vmul.f32 %v3436_v38, %v16695_v62  ;;  %v16698_v15 = vld [vmem:[#allocation368_spill] sm:$0xff] }
 0x382   :  { %4595 = vst [vmem:[%s14510_s1 + $0x120] sm:$0xff] %v4083_v3  ;;  %v2592_v3 = vmul.f32 %v11076_v20, %v11076_v20  ;;  %v11134_v20 = vsub.f32 %v16698_v15, %v16680_v29  ;;  %v16705_v15 = vld [vmem:[#allocation493_spill] sm:$0xff] }
 0x383   :  { %16690 = vst [vmem:[#allocation345_spill] sm:$0xff] %v11099_v9  ;;  %v3139_v16 = vadd.f32 %v3138_v44, %v2580_v24  ;;  %v3284_v44 = vmul.f32 %v2756_v61, %v7774_v40  ;;  %v4068_v43 = vmul.f32 %v3436_v38, %v16705_v15  ;;  %v16707_v61 = vld [vmem:[#allocation370_spill] sm:$0xff] }
 0x384   :  { %4596 = vst [vmem:[%s14510_s1 + $0x128] sm:$0xff] %v4084_v1  ;;  %v4066_v1 = vmul.f32 %v3436_v38, %v16696_v22  ;;  %v3153_v62 = vadd.f32 %v2592_v3, %v2591_v33  ;;  %v16700_v22 = vld [vmem:[#allocation298_spill] sm:$0xff] }
 0x385   :  { %16694 = vst [vmem:[#allocation361_spill] sm:$0xff] %v11116_v57  ;;  %v3140_v24 = vadd.f32 %v3139_v16, %v2581_v13  ;;  %v11148_v0 = vsub.f32 %v16703_v49, %v16700_v22  ;;  %v2595_v13 = vmul.f32 %v11116_v57, %v11116_v57  ;;  %v11160_v16 = vadd.f32 1e-05, %v3284_v44 }
 0x386   :  { %4597 = vst [vmem:[%s14510_s1 + $0x130] sm:$0xff] %v4085_v32  ;;  %v2594_v32 = vmul.f32 %v11099_v9, %v11099_v9  ;;  %v4069_v9 = vmul.f32 %v3436_v38, %v16706_v23  ;;  %v3154_v33 = vadd.f32 %v3153_v62, %v2593_v47  ;;  %v16709_v23 = vld [vmem:[#allocation373_spill] sm:$0xff] }
 0x387   :  { %4598 = vst [vmem:[%s14510_s1 + $0x138] sm:$0xff] %v4086_v58  ;;  %v16701_v58 = vld [vmem:[#allocation383_spill] sm:$0xff]  ;;  %v3141_v3 = vadd.f32 %v3140_v24, %v2582_v34  ;;  %v11168_v49 = vsub.f32 %v16709_v23, %v16680_v29  ;;  %v2596_v34 = vmul.f32 %v11134_v20, %v11134_v20  ;;  %5092 = vrsqrt.f32 %v11160_v16 }
 0x388   :  { %16699 = vst [vmem:[#allocation348_spill] sm:$0xff] %v11134_v20  ;;  %v11144_v41 = vsub.f32 %v16701_v58, %v16700_v22  ;;  %v11164_v58 = vsub.f32 %v16707_v61, %v16680_v29  ;;  %v16712_v29 = vld [vmem:[#allocation387_spill] sm:$0xff]  ;;  %v2608_v24 = vmul.f32 %v11148_v0, %v11148_v0  ;;  %vm3463_vm5 = vweird.f32 %v11160_v16 }
 0x389   :  { %4575 = vst [vmem:[%s14510_s1 + $0x80] sm:$0xff] %v4063_v53  ;;  %v5089_v53 = vpop.eup %5088  ;;  %3142 = vadd.xlane.f32.xlu1 %v3141_v3  ;;  %v2598_v23 = vmul.f32 %v11168_v49, %v11168_v49 }
 0x38a   :  { %16702 = vst [vmem:[#allocation362_spill] sm:$0xff] %v11144_v41  ;;  %v3478_v47 = vmul.f32 %v5089_v53, %v11087_v35  ;;  %v11177_v62 = vpop.eup %5090  ;;  %v2597_v61 = vmul.f32 %v11164_v58, %v11164_v58  ;;  %vm3484_vm2 = vweird.f32 %v5089_v53 }
 0x38b   :  { %16704 = vst [vmem:[#allocation365_spill] sm:$0xff] %v11148_v0  ;;  %vm3474_vm3 = vweird.f32 %v11177_v62  ;;  %vm3485_vm4 = vmor %vm3483_vm0, %vm3484_vm2 }
 0x38c   :  { %4576 = vst [vmem:[%s14510_s1 + $0x88] sm:$0xff] %v4064_v42  ;;  %v16711_v42 = vld [vmem:[#allocation495_spill] sm:$0xff]  ;;  %vm3475_vm6 = vmor %vm3473_vm1, %vm3474_vm3 }
 0x38d   :  { %4577 = vst [vmem:[%s14510_s1 + $0x90] sm:$0xff] %v4065_v46  ;;  %v4070_v15 = vmul.f32 %v3436_v38, %v16711_v42  ;;  %v3155_v46 = vadd.f32 %v3154_v33, %v2594_v32  ;;  %v11185_v38 = vsub.f32 %v16712_v29, %v16700_v22  ;;  %v16714_v32 = vld [vmem:[#allocation293_spill] sm:$0xff]  ;;  %v3468_v33 = vmul.f32 %v11177_v62, %v11108_v63  ;;  %v16715_v42 = vld [vmem:[#allocation390_spill] sm:$0xff]  ;;  %v16740_v63 = vld [vmem:[#allocation399_spill] sm:$0xff] }
 0x38e   :  { %16708 = vst [vmem:[#allocation371_spill] sm:$0xff] %v11164_v58  ;;  %v11193_v44 = vmul.f32 %v7774_v40, %v16714_v32  ;;  %v16719_v32 = vld [vmem:[#allocation398_spill] sm:$0xff] }
 0x38f   :  { %16710 = vst [vmem:[#allocation374_spill] sm:$0xff] %v11168_v49  ;;  %v3156_v3 = vadd.f32 %v3155_v46, %v2595_v13  ;;  %v16717_v46 = vld [vmem:[#allocation395_spill] sm:$0xff]  ;;  %v11223_v49 = vsub.f32 %v16719_v32, %v16700_v22 }
 0x390   :  { %4578 = vst [vmem:[%s14510_s1 + $0x98] sm:$0xff] %v4066_v1  ;;  %v2607_v1 = vmul.f32 %v11144_v41, %v11144_v41  ;;  %v11219_v29 = vsub.f32 %v16717_v46, %v16700_v22  ;;  %v16723_v46 = vld [vmem:[#allocation404_spill] sm:$0xff] }
 0x391   :  { %4579 = vst [vmem:[%s14510_s1 + $0xa0] sm:$0xff] %v4067_v26  ;;  %v3479_v26 = vmul.f32 %v5089_v53, %v3478_v47  ;;  %v3469_v47 = vmul.f32 %v11177_v62, %v3468_v33  ;;  %v11236_v32 = vsub.f32 %v16723_v46, %v16700_v22  ;;  %v16728_v46 = vld [vmem:[#allocation392_spill] sm:$0xff] }
 0x392   :  { %16713 = vst [vmem:[#allocation378_spill] sm:$0xff] %v11185_v38 }
 0x393   :  { %4580 = vst [vmem:[%s14510_s1 + $0xa8] sm:$0xff] %v4068_v43  ;;  %v11210_v43 = vsub.f32 %v16715_v42, %v16700_v22  ;;  %v3480_v13 = vmul.f32 0.5, %v3479_v26  ;;  %v16721_v42 = vld [vmem:[#allocation402_spill] sm:$0xff]  ;;  %v3171_v26 = vadd.f32 %v2608_v24, %v2607_v1  ;;  %v3470_v20 = vmul.f32 0.5, %v3469_v47  ;;  %v16725_v24 = vld [vmem:[#allocation316_spill] sm:$0xff] }
 0x394   :  { %4581 = vst [vmem:[%s14510_s1 + $0xb0] sm:$0xff] %v4069_v9  ;;  %v3157_v9 = vadd.f32 %v3156_v3, %v2596_v34  ;;  %v11227_v58 = vsub.f32 %v16721_v42, %v16700_v22  ;;  %v11231_v3 = vpop.eup %5092  ;;  %v2611_v22 = vmul.f32 %v11219_v29, %v11219_v29 }
 0x395   :  { %16716 = vst [vmem:[#allocation380_spill] sm:$0xff] %v11210_v43  ;;  %v3481_v33 = vsub.f32 1.5, %v3480_v13  ;;  %v2610_v42 = vmul.f32 %v11210_v43, %v11210_v43  ;;  %v3471_v41 = vsub.f32 1.5, %v3470_v20  ;;  %v3458_v1 = vmul.f32 %v11231_v3, %v11160_v16  ;;  %v16726_v13 = vld [vmem:[#allocation391_spill] sm:$0xff]  ;;  %v16730_v43 = vld [vmem:[#allocation13_spill] sm:$0xff] }
 0x396   :  { %4582 = vst [vmem:[%s14510_s1 + $0xb8] sm:$0xff] %v4070_v15  ;;  %v2609_v15 = vmul.f32 %v11185_v38, %v11185_v38  ;;  %v3158_v34 = vadd.f32 %v3157_v9, %v2597_v61  ;;  %v11244_v61 = vsub.f32 %v16726_v13, %v16725_v24  ;;  %v2612_v13 = vmul.f32 %v11223_v49, %v11223_v49  ;;  %v16731_v38 = vld [vmem:[#allocation9_spill] sm:$0xff] }
 0x397   :  { %16718 = vst [vmem:[#allocation366_spill] sm:$0xff] %v11219_v29  ;;  %v3482_v0 = vmul.f32 %v5089_v53, %v3481_v33  ;;  %v3459_v33 = vmul.f32 %v11231_v3, %v3458_v1  ;;  %vm3464_vm7 = vweird.f32 %v11231_v3  ;;  %v16751_v29 = vld [vmem:[#allocation31_spill] sm:$0xff] }
 0x398   :  { %16720 = vst [vmem:[#allocation367_spill] sm:$0xff] %v11223_v49  ;;  %v3172_v57 = vadd.f32 %v3171_v26, %v2609_v15  ;;  %v3159_v47 = vadd.f32 %v3158_v34, %v2598_v23  ;;  %v11252_v15 = vsub.f32 %v16728_v46, %v16725_v24  ;;  %v3472_v26 = vmul.f32 %v11177_v62, %v3471_v41  ;;  %v16732_v34 = vld [vmem:[#allocation14_spill] sm:$0xff]  ;;  %vm3465_vm8 = vmor %vm3463_vm5, %vm3464_vm7 }
 0x399   :  { %16722 = vst [vmem:[#allocation369_spill] sm:$0xff] %v11227_v58  ;;  %v3486_v20 = vsel %vm3485_vm4, %v5089_v53, %v3482_v0  ;;  %v16733_v0 = vld [vmem:[#allocation26_spill] sm:$0xff]  ;;  %v2614_v41 = vmul.f32 %v11236_v32, %v11236_v32 }
 0x39a   :  { %16724 = vst [vmem:[#allocation372_spill] sm:$0xff] %v11236_v32  ;;  %v3173_v9 = vadd.f32 %v3172_v57, %v2610_v42  ;;  %v4103_v35 = vmul.f32 %v3486_v20, %v16730_v43  ;;  %v4104_v23 = vmul.f32 %v3486_v20, %v16731_v38  ;;  %v4105_v2 = vmul.f32 %v3486_v20, %v16732_v34  ;;  %v16734_v42 = vld [vmem:[#allocation393_spill] sm:$0xff]  ;;  %v16736_v43 = vld [vmem:[#allocation27_spill] sm:$0xff] }
 0x39b   :  { %16727 = vst [vmem:[#allocation375_spill] sm:$0xff] %v11244_v61  ;;  %3160 = vadd.xlane.f32.xlu0 %v3159_v47  ;;  %v2613_v57 = vmul.f32 %v11227_v58, %v11227_v58  ;;  %v4106_v53 = vmul.f32 %v3486_v20, %v16733_v0  ;;  %v11269_v1 = vsub.f32 %v16734_v42, %v16725_v24  ;;  %v3460_v47 = vmul.f32 0.5, %v3459_v33  ;;  %v16737_v42 = vld [vmem:[#allocation16_spill] sm:$0xff]  ;;  %v16743_v33 = vld [vmem:[#allocation405_spill] sm:$0xff] }
 0x39c   :  { %16729 = vst [vmem:[#allocation2_spill] sm:$0xff] %v11252_v15  ;;  %v2599_v38 = vmul.f32 %v11244_v61, %v11244_v61  ;;  %v4107_v46 = vmul.f32 %v3486_v20, %v16736_v43  ;;  %v3174_v34 = vadd.f32 %v3173_v9, %v2611_v22  ;;  %v2600_v0 = vmul.f32 %v11252_v15, %v11252_v15  ;;  %v16742_v22 = vld [vmem:[#allocation33_spill] sm:$0xff] }
 0x39d   :  { %16735 = vst [vmem:[#allocation3_spill] sm:$0xff] %v11269_v1  ;;  %v4108_v32 = vmul.f32 %v3486_v20, %v16737_v42  ;;  %v3476_v43 = vsel %vm3475_vm6, %v11177_v62, %v3472_v26  ;;  %v11294_v58 = vsub.f32 %v16740_v63, %v16725_v24  ;;  %v4109_v9 = vmul.f32 %v3486_v20, %v16742_v22  ;;  %v16745_v62 = vld [vmem:[#allocation407_spill] sm:$0xff]  ;;  %v2801_v42 = vpop.xlane.xlu2 %2800 }
 0x39e   :  { %4615 = vst [vmem:[%s14510_s1 + $0x1c0] sm:$0xff] %v4103_v35  ;;  %v16738_v35 = vld [vmem:[#allocation396_spill] sm:$0xff]  ;;  %v11307_v26 = vsub.f32 %v16745_v62, %v16725_v24  ;;  %v3461_v22 = vsub.f32 1.5, %v3460_v47  ;;  %v3175_v15 = vadd.f32 %v3174_v34, %v2612_v13  ;;  %v4096_v10 = vmul.f32 %v3476_v43, %v16751_v29  ;;  %v16752_v13 = vld [vmem:[#allocation37_spill] sm:$0xff]  ;;  %v16753_v29 = vld [vmem:[#allocation470_spill] sm:$0xff] }
 0x39f   :  { %4616 = vst [vmem:[%s14510_s1 + $0x1c8] sm:$0xff] %v4104_v23  ;;  %v11290_v61 = vsub.f32 %v16738_v35, %v16725_v24  ;;  %v11303_v23 = vsub.f32 %v16743_v33, %v16725_v24  ;;  %v16747_v35 = vld [vmem:[#allocation32_spill] sm:$0xff]  ;;  %v16750_v33 = vld [vmem:[#allocation17_spill] sm:$0xff]  ;;  %v3289_v34 = vmul.f32 %v2801_v42, %v7774_v40  ;;  %v2603_v16 = vmul.f32 %v11294_v58, %v11294_v58 }
 0x3a0   :  { %16741 = vst [vmem:[#allocation384_spill] sm:$0xff] %v11294_v58  ;;  %v4110_v63 = vmul.f32 %v3486_v20, %v16747_v35  ;;  %v4095_v62 = vmul.f32 %v3476_v43, %v16750_v33  ;;  %v2601_v20 = vmul.f32 %v11269_v1, %v11269_v1  ;;  %v3162_v35 = vadd.f32 %v2600_v0, %v2599_v38  ;;  %v16754_v33 = vld [vmem:[#allocation34_spill] sm:$0xff] }
 0x3a1   :  { %16739 = vst [vmem:[#allocation381_spill] sm:$0xff] %v11290_v61  ;;  %v3176_v47 = vadd.f32 %v3175_v15, %v2613_v57  ;;  %v4099_v38 = vmul.f32 %v3476_v43, %v16754_v33  ;;  %v16756_v57 = vld [vmem:[#allocation42_spill] sm:$0xff] }
 0x3a2   :  { %4617 = vst [vmem:[%s14510_s1 + $0x1d0] sm:$0xff] %v4105_v2  ;;  %v16748_v2 = vld [vmem:[#allocation412_spill] sm:$0xff]  ;;  %v3163_v0 = vadd.f32 %v3162_v35, %v2601_v20  ;;  %v4101_v42 = vmul.f32 %v3476_v43, %v16756_v57  ;;  %v2602_v35 = vmul.f32 %v11290_v61, %v11290_v61  ;;  %v16778_v61 = vld [vmem:[#allocation25_spill] sm:$0xff] }
 0x3a3   :  { %16744 = vst [vmem:[#allocation18_spill] sm:$0xff] %v11303_v23  ;;  %v11315_v49 = vsub.f32 %v16748_v2, %v16725_v24  ;;  %v3462_v24 = vmul.f32 %v11231_v3, %v3461_v22  ;;  %v4098_v2 = vmul.f32 %v3476_v43, %v16753_v29  ;;  %v16757_v22 = vld [vmem:[#allocation453_spill] sm:$0xff]  ;;  %v16759_v29 = vld [vmem:[#allocation376_spill] sm:$0xff] }
 0x3a4   :  { %16746 = vst [vmem:[#allocation19_spill] sm:$0xff] %v11307_v26 }
 0x3a5   :  { %4618 = vst [vmem:[%s14510_s1 + $0x1d8] sm:$0xff] %v4106_v53  ;;  %v4097_v53 = vmul.f32 %v3476_v43, %v16752_v13  ;;  %v4102_v13 = vmul.f32 %v3476_v43, %v16757_v22  ;;  %v3466_v20 = vsel %vm3465_vm8, %v11231_v3, %v3462_v24  ;;  %v16761_v3 = vld [vmem:[#allocation377_spill] sm:$0xff]  ;;  %v16763_v24 = vld [vmem:[#allocation379_spill] sm:$0xff] }
 0x3a6   :  { %16749 = vst [vmem:[#allocation388_spill] sm:$0xff] %v11315_v49  ;;  %v16766_v22 = vld [vmem:[#allocation23_spill] sm:$0xff] }
 0x3a7   :  { %4619 = vst [vmem:[%s14510_s1 + $0x1e0] sm:$0xff] %v4107_v46  ;;  %v2792_v46 = vpop.xlane.xlu1 %2791 }
 0x3a8   :  { %4620 = vst [vmem:[%s14510_s1 + $0x1e8] sm:$0xff] %v4108_v32  ;;  %v3288_v1 = vmul.f32 %v2792_v46, %v7774_v40  ;;  %v16755_v32 = vld [vmem:[#allocation38_spill] sm:$0xff] }
 0x3a9   :  { %4621 = vst [vmem:[%s14510_s1 + $0x1f0] sm:$0xff] %v4109_v9  ;;  %v4100_v15 = vmul.f32 %v3476_v43, %v16755_v32  ;;  %v11346_v9 = vadd.f32 1e-05, %v3289_v34  ;;  %v16758_v46 = vld [vmem:[#allocation266_spill] sm:$0xff]  ;;  %v3164_v34 = vadd.f32 %v3163_v0, %v2602_v35 }
 0x3aa   :  { %4622 = vst [vmem:[%s14510_s1 + $0x1f8] sm:$0xff] %v4110_v63  ;;  %v3177_v63 = vadd.f32 %v3176_v47, %v2614_v41  ;;  %v11356_v43 = vsub.f32 %v16759_v29, %v16758_v46  ;;  %v11367_v41 = vsub.f32 %v16761_v3, %v16758_v46  ;;  %v11371_v47 = vsub.f32 %v16763_v24, %v16758_v46  ;;  %v16765_v32 = vld [vmem:[#allocation6_spill] sm:$0xff] }
 0x3ab   :  { %4607 = vst [vmem:[%s14510_s1 + $0x180] sm:$0xff] %v4095_v62  ;;  %v2604_v62 = vmul.f32 %v11303_v23, %v11303_v23  ;;  %5094 = vrsqrt.f32 %v11346_v9  ;;  %v11379_v33 = vadd.f32 1e-05, %v3288_v1  ;;  %v4087_v57 = vmul.f32 %v3466_v20, %v16765_v32  ;;  %v16769_v1 = vld [vmem:[#allocation7_spill] sm:$0xff]  ;;  %v16770_v24 = vld [vmem:[#allocation10_spill] sm:$0xff]  ;;  %v16776_v23 = vld [vmem:[#allocation389_spill] sm:$0xff] }
 0x3ac   :  { %16760 = vst [vmem:[#allocation4_spill] sm:$0xff] %v11356_v43  ;;  %3178 = vadd.xlane.f32.xlu2 %v3177_v63  ;;  %v4088_v29 = vmul.f32 %v3466_v20, %v16766_v22  ;;  %v16767_v63 = vld [vmem:[#allocation382_spill] sm:$0xff]  ;;  %v4089_v0 = vmul.f32 %v3466_v20, %v16769_v1  ;;  %v3165_v35 = vadd.f32 %v3164_v34, %v2603_v16  ;;  %v2783_v22 = vpop.xlane.xlu0 %2782  ;;  %v16773_v34 = vld [vmem:[#allocation12_spill] sm:$0xff]  ;;  %vm3513_vm9 = vweird.f32 %v11346_v9 }
 0x3ad   :  { %4608 = vst [vmem:[%s14510_s1 + $0x188] sm:$0xff] %v4096_v10  ;;  %v2605_v10 = vmul.f32 %v11307_v26, %v11307_v26  ;;  %v11390_v3 = vsub.f32 %v16767_v63, %v16758_v46  ;;  %5096 = vrsqrt.f32 %v11379_v33  ;;  %v4090_v32 = vmul.f32 %v3466_v20, %v16770_v24  ;;  %v16771_v63 = vld [vmem:[#allocation386_spill] sm:$0xff] }
 0x3ae   :  { %16762 = vst [vmem:[#allocation5_spill] sm:$0xff] %v11367_v41  ;;  %v2617_v16 = vmul.f32 %v11371_v47, %v11371_v47  ;;  %v4091_v1 = vmul.f32 %v3466_v20, %v16773_v34  ;;  %v3166_v24 = vadd.f32 %v3165_v35, %v2604_v62  ;;  %v3287_v26 = vmul.f32 %v2783_v22, %v7774_v40 }
 0x3af   :  { %16764 = vst [vmem:[#allocation268_spill] sm:$0xff] %v11371_v47  ;;  %v11423_v47 = vsub.f32 %v16776_v23, %v16758_v46  ;;  %vm3503_vm10 = vweird.f32 %v11379_v33 }
 0x3b0   :  { %4609 = vst [vmem:[%s14510_s1 + $0x190] sm:$0xff] %v4097_v53  ;;  %v2606_v53 = vmul.f32 %v11315_v49, %v11315_v49  ;;  %v11405_v49 = vsub.f32 %v16771_v63, %v16758_v46  ;;  %v16775_v63 = vld [vmem:[#allocation15_spill] sm:$0xff]  ;;  %v3167_v62 = vadd.f32 %v3166_v24, %v2605_v10  ;;  %v11431_v35 = vadd.f32 1e-05, %v3287_v26  ;;  %v16785_v24 = vld [vmem:[#allocation397_spill] sm:$0xff] }
 0x3b1   :  { %4610 = vst [vmem:[%s14510_s1 + $0x198] sm:$0xff] %v4098_v2  ;;  %v2615_v2 = vmul.f32 %v11356_v43, %v11356_v43  ;;  %v5095_v34 = vpop.eup %5094 }
 0x3b2   :  { %16768 = vst [vmem:[#allocation353_spill] sm:$0xff] %v11390_v3  ;;  %v3508_v23 = vmul.f32 %v5095_v34, %v11346_v9  ;;  %v3168_v10 = vadd.f32 %v3167_v62, %v2606_v53  ;;  %5098 = vrsqrt.f32 %v11431_v35  ;;  %v2620_v53 = vmul.f32 %v11423_v47, %v11423_v47  ;;  %v16787_v62 = vld [vmem:[#allocation311_spill] sm:$0xff] }
 0x3b3   :  { %4611 = vst [vmem:[%s14510_s1 + $0x1a0] sm:$0xff] %v4099_v38  ;;  %v2616_v38 = vmul.f32 %v11367_v41, %v11367_v41  ;;  %v4093_v41 = vmul.f32 %v3466_v20, %v16775_v63  ;;  %v11447_v26 = vpop.eup %5096  ;;  %vm3514_vm11 = vweird.f32 %v5095_v34  ;;  %vm3493_vm14 = vweird.f32 %v11431_v35 }
 0x3b4   :  { %4612 = vst [vmem:[%s14510_s1 + $0x1a8] sm:$0xff] %v4100_v15  ;;  %v16774_v15 = vld [vmem:[#allocation8_spill] sm:$0xff]  ;;  %v3498_v63 = vmul.f32 %v11447_v26, %v11379_v33  ;;  %3169 = vadd.xlane.f32.xlu1 %v3168_v10  ;;  %vm3515_vm12 = vmor %vm3513_vm9, %vm3514_vm11  ;;  %vm3504_vm13 = vweird.f32 %v11447_v26 }
 0x3b5   :  { %16772 = vst [vmem:[#allocation428_spill] sm:$0xff] %v11405_v49  ;;  %v4092_v43 = vmul.f32 %v3466_v20, %v16774_v15  ;;  %v3180_v58 = vadd.f32 %v2616_v38, %v2615_v2  ;;  %v4094_v15 = vmul.f32 %v3466_v20, %v16778_v61  ;;  %v2619_v61 = vmul.f32 %v11405_v49, %v11405_v49  ;;  %v16781_v2 = vld [vmem:[#allocation409_spill] sm:$0xff]  ;;  %v16798_v49 = vld [vmem:[#allocation22_spill] sm:$0xff]  ;;  %vm3505_vm15 = vmor %vm3503_vm10, %vm3504_vm13 }
 0x3b6   :  { %4613 = vst [vmem:[%s14510_s1 + $0x1b0] sm:$0xff] %v4101_v42  ;;  %v2618_v42 = vmul.f32 %v11390_v3, %v11390_v3  ;;  %v16799_v3 = vld [vmem:[#allocation46_spill] sm:$0xff]  ;;  %v16808_v33 = vld [vmem:[#allocation36_spill] sm:$0xff] }
 0x3b7   :  { %4614 = vst [vmem:[%s14510_s1 + $0x1b8] sm:$0xff] %v4102_v13  ;;  %v16779_v13 = vld [vmem:[#allocation408_spill] sm:$0xff]  ;;  %v3181_v20 = vadd.f32 %v3180_v58, %v2617_v16  ;;  %v11459_v58 = vsub.f32 %v16785_v24, %v16758_v46  ;;  %v3509_v16 = vmul.f32 %v5095_v34, %v3508_v23 }
 0x3b8   :  { %16777 = vst [vmem:[#allocation11_spill] sm:$0xff] %v11423_v47  ;;  %v11435_v22 = vsub.f32 %v16779_v13, %v10627_v25  ;;  %v11470_v13 = vmul.f32 %v7774_v40, %v16787_v62 }
 0x3b9   :  { %4599 = vst [vmem:[%s14510_s1 + $0x140] sm:$0xff] %v4087_v57  ;;  %v11445_v57 = vsub.f32 %v16781_v2, %v10627_v25 }
 0x3ba   :  { %16780 = vst [vmem:[#allocation354_spill] sm:$0xff] %v11435_v22  ;;  %v2631_v23 = vmul.f32 %v11435_v22, %v11435_v22 }
 0x3bb   :  { %4600 = vst [vmem:[%s14510_s1 + $0x148] sm:$0xff] %v4088_v29  ;;  %v16783_v29 = vld [vmem:[#allocation394_spill] sm:$0xff] }
 0x3bc   :  { %16782 = vst [vmem:[#allocation357_spill] sm:$0xff] %v11445_v57  ;;  %v11455_v38 = vsub.f32 %v16783_v29, %v16758_v46  ;;  %v16788_v46 = vld [vmem:[#allocation411_spill] sm:$0xff]  ;;  %v2632_v29 = vmul.f32 %v11445_v57, %v11445_v57  ;;  %v16800_v57 = vld [vmem:[#allocation24_spill] sm:$0xff] }
 0x3bd   :  { %4601 = vst [vmem:[%s14510_s1 + $0x150] sm:$0xff] %v4089_v0  ;;  %v3182_v0 = vadd.f32 %v3181_v20, %v2618_v42  ;;  %v3510_v42 = vmul.f32 0.5, %v3509_v16  ;;  %v3499_v20 = vmul.f32 %v11447_v26, %v3498_v63  ;;  %v11499_v16 = vpop.eup %5098 }
 0x3be   :  { %16784 = vst [vmem:[#allocation359_spill] sm:$0xff] %v11455_v38  ;;  %vm3494_vm0 = vweird.f32 %v11499_v16 }
 0x3bf   :  { %16786 = vst [vmem:[#allocation488_spill] sm:$0xff] %v11459_v58  ;;  %v3183_v2 = vadd.f32 %v3182_v0, %v2619_v61  ;;  %v3511_v61 = vsub.f32 1.5, %v3510_v42  ;;  %v3500_v10 = vmul.f32 0.5, %v3499_v20  ;;  %v16791_v0 = vld [vmem:[#allocation419_spill] sm:$0xff]  ;;  %v3488_v42 = vmul.f32 %v11499_v16, %v11431_v35  ;;  %vm3495_vm1 = vmor %vm3493_vm14, %vm3494_vm0 }
 0x3c0   :  { %4602 = vst [vmem:[%s14510_s1 + $0x158] sm:$0xff] %v4090_v32  ;;  %v11477_v32 = vsub.f32 %v16788_v46, %v10627_v25  ;;  %v11507_v62 = vsub.f32 %v16791_v0, %v10627_v25 }
 0x3c1   :  { %4603 = vst [vmem:[%s14510_s1 + $0x160] sm:$0xff] %v4091_v1  ;;  %v2621_v1 = vmul.f32 %v11455_v38, %v11455_v38  ;;  %v3184_v24 = vadd.f32 %v3183_v2, %v2620_v53  ;;  %v3512_v38 = vmul.f32 %v5095_v34, %v3511_v61  ;;  %v16792_v53 = vld [vmem:[#allocation422_spill] sm:$0xff] }
 0x3c2   :  { %16789 = vst [vmem:[#allocation489_spill] sm:$0xff] %v11477_v32  ;;  %v2633_v46 = vmul.f32 %v11477_v32, %v11477_v32  ;;  %v11515_v20 = vsub.f32 %v16792_v53, %v10627_v25  ;;  %v16794_v2 = vld [vmem:[#allocation426_spill] sm:$0xff]  ;;  %v3489_v53 = vmul.f32 %v11499_v16, %v3488_v42 }
 0x3c3   :  { %4604 = vst [vmem:[%s14510_s1 + $0x168] sm:$0xff] %v4092_v43  ;;  %v2622_v43 = vmul.f32 %v11459_v58, %v11459_v58  ;;  %v3198_v58 = vadd.f32 %v2632_v29, %v2631_v23  ;;  %v16796_v23 = vld [vmem:[#allocation429_spill] sm:$0xff]  ;;  %v3185_v47 = vadd.f32 %v3184_v24, %v2621_v1  ;;  %v16807_v24 = vld [vmem:[#allocation50_spill] sm:$0xff] }
 0x3c4   :  { %4605 = vst [vmem:[%s14510_s1 + $0x170] sm:$0xff] %v4093_v41  ;;  %v16790_v41 = vld [vmem:[#allocation414_spill] sm:$0xff]  ;;  %v11526_v29 = vsub.f32 %v16796_v23, %v10627_v25  ;;  %v2636_v23 = vmul.f32 %v11515_v20, %v11515_v20 }
 0x3c5   :  { %4606 = vst [vmem:[%s14510_s1 + $0x178] sm:$0xff] %v4094_v15  ;;  %v11503_v63 = vsub.f32 %v16790_v41, %v10627_v25  ;;  %v3501_v15 = vsub.f32 1.5, %v3500_v10  ;;  %v11522_v41 = vsub.f32 %v16794_v2, %v10627_v25  ;;  %v3199_v61 = vadd.f32 %v3198_v58, %v2633_v46  ;;  %v16804_v58 = vld [vmem:[#allocation49_spill] sm:$0xff] }
 0x3c6   :  { %16793 = vst [vmem:[#allocation364_spill] sm:$0xff] %v11515_v20  ;;  %v3516_v10 = vsel %vm3515_vm12, %v5095_v34, %v3512_v38  ;;  %v2635_v25 = vmul.f32 %v11507_v62, %v11507_v62  ;;  %v16802_v34 = vld [vmem:[#allocation415_spill] sm:$0xff]  ;;  %v3186_v42 = vadd.f32 %v3185_v47, %v2622_v43 }
 0x3c7   :  { %16795 = vst [vmem:[#allocation490_spill] sm:$0xff] %v11522_v41  ;;  %v3502_v0 = vmul.f32 %v11447_v26, %v3501_v15  ;;  %v4127_v9 = vmul.f32 %v3516_v10, %v16798_v49  ;;  %v4128_v32 = vmul.f32 %v3516_v10, %v16799_v3  ;;  %v4129_v22 = vmul.f32 %v3516_v10, %v16800_v57  ;;  %v16805_v57 = vld [vmem:[#allocation416_spill] sm:$0xff] }
 0x3c8   :  { %16797 = vst [vmem:[#allocation491_spill] sm:$0xff] %v11526_v29  ;;  %v2634_v2 = vmul.f32 %v11503_v63, %v11503_v63  ;;  %v4130_v5 = vmul.f32 %v3516_v10, %v16801_v14  ;;  %v11541_v38 = vsub.f32 %v16802_v34, %v10630_v50  ;;  %v4131_v49 = vmul.f32 %v3516_v10, %v16804_v58  ;;  %v16812_v58 = vld [vmem:[#allocation420_spill] sm:$0xff] }
 0x3c9   :  { %4639 = vst [vmem:[%s14510_s1 + $0x280] sm:$0xff] %v4127_v9  ;;  %v3490_v14 = vmul.f32 0.5, %v3489_v53  ;;  %v11553_v1 = vsub.f32 %v16805_v57, %v10630_v50  ;;  %v4132_v46 = vmul.f32 %v3516_v10, %v16807_v24  ;;  %v3506_v15 = vsel %vm3505_vm15, %v11447_v26, %v3502_v0  ;;  %v16809_v53 = vld [vmem:[#allocation61_spill] sm:$0xff]  ;;  %3187 = vadd.xlane.f32.xlu0 %v3186_v42  ;;  %v16814_v42 = vld [vmem:[#allocation423_spill] sm:$0xff] }
 0x3ca   :  { %16803 = vst [vmem:[#allocation492_spill] sm:$0xff] %v11541_v38  ;;  %v3200_v3 = vadd.f32 %v3199_v61, %v2634_v2  ;;  %v4133_v9 = vmul.f32 %v3516_v10, %v16808_v33  ;;  %v2637_v61 = vmul.f32 %v11522_v41, %v11522_v41  ;;  %v4134_v26 = vmul.f32 %v3516_v10, %v16809_v53  ;;  %v16810_v0 = vld [vmem:[#allocation417_spill] sm:$0xff]  ;;  %v16811_v2 = vld [vmem:[#allocation51_spill] sm:$0xff] }
 0x3cb   :  { %16806 = vst [vmem:[#allocation368_spill] sm:$0xff] %v11553_v1  ;;  %v3491_v47 = vsub.f32 1.5, %v3490_v14  ;;  %v4119_v34 = vmul.f32 %v3506_v15, %v16811_v2  ;;  %v11585_v10 = vsub.f32 %v16812_v58, %v10630_v50  ;;  %v2828_v14 = vpop.xlane.xlu2 %2827  ;;  %v11598_v33 = vsub.f32 %v16814_v42, %v10630_v50  ;;  %v16815_v53 = vld [vmem:[#allocation55_spill] sm:$0xff]  ;;  %v16816_v2 = vld [vmem:[#allocation60_spill] sm:$0xff] }
 0x3cc   :  { %4640 = vst [vmem:[%s14510_s1 + $0x288] sm:$0xff] %v4128_v32  ;;  %v2638_v32 = vmul.f32 %v11526_v29, %v11526_v29  ;;  %v3201_v43 = vadd.f32 %v3200_v3, %v2635_v25  ;;  %v2624_v25 = vmul.f32 %v11553_v1, %v11553_v1  ;;  %v16813_v3 = vld [vmem:[#allocation30_spill] sm:$0xff]  ;;  %v4122_v58 = vmul.f32 %v3506_v15, %v16816_v2  ;;  %v16817_v1 = vld [vmem:[#allocation57_spill] sm:$0xff]  ;;  %v2819_v29 = vpop.xlane.xlu1 %2818 }
 0x3cd   :  { %4641 = vst [vmem:[%s14510_s1 + $0x290] sm:$0xff] %v4129_v22  ;;  %v11577_v22 = vsub.f32 %v16810_v0, %v10630_v50  ;;  %v4120_v57 = vmul.f32 %v3506_v15, %v16813_v3  ;;  %v4121_v0 = vmul.f32 %v3506_v15, %v16815_v53  ;;  %v16819_v3 = vld [vmem:[#allocation430_spill] sm:$0xff]  ;;  %v16821_v53 = vld [vmem:[#allocation68_spill] sm:$0xff]  ;;  %v16822_v2 = vld [vmem:[#allocation69_spill] sm:$0xff]  ;;  %v2626_v35 = vmul.f32 %v11585_v10, %v11585_v10 }
 0x3ce   :  { %4642 = vst [vmem:[%s14510_s1 + $0x298] sm:$0xff] %v4130_v5  ;;  %v2623_v5 = vmul.f32 %v11541_v38, %v11541_v38  ;;  %v3202_v24 = vadd.f32 %v3201_v43, %v2636_v23  ;;  %v4123_v38 = vmul.f32 %v3506_v15, %v16817_v1  ;;  %v16818_v23 = vld [vmem:[#allocation58_spill] sm:$0xff]  ;;  %v11612_v42 = vsub.f32 %v16819_v3, %v10630_v50  ;;  %v16823_v1 = vld [vmem:[#allocation432_spill] sm:$0xff]  ;;  %v16829_v3 = vld [vmem:[#allocation401_spill] sm:$0xff] }
 0x3cf   :  { %4643 = vst [vmem:[%s14510_s1 + $0x2a0] sm:$0xff] %v4131_v49  ;;  %v3492_v49 = vmul.f32 %v11499_v16, %v3491_v47  ;;  %v4124_v47 = vmul.f32 %v3506_v15, %v16818_v23  ;;  %v4125_v41 = vmul.f32 %v3506_v15, %v16821_v53  ;;  %v4126_v20 = vmul.f32 %v3506_v15, %v16822_v2 }
 0x3d0   :  { %4644 = vst [vmem:[%s14510_s1 + $0x2a8] sm:$0xff] %v4132_v46  ;;  %v3189_v46 = vadd.f32 %v2624_v25, %v2623_v5  ;;  %v3203_v43 = vadd.f32 %v3202_v24, %v2637_v61  ;;  %v11626_v61 = vsub.f32 %v16823_v1, %v10630_v50  ;;  %v16827_v25 = vld [vmem:[#allocation400_spill] sm:$0xff]  ;;  %v11659_v53 = vsub.f32 %v16829_v3, %v10617_v30 }
 0x3d1   :  { %4645 = vst [vmem:[%s14510_s1 + $0x2b0] sm:$0xff] %v4133_v9  ;;  %v3292_v9 = vmul.f32 %v2828_v14, %v7774_v40  ;;  %v3496_v15 = vsel %vm3495_vm1, %v11499_v16, %v3492_v49  ;;  %v11642_v14 = vsub.f32 %v16827_v25, %v10617_v30  ;;  %v3291_v16 = vmul.f32 %v2819_v29, %v7774_v40  ;;  %v16833_v29 = vld [vmem:[#allocation35_spill] sm:$0xff] }
 0x3d2   :  { %4646 = vst [vmem:[%s14510_s1 + $0x2b8] sm:$0xff] %v4134_v26  ;;  %v2625_v26 = vmul.f32 %v11577_v22, %v11577_v22  ;;  %v3204_v24 = vadd.f32 %v3203_v43, %v2638_v32  ;;  %v2628_v49 = vmul.f32 %v11612_v42, %v11612_v42  ;;  %v16831_v32 = vld [vmem:[#allocation403_spill] sm:$0xff]  ;;  %v2629_v1 = vmul.f32 %v11626_v61, %v11626_v61 }
 0x3d3   :  { %16820 = vst [vmem:[#allocation298_spill] sm:$0xff] %v11612_v42  ;;  %v11670_v43 = vadd.f32 1e-05, %v3291_v16 }
 0x3d4   :  { %4631 = vst [vmem:[%s14510_s1 + $0x240] sm:$0xff] %v4119_v34  ;;  %v16825_v34 = vld [vmem:[#allocation437_spill] sm:$0xff]  ;;  %v3190_v23 = vadd.f32 %v3189_v46, %v2625_v26  ;;  %3205 = vadd.xlane.f32.xlu2 %v3204_v24  ;;  %v16835_v26 = vld [vmem:[#allocation406_spill] sm:$0xff] }
 0x3d5   :  { %16824 = vst [vmem:[#allocation383_spill] sm:$0xff] %v11626_v61  ;;  %v11636_v5 = vsub.f32 %v16825_v34, %v10630_v50  ;;  %v2627_v50 = vmul.f32 %v11598_v33, %v11598_v33  ;;  %v2639_v34 = vmul.f32 %v11642_v14, %v11642_v14  ;;  %vm3533_vm3 = vweird.f32 %v11670_v43 }
 0x3d6   :  { %4632 = vst [vmem:[%s14510_s1 + $0x248] sm:$0xff] %v4120_v57  ;;  %v11647_v57 = vadd.f32 1e-05, %v3292_v9  ;;  %v3191_v46 = vadd.f32 %v3190_v23, %v2626_v35  ;;  %v16834_v9 = vld [vmem:[#allocation39_spill] sm:$0xff]  ;;  %v16837_v35 = vld [vmem:[#allocation44_spill] sm:$0xff]  ;;  %v16838_v23 = vld [vmem:[#allocation45_spill] sm:$0xff] }
 0x3d7   :  { %16826 = vst [vmem:[#allocation385_spill] sm:$0xff] %v11636_v5  ;;  %v4112_v2 = vmul.f32 %v3496_v15, %v16834_v9  ;;  %v4113_v25 = vmul.f32 %v3496_v15, %v16837_v35  ;;  %v4114_v16 = vmul.f32 %v3496_v15, %v16838_v23  ;;  %v2630_v3 = vmul.f32 %v11636_v5, %v11636_v5 }
 0x3d8   :  { %16828 = vst [vmem:[#allocation493_spill] sm:$0xff] %v11642_v14  ;;  %5100 = vrsqrt.f32 %v11647_v57  ;;  %v3192_v24 = vadd.f32 %v3191_v46, %v2627_v50  ;;  %v16841_v46 = vld [vmem:[#allocation20_spill] sm:$0xff]  ;;  %vm3543_vm2 = vweird.f32 %v11647_v57 }
 0x3d9   :  { %4633 = vst [vmem:[%s14510_s1 + $0x250] sm:$0xff] %v4121_v0  ;;  %v11663_v0 = vsub.f32 %v16831_v32, %v10617_v30  ;;  %5102 = vrsqrt.f32 %v11670_v43  ;;  %v2810_v32 = vpop.xlane.xlu0 %2809  ;;  %v4115_v9 = vmul.f32 %v3496_v15, %v16841_v46 }
 0x3da   :  { %4634 = vst [vmem:[%s14510_s1 + $0x258] sm:$0xff] %v4122_v58  ;;  %v4111_v58 = vmul.f32 %v3496_v15, %v16833_v29  ;;  %v3290_v23 = vmul.f32 %v2810_v32, %v7774_v40 }
 0x3db   :  { %16830 = vst [vmem:[#allocation494_spill] sm:$0xff] %v11659_v53  ;;  %v2641_v50 = vmul.f32 %v11663_v0, %v11663_v0 }
 0x3dc   :  { %16832 = vst [vmem:[#allocation370_spill] sm:$0xff] %v11663_v0 }
 0x3dd   :  { %4635 = vst [vmem:[%s14510_s1 + $0x260] sm:$0xff] %v4123_v38  ;;  %v11680_v38 = vsub.f32 %v16835_v26, %v10617_v30  ;;  %v16842_v26 = vld [vmem:[#allocation21_spill] sm:$0xff] }
 0x3de   :  { %4636 = vst [vmem:[%s14510_s1 + $0x268] sm:$0xff] %v4124_v47  ;;  %v2640_v47 = vmul.f32 %v11659_v53, %v11659_v53  ;;  %v4116_v35 = vmul.f32 %v3496_v15, %v16842_v26  ;;  %v16843_v53 = vld [vmem:[#allocation52_spill] sm:$0xff]  ;;  %v5101_v5 = vpop.eup %5100 }
 0x3df   :  { %16836 = vst [vmem:[#allocation373_spill] sm:$0xff] %v11680_v38  ;;  %v4117_v14 = vmul.f32 %v3496_v15, %v16843_v53  ;;  %v2642_v46 = vmul.f32 %v11680_v38, %v11680_v38  ;;  %v16846_v53 = vld [vmem:[#allocation433_spill] sm:$0xff]  ;;  %vm3544_vm4 = vweird.f32 %v5101_v5  ;;  %v16866_v38 = vld [vmem:[#allocation43_spill] sm:$0xff] }
 0x3e0   :  { %4637 = vst [vmem:[%s14510_s1 + $0x270] sm:$0xff] %v4125_v41  ;;  %v16839_v41 = vld [vmem:[#allocation410_spill] sm:$0xff]  ;;  %v3207_v26 = vadd.f32 %v2640_v47, %v2639_v34  ;;  %v3538_v34 = vmul.f32 %v5101_v5, %v11647_v57  ;;  %v11739_v47 = vpop.eup %5102  ;;  %vm3545_vm5 = vmor %vm3543_vm2, %vm3544_vm4 }
 0x3e1   :  { %4638 = vst [vmem:[%s14510_s1 + $0x278] sm:$0xff] %v4126_v20  ;;  %v11699_v29 = vsub.f32 %v16839_v41, %v10617_v30  ;;  %v3193_v20 = vadd.f32 %v3192_v24, %v2628_v49  ;;  %v16844_v41 = vld [vmem:[#allocation413_spill] sm:$0xff]  ;;  %v11726_v24 = vsub.f32 %v16846_v53, %v10910_v21  ;;  %vm3534_vm6 = vweird.f32 %v11739_v47  ;;  %v16867_v57 = vld [vmem:[#allocation70_spill] sm:$0xff] }
 0x3e2   :  { %4623 = vst [vmem:[%s14510_s1 + $0x200] sm:$0xff] %v4111_v58  ;;  %v11715_v0 = vsub.f32 %v16844_v41, %v10617_v30  ;;  %v11722_v58 = vadd.f32 1e-05, %v3290_v23  ;;  %v16850_v41 = vld [vmem:[#allocation28_spill] sm:$0xff]  ;;  %vm3535_vm8 = vmor %vm3533_vm3, %vm3534_vm6 }
 0x3e3   :  { %16840 = vst [vmem:[#allocation495_spill] sm:$0xff] %v11699_v29  ;;  %v3194_v49 = vadd.f32 %v3193_v20, %v2629_v1  ;;  %v4118_v61 = vmul.f32 %v3496_v15, %v16850_v41  ;;  %v2643_v1 = vmul.f32 %v11699_v29, %v11699_v29  ;;  %v16851_v15 = vld [vmem:[#allocation418_spill] sm:$0xff] }
 0x3e4   :  { %4624 = vst [vmem:[%s14510_s1 + $0x208] sm:$0xff] %v4112_v2  ;;  %v16848_v2 = vld [vmem:[#allocation434_spill] sm:$0xff]  ;;  %5104 = vrsqrt.f32 %v11722_v58  ;;  %v11747_v23 = vsub.f32 %v16851_v15, %v10617_v30  ;;  %vm3523_vm7 = vweird.f32 %v11722_v58 }
 0x3e5   :  { %16845 = vst [vmem:[#allocation387_spill] sm:$0xff] %v11715_v0  ;;  %v11730_v32 = vsub.f32 %v16848_v2, %v10910_v21  ;;  %v3195_v20 = vadd.f32 %v3194_v49, %v2630_v3  ;;  %v2644_v3 = vmul.f32 %v11715_v0, %v11715_v0 }
 0x3e6   :  { %4625 = vst [vmem:[%s14510_s1 + $0x210] sm:$0xff] %v4113_v25  ;;  %v3208_v25 = vadd.f32 %v3207_v26, %v2641_v50  ;;  %v3539_v50 = vmul.f32 %v5101_v5, %v3538_v34  ;;  %v3528_v26 = vmul.f32 %v11739_v47, %v11670_v43  ;;  %v2645_v34 = vmul.f32 %v11747_v23, %v11747_v23  ;;  %v16876_v43 = vld [vmem:[#allocation56_spill] sm:$0xff] }
 0x3e7   :  { %16847 = vst [vmem:[#allocation293_spill] sm:$0xff] %v11726_v24  ;;  %3196 = vadd.xlane.f32.xlu1 %v3195_v20  ;;  %v2656_v2 = vmul.f32 %v11730_v32, %v11730_v32  ;;  %v16857_v20 = vld [vmem:[#allocation439_spill] sm:$0xff] }
 0x3e8   :  { %16849 = vst [vmem:[#allocation390_spill] sm:$0xff] %v11730_v32  ;;  %v11783_v15 = vsub.f32 %v16857_v20, %v10910_v21 }
 0x3e9   :  { %4626 = vst [vmem:[%s14510_s1 + $0x218] sm:$0xff] %v4114_v16  ;;  %v16853_v16 = vld [vmem:[#allocation421_spill] sm:$0xff] }
 0x3ea   :  { %4627 = vst [vmem:[%s14510_s1 + $0x220] sm:$0xff] %v4115_v9  ;;  %v11751_v53 = vsub.f32 %v16853_v16, %v10617_v30  ;;  %v3209_v9 = vadd.f32 %v3208_v25, %v2642_v46  ;;  %v16855_v30 = vld [vmem:[#allocation436_spill] sm:$0xff]  ;;  %v3540_v46 = vmul.f32 0.5, %v3539_v50 }
 0x3eb   :  { %16852 = vst [vmem:[#allocation395_spill] sm:$0xff] %v11747_v23  ;;  %v11765_v49 = vsub.f32 %v16855_v30, %v10910_v21  ;;  %v11785_v30 = vpop.eup %5104 }
 0x3ec   :  { %16854 = vst [vmem:[#allocation398_spill] sm:$0xff] %v11751_v53  ;;  %v3210_v41 = vadd.f32 %v3209_v9, %v2643_v1  ;;  %v2646_v25 = vmul.f32 %v11751_v53, %v11751_v53  ;;  %v3541_v16 = vsub.f32 1.5, %v3540_v46  ;;  %v16859_v1 = vld [vmem:[#allocation444_spill] sm:$0xff]  ;;  %v16860_v9 = vld [vmem:[#allocation447_spill] sm:$0xff]  ;;  %v3518_v46 = vmul.f32 %v11785_v30, %v11722_v58 }
 0x3ed   :  { %4628 = vst [vmem:[%s14510_s1 + $0x228] sm:$0xff] %v4116_v35  ;;  %v2655_v35 = vmul.f32 %v11726_v24, %v11726_v24  ;;  %v11793_v23 = vsub.f32 %v16860_v9, %v10910_v21  ;;  %v2657_v53 = vmul.f32 %v11765_v49, %v11765_v49  ;;  %v16868_v24 = vld [vmem:[#allocation47_spill] sm:$0xff]  ;;  %vm3524_vm9 = vweird.f32 %v11785_v30 }
 0x3ee   :  { %4629 = vst [vmem:[%s14510_s1 + $0x230] sm:$0xff] %v4117_v14  ;;  %v3529_v14 = vmul.f32 %v11739_v47, %v3528_v26  ;;  %v3211_v50 = vadd.f32 %v3210_v41, %v2644_v3  ;;  %v11789_v26 = vsub.f32 %v16859_v1, %v10910_v21  ;;  %v3542_v20 = vmul.f32 %v5101_v5, %v3541_v16  ;;  %v16862_v3 = vld [vmem:[#allocation451_spill] sm:$0xff]  ;;  %v16864_v41 = vld [vmem:[#allocation454_spill] sm:$0xff]  ;;  %vm3525_vm10 = vmor %vm3523_vm7, %vm3524_vm9 }
 0x3ef   :  { %16856 = vst [vmem:[#allocation402_spill] sm:$0xff] %v11765_v49  ;;  %v3225_v0 = vadd.f32 %v2656_v2, %v2655_v35  ;;  %v11808_v1 = vsub.f32 %v16864_v41, %v10910_v21  ;;  %v2658_v35 = vmul.f32 %v11783_v15, %v11783_v15  ;;  %v3519_v9 = vmul.f32 %v11785_v30, %v3518_v46  ;;  %v16869_v41 = vld [vmem:[#allocation53_spill] sm:$0xff] }
 0x3f0   :  { %4630 = vst [vmem:[%s14510_s1 + $0x238] sm:$0xff] %v4118_v61  ;;  %v3530_v61 = vmul.f32 0.5, %v3529_v14  ;;  %v11801_v14 = vsub.f32 %v16862_v3, %v10910_v21  ;;  %v3546_v16 = vsel %vm3545_vm5, %v5101_v5, %v3542_v20  ;;  %v3212_v3 = vadd.f32 %v3211_v50, %v2645_v34  ;;  %v16873_v20 = vld [vmem:[#allocation441_spill] sm:$0xff] }
 0x3f1   :  { %16858 = vst [vmem:[#allocation404_spill] sm:$0xff] %v11783_v15  ;;  %v3226_v2 = vadd.f32 %v3225_v0, %v2657_v53  ;;  %v4151_v49 = vmul.f32 %v3546_v16, %v16866_v38  ;;  %v4152_v32 = vmul.f32 %v3546_v16, %v16867_v57  ;;  %v4153_v42 = vmul.f32 %v3546_v16, %v16868_v24  ;;  %v16872_v53 = vld [vmem:[#allocation72_spill] sm:$0xff]  ;;  %v16875_v57 = vld [vmem:[#allocation73_spill] sm:$0xff] }
 0x3f2   :  { %16861 = vst [vmem:[#allocation316_spill] sm:$0xff] %v11793_v23  ;;  %v3531_v29 = vsub.f32 1.5, %v3530_v61  ;;  %v2659_v21 = vmul.f32 %v11789_v26, %v11789_v26  ;;  %v4154_v15 = vmul.f32 %v3546_v16, %v16869_v41  ;;  %v2660_v5 = vmul.f32 %v11793_v23, %v11793_v23 }
 0x3f3   :  { %16863 = vst [vmem:[#allocation391_spill] sm:$0xff] %v11801_v14  ;;  %v2661_v0 = vmul.f32 %v11801_v14, %v11801_v14  ;;  %v4155_v34 = vmul.f32 %v3546_v16, %v16872_v53  ;;  %v3520_v24 = vmul.f32 0.5, %v3519_v9  ;;  %v3227_v50 = vadd.f32 %v3226_v2, %v2658_v35  ;;  %v16877_v35 = vld [vmem:[#allocation442_spill] sm:$0xff] }
 0x3f4   :  { %16865 = vst [vmem:[#allocation392_spill] sm:$0xff] %v11808_v1  ;;  %v3532_v61 = vmul.f32 %v11739_v47, %v3531_v29  ;;  %v16870_v29 = vld [vmem:[#allocation440_spill] sm:$0xff]  ;;  %v11839_v46 = vsub.f32 %v16873_v20, %v10916_v37  ;;  %v4156_v41 = vmul.f32 %v3546_v16, %v16875_v57  ;;  %v2662_v53 = vmul.f32 %v11808_v1, %v11808_v1  ;;  %v2855_v57 = vpop.xlane.xlu2 %2854 }
 0x3f5   :  { %v11827_v38 = vsub.f32 %v16870_v29, %v10916_v37  ;;  %4663 = vst [vmem:[%s14510_s1 + $0x340] sm:$0xff] %v4151_v49  ;;  %v3213_v49 = vadd.f32 %v3212_v3, %v2646_v25  ;;  %v4157_v14 = vmul.f32 %v3546_v16, %v16876_v43  ;;  %v11855_v2 = vsub.f32 %v16877_v35, %v10916_v37  ;;  %v16881_v43 = vld [vmem:[#allocation75_spill] sm:$0xff] }
 0x3f6   :  { %16874 = vst [vmem:[#allocation9_spill] sm:$0xff] %v11839_v46  ;;  %v3536_v29 = vsel %vm3535_vm8, %v11739_v47, %v3532_v61  ;;  %v16879_v47 = vld [vmem:[#allocation85_spill] sm:$0xff]  ;;  %v3521_v61 = vsub.f32 1.5, %v3520_v24  ;;  %v3228_v3 = vadd.f32 %v3227_v50, %v2659_v21  ;;  %v2648_v21 = vmul.f32 %v11839_v46, %v11839_v46  ;;  %v16884_v24 = vld [vmem:[#allocation54_spill] sm:$0xff] }
 0x3f7   :  { %16871 = vst [vmem:[#allocation13_spill] sm:$0xff] %v11827_v38  ;;  %v4158_v25 = vmul.f32 %v3546_v16, %v16879_v47  ;;  %3214 = vadd.xlane.f32.xlu0 %v3213_v49  ;;  %v4143_v35 = vmul.f32 %v3536_v29, %v16881_v43  ;;  %v16882_v16 = vld [vmem:[#allocation455_spill] sm:$0xff]  ;;  %v4144_v50 = vmul.f32 %v3536_v29, %v16884_v24  ;;  %v16886_v43 = vld [vmem:[#allocation80_spill] sm:$0xff] }
 0x3f8   :  { %4664 = vst [vmem:[%s14510_s1 + $0x348] sm:$0xff] %v4152_v32  ;;  %v16878_v32 = vld [vmem:[#allocation445_spill] sm:$0xff]  ;;  %v16885_v49 = vld [vmem:[#allocation79_spill] sm:$0xff]  ;;  %v3522_v47 = vmul.f32 %v11785_v30, %v3521_v61  ;;  %v3295_v23 = vmul.f32 %v2855_v57, %v7774_v40  ;;  %v2649_v58 = vmul.f32 %v11855_v2, %v11855_v2 }
 0x3f9   :  { %4665 = vst [vmem:[%s14510_s1 + $0x350] sm:$0xff] %v4153_v42  ;;  %v11859_v9 = vsub.f32 %v16878_v32, %v10916_v37  ;;  %v16880_v42 = vld [vmem:[#allocation448_spill] sm:$0xff]  ;;  %v11875_v32 = vsub.f32 %v16882_v16, %v10916_v37  ;;  %v4146_v16 = vmul.f32 %v3536_v29, %v16886_v43  ;;  %v16892_v57 = vld [vmem:[#allocation93_spill] sm:$0xff] }
 0x3fa   :  { %4666 = vst [vmem:[%s14510_s1 + $0x358] sm:$0xff] %v4154_v15  ;;  %v11867_v20 = vsub.f32 %v16880_v42, %v10916_v37  ;;  %v2647_v15 = vmul.f32 %v11827_v38, %v11827_v38  ;;  %v3229_v42 = vadd.f32 %v3228_v3, %v2660_v5  ;;  %v16887_v38 = vld [vmem:[#allocation81_spill] sm:$0xff]  ;;  %v2846_v3 = vpop.xlane.xlu1 %2845 }
 0x3fb   :  { %4667 = vst [vmem:[%s14510_s1 + $0x360] sm:$0xff] %v4155_v34  ;;  %v4145_v34 = vmul.f32 %v3536_v29, %v16885_v49  ;;  %v4147_v1 = vmul.f32 %v3536_v29, %v16887_v38  ;;  %v16889_v49 = vld [vmem:[#allocation88_spill] sm:$0xff]  ;;  %v16890_v5 = vld [vmem:[#allocation457_spill] sm:$0xff] }
 0x3fc   :  { %16883 = vst [vmem:[#allocation14_spill] sm:$0xff] %v11875_v32  ;;  %v3216_v46 = vadd.f32 %v2648_v21, %v2647_v15  ;;  %v4149_v61 = vmul.f32 %v3536_v29, %v16889_v49  ;;  %v11904_v38 = vsub.f32 %v16890_v5, %v10916_v37  ;;  %v4150_v15 = vmul.f32 %v3536_v29, %v16892_v57  ;;  %v16893_v21 = vld [vmem:[#allocation462_spill] sm:$0xff] }
 0x3fd   :  { %4668 = vst [vmem:[%s14510_s1 + $0x368] sm:$0xff] %v4156_v41  ;;  %v16888_v41 = vld [vmem:[#allocation82_spill] sm:$0xff]  ;;  %v11913_v43 = vsub.f32 %v16893_v21, %v10916_v37  ;;  %v16897_v37 = vld [vmem:[#allocation425_spill] sm:$0xff]  ;;  %v3294_v49 = vmul.f32 %v2846_v3, %v7774_v40  ;;  %v2652_v21 = vmul.f32 %v11875_v32, %v11875_v32  ;;  %v16904_v3 = vld [vmem:[#allocation59_spill] sm:$0xff] }
 0x3fe   :  { %4669 = vst [vmem:[%s14510_s1 + $0x370] sm:$0xff] %v4157_v14  ;;  %v4148_v24 = vmul.f32 %v3536_v29, %v16888_v41  ;;  %v3230_v14 = vadd.f32 %v3229_v42, %v2661_v0  ;;  %v2650_v0 = vmul.f32 %v11859_v9, %v11859_v9  ;;  %v2651_v29 = vmul.f32 %v11867_v20, %v11867_v20  ;;  %v16899_v5 = vld [vmem:[#allocation62_spill] sm:$0xff] }
 0x3ff   :  { %4670 = vst [vmem:[%s14510_s1 + $0x378] sm:$0xff] %v4158_v25  ;;  %v3526_v25 = vsel %vm3525_vm10, %v11785_v30, %v3522_v47  ;;  %v11930_v47 = vsub.f32 %v16897_v37, %v10857_v39  ;;  %v11935_v41 = vadd.f32 1e-05, %v3295_v23  ;;  %v16905_v37 = vld [vmem:[#allocation435_spill] sm:$0xff] }
 0x400   :  { %16891 = vst [vmem:[#allocation26_spill] sm:$0xff] %v11904_v38  ;;  %v3231_v42 = vadd.f32 %v3230_v14, %v2662_v53  ;;  %v4135_v57 = vmul.f32 %v3526_v25, %v16899_v5  ;;  %v11966_v5 = vsub.f32 %v16905_v37, %v10857_v39 }
 0x401   :  { %4655 = vst [vmem:[%s14510_s1 + $0x300] sm:$0xff] %v4143_v35  ;;  %v16895_v35 = vld [vmem:[#allocation424_spill] sm:$0xff]  ;;  %5106 = vrsqrt.f32 %v11935_v41  ;;  %vm3573_vm11 = vweird.f32 %v11935_v41 }
 0x402   :  { %16894 = vst [vmem:[#allocation393_spill] sm:$0xff] %v11913_v43  ;;  %v11926_v30 = vsub.f32 %v16895_v35, %v10857_v39  ;;  %v2653_v35 = vmul.f32 %v11904_v38, %v11904_v38  ;;  %3232 = vadd.xlane.f32.xlu2 %v3231_v42  ;;  %v16907_v42 = vld [vmem:[#allocation63_spill] sm:$0xff]  ;;  %v16913_v38 = vld [vmem:[#allocation76_spill] sm:$0xff] }
 0x403   :  { %4656 = vst [vmem:[%s14510_s1 + $0x308] sm:$0xff] %v4144_v50  ;;  %v3217_v50 = vadd.f32 %v3216_v46, %v2649_v58  ;;  %v11954_v46 = vadd.f32 1e-05, %v3294_v49  ;;  %v4136_v58 = vmul.f32 %v3526_v25, %v16904_v3  ;;  %v16909_v3 = vld [vmem:[#allocation40_spill] sm:$0xff] }
 0x404   :  { %16896 = vst [vmem:[#allocation27_spill] sm:$0xff] %v11926_v30  ;;  %v4139_v37 = vmul.f32 %v3526_v25, %v16909_v3  ;;  %v16912_v3 = vld [vmem:[#allocation41_spill] sm:$0xff] }
 0x405   :  { %16898 = vst [vmem:[#allocation16_spill] sm:$0xff] %v11930_v47  ;;  %v3218_v23 = vadd.f32 %v3217_v50, %v2650_v0  ;;  %v2664_v0 = vmul.f32 %v11930_v47, %v11930_v47  ;;  %v4137_v50 = vmul.f32 %v3526_v25, %v16907_v42  ;;  %5108 = vrsqrt.f32 %v11954_v46  ;;  %v16910_v42 = vld [vmem:[#allocation438_spill] sm:$0xff] }
 0x406   :  { %4657 = vst [vmem:[%s14510_s1 + $0x310] sm:$0xff] %v4145_v34  ;;  %v16900_v34 = vld [vmem:[#allocation427_spill] sm:$0xff]  ;;  %v2654_v47 = vmul.f32 %v11913_v43, %v11913_v43  ;;  %v4141_v43 = vmul.f32 %v3526_v25, %v16913_v38  ;;  %vm3563_vm12 = vweird.f32 %v11954_v46 }
 0x407   :  { %4658 = vst [vmem:[%s14510_s1 + $0x318] sm:$0xff] %v4146_v16  ;;  %v11948_v53 = vsub.f32 %v16900_v34, %v10857_v39  ;;  %v16902_v16 = vld [vmem:[#allocation431_spill] sm:$0xff]  ;;  %v3219_v49 = vadd.f32 %v3218_v23, %v2651_v29  ;;  %v16908_v34 = vld [vmem:[#allocation65_spill] sm:$0xff]  ;;  %v11988_v29 = vsub.f32 %v16910_v42, %v10857_v39  ;;  %v2667_v42 = vmul.f32 %v11966_v5, %v11966_v5 }
 0x408   :  { %4659 = vst [vmem:[%s14510_s1 + $0x320] sm:$0xff] %v4147_v1  ;;  %v11958_v14 = vsub.f32 %v16902_v16, %v10857_v39  ;;  %v2663_v1 = vmul.f32 %v11926_v30, %v11926_v30  ;;  %v4138_v16 = vmul.f32 %v3526_v25, %v16908_v34  ;;  %v4140_v30 = vmul.f32 %v3526_v25, %v16912_v3 }
 0x409   :  { %16901 = vst [vmem:[#allocation396_spill] sm:$0xff] %v11948_v53  ;;  %v3220_v23 = vadd.f32 %v3219_v49, %v2652_v21  ;;  %v5107_v49 = vpop.eup %5106 }
 0x40a   :  { %16903 = vst [vmem:[#allocation399_spill] sm:$0xff] %v11958_v14  ;;  %v3234_v34 = vadd.f32 %v2664_v0, %v2663_v1  ;;  %vm3574_vm13 = vweird.f32 %v5107_v49 }
 0x40b   :  { %4660 = vst [vmem:[%s14510_s1 + $0x328] sm:$0xff] %v4148_v24  ;;  %v2665_v24 = vmul.f32 %v11948_v53, %v11948_v53  ;;  %v3221_v1 = vadd.f32 %v3220_v23, %v2653_v35  ;;  %v16921_v35 = vld [vmem:[#allocation446_spill] sm:$0xff]  ;;  %vm3575_vm14 = vmor %vm3573_vm11, %vm3574_vm13 }
 0x40c   :  { %16906 = vst [vmem:[#allocation33_spill] sm:$0xff] %v11966_v5  ;;  %v16919_v5 = vld [vmem:[#allocation443_spill] sm:$0xff] }
 0x40d   :  { %4661 = vst [vmem:[%s14510_s1 + $0x330] sm:$0xff] %v4149_v61  ;;  %v2837_v61 = vpop.xlane.xlu0 %2836  ;;  %v3235_v38 = vadd.f32 %v3234_v34, %v2665_v24  ;;  %v12023_v32 = vsub.f32 %v16919_v5, %v10857_v39  ;;  %v2668_v24 = vmul.f32 %v11988_v29, %v11988_v29  ;;  %v12039_v5 = vmul.f32 %v7774_v40, %v10678_v31 }
 0x40e   :  { %4662 = vst [vmem:[%s14510_s1 + $0x338] sm:$0xff] %v4150_v15  ;;  %v3293_v53 = vmul.f32 %v2837_v61, %v7774_v40  ;;  %v2666_v15 = vmul.f32 %v11958_v14, %v11958_v14  ;;  %v16916_v61 = vld [vmem:[#allocation459_spill] sm:$0xff]  ;;  %v12059_v34 = vmul.f32 %v7774_v40, %v10747_v55 }
 0x40f   :  { %16911 = vst [vmem:[#allocation405_spill] sm:$0xff] %v11988_v29  ;;  %v12014_v3 = vsub.f32 %v16916_v61, %v11470_v13  ;;  %v16936_v29 = vld [vmem:[#allocation94_spill] sm:$0xff] }
 0x410   :  { %4647 = vst [vmem:[%s14510_s1 + $0x2c0] sm:$0xff] %v4135_v57  ;;  %v16914_v57 = vld [vmem:[#allocation458_spill] sm:$0xff]  ;;  %v12010_v0 = vadd.f32 1e-05, %v3293_v53  ;;  %v12027_v53 = vsub.f32 %v16921_v35, %v10857_v39 }
 0x411   :  { %4648 = vst [vmem:[%s14510_s1 + $0x2c8] sm:$0xff] %v4136_v58  ;;  %v12005_v21 = vsub.f32 %v16914_v57, %v11470_v13  ;;  %v16918_v58 = vld [vmem:[#allocation48_spill] sm:$0xff]  ;;  %v3568_v57 = vmul.f32 %v5107_v49, %v11935_v41 }
 0x412   :  { %4649 = vst [vmem:[%s14510_s1 + $0x2d0] sm:$0xff] %v4137_v50  ;;  %v4142_v14 = vmul.f32 %v3526_v25, %v16918_v58  ;;  %v12029_v50 = vpop.eup %5108  ;;  %v3222_v25 = vadd.f32 %v3221_v1, %v2654_v47  ;;  %5110 = vrsqrt.f32 %v12010_v0  ;;  %v16923_v47 = vld [vmem:[#allocation461_spill] sm:$0xff]  ;;  %vm3553_vm0 = vweird.f32 %v12010_v0 }
 0x413   :  { %16915 = vst [vmem:[#allocation407_spill] sm:$0xff] %v12005_v21  ;;  %v3569_v39 = vmul.f32 %v5107_v49, %v3568_v57  ;;  %v3558_v23 = vmul.f32 %v12029_v50, %v11954_v46  ;;  %v2679_v31 = vmul.f32 %v12005_v21, %v12005_v21  ;;  %vm3564_vm15 = vweird.f32 %v12029_v50 }
 0x414   :  { %16917 = vst [vmem:[#allocation32_spill] sm:$0xff] %v12014_v3  ;;  %3223 = vadd.xlane.f32.xlu1 %v3222_v25  ;;  %v16925_v25 = vld [vmem:[#allocation464_spill] sm:$0xff]  ;;  %vm3565_vm1 = vmor %vm3563_vm12, %vm3564_vm15 }
 0x415   :  { %4650 = vst [vmem:[%s14510_s1 + $0x2d8] sm:$0xff] %v4138_v16  ;;  %v3236_v16 = vadd.f32 %v3235_v38, %v2666_v15  ;;  %v3570_v1 = vmul.f32 0.5, %v3569_v39  ;;  %v2670_v38 = vmul.f32 %v12027_v53, %v12027_v53  ;;  %v16927_v39 = vld [vmem:[#allocation469_spill] sm:$0xff] }
 0x416   :  { %16920 = vst [vmem:[#allocation412_spill] sm:$0xff] %v12023_v32 }
 0x417   :  { %16922 = vst [vmem:[#allocation17_spill] sm:$0xff] %v12027_v53  ;;  %v3237_v15 = vadd.f32 %v3236_v16, %v2667_v42  ;;  %v2669_v42 = vmul.f32 %v12023_v32, %v12023_v32  ;;  %v3571_v55 = vsub.f32 1.5, %v3570_v1  ;;  %v12075_v16 = vsub.f32 %v16925_v25, %v11470_v13  ;;  %v16935_v32 = vld [vmem:[#allocation67_spill] sm:$0xff] }
 0x418   :  { %4651 = vst [vmem:[%s14510_s1 + $0x2e0] sm:$0xff] %v4139_v37  ;;  %v12048_v37 = vsub.f32 %v16923_v47, %v11470_v13  ;;  %v12071_v35 = vpop.eup %5110 }
 0x419   :  { %4652 = vst [vmem:[%s14510_s1 + $0x2e8] sm:$0xff] %v4140_v30  ;;  %v2680_v30 = vmul.f32 %v12014_v3, %v12014_v3  ;;  %v3238_v61 = vadd.f32 %v3237_v15, %v2668_v24  ;;  %v3572_v53 = vmul.f32 %v5107_v49, %v3571_v55  ;;  %v3548_v15 = vmul.f32 %v12071_v35, %v12010_v0  ;;  %v16937_v3 = vld [vmem:[#allocation71_spill] sm:$0xff] }
 0x41a   :  { %16924 = vst [vmem:[#allocation31_spill] sm:$0xff] %v12048_v37  ;;  %v2681_v47 = vmul.f32 %v12048_v37, %v12048_v37  ;;  %vm3554_vm2 = vweird.f32 %v12071_v35 }
 0x41b   :  { %4653 = vst [vmem:[%s14510_s1 + $0x2f0] sm:$0xff] %v4141_v43  ;;  %v3559_v43 = vmul.f32 %v12029_v50, %v3558_v23  ;;  %v3252_v57 = vadd.f32 %v2680_v30, %v2679_v31  ;;  %v12079_v23 = vsub.f32 %v16927_v39, %v11470_v13  ;;  %v16929_v31 = vld [vmem:[#allocation473_spill] sm:$0xff]  ;;  %v3576_v55 = vsel %vm3575_vm14, %v5107_v49, %v3572_v53  ;;  %v16933_v39 = vld [vmem:[#allocation479_spill] sm:$0xff]  ;;  %vm3555_vm3 = vmor %vm3553_vm0, %vm3554_vm2 }
 0x41c   :  { %4654 = vst [vmem:[%s14510_s1 + $0x2f8] sm:$0xff] %v4142_v14  ;;  %v3239_v14 = vadd.f32 %v3238_v61, %v2669_v42  ;;  %v12087_v30 = vsub.f32 %v16929_v31, %v11470_v13  ;;  %v3549_v25 = vmul.f32 %v12071_v35, %v3548_v15  ;;  %v12100_v31 = vsub.f32 %v16933_v39, %v11470_v13  ;;  %v16938_v53 = vld [vmem:[#allocation77_spill] sm:$0xff]  ;;  %v16944_v39 = vld [vmem:[#allocation98_spill] sm:$0xff] }
 0x41d   :  { %v3560_v58 = vmul.f32 0.5, %v3559_v43  ;;  %16926 = vst [vmem:[#allocation37_spill] sm:$0xff] %v12075_v16  ;;  %v16931_v43 = vld [vmem:[#allocation477_spill] sm:$0xff]  ;;  %v3253_v61 = vadd.f32 %v3252_v57, %v2681_v47  ;;  %v4175_v41 = vmul.f32 %v3576_v55, %v16935_v32  ;;  %v4176_v37 = vmul.f32 %v3576_v55, %v16936_v29  ;;  %v16941_v29 = vld [vmem:[#allocation96_spill] sm:$0xff] }
 0x41e   :  { %16928 = vst [vmem:[#allocation470_spill] sm:$0xff] %v12079_v23  ;;  %v3240_v1 = vadd.f32 %v3239_v14, %v2670_v38  ;;  %v12094_v42 = vsub.f32 %v16931_v43, %v11470_v13  ;;  %v4177_v38 = vmul.f32 %v3576_v55, %v16937_v3  ;;  %v2682_v49 = vmul.f32 %v12075_v16, %v12075_v16  ;;  %v16939_v32 = vld [vmem:[#allocation465_spill] sm:$0xff] }
 0x41f   :  { %v3561_v24 = vsub.f32 1.5, %v3560_v58  ;;  %16930 = vst [vmem:[#allocation34_spill] sm:$0xff] %v12087_v30  ;;  %v4178_v57 = vmul.f32 %v3576_v55, %v16938_v53  ;;  %v2683_v14 = vmul.f32 %v12079_v23, %v12079_v23  ;;  %v2684_v13 = vmul.f32 %v12087_v30, %v12087_v30 }
 0x420   :  { %16932 = vst [vmem:[#allocation38_spill] sm:$0xff] %v12094_v42  ;;  %3241 = vadd.xlane.f32.xlu0 %v3240_v1  ;;  %v12115_v47 = vsub.f32 %v16939_v32, %v12039_v5  ;;  %v4179_v3 = vmul.f32 %v3576_v55, %v16941_v29  ;;  %v3254_v15 = vadd.f32 %v3253_v61, %v2682_v49  ;;  %v16942_v1 = vld [vmem:[#allocation466_spill] sm:$0xff]  ;;  %v16946_v49 = vld [vmem:[#allocation467_spill] sm:$0xff] }
 0x421   :  { %v3562_v58 = vmul.f32 %v12029_v50, %v3561_v24  ;;  %16934 = vst [vmem:[#allocation42_spill] sm:$0xff] %v12100_v31  ;;  %v3550_v24 = vmul.f32 0.5, %v3549_v25  ;;  %v12127_v43 = vsub.f32 %v16942_v1, %v12039_v5  ;;  %v4180_v53 = vmul.f32 %v3576_v55, %v16944_v39  ;;  %v16945_v25 = vld [vmem:[#allocation84_spill] sm:$0xff] }
 0x422   :  { %16940 = vst [vmem:[#allocation453_spill] sm:$0xff] %v12115_v47  ;;  %v2686_v46 = vmul.f32 %v12100_v31, %v12100_v31  ;;  %v4181_v61 = vmul.f32 %v3576_v55, %v16945_v25  ;;  %v12145_v29 = vsub.f32 %v16946_v49, %v12039_v5  ;;  %v3255_v25 = vadd.f32 %v3254_v15, %v2683_v14  ;;  %v2882_v31 = vpop.xlane.xlu2 %2881  ;;  %v16949_v49 = vld [vmem:[#allocation99_spill] sm:$0xff]  ;;  %v16953_v14 = vld [vmem:[#allocation78_spill] sm:$0xff] }
 0x423   :  { %4687 = vst [vmem:[%s14510_s1 + $0x400] sm:$0xff] %v4175_v41  ;;  %v3566_v32 = vsel %vm3565_vm1, %v12029_v50, %v3562_v58  ;;  %v2685_v41 = vmul.f32 %v12094_v42, %v12094_v42  ;;  %v16947_v50 = vld [vmem:[#allocation471_spill] sm:$0xff]  ;;  %v16948_v58 = vld [vmem:[#allocation109_spill] sm:$0xff]  ;;  %v3551_v39 = vsub.f32 1.5, %v3550_v24 }
 0x424   :  { %16943 = vst [vmem:[#allocation266_spill] sm:$0xff] %v12127_v43  ;;  %v4182_v1 = vmul.f32 %v3576_v55, %v16948_v58  ;;  %v4167_v42 = vmul.f32 %v3566_v32, %v16949_v49  ;;  %v16951_v55 = vld [vmem:[#allocation480_spill] sm:$0xff]  ;;  %v4168_v24 = vmul.f32 %v3566_v32, %v16953_v14  ;;  %v3256_v15 = vadd.f32 %v3255_v25, %v2684_v13  ;;  %v16954_v49 = vld [vmem:[#allocation482_spill] sm:$0xff]  ;;  %v16959_v25 = vld [vmem:[#allocation105_spill] sm:$0xff] }
 0x425   :  { %4688 = vst [vmem:[%s14510_s1 + $0x408] sm:$0xff] %v4176_v37  ;;  %v12149_v37 = vsub.f32 %v16947_v50, %v12039_v5  ;;  %v16950_v50 = vld [vmem:[#allocation474_spill] sm:$0xff]  ;;  %v12167_v58 = vsub.f32 %v16951_v55, %v12039_v5  ;;  %v16956_v55 = vld [vmem:[#allocation103_spill] sm:$0xff]  ;;  %v16958_v13 = vld [vmem:[#allocation104_spill] sm:$0xff]  ;;  %v4172_v14 = vmul.f32 %v3566_v32, %v16959_v25 }
 0x426   :  { %4689 = vst [vmem:[%s14510_s1 + $0x410] sm:$0xff] %v4177_v38  ;;  %v2671_v38 = vmul.f32 %v12115_v47, %v12115_v47  ;;  %v12163_v30 = vsub.f32 %v16950_v50, %v12039_v5  ;;  %v12178_v50 = vsub.f32 %v16954_v49, %v12039_v5  ;;  %v4169_v47 = vmul.f32 %v3566_v32, %v16956_v55  ;;  %v16960_v49 = vld [vmem:[#allocation116_spill] sm:$0xff] }
 0x427   :  { %4690 = vst [vmem:[%s14510_s1 + $0x418] sm:$0xff] %v4178_v57  ;;  %v2672_v57 = vmul.f32 %v12127_v43, %v12127_v43  ;;  %v16957_v43 = vld [vmem:[#allocation106_spill] sm:$0xff]  ;;  %v4173_v21 = vmul.f32 %v3566_v32, %v16960_v49  ;;  %v2674_v0 = vmul.f32 %v12149_v37, %v12149_v37 }
 0x428   :  { %4691 = vst [vmem:[%s14510_s1 + $0x420] sm:$0xff] %v4179_v3  ;;  %v3552_v3 = vmul.f32 %v12071_v35, %v3551_v39  ;;  %v4170_v23 = vmul.f32 %v3566_v32, %v16957_v43  ;;  %v4171_v39 = vmul.f32 %v3566_v32, %v16958_v13  ;;  %v2873_v43 = vpop.xlane.xlu1 %2872  ;;  %v2673_v13 = vmul.f32 %v12145_v29, %v12145_v29 }
 0x429   :  { %16952 = vst [vmem:[#allocation376_spill] sm:$0xff] %v12167_v58  ;;  %v3243_v16 = vadd.f32 %v2672_v57, %v2671_v38  ;;  %v16961_v38 = vld [vmem:[#allocation117_spill] sm:$0xff]  ;;  %v3297_v49 = vmul.f32 %v2873_v43, %v7774_v40 }
 0x42a   :  { %4692 = vst [vmem:[%s14510_s1 + $0x428] sm:$0xff] %v4180_v53  ;;  %v3298_v53 = vmul.f32 %v2882_v31, %v7774_v40  ;;  %v4174_v57 = vmul.f32 %v3566_v32, %v16961_v38  ;;  %v3556_v31 = vsel %vm3555_vm3, %v12071_v35, %v3552_v3  ;;  %v16964_v32 = vld [vmem:[#allocation449_spill] sm:$0xff]  ;;  %v16966_v35 = vld [vmem:[#allocation450_spill] sm:$0xff] }
 0x42b   :  { %16955 = vst [vmem:[#allocation377_spill] sm:$0xff] %v12178_v50  ;;  %v16970_v38 = vld [vmem:[#allocation86_spill] sm:$0xff] }
 0x42c   :  { %4693 = vst [vmem:[%s14510_s1 + $0x430] sm:$0xff] %v4181_v61  ;;  %v3257_v61 = vadd.f32 %v3256_v15, %v2685_v41  ;;  %v12214_v41 = vsub.f32 %v16964_v32, %v11193_v44  ;;  %v3244_v15 = vadd.f32 %v3243_v16, %v2673_v13  ;;  %v12227_v25 = vadd.f32 1e-05, %v3298_v53  ;;  %v16974_v13 = vld [vmem:[#allocation460_spill] sm:$0xff] }
 0x42d   :  { %4694 = vst [vmem:[%s14510_s1 + $0x438] sm:$0xff] %v4182_v1  ;;  %v16962_v1 = vld [vmem:[#allocation484_spill] sm:$0xff]  ;;  %v2675_v32 = vmul.f32 %v12163_v30, %v12163_v30 }
 0x42e   :  { %4679 = vst [vmem:[%s14510_s1 + $0x3c0] sm:$0xff] %v4167_v42  ;;  %v12203_v55 = vsub.f32 %v16962_v1, %v12039_v5  ;;  %v12218_v42 = vsub.f32 %v16966_v35, %v11193_v44  ;;  %v16968_v5 = vld [vmem:[#allocation452_spill] sm:$0xff]  ;;  %v4159_v1 = vmul.f32 %v3556_v31, %v16970_v38  ;;  %v2676_v35 = vmul.f32 %v12167_v58, %v12167_v58 }
 0x42f   :  { %4680 = vst [vmem:[%s14510_s1 + $0x3c8] sm:$0xff] %v4168_v24  ;;  %v12222_v3 = vsub.f32 %v16968_v5, %v11193_v44  ;;  %v3258_v24 = vadd.f32 %v3257_v61, %v2686_v46  ;;  %v3245_v16 = vadd.f32 %v3244_v15, %v2674_v0  ;;  %5112 = vrsqrt.f32 %v12227_v25  ;;  %v16971_v46 = vld [vmem:[#allocation456_spill] sm:$0xff]  ;;  %v16973_v61 = vld [vmem:[#allocation83_spill] sm:$0xff] }
 0x430   :  { %16963 = vst [vmem:[#allocation379_spill] sm:$0xff] %v12203_v55  ;;  %v12248_v53 = vsub.f32 %v16971_v46, %v11193_v44  ;;  %v4160_v43 = vmul.f32 %v3556_v31, %v16973_v61  ;;  %v12256_v5 = vsub.f32 %v16974_v13, %v11193_v44  ;;  %v2688_v0 = vmul.f32 %v12218_v42, %v12218_v42  ;;  %v16977_v38 = vld [vmem:[#allocation92_spill] sm:$0xff] }
 0x431   :  { %16965 = vst [vmem:[#allocation6_spill] sm:$0xff] %v12214_v41  ;;  %3259 = vadd.xlane.f32.xlu2 %v3258_v24  ;;  %v16976_v24 = vld [vmem:[#allocation87_spill] sm:$0xff]  ;;  %v4162_v46 = vmul.f32 %v3556_v31, %v16977_v38  ;;  %v16978_v61 = vld [vmem:[#allocation64_spill] sm:$0xff]  ;;  %vm3603_vm4 = vweird.f32 %v12227_v25 }
 0x432   :  { %16967 = vst [vmem:[#allocation23_spill] sm:$0xff] %v12218_v42  ;;  %v4161_v15 = vmul.f32 %v3556_v31, %v16976_v24  ;;  %v4163_v13 = vmul.f32 %v3556_v31, %v16978_v61  ;;  %v2678_v42 = vmul.f32 %v12203_v55, %v12203_v55  ;;  %v16979_v24 = vld [vmem:[#allocation463_spill] sm:$0xff]  ;;  %v16981_v61 = vld [vmem:[#allocation66_spill] sm:$0xff] }
 0x433   :  { %16969 = vst [vmem:[#allocation382_spill] sm:$0xff] %v12222_v3 }
 0x434   :  { %4681 = vst [vmem:[%s14510_s1 + $0x3d0] sm:$0xff] %v4169_v47  ;;  %v2677_v47 = vmul.f32 %v12178_v50, %v12178_v50  ;;  %v16982_v50 = vld [vmem:[#allocation100_spill] sm:$0xff] }
 0x435   :  { %4682 = vst [vmem:[%s14510_s1 + $0x3d8] sm:$0xff] %v4170_v23  ;;  %v12244_v23 = vadd.f32 1e-05, %v3297_v49  ;;  %v3246_v49 = vadd.f32 %v3245_v16, %v2675_v32  ;;  %v12278_v32 = vsub.f32 %v16979_v24, %v11193_v44  ;;  %v4165_v55 = vmul.f32 %v3556_v31, %v16982_v50 }
 0x436   :  { %4683 = vst [vmem:[%s14510_s1 + $0x3e0] sm:$0xff] %v4171_v39  ;;  %v2687_v39 = vmul.f32 %v12214_v41, %v12214_v41  ;;  %v4164_v41 = vmul.f32 %v3556_v31, %v16981_v61  ;;  %v2691_v24 = vmul.f32 %v12256_v5, %v12256_v5 }
 0x437   :  { %16972 = vst [vmem:[#allocation7_spill] sm:$0xff] %v12248_v53  ;;  %5114 = vrsqrt.f32 %v12244_v23  ;;  %v3247_v16 = vadd.f32 %v3246_v49, %v2676_v35  ;;  %v5113_v49 = vpop.eup %5112  ;;  %vm3593_vm8 = vweird.f32 %v12244_v23 }
 0x438   :  { %4684 = vst [vmem:[%s14510_s1 + $0x3e8] sm:$0xff] %v4172_v14  ;;  %v2689_v14 = vmul.f32 %v12222_v3, %v12222_v3  ;;  %v3261_v38 = vadd.f32 %v2688_v0, %v2687_v39  ;;  %vm3604_vm5 = vweird.f32 %v5113_v49 }
 0x439   :  { %16975 = vst [vmem:[#allocation10_spill] sm:$0xff] %v12256_v5  ;;  %v3248_v39 = vadd.f32 %v3247_v16, %v2677_v47  ;;  %v16986_v5 = vld [vmem:[#allocation468_spill] sm:$0xff]  ;;  %vm3605_vm6 = vmor %vm3603_vm4, %vm3604_vm5 }
 0x43a   :  { %4685 = vst [vmem:[%s14510_s1 + $0x3f0] sm:$0xff] %v4173_v21  ;;  %v2864_v21 = vpop.xlane.xlu0 %2863  ;;  %v3262_v50 = vadd.f32 %v3261_v38, %v2689_v14  ;;  %v12313_v58 = vsub.f32 %v16986_v5, %v11193_v44 }
 0x43b   :  { %4686 = vst [vmem:[%s14510_s1 + $0x3f8] sm:$0xff] %v4174_v57  ;;  %v3296_v3 = vmul.f32 %v2864_v21, %v7774_v40  ;;  %v2690_v57 = vmul.f32 %v12248_v53, %v12248_v53  ;;  %v16984_v21 = vld [vmem:[#allocation476_spill] sm:$0xff] }
 0x43c   :  { %16980 = vst [vmem:[#allocation386_spill] sm:$0xff] %v12278_v32  ;;  %v12304_v61 = vsub.f32 %v16984_v21, %v12059_v34 }
 0x43d   :  { %4671 = vst [vmem:[%s14510_s1 + $0x380] sm:$0xff] %v4159_v1  ;;  %v16983_v1 = vld [vmem:[#allocation475_spill] sm:$0xff]  ;;  %v12300_v0 = vadd.f32 1e-05, %v3296_v3  ;;  %v12315_v47 = vpop.eup %5114  ;;  %v3249_v3 = vadd.f32 %v3248_v39, %v2678_v42 }
 0x43e   :  { %4672 = vst [vmem:[%s14510_s1 + $0x388] sm:$0xff] %v4160_v43  ;;  %v12295_v35 = vsub.f32 %v16983_v1, %v12059_v34  ;;  %v16985_v43 = vld [vmem:[#allocation74_spill] sm:$0xff]  ;;  %v3598_v1 = vmul.f32 %v5113_v49, %v12227_v25  ;;  %v3588_v5 = vmul.f32 %v12315_v47, %v12244_v23  ;;  %v2696_v38 = vmul.f32 %v12304_v61, %v12304_v61 }
 0x43f   :  { %4673 = vst [vmem:[%s14510_s1 + $0x390] sm:$0xff] %v4161_v15  ;;  %v4166_v53 = vmul.f32 %v3556_v31, %v16985_v43  ;;  %5116 = vrsqrt.f32 %v12300_v0  ;;  %v2692_v31 = vmul.f32 %v12278_v32, %v12278_v32  ;;  %v3263_v15 = vadd.f32 %v3262_v50, %v2690_v57  ;;  %3250 = vadd.xlane.f32.xlu1 %v3249_v3  ;;  %v16990_v57 = vld [vmem:[#allocation478_spill] sm:$0xff]  ;;  %v2909_v50 = vpop.xlane.xlu2 %2908 }
 0x440   :  { %4674 = vst [vmem:[%s14510_s1 + $0x398] sm:$0xff] %v4162_v46  ;;  %v3599_v14 = vmul.f32 %v5113_v49, %v3598_v1  ;;  %v16988_v46 = vld [vmem:[#allocation472_spill] sm:$0xff]  ;;  %v2695_v42 = vmul.f32 %v12295_v35, %v12295_v35  ;;  %v3589_v39 = vmul.f32 %v12315_v47, %v3588_v5  ;;  %v3301_v3 = vmul.f32 %v2909_v50, %v7774_v40  ;;  %v16992_v5 = vld [vmem:[#allocation481_spill] sm:$0xff]  ;;  %v16996_v32 = vld [vmem:[#allocation118_spill] sm:$0xff] }
 0x441   :  { %16987 = vst [vmem:[#allocation12_spill] sm:$0xff] %v12313_v58  ;;  %v12330_v16 = vsub.f32 %v16988_v46, %v11193_v44  ;;  %v12357_v46 = vsub.f32 %v16992_v5, %v12059_v34  ;;  %vm3594_vm7 = vweird.f32 %v12315_v47  ;;  %vm3583_vm11 = vweird.f32 %v12300_v0 }
 0x442   :  { %4675 = vst [vmem:[%s14510_s1 + $0x3a0] sm:$0xff] %v4163_v13  ;;  %v3264_v13 = vadd.f32 %v3263_v15, %v2691_v24  ;;  %v3600_v44 = vmul.f32 0.5, %v3599_v14  ;;  %v3590_v43 = vmul.f32 0.5, %v3589_v39  ;;  %v3270_v1 = vadd.f32 %v2696_v38, %v2695_v42  ;;  %v16994_v39 = vld [vmem:[#allocation485_spill] sm:$0xff]  ;;  %vm3595_vm9 = vmor %vm3593_vm8, %vm3594_vm7 }
 0x443   :  { %4676 = vst [vmem:[%s14510_s1 + $0x3a8] sm:$0xff] %v4164_v41  ;;  %v12339_v41 = vsub.f32 %v16990_v57, %v12059_v34  ;;  %v12372_v50 = vsub.f32 %v16994_v39, %v12059_v34 }
 0x444   :  { %16989 = vst [vmem:[#allocation8_spill] sm:$0xff] %v12330_v16  ;;  %v3265_v24 = vadd.f32 %v3264_v13, %v2692_v31  ;;  %v3601_v21 = vsub.f32 1.5, %v3600_v44  ;;  %v3591_v31 = vsub.f32 1.5, %v3590_v43  ;;  %v16993_v13 = vld [vmem:[#allocation483_spill] sm:$0xff] }
 0x445   :  { %4677 = vst [vmem:[%s14510_s1 + $0x3b0] sm:$0xff] %v4165_v55  ;;  %v2693_v55 = vmul.f32 %v12313_v58, %v12313_v58  ;;  %v12351_v15 = vpop.eup %5116  ;;  %v2697_v57 = vmul.f32 %v12339_v41, %v12339_v41  ;;  %v12365_v38 = vsub.f32 %v16993_v13, %v12059_v34  ;;  %v16995_v13 = vld [vmem:[#allocation91_spill] sm:$0xff] }
 0x446   :  { %16991 = vst [vmem:[#allocation15_spill] sm:$0xff] %v12339_v41  ;;  %v3602_v58 = vmul.f32 %v5113_v49, %v3601_v21  ;;  %v3578_v42 = vmul.f32 %v12351_v15, %v12300_v0  ;;  %v3592_v43 = vmul.f32 %v12315_v47, %v3591_v31  ;;  %v16997_v41 = vld [vmem:[#allocation95_spill] sm:$0xff]  ;;  %vm3584_vm10 = vweird.f32 %v12351_v15 }
 0x447   :  { %4678 = vst [vmem:[%s14510_s1 + $0x3b8] sm:$0xff] %v4166_v53  ;;  %v2694_v53 = vmul.f32 %v12330_v16, %v12330_v16  ;;  %v3266_v14 = vadd.f32 %v3265_v24, %v2693_v55  ;;  %v3271_v55 = vadd.f32 %v3270_v1, %v2697_v57  ;;  %v12374_v24 = vadd.f32 1e-05, %v3301_v3  ;;  %v16998_v1 = vld [vmem:[#allocation101_spill] sm:$0xff]  ;;  %vm3585_vm12 = vmor %vm3583_vm11, %vm3584_vm10 }
 0x448   :  { %v3606_v21 = vsel %vm3605_vm6, %v5113_v49, %v3602_v58  ;;  %v3579_v5 = vmul.f32 %v12351_v15, %v3578_v42  ;;  %v16999_v58 = vld [vmem:[#allocation486_spill] sm:$0xff]  ;;  %v17001_v57 = vld [vmem:[#allocation121_spill] sm:$0xff]  ;;  %v2900_v42 = vpop.xlane.xlu1 %2899  ;;  %v3596_v23 = vsel %vm3595_vm9, %v12315_v47, %v3592_v43 }
 0x449   :  { %v3267_v44 = vadd.f32 %v3266_v14, %v2694_v53  ;;  %v4199_v16 = vmul.f32 %v3606_v21, %v16995_v13  ;;  %v4200_v25 = vmul.f32 %v3606_v21, %v16996_v32  ;;  %v4201_v53 = vmul.f32 %v3606_v21, %v16997_v41 }
 0x44a   :  { %v2698_v14 = vmul.f32 %v12357_v46, %v12357_v46  ;;  %v4202_v3 = vmul.f32 %v3606_v21, %v16998_v1  ;;  %v12388_v49 = vsub.f32 %v16999_v58, %v12059_v34  ;;  %v4203_v31 = vmul.f32 %v3606_v21, %v17001_v57  ;;  %v17003_v1 = vld [vmem:[#allocation108_spill] sm:$0xff] }
 0x44b   :  { %3268 = vadd.xlane.f32.xlu0 %v3267_v44  ;;  %4711 = vst [vmem:[%s14510_s1 + $0x4c0] sm:$0xff] %v4199_v16  ;;  %v3580_v32 = vmul.f32 0.5, %v3579_v5  ;;  %5118 = vrsqrt.f32 %v12374_v24  ;;  %v17002_v44 = vld [vmem:[#allocation122_spill] sm:$0xff]  ;;  %v2699_v13 = vmul.f32 %v12365_v38, %v12365_v38  ;;  %v4205_v58 = vmul.f32 %v3606_v21, %v17003_v1 }
 0x44c   :  { %17000 = vst [vmem:[#allocation389_spill] sm:$0xff] %v12388_v49  ;;  %v3272_v41 = vadd.f32 %v3271_v55, %v2698_v14  ;;  %v4204_v39 = vmul.f32 %v3606_v21, %v17002_v44  ;;  %v2700_v16 = vmul.f32 %v12372_v50, %v12372_v50  ;;  %v17004_v55 = vld [vmem:[#allocation133_spill] sm:$0xff]  ;;  %v3300_v43 = vmul.f32 %v2900_v42, %v7774_v40  ;;  %v17005_v14 = vld [vmem:[#allocation123_spill] sm:$0xff] }
 0x44d   :  { %4712 = vst [vmem:[%s14510_s1 + $0x4c8] sm:$0xff] %v4200_v25  ;;  %v4206_v5 = vmul.f32 %v3606_v21, %v17004_v55  ;;  %v3581_v25 = vsub.f32 1.5, %v3580_v32  ;;  %v4191_v57 = vmul.f32 %v3596_v23, %v17005_v14  ;;  %v2701_v21 = vmul.f32 %v12388_v49, %v12388_v49 }
 0x44e   :  { %4713 = vst [vmem:[%s14510_s1 + $0x4d0] sm:$0xff] %v4201_v53  ;;  %v3273_v47 = vadd.f32 %v3272_v41, %v2699_v13  ;;  %v17006_v53 = vld [vmem:[#allocation487_spill] sm:$0xff]  ;;  %v12433_v1 = vadd.f32 1e-05, %v3300_v43  ;;  %v2891_v43 = vpop.xlane.xlu0 %2890  ;;  %vm3633_vm14 = vweird.f32 %v12374_v24 }
 0x44f   :  { %4714 = vst [vmem:[%s14510_s1 + $0x4d8] sm:$0xff] %v4202_v3  ;;  %v12419_v44 = vsub.f32 %v17006_v53, %v12059_v34  ;;  %v17008_v3 = vld [vmem:[#allocation102_spill] sm:$0xff]  ;;  %v3582_v41 = vmul.f32 %v12351_v15, %v3581_v25  ;;  %v17009_v34 = vld [vmem:[#allocation127_spill] sm:$0xff] }
 0x450   :  { %4715 = vst [vmem:[%s14510_s1 + $0x4e0] sm:$0xff] %v4203_v31  ;;  %v4192_v32 = vmul.f32 %v3596_v23, %v17008_v3  ;;  %v3274_v31 = vadd.f32 %v3273_v47, %v2700_v16  ;;  %v4193_v13 = vmul.f32 %v3596_v23, %v17009_v34  ;;  %v17011_v47 = vld [vmem:[#allocation128_spill] sm:$0xff]  ;;  %v17012_v53 = vld [vmem:[#allocation130_spill] sm:$0xff]  ;;  %5120 = vrsqrt.f32 %v12433_v1  ;;  %v17014_v34 = vld [vmem:[#allocation141_spill] sm:$0xff] }
 0x451   :  { %17007 = vst [vmem:[#allocation25_spill] sm:$0xff] %v12419_v44  ;;  %v5119_v42 = vpop.eup %5118  ;;  %v4195_v14 = vmul.f32 %v3596_v23, %v17011_v47  ;;  %v3586_v0 = vsel %vm3585_vm12, %v12351_v15, %v3582_v41  ;;  %v17015_v15 = vld [vmem:[#allocation110_spill] sm:$0xff]  ;;  %vm3623_vm1 = vweird.f32 %v12433_v1 }
 0x452   :  { %4716 = vst [vmem:[%s14510_s1 + $0x4e8] sm:$0xff] %v4204_v39  ;;  %v17010_v39 = vld [vmem:[#allocation129_spill] sm:$0xff]  ;;  %v3275_v25 = vadd.f32 %v3274_v31, %v2701_v21  ;;  %v3628_v16 = vmul.f32 %v5119_v42, %v12374_v24  ;;  %v17013_v21 = vld [vmem:[#allocation140_spill] sm:$0xff]  ;;  %v4183_v41 = vmul.f32 %v3586_v0, %v17015_v15  ;;  %vm3634_vm13 = vweird.f32 %v5119_v42 }
 0x453   :  { %4717 = vst [vmem:[%s14510_s1 + $0x4f0] sm:$0xff] %v4205_v58  ;;  %v4194_v55 = vmul.f32 %v3596_v23, %v17010_v39  ;;  %v2702_v58 = vmul.f32 %v12419_v44, %v12419_v44  ;;  %v4197_v3 = vmul.f32 %v3596_v23, %v17013_v21  ;;  %v4198_v39 = vmul.f32 %v3596_v23, %v17014_v34  ;;  %v17019_v21 = vld [vmem:[#allocation89_spill] sm:$0xff]  ;;  %v17020_v34 = vld [vmem:[#allocation90_spill] sm:$0xff]  ;;  %vm3635_vm15 = vmor %vm3633_vm14, %vm3634_vm13 }
 0x454   :  { %4718 = vst [vmem:[%s14510_s1 + $0x4f8] sm:$0xff] %v4206_v5  ;;  %v4196_v5 = vmul.f32 %v3596_v23, %v17012_v53  ;;  %v3629_v31 = vmul.f32 %v5119_v42, %v3628_v16  ;;  %v2936_v53 = vpop.xlane.xlu2 %2935  ;;  %v17021_v15 = vld [vmem:[#allocation120_spill] sm:$0xff]  ;;  %v17022_v24 = vld [vmem:[#allocation97_spill] sm:$0xff] }
 0x455   :  { %4703 = vst [vmem:[%s14510_s1 + $0x480] sm:$0xff] %v4191_v57  ;;  %v3276_v57 = vadd.f32 %v3275_v25, %v2702_v58  ;;  %v17016_v25 = vld [vmem:[#allocation107_spill] sm:$0xff] }
 0x456   :  { %4704 = vst [vmem:[%s14510_s1 + $0x488] sm:$0xff] %v4192_v32  ;;  %v3299_v32 = vmul.f32 %v2891_v43, %v7774_v40  ;;  %v4184_v23 = vmul.f32 %v3586_v0, %v17016_v25 }
 0x457   :  { %4705 = vst [vmem:[%s14510_s1 + $0x490] sm:$0xff] %v4193_v13  ;;  %3277 = vadd.xlane.f32.xlu1 %v3276_v57  ;;  %v3630_v13 = vmul.f32 0.5, %v3629_v31  ;;  %v4187_v57 = vmul.f32 %v3586_v0, %v17019_v21  ;;  %v3304_v31 = vmul.f32 %v2936_v53, %v7774_v40 }
 0x458   :  { %4706 = vst [vmem:[%s14510_s1 + $0x498] sm:$0xff] %v4194_v55  ;;  %v12470_v16 = vadd.f32 1e-05, %v3299_v32  ;;  %v17017_v55 = vld [vmem:[#allocation111_spill] sm:$0xff]  ;;  %v4188_v32 = vmul.f32 %v3586_v0, %v17020_v34  ;;  %v2927_v34 = vpop.xlane.xlu1 %2926 }
 0x459   :  { %4707 = vst [vmem:[%s14510_s1 + $0x4a0] sm:$0xff] %v4195_v14  ;;  %v4185_v47 = vmul.f32 %v3586_v0, %v17017_v55  ;;  %v3631_v58 = vsub.f32 1.5, %v3630_v13  ;;  %v17018_v14 = vld [vmem:[#allocation112_spill] sm:$0xff]  ;;  %v4189_v13 = vmul.f32 %v3586_v0, %v17021_v15  ;;  %v12496_v25 = vadd.f32 1e-05, %v3304_v31 }
 0x45a   :  { %4708 = vst [vmem:[%s14510_s1 + $0x4a8] sm:$0xff] %v4196_v5  ;;  %v4186_v43 = vmul.f32 %v3586_v0, %v17018_v14  ;;  %5122 = vrsqrt.f32 %v12470_v16  ;;  %v5121_v5 = vpop.eup %5120  ;;  %v4190_v55 = vmul.f32 %v3586_v0, %v17022_v24  ;;  %v17025_v0 = vld [vmem:[#allocation119_spill] sm:$0xff]  ;;  %v3303_v24 = vmul.f32 %v2927_v34, %v7774_v40 }
 0x45b   :  { %4709 = vst [vmem:[%s14510_s1 + $0x4b0] sm:$0xff] %v4197_v3  ;;  %v3632_v3 = vmul.f32 %v5119_v42, %v3631_v58  ;;  %5124 = vrsqrt.f32 %v12496_v25  ;;  %vm3624_vm0 = vweird.f32 %v5121_v5  ;;  %vm3613_vm4 = vweird.f32 %v12470_v16 }
 0x45c   :  { %4710 = vst [vmem:[%s14510_s1 + $0x4b8] sm:$0xff] %v4198_v39  ;;  %v3618_v39 = vmul.f32 %v5121_v5, %v12433_v1  ;;  %vm3625_vm2 = vmor %vm3623_vm1, %vm3624_vm0  ;;  %v17031_v1 = vld [vmem:[#allocation147_spill] sm:$0xff]  ;;  %vm3663_vm7 = vweird.f32 %v12496_v25 }
 0x45d   :  { %4695 = vst [vmem:[%s14510_s1 + $0x440] sm:$0xff] %v4183_v41  ;;  %v3636_v41 = vsel %vm3635_vm15, %v5119_v42, %v3632_v3  ;;  %v17024_v42 = vld [vmem:[#allocation142_spill] sm:$0xff] }
 0x45e   :  { %4696 = vst [vmem:[%s14510_s1 + $0x448] sm:$0xff] %v4184_v23  ;;  %v17023_v23 = vld [vmem:[#allocation115_spill] sm:$0xff]  ;;  %v3619_v53 = vmul.f32 %v5121_v5, %v3618_v39  ;;  %v17027_v39 = vld [vmem:[#allocation145_spill] sm:$0xff] }
 0x45f   :  { %4697 = vst [vmem:[%s14510_s1 + $0x450] sm:$0xff] %v4185_v47  ;;  %v4223_v58 = vmul.f32 %v3636_v41, %v17023_v23  ;;  %v4224_v47 = vmul.f32 %v3636_v41, %v17024_v42  ;;  %v4227_v15 = vmul.f32 %v3636_v41, %v17027_v39  ;;  %v17028_v42 = vld [vmem:[#allocation146_spill] sm:$0xff]  ;;  %v17030_v39 = vld [vmem:[#allocation157_spill] sm:$0xff] }
 0x460   :  { %4698 = vst [vmem:[%s14510_s1 + $0x458] sm:$0xff] %v4186_v43  ;;  %v5123_v14 = vpop.eup %5122  ;;  %v4225_v43 = vmul.f32 %v3636_v41, %v17025_v0  ;;  %v3620_v31 = vmul.f32 0.5, %v3619_v53  ;;  %v4228_v0 = vmul.f32 %v3636_v41, %v17028_v42  ;;  %v17029_v53 = vld [vmem:[#allocation132_spill] sm:$0xff]  ;;  %v4230_v42 = vmul.f32 %v3636_v41, %v17030_v39 }
 0x461   :  { %4699 = vst [vmem:[%s14510_s1 + $0x460] sm:$0xff] %v4187_v57  ;;  %v3608_v21 = vmul.f32 %v5123_v14, %v12470_v16  ;;  %v17026_v57 = vld [vmem:[#allocation125_spill] sm:$0xff]  ;;  %vm3614_vm3 = vweird.f32 %v5123_v14  ;;  %v2954_v16 = vpop.xlane.xlu1 %2953 }
 0x462   :  { %4700 = vst [vmem:[%s14510_s1 + $0x468] sm:$0xff] %v4188_v32  ;;  %v4226_v3 = vmul.f32 %v3636_v41, %v17026_v57  ;;  %v2918_v32 = vpop.xlane.xlu0 %2917  ;;  %v4229_v57 = vmul.f32 %v3636_v41, %v17029_v53  ;;  %v17035_v53 = vld [vmem:[#allocation153_spill] sm:$0xff]  ;;  %vm3615_vm5 = vmor %vm3613_vm4, %vm3614_vm3 }
 0x463   :  { %4701 = vst [vmem:[%s14510_s1 + $0x470] sm:$0xff] %v4189_v13  ;;  %v3609_v13 = vmul.f32 %v5123_v14, %v3608_v21  ;;  %v3302_v23 = vmul.f32 %v2918_v32, %v7774_v40  ;;  %v12534_v21 = vadd.f32 1e-05, %v3303_v24  ;;  %v12538_v32 = vpop.eup %5124  ;;  %v17033_v24 = vld [vmem:[#allocation151_spill] sm:$0xff] }
 0x464   :  { %4702 = vst [vmem:[%s14510_s1 + $0x478] sm:$0xff] %v4190_v55  ;;  %v3621_v55 = vsub.f32 1.5, %v3620_v31  ;;  %v3658_v31 = vmul.f32 %v12538_v32, %v12496_v25  ;;  %vm3664_vm6 = vweird.f32 %v12538_v32 }
 0x465   :  { %4735 = vst [vmem:[%s14510_s1 + $0x580] sm:$0xff] %v4223_v58  ;;  %v3610_v58 = vmul.f32 0.5, %v3609_v13  ;;  %v12536_v34 = vadd.f32 1e-05, %v3302_v23  ;;  %5126 = vrsqrt.f32 %v12534_v21  ;;  %vm3665_vm8 = vmor %vm3663_vm7, %vm3664_vm6  ;;  %vm3653_vm10 = vweird.f32 %v12534_v21 }
 0x466   :  { %4736 = vst [vmem:[%s14510_s1 + $0x588] sm:$0xff] %v4224_v47  ;;  %v3622_v47 = vmul.f32 %v5121_v5, %v3621_v55  ;;  %v17034_v55 = vld [vmem:[#allocation156_spill] sm:$0xff]  ;;  %v3659_v39 = vmul.f32 %v12538_v32, %v3658_v31 }
 0x467   :  { %4737 = vst [vmem:[%s14510_s1 + $0x590] sm:$0xff] %v4225_v43  ;;  %v3611_v43 = vsub.f32 1.5, %v3610_v58  ;;  %5128 = vrsqrt.f32 %v12536_v34  ;;  %vm3643_vm13 = vweird.f32 %v12536_v34 }
 0x468   :  { %4738 = vst [vmem:[%s14510_s1 + $0x598] sm:$0xff] %v4226_v3  ;;  %v3626_v41 = vsel %vm3625_vm2, %v5121_v5, %v3622_v47  ;;  %v2963_v5 = vpop.xlane.xlu2 %2962  ;;  %v3660_v31 = vmul.f32 0.5, %v3659_v39 }
 0x469   :  { %4739 = vst [vmem:[%s14510_s1 + $0x5a0] sm:$0xff] %v4227_v15  ;;  %v4215_v3 = vmul.f32 %v3626_v41, %v17031_v1  ;;  %v17032_v15 = vld [vmem:[#allocation126_spill] sm:$0xff]  ;;  %v4217_v23 = vmul.f32 %v3626_v41, %v17033_v24  ;;  %v4219_v58 = vmul.f32 %v3626_v41, %v17035_v53  ;;  %v3307_v47 = vmul.f32 %v2963_v5, %v7774_v40  ;;  %v17037_v24 = vld [vmem:[#allocation164_spill] sm:$0xff]  ;;  %v17038_v53 = vld [vmem:[#allocation165_spill] sm:$0xff] }
 0x46a   :  { %4740 = vst [vmem:[%s14510_s1 + $0x5a8] sm:$0xff] %v4228_v0  ;;  %v4216_v13 = vmul.f32 %v3626_v41, %v17032_v15  ;;  %v4218_v0 = vmul.f32 %v3626_v41, %v17034_v55  ;;  %v17036_v1 = vld [vmem:[#allocation154_spill] sm:$0xff]  ;;  %v4221_v55 = vmul.f32 %v3626_v41, %v17037_v24 }
 0x46b   :  { %4741 = vst [vmem:[%s14510_s1 + $0x5b0] sm:$0xff] %v4229_v57  ;;  %v3612_v57 = vmul.f32 %v5123_v14, %v3611_v43  ;;  %v4220_v15 = vmul.f32 %v3626_v41, %v17036_v1  ;;  %v4222_v1 = vmul.f32 %v3626_v41, %v17038_v53 }
 0x46c   :  { %4742 = vst [vmem:[%s14510_s1 + $0x5b8] sm:$0xff] %v4230_v42  ;;  %v12576_v42 = vpop.eup %5126 }
 0x46d   :  { %4727 = vst [vmem:[%s14510_s1 + $0x540] sm:$0xff] %v4215_v3  ;;  %v3616_v43 = vsel %vm3615_vm5, %v5123_v14, %v3612_v57  ;;  %v12582_v3 = vadd.f32 1e-05, %v3307_v47  ;;  %v12584_v5 = vpop.eup %5128  ;;  %v3306_v14 = vmul.f32 %v2954_v16, %v7774_v40  ;;  %v3661_v57 = vsub.f32 1.5, %v3660_v31 }
 0x46e   :  { %4728 = vst [vmem:[%s14510_s1 + $0x548] sm:$0xff] %v4216_v13  ;;  %v17039_v13 = vld [vmem:[#allocation134_spill] sm:$0xff]  ;;  %v3638_v39 = vmul.f32 %v12584_v5, %v12536_v34  ;;  %vm3654_vm9 = vweird.f32 %v12576_v42  ;;  %vm3644_vm12 = vweird.f32 %v12584_v5 }
 0x46f   :  { %4729 = vst [vmem:[%s14510_s1 + $0x550] sm:$0xff] %v4217_v23  ;;  %v4207_v24 = vmul.f32 %v3616_v43, %v17039_v13  ;;  %v17040_v23 = vld [vmem:[#allocation131_spill] sm:$0xff]  ;;  %5130 = vrsqrt.f32 %v12582_v3  ;;  %v3662_v31 = vmul.f32 %v12538_v32, %v3661_v57  ;;  %v17043_v13 = vld [vmem:[#allocation113_spill] sm:$0xff]  ;;  %vm3655_vm11 = vmor %vm3653_vm10, %vm3654_vm9  ;;  %vm3693_vm0 = vweird.f32 %v12582_v3 }
 0x470   :  { %4730 = vst [vmem:[%s14510_s1 + $0x558] sm:$0xff] %v4218_v0  ;;  %v4208_v41 = vmul.f32 %v3616_v43, %v17040_v23  ;;  %v3648_v0 = vmul.f32 %v12576_v42, %v12534_v21  ;;  %v4211_v23 = vmul.f32 %v3616_v43, %v17043_v13  ;;  %v17045_v13 = vld [vmem:[#allocation148_spill] sm:$0xff]  ;;  %vm3645_vm14 = vmor %vm3643_vm13, %vm3644_vm12 }
 0x471   :  { %4731 = vst [vmem:[%s14510_s1 + $0x560] sm:$0xff] %v4219_v58  ;;  %v17041_v58 = vld [vmem:[#allocation135_spill] sm:$0xff]  ;;  %v3666_v25 = vsel %vm3665_vm8, %v12538_v32, %v3662_v31  ;;  %v4213_v44 = vmul.f32 %v3616_v43, %v17045_v13 }
 0x472   :  { %4732 = vst [vmem:[%s14510_s1 + $0x568] sm:$0xff] %v4220_v15  ;;  %v4209_v47 = vmul.f32 %v3616_v43, %v17041_v58  ;;  %v17042_v15 = vld [vmem:[#allocation138_spill] sm:$0xff]  ;;  %v3649_v53 = vmul.f32 %v12576_v42, %v3648_v0  ;;  %v3639_v0 = vmul.f32 %v12584_v5, %v3638_v39  ;;  %v17047_v32 = vld [vmem:[#allocation139_spill] sm:$0xff] }
 0x473   :  { %4733 = vst [vmem:[%s14510_s1 + $0x570] sm:$0xff] %v4221_v55  ;;  %v4210_v16 = vmul.f32 %v3616_v43, %v17042_v15  ;;  %v12622_v55 = vadd.f32 1e-05, %v3306_v14  ;;  %v2945_v15 = vpop.xlane.xlu0 %2944 }
 0x474   :  { %4734 = vst [vmem:[%s14510_s1 + $0x578] sm:$0xff] %v4222_v1  ;;  %v17044_v1 = vld [vmem:[#allocation114_spill] sm:$0xff]  ;;  %v3650_v57 = vmul.f32 0.5, %v3649_v53  ;;  %v3305_v31 = vmul.f32 %v2945_v15, %v7774_v40 }
 0x475   :  { %4719 = vst [vmem:[%s14510_s1 + $0x500] sm:$0xff] %v4207_v24  ;;  %v4212_v58 = vmul.f32 %v3616_v43, %v17044_v1  ;;  %v17046_v24 = vld [vmem:[#allocation124_spill] sm:$0xff]  ;;  %v12638_v1 = vpop.eup %5130  ;;  %5132 = vrsqrt.f32 %v12622_v55  ;;  %vm3683_vm3 = vweird.f32 %v12622_v55 }
 0x476   :  { %4720 = vst [vmem:[%s14510_s1 + $0x508] sm:$0xff] %v4208_v41  ;;  %v4214_v14 = vmul.f32 %v3616_v43, %v17046_v24  ;;  %v4247_v41 = vmul.f32 %v3666_v25, %v17047_v32  ;;  %v3651_v39 = vsub.f32 1.5, %v3650_v57  ;;  %v17048_v43 = vld [vmem:[#allocation166_spill] sm:$0xff]  ;;  %v3688_v53 = vmul.f32 %v12638_v1, %v12582_v3  ;;  %v17052_v32 = vld [vmem:[#allocation169_spill] sm:$0xff] }
 0x477   :  { %4721 = vst [vmem:[%s14510_s1 + $0x510] sm:$0xff] %v4209_v47  ;;  %v4248_v47 = vmul.f32 %v3666_v25, %v17048_v43  ;;  %v4252_v43 = vmul.f32 %v3666_v25, %v17052_v32  ;;  %vm3694_vm15 = vweird.f32 %v12638_v1 }
 0x478   :  { %4722 = vst [vmem:[%s14510_s1 + $0x518] sm:$0xff] %v4210_v16  ;;  %v3640_v16 = vmul.f32 0.5, %v3639_v0  ;;  %v3652_v15 = vmul.f32 %v12576_v42, %v3651_v39  ;;  %v17051_v0 = vld [vmem:[#allocation168_spill] sm:$0xff]  ;;  %v3689_v21 = vmul.f32 %v12638_v1, %v3688_v53  ;;  %vm3695_vm1 = vmor %vm3693_vm0, %vm3694_vm15 }
 0x479   :  { %4723 = vst [vmem:[%s14510_s1 + $0x520] sm:$0xff] %v4211_v23  ;;  %v17049_v23 = vld [vmem:[#allocation143_spill] sm:$0xff]  ;;  %v4251_v24 = vmul.f32 %v3666_v25, %v17051_v0  ;;  %v17053_v0 = vld [vmem:[#allocation152_spill] sm:$0xff] }
 0x47a   :  { %4724 = vst [vmem:[%s14510_s1 + $0x528] sm:$0xff] %v4212_v58  ;;  %v4249_v57 = vmul.f32 %v3666_v25, %v17049_v23  ;;  %v17050_v58 = vld [vmem:[#allocation149_spill] sm:$0xff]  ;;  %v3641_v39 = vsub.f32 1.5, %v3640_v16  ;;  %v2990_v23 = vpop.xlane.xlu2 %2989  ;;  %v4253_v49 = vmul.f32 %v3666_v25, %v17053_v0 }
 0x47b   :  { %4725 = vst [vmem:[%s14510_s1 + $0x530] sm:$0xff] %v4213_v44  ;;  %v4250_v13 = vmul.f32 %v3666_v25, %v17050_v58  ;;  %v12667_v44 = vadd.f32 1e-05, %v3305_v31  ;;  %v12675_v58 = vpop.eup %5132  ;;  %v3310_v16 = vmul.f32 %v2990_v23, %v7774_v40  ;;  %v17058_v23 = vld [vmem:[#allocation176_spill] sm:$0xff]  ;;  %v17059_v0 = vld [vmem:[#allocation177_spill] sm:$0xff] }
 0x47c   :  { %4726 = vst [vmem:[%s14510_s1 + $0x538] sm:$0xff] %v4214_v14  ;;  %v3656_v14 = vsel %vm3655_vm11, %v12576_v42, %v3652_v15  ;;  %v17055_v42 = vld [vmem:[#allocation171_spill] sm:$0xff]  ;;  %v3690_v15 = vmul.f32 0.5, %v3689_v21  ;;  %v17060_v21 = vld [vmem:[#allocation178_spill] sm:$0xff]  ;;  %vm3684_vm2 = vweird.f32 %v12675_v58 }
 0x47d   :  { %4759 = vst [vmem:[%s14510_s1 + $0x640] sm:$0xff] %v4247_v41  ;;  %v17054_v41 = vld [vmem:[#allocation181_spill] sm:$0xff]  ;;  %5134 = vrsqrt.f32 %v12667_v44  ;;  %vm3685_vm4 = vmor %vm3683_vm3, %vm3684_vm2  ;;  %vm3673_vm6 = vweird.f32 %v12667_v44 }
 0x47e   :  { %4760 = vst [vmem:[%s14510_s1 + $0x648] sm:$0xff] %v4248_v47  ;;  %v4254_v31 = vmul.f32 %v3666_v25, %v17054_v41  ;;  %v4239_v47 = vmul.f32 %v3656_v14, %v17055_v42  ;;  %v17056_v25 = vld [vmem:[#allocation150_spill] sm:$0xff]  ;;  %v4244_v41 = vmul.f32 %v3656_v14, %v17060_v21  ;;  %v3691_v34 = vsub.f32 1.5, %v3690_v15 }
 0x47f   :  { %4761 = vst [vmem:[%s14510_s1 + $0x650] sm:$0xff] %v4249_v57  ;;  %v4240_v53 = vmul.f32 %v3656_v14, %v17056_v25  ;;  %v3642_v57 = vmul.f32 %v12584_v5, %v3641_v39  ;;  %v4243_v39 = vmul.f32 %v3656_v14, %v17059_v0  ;;  %v2981_v25 = vpop.xlane.xlu1 %2980 }
 0x480   :  { %4762 = vst [vmem:[%s14510_s1 + $0x658] sm:$0xff] %v4250_v13  ;;  %v3678_v13 = vmul.f32 %v12675_v58, %v12622_v55 }
 0x481   :  { %4763 = vst [vmem:[%s14510_s1 + $0x660] sm:$0xff] %v4251_v24  ;;  %v17057_v24 = vld [vmem:[#allocation175_spill] sm:$0xff] }
 0x482   :  { %4764 = vst [vmem:[%s14510_s1 + $0x668] sm:$0xff] %v4252_v43  ;;  %v4241_v32 = vmul.f32 %v3656_v14, %v17057_v24  ;;  %v4242_v43 = vmul.f32 %v3656_v14, %v17058_v23  ;;  %v3679_v42 = vmul.f32 %v12675_v58, %v3678_v13  ;;  %v3692_v13 = vmul.f32 %v12638_v1, %v3691_v34 }
 0x483   :  { %4765 = vst [vmem:[%s14510_s1 + $0x670] sm:$0xff] %v4253_v49  ;;  %v12714_v49 = vadd.f32 1e-05, %v3310_v16  ;;  %v12722_v24 = vpop.eup %5134  ;;  %v17062_v16 = vld [vmem:[#allocation189_spill] sm:$0xff] }
 0x484   :  { %4766 = vst [vmem:[%s14510_s1 + $0x678] sm:$0xff] %v4254_v31  ;;  %v3646_v31 = vsel %vm3645_vm14, %v12584_v5, %v3642_v57  ;;  %v4246_v0 = vmul.f32 %v3656_v14, %v17062_v16  ;;  %v17063_v5 = vld [vmem:[#allocation158_spill] sm:$0xff]  ;;  %v3309_v57 = vmul.f32 %v2981_v25, %v7774_v40  ;;  %v17066_v25 = vld [vmem:[#allocation161_spill] sm:$0xff]  ;;  %vm3674_vm5 = vweird.f32 %v12722_v24 }
 0x485   :  { %4751 = vst [vmem:[%s14510_s1 + $0x600] sm:$0xff] %v4239_v47  ;;  %v17061_v47 = vld [vmem:[#allocation184_spill] sm:$0xff]  ;;  %5136 = vrsqrt.f32 %v12714_v49  ;;  %vm3675_vm7 = vmor %vm3673_vm6, %vm3674_vm5  ;;  %vm3723_vm9 = vweird.f32 %v12714_v49 }
 0x486   :  { %4752 = vst [vmem:[%s14510_s1 + $0x608] sm:$0xff] %v4240_v53  ;;  %v4245_v23 = vmul.f32 %v3656_v14, %v17061_v47  ;;  %v4231_v53 = vmul.f32 %v3646_v31, %v17063_v5  ;;  %v17064_v14 = vld [vmem:[#allocation155_spill] sm:$0xff]  ;;  %v17067_v47 = vld [vmem:[#allocation136_spill] sm:$0xff] }
 0x487   :  { %4753 = vst [vmem:[%s14510_s1 + $0x610] sm:$0xff] %v4241_v32  ;;  %v4232_v15 = vmul.f32 %v3646_v31, %v17064_v14  ;;  %v3680_v32 = vmul.f32 0.5, %v3679_v42  ;;  %v4235_v34 = vmul.f32 %v3646_v31, %v17067_v47  ;;  %v12761_v42 = vadd.f32 1e-05, %v3309_v57  ;;  %v2972_v14 = vpop.xlane.xlu0 %2971  ;;  %v17070_v57 = vld [vmem:[#allocation144_spill] sm:$0xff] }
 0x488   :  { %4754 = vst [vmem:[%s14510_s1 + $0x618] sm:$0xff] %v4242_v43  ;;  %v3668_v43 = vmul.f32 %v12722_v24, %v12667_v44  ;;  %v4238_v47 = vmul.f32 %v3646_v31, %v17070_v57 }
 0x489   :  { %4755 = vst [vmem:[%s14510_s1 + $0x620] sm:$0xff] %v4243_v39  ;;  %v17065_v39 = vld [vmem:[#allocation159_spill] sm:$0xff]  ;;  %v3681_v3 = vsub.f32 1.5, %v3680_v32  ;;  %5138 = vrsqrt.f32 %v12761_v42  ;;  %vm3713_vm12 = vweird.f32 %v12761_v42 }
 0x48a   :  { %4756 = vst [vmem:[%s14510_s1 + $0x628] sm:$0xff] %v4244_v41  ;;  %v4233_v21 = vmul.f32 %v3646_v31, %v17065_v39  ;;  %v4234_v41 = vmul.f32 %v3646_v31, %v17066_v25  ;;  %v3669_v5 = vmul.f32 %v12722_v24, %v3668_v43 }
 0x48b   :  { %4757 = vst [vmem:[%s14510_s1 + $0x630] sm:$0xff] %v4245_v23  ;;  %v17068_v23 = vld [vmem:[#allocation137_spill] sm:$0xff]  ;;  %v12769_v39 = vpop.eup %5136  ;;  %v3682_v43 = vmul.f32 %v12675_v58, %v3681_v3 }
 0x48c   :  { %4758 = vst [vmem:[%s14510_s1 + $0x638] sm:$0xff] %v4246_v0  ;;  %v4236_v16 = vmul.f32 %v3646_v31, %v17068_v23  ;;  %v3696_v0 = vsel %vm3695_vm1, %v12638_v1, %v3692_v13  ;;  %v17071_v1 = vld [vmem:[#allocation163_spill] sm:$0xff]  ;;  %v3308_v13 = vmul.f32 %v2972_v14, %v7774_v40  ;;  %v17074_v14 = vld [vmem:[#allocation173_spill] sm:$0xff]  ;;  %vm3724_vm8 = vweird.f32 %v12769_v39 }
 0x48d   :  { %4743 = vst [vmem:[%s14510_s1 + $0x5c0] sm:$0xff] %v4231_v53  ;;  %v17069_v53 = vld [vmem:[#allocation172_spill] sm:$0xff]  ;;  %vm3725_vm10 = vmor %vm3723_vm9, %vm3724_vm8 }
 0x48e   :  { %4744 = vst [vmem:[%s14510_s1 + $0x5c8] sm:$0xff] %v4232_v15  ;;  %v4237_v25 = vmul.f32 %v3646_v31, %v17069_v53  ;;  %v4271_v15 = vmul.f32 %v3696_v0, %v17071_v1  ;;  %v17072_v31 = vld [vmem:[#allocation190_spill] sm:$0xff]  ;;  %v17075_v53 = vld [vmem:[#allocation192_spill] sm:$0xff] }
 0x48f   :  { %4745 = vst [vmem:[%s14510_s1 + $0x5d0] sm:$0xff] %v4233_v21  ;;  %v4272_v32 = vmul.f32 %v3696_v0, %v17072_v31  ;;  %v3670_v21 = vmul.f32 0.5, %v3669_v5  ;;  %v4275_v3 = vmul.f32 %v3696_v0, %v17075_v53  ;;  %v12808_v5 = vadd.f32 1e-05, %v3308_v13  ;;  %v3017_v31 = vpop.xlane.xlu2 %3016  ;;  %v17078_v13 = vld [vmem:[#allocation205_spill] sm:$0xff] }
 0x490   :  { %4746 = vst [vmem:[%s14510_s1 + $0x5d8] sm:$0xff] %v4234_v41  ;;  %v3718_v41 = vmul.f32 %v12769_v39, %v12714_v49  ;;  %v4278_v53 = vmul.f32 %v3696_v0, %v17078_v13 }
 0x491   :  { %4747 = vst [vmem:[%s14510_s1 + $0x5e0] sm:$0xff] %v4235_v34  ;;  %v17073_v34 = vld [vmem:[#allocation167_spill] sm:$0xff]  ;;  %v3671_v55 = vsub.f32 1.5, %v3670_v21  ;;  %5140 = vrsqrt.f32 %v12808_v5  ;;  %vm3703_vm15 = vweird.f32 %v12808_v5 }
 0x492   :  { %4748 = vst [vmem:[%s14510_s1 + $0x5e8] sm:$0xff] %v4236_v16  ;;  %v4273_v23 = vmul.f32 %v3696_v0, %v17073_v34  ;;  %v4274_v16 = vmul.f32 %v3696_v0, %v17074_v14  ;;  %v3719_v1 = vmul.f32 %v12769_v39, %v3718_v41  ;;  %v12816_v34 = vpop.eup %5138 }
 0x493   :  { %4749 = vst [vmem:[%s14510_s1 + $0x5f0] sm:$0xff] %v4237_v25  ;;  %v17076_v25 = vld [vmem:[#allocation194_spill] sm:$0xff]  ;;  %v3672_v41 = vmul.f32 %v12722_v24, %v3671_v55  ;;  %vm3714_vm11 = vweird.f32 %v12816_v34 }
 0x494   :  { %4750 = vst [vmem:[%s14510_s1 + $0x5f8] sm:$0xff] %v4238_v47  ;;  %v4276_v57 = vmul.f32 %v3696_v0, %v17076_v25  ;;  %v3686_v47 = vsel %vm3685_vm4, %v12675_v58, %v3682_v43  ;;  %v17079_v58 = vld [vmem:[#allocation195_spill] sm:$0xff]  ;;  %v3313_v43 = vmul.f32 %v3017_v31, %v7774_v40  ;;  %v17082_v31 = vld [vmem:[#allocation202_spill] sm:$0xff]  ;;  %vm3715_vm13 = vmor %vm3713_vm12, %vm3714_vm11 }
 0x495   :  { %4783 = vst [vmem:[%s14510_s1 + $0x700] sm:$0xff] %v4271_v15  ;;  %v17077_v15 = vld [vmem:[#allocation180_spill] sm:$0xff] }
 0x496   :  { %4784 = vst [vmem:[%s14510_s1 + $0x708] sm:$0xff] %v4272_v32  ;;  %v4277_v14 = vmul.f32 %v3696_v0, %v17077_v15  ;;  %v4263_v32 = vmul.f32 %v3686_v47, %v17079_v58  ;;  %v17080_v0 = vld [vmem:[#allocation174_spill] sm:$0xff]  ;;  %v17083_v15 = vld [vmem:[#allocation200_spill] sm:$0xff] }
 0x497   :  { %4785 = vst [vmem:[%s14510_s1 + $0x710] sm:$0xff] %v4273_v23  ;;  %v4264_v21 = vmul.f32 %v3686_v47, %v17080_v0  ;;  %v3720_v23 = vmul.f32 0.5, %v3719_v1  ;;  %v4267_v55 = vmul.f32 %v3686_v47, %v17083_v15  ;;  %v12855_v1 = vadd.f32 1e-05, %v3313_v43  ;;  %v3008_v0 = vpop.xlane.xlu1 %3007  ;;  %v17086_v43 = vld [vmem:[#allocation213_spill] sm:$0xff] }
 0x498   :  { %4786 = vst [vmem:[%s14510_s1 + $0x718] sm:$0xff] %v4274_v16  ;;  %v3708_v16 = vmul.f32 %v12816_v34, %v12761_v42  ;;  %v4270_v15 = vmul.f32 %v3686_v47, %v17086_v43 }
 0x499   :  { %4787 = vst [vmem:[%s14510_s1 + $0x720] sm:$0xff] %v4275_v3  ;;  %v17081_v3 = vld [vmem:[#allocation199_spill] sm:$0xff]  ;;  %v3721_v44 = vsub.f32 1.5, %v3720_v23  ;;  %5142 = vrsqrt.f32 %v12855_v1  ;;  %vm3753_vm2 = vweird.f32 %v12855_v1 }
 0x49a   :  { %4788 = vst [vmem:[%s14510_s1 + $0x728] sm:$0xff] %v4276_v57  ;;  %v4265_v25 = vmul.f32 %v3686_v47, %v17081_v3  ;;  %v4266_v57 = vmul.f32 %v3686_v47, %v17082_v31  ;;  %v3709_v58 = vmul.f32 %v12816_v34, %v3708_v16  ;;  %v12863_v3 = vpop.eup %5140 }
 0x49b   :  { %4789 = vst [vmem:[%s14510_s1 + $0x730] sm:$0xff] %v4277_v14  ;;  %v17084_v14 = vld [vmem:[#allocation201_spill] sm:$0xff]  ;;  %v3722_v16 = vmul.f32 %v12769_v39, %v3721_v44  ;;  %vm3704_vm14 = vweird.f32 %v12863_v3 }
 0x49c   :  { %4790 = vst [vmem:[%s14510_s1 + $0x738] sm:$0xff] %v4278_v53  ;;  %v4268_v13 = vmul.f32 %v3686_v47, %v17084_v14  ;;  %v3676_v53 = vsel %vm3675_vm7, %v12722_v24, %v3672_v41  ;;  %v17087_v24 = vld [vmem:[#allocation182_spill] sm:$0xff]  ;;  %v3312_v41 = vmul.f32 %v3008_v0, %v7774_v40  ;;  %v17090_v0 = vld [vmem:[#allocation188_spill] sm:$0xff]  ;;  %vm3705_vm0 = vmor %vm3703_vm15, %vm3704_vm14 }
 0x49d   :  { %4775 = vst [vmem:[%s14510_s1 + $0x6c0] sm:$0xff] %v4263_v32  ;;  %v17085_v32 = vld [vmem:[#allocation212_spill] sm:$0xff] }
 0x49e   :  { %4776 = vst [vmem:[%s14510_s1 + $0x6c8] sm:$0xff] %v4264_v21  ;;  %v4269_v31 = vmul.f32 %v3686_v47, %v17085_v32  ;;  %v4255_v21 = vmul.f32 %v3676_v53, %v17087_v24  ;;  %v17088_v47 = vld [vmem:[#allocation179_spill] sm:$0xff]  ;;  %v17091_v32 = vld [vmem:[#allocation160_spill] sm:$0xff] }
 0x49f   :  { %4777 = vst [vmem:[%s14510_s1 + $0x6d0] sm:$0xff] %v4265_v25  ;;  %v4256_v23 = vmul.f32 %v3676_v53, %v17088_v47  ;;  %v3710_v25 = vmul.f32 0.5, %v3709_v58  ;;  %v4259_v44 = vmul.f32 %v3676_v53, %v17091_v32  ;;  %v12902_v58 = vadd.f32 1e-05, %v3312_v41  ;;  %v2999_v47 = vpop.xlane.xlu0 %2998  ;;  %v17094_v41 = vld [vmem:[#allocation170_spill] sm:$0xff] }
 0x4a0   :  { %4778 = vst [vmem:[%s14510_s1 + $0x6d8] sm:$0xff] %v4266_v57  ;;  %v3698_v57 = vmul.f32 %v12863_v3, %v12808_v5  ;;  %v4262_v32 = vmul.f32 %v3676_v53, %v17094_v41 }
 0x4a1   :  { %4779 = vst [vmem:[%s14510_s1 + $0x6e0] sm:$0xff] %v4267_v55  ;;  %v17089_v55 = vld [vmem:[#allocation183_spill] sm:$0xff]  ;;  %v3711_v49 = vsub.f32 1.5, %v3710_v25  ;;  %5144 = vrsqrt.f32 %v12902_v58  ;;  %vm3743_vm5 = vweird.f32 %v12902_v58 }
 0x4a2   :  { %4780 = vst [vmem:[%s14510_s1 + $0x6e8] sm:$0xff] %v4268_v13  ;;  %v4257_v14 = vmul.f32 %v3676_v53, %v17089_v55  ;;  %v4258_v13 = vmul.f32 %v3676_v53, %v17090_v0  ;;  %v3699_v24 = vmul.f32 %v12863_v3, %v3698_v57  ;;  %v12910_v55 = vpop.eup %5142 }
 0x4a3   :  { %4781 = vst [vmem:[%s14510_s1 + $0x6f0] sm:$0xff] %v4269_v31  ;;  %v17092_v31 = vld [vmem:[#allocation162_spill] sm:$0xff]  ;;  %v3712_v57 = vmul.f32 %v12816_v34, %v3711_v49  ;;  %vm3754_vm1 = vweird.f32 %v12910_v55 }
 0x4a4   :  { %4782 = vst [vmem:[%s14510_s1 + $0x6f8] sm:$0xff] %v4270_v15  ;;  %v4260_v43 = vmul.f32 %v3676_v53, %v17092_v31  ;;  %v3726_v15 = vsel %vm3725_vm10, %v12769_v39, %v3722_v16  ;;  %v17095_v39 = vld [vmem:[#allocation187_spill] sm:$0xff]  ;;  %v3311_v16 = vmul.f32 %v2999_v47, %v7774_v40  ;;  %v17098_v47 = vld [vmem:[#allocation197_spill] sm:$0xff]  ;;  %vm3755_vm3 = vmor %vm3753_vm2, %vm3754_vm1 }
 0x4a5   :  { %4767 = vst [vmem:[%s14510_s1 + $0x680] sm:$0xff] %v4255_v21  ;;  %v17093_v21 = vld [vmem:[#allocation196_spill] sm:$0xff] }
 0x4a6   :  { %4768 = vst [vmem:[%s14510_s1 + $0x688] sm:$0xff] %v4256_v23  ;;  %v4261_v0 = vmul.f32 %v3676_v53, %v17093_v21  ;;  %v4295_v23 = vmul.f32 %v3726_v15, %v17095_v39  ;;  %v17096_v53 = vld [vmem:[#allocation214_spill] sm:$0xff]  ;;  %v17099_v21 = vld [vmem:[#allocation217_spill] sm:$0xff] }
 0x4a7   :  { %4769 = vst [vmem:[%s14510_s1 + $0x690] sm:$0xff] %v4257_v14  ;;  %v4296_v25 = vmul.f32 %v3726_v15, %v17096_v53  ;;  %v3700_v14 = vmul.f32 0.5, %v3699_v24  ;;  %v4299_v49 = vmul.f32 %v3726_v15, %v17099_v21  ;;  %v12949_v24 = vadd.f32 1e-05, %v3311_v16  ;;  %v3044_v53 = vpop.xlane.xlu2 %3043  ;;  %v17102_v16 = vld [vmem:[#allocation229_spill] sm:$0xff] }
 0x4a8   :  { %4770 = vst [vmem:[%s14510_s1 + $0x698] sm:$0xff] %v4258_v13  ;;  %v3748_v13 = vmul.f32 %v12910_v55, %v12855_v1  ;;  %v4302_v21 = vmul.f32 %v3726_v15, %v17102_v16 }
 0x4a9   :  { %4771 = vst [vmem:[%s14510_s1 + $0x6a0] sm:$0xff] %v4259_v44  ;;  %v17097_v44 = vld [vmem:[#allocation191_spill] sm:$0xff]  ;;  %v3701_v42 = vsub.f32 1.5, %v3700_v14  ;;  %5146 = vrsqrt.f32 %v12949_v24  ;;  %vm3733_vm8 = vweird.f32 %v12949_v24 }
 0x4aa   :  { %4772 = vst [vmem:[%s14510_s1 + $0x6a8] sm:$0xff] %v4260_v43  ;;  %v4297_v31 = vmul.f32 %v3726_v15, %v17097_v44  ;;  %v4298_v43 = vmul.f32 %v3726_v15, %v17098_v47  ;;  %v3749_v39 = vmul.f32 %v12910_v55, %v3748_v13  ;;  %v12957_v44 = vpop.eup %5144 }
 0x4ab   :  { %4773 = vst [vmem:[%s14510_s1 + $0x6b0] sm:$0xff] %v4261_v0  ;;  %v17100_v0 = vld [vmem:[#allocation218_spill] sm:$0xff]  ;;  %v3702_v13 = vmul.f32 %v12863_v3, %v3701_v42  ;;  %vm3744_vm4 = vweird.f32 %v12957_v44 }
 0x4ac   :  { %4774 = vst [vmem:[%s14510_s1 + $0x6b8] sm:$0xff] %v4262_v32  ;;  %v4300_v41 = vmul.f32 %v3726_v15, %v17100_v0  ;;  %v3716_v32 = vsel %vm3715_vm13, %v12816_v34, %v3712_v57  ;;  %v17103_v34 = vld [vmem:[#allocation219_spill] sm:$0xff]  ;;  %v3316_v57 = vmul.f32 %v3044_v53, %v7774_v40  ;;  %v17106_v53 = vld [vmem:[#allocation225_spill] sm:$0xff]  ;;  %vm3745_vm6 = vmor %vm3743_vm5, %vm3744_vm4 }
 0x4ad   :  { %4807 = vst [vmem:[%s14510_s1 + $0x7c0] sm:$0xff] %v4295_v23  ;;  %v17101_v23 = vld [vmem:[#allocation204_spill] sm:$0xff] }
 0x4ae   :  { %4808 = vst [vmem:[%s14510_s1 + $0x7c8] sm:$0xff] %v4296_v25  ;;  %v4301_v47 = vmul.f32 %v3726_v15, %v17101_v23  ;;  %v4287_v25 = vmul.f32 %v3716_v32, %v17103_v34  ;;  %v17104_v15 = vld [vmem:[#allocation198_spill] sm:$0xff]  ;;  %v17107_v23 = vld [vmem:[#allocation224_spill] sm:$0xff] }
 0x4af   :  { %4809 = vst [vmem:[%s14510_s1 + $0x7d0] sm:$0xff] %v4297_v31  ;;  %v4288_v14 = vmul.f32 %v3716_v32, %v17104_v15  ;;  %v3750_v31 = vmul.f32 0.5, %v3749_v39  ;;  %v4291_v42 = vmul.f32 %v3716_v32, %v17107_v23  ;;  %v12996_v39 = vadd.f32 1e-05, %v3316_v57  ;;  %v3035_v15 = vpop.xlane.xlu1 %3034  ;;  %v17110_v57 = vld [vmem:[#allocation237_spill] sm:$0xff] }
 0x4b0   :  { %4810 = vst [vmem:[%s14510_s1 + $0x7d8] sm:$0xff] %v4298_v43  ;;  %v3738_v43 = vmul.f32 %v12957_v44, %v12902_v58  ;;  %v4294_v23 = vmul.f32 %v3716_v32, %v17110_v57 }
 0x4b1   :  { %4811 = vst [vmem:[%s14510_s1 + $0x7e0] sm:$0xff] %v4299_v49  ;;  %v17105_v49 = vld [vmem:[#allocation223_spill] sm:$0xff]  ;;  %v3751_v5 = vsub.f32 1.5, %v3750_v31  ;;  %5148 = vrsqrt.f32 %v12996_v39  ;;  %vm3783_vm11 = vweird.f32 %v12996_v39 }
 0x4b2   :  { %4812 = vst [vmem:[%s14510_s1 + $0x7e8] sm:$0xff] %v4300_v41  ;;  %v4289_v0 = vmul.f32 %v3716_v32, %v17105_v49  ;;  %v4290_v41 = vmul.f32 %v3716_v32, %v17106_v53  ;;  %v3739_v34 = vmul.f32 %v12957_v44, %v3738_v43  ;;  %v13004_v49 = vpop.eup %5146 }
 0x4b3   :  { %4813 = vst [vmem:[%s14510_s1 + $0x7f0] sm:$0xff] %v4301_v47  ;;  %v17108_v47 = vld [vmem:[#allocation226_spill] sm:$0xff]  ;;  %v3752_v43 = vmul.f32 %v12910_v55, %v3751_v5  ;;  %vm3734_vm7 = vweird.f32 %v13004_v49 }
 0x4b4   :  { %4814 = vst [vmem:[%s14510_s1 + $0x7f8] sm:$0xff] %v4302_v21  ;;  %v4292_v16 = vmul.f32 %v3716_v32, %v17108_v47  ;;  %v3706_v21 = vsel %vm3705_vm0, %v12863_v3, %v3702_v13  ;;  %v17111_v3 = vld [vmem:[#allocation206_spill] sm:$0xff]  ;;  %v3315_v13 = vmul.f32 %v3035_v15, %v7774_v40  ;;  %v17114_v15 = vld [vmem:[#allocation208_spill] sm:$0xff]  ;;  %vm3735_vm9 = vmor %vm3733_vm8, %vm3734_vm7 }
 0x4b5   :  { %4799 = vst [vmem:[%s14510_s1 + $0x780] sm:$0xff] %v4287_v25  ;;  %v17109_v25 = vld [vmem:[#allocation236_spill] sm:$0xff] }
 0x4b6   :  { %4800 = vst [vmem:[%s14510_s1 + $0x788] sm:$0xff] %v4288_v14  ;;  %v4293_v53 = vmul.f32 %v3716_v32, %v17109_v25  ;;  %v4279_v14 = vmul.f32 %v3706_v21, %v17111_v3  ;;  %v17112_v32 = vld [vmem:[#allocation203_spill] sm:$0xff]  ;;  %v17115_v25 = vld [vmem:[#allocation185_spill] sm:$0xff] }
 0x4b7   :  { %4801 = vst [vmem:[%s14510_s1 + $0x790] sm:$0xff] %v4289_v0  ;;  %v4280_v31 = vmul.f32 %v3706_v21, %v17112_v32  ;;  %v3740_v0 = vmul.f32 0.5, %v3739_v34  ;;  %v4283_v5 = vmul.f32 %v3706_v21, %v17115_v25  ;;  %v13043_v34 = vadd.f32 1e-05, %v3315_v13  ;;  %v3026_v32 = vpop.xlane.xlu0 %3025  ;;  %v17118_v13 = vld [vmem:[#allocation193_spill] sm:$0xff] }
 0x4b8   :  { %4802 = vst [vmem:[%s14510_s1 + $0x798] sm:$0xff] %v4290_v41  ;;  %v3728_v41 = vmul.f32 %v13004_v49, %v12949_v24  ;;  %v4286_v25 = vmul.f32 %v3706_v21, %v17118_v13 }
 0x4b9   :  { %4803 = vst [vmem:[%s14510_s1 + $0x7a0] sm:$0xff] %v4291_v42  ;;  %v17113_v42 = vld [vmem:[#allocation207_spill] sm:$0xff]  ;;  %v3741_v1 = vsub.f32 1.5, %v3740_v0  ;;  %5150 = vrsqrt.f32 %v13043_v34  ;;  %vm3773_vm14 = vweird.f32 %v13043_v34 }
 0x4ba   :  { %4804 = vst [vmem:[%s14510_s1 + $0x7a8] sm:$0xff] %v4292_v16  ;;  %v4281_v47 = vmul.f32 %v3706_v21, %v17113_v42  ;;  %v4282_v16 = vmul.f32 %v3706_v21, %v17114_v15  ;;  %v3729_v3 = vmul.f32 %v13004_v49, %v3728_v41  ;;  %v13051_v42 = vpop.eup %5148 }
 0x4bb   :  { %4805 = vst [vmem:[%s14510_s1 + $0x7b0] sm:$0xff] %v4293_v53  ;;  %v17116_v53 = vld [vmem:[#allocation186_spill] sm:$0xff]  ;;  %v3742_v41 = vmul.f32 %v12957_v44, %v3741_v1  ;;  %vm3784_vm10 = vweird.f32 %v13051_v42 }
 0x4bc   :  { %4806 = vst [vmem:[%s14510_s1 + $0x7b8] sm:$0xff] %v4294_v23  ;;  %v4284_v57 = vmul.f32 %v3706_v21, %v17116_v53  ;;  %v3756_v23 = vsel %vm3755_vm3, %v12910_v55, %v3752_v43  ;;  %v17119_v55 = vld [vmem:[#allocation211_spill] sm:$0xff]  ;;  %v3314_v43 = vmul.f32 %v3026_v32, %v7774_v40  ;;  %v17122_v32 = vld [vmem:[#allocation221_spill] sm:$0xff]  ;;  %vm3785_vm12 = vmor %vm3783_vm11, %vm3784_vm10 }
 0x4bd   :  { %4791 = vst [vmem:[%s14510_s1 + $0x740] sm:$0xff] %v4279_v14  ;;  %v17117_v14 = vld [vmem:[#allocation216_spill] sm:$0xff] }
 0x4be   :  { %4792 = vst [vmem:[%s14510_s1 + $0x748] sm:$0xff] %v4280_v31  ;;  %v4285_v15 = vmul.f32 %v3706_v21, %v17117_v14  ;;  %v4319_v31 = vmul.f32 %v3756_v23, %v17119_v55  ;;  %v17120_v21 = vld [vmem:[#allocation238_spill] sm:$0xff]  ;;  %v17123_v14 = vld [vmem:[#allocation241_spill] sm:$0xff] }
 0x4bf   :  { %4793 = vst [vmem:[%s14510_s1 + $0x750] sm:$0xff] %v4281_v47  ;;  %v4320_v0 = vmul.f32 %v3756_v23, %v17120_v21  ;;  %v3730_v47 = vmul.f32 0.5, %v3729_v3  ;;  %v4323_v1 = vmul.f32 %v3756_v23, %v17123_v14  ;;  %v13090_v3 = vadd.f32 1e-05, %v3314_v43  ;;  %v3071_v21 = vpop.xlane.xlu2 %3070  ;;  %v17126_v43 = vld [vmem:[#allocation253_spill] sm:$0xff] }
 0x4c0   :  { %4794 = vst [vmem:[%s14510_s1 + $0x758] sm:$0xff] %v4282_v16  ;;  %v3778_v16 = vmul.f32 %v13051_v42, %v12996_v39  ;;  %v4326_v14 = vmul.f32 %v3756_v23, %v17126_v43 }
 0x4c1   :  { %4795 = vst [vmem:[%s14510_s1 + $0x760] sm:$0xff] %v4283_v5  ;;  %v17121_v5 = vld [vmem:[#allocation215_spill] sm:$0xff]  ;;  %v3731_v58 = vsub.f32 1.5, %v3730_v47  ;;  %5152 = vrsqrt.f32 %v13090_v3  ;;  %vm3763_vm1 = vweird.f32 %v13090_v3 }
 0x4c2   :  { %4796 = vst [vmem:[%s14510_s1 + $0x768] sm:$0xff] %v4284_v57  ;;  %v4321_v53 = vmul.f32 %v3756_v23, %v17121_v5  ;;  %v4322_v57 = vmul.f32 %v3756_v23, %v17122_v32  ;;  %v3779_v55 = vmul.f32 %v13051_v42, %v3778_v16  ;;  %v13098_v5 = vpop.eup %5150 }
 0x4c3   :  { %4797 = vst [vmem:[%s14510_s1 + $0x770] sm:$0xff] %v4285_v15  ;;  %v17124_v15 = vld [vmem:[#allocation242_spill] sm:$0xff]  ;;  %v3732_v16 = vmul.f32 %v13004_v49, %v3731_v58  ;;  %vm3774_vm13 = vweird.f32 %v13098_v5 }
 0x4c4   :  { %4798 = vst [vmem:[%s14510_s1 + $0x778] sm:$0xff] %v4286_v25  ;;  %v4324_v13 = vmul.f32 %v3756_v23, %v17124_v15  ;;  %v3746_v25 = vsel %vm3745_vm6, %v12957_v44, %v3742_v41  ;;  %v17127_v44 = vld [vmem:[#allocation243_spill] sm:$0xff]  ;;  %v3319_v41 = vmul.f32 %v3071_v21, %v7774_v40  ;;  %v17130_v21 = vld [vmem:[#allocation252_spill] sm:$0xff]  ;;  %vm3775_vm15 = vmor %vm3773_vm14, %vm3774_vm13 }
 0x4c5   :  { %4831 = vst [vmem:[%s14510_s1 + $0x880] sm:$0xff] %v4319_v31  ;;  %v17125_v31 = vld [vmem:[#allocation228_spill] sm:$0xff] }
 0x4c6   :  { %4832 = vst [vmem:[%s14510_s1 + $0x888] sm:$0xff] %v4320_v0  ;;  %v4325_v32 = vmul.f32 %v3756_v23, %v17125_v31  ;;  %v4311_v0 = vmul.f32 %v3746_v25, %v17127_v44  ;;  %v17128_v23 = vld [vmem:[#allocation222_spill] sm:$0xff]  ;;  %v17131_v31 = vld [vmem:[#allocation249_spill] sm:$0xff] }
 0x4c7   :  { %4833 = vst [vmem:[%s14510_s1 + $0x890] sm:$0xff] %v4321_v53  ;;  %v4312_v47 = vmul.f32 %v3746_v25, %v17128_v23  ;;  %v3780_v53 = vmul.f32 0.5, %v3779_v55  ;;  %v4315_v58 = vmul.f32 %v3746_v25, %v17131_v31  ;;  %v13137_v55 = vadd.f32 1e-05, %v3319_v41  ;;  %v3062_v23 = vpop.xlane.xlu1 %3061  ;;  %v17134_v41 = vld [vmem:[#allocation261_spill] sm:$0xff] }
 0x4c8   :  { %4834 = vst [vmem:[%s14510_s1 + $0x898] sm:$0xff] %v4322_v57  ;;  %v3768_v57 = vmul.f32 %v13098_v5, %v13043_v34  ;;  %v4318_v31 = vmul.f32 %v3746_v25, %v17134_v41 }
 0x4c9   :  { %4835 = vst [vmem:[%s14510_s1 + $0x8a0] sm:$0xff] %v4323_v1  ;;  %v17129_v1 = vld [vmem:[#allocation247_spill] sm:$0xff]  ;;  %v3781_v24 = vsub.f32 1.5, %v3780_v53  ;;  %5154 = vrsqrt.f32 %v13137_v55  ;;  %vm3813_vm4 = vweird.f32 %v13137_v55 }
 0x4ca   :  { %4836 = vst [vmem:[%s14510_s1 + $0x8a8] sm:$0xff] %v4324_v13  ;;  %v4313_v15 = vmul.f32 %v3746_v25, %v17129_v1  ;;  %v4314_v13 = vmul.f32 %v3746_v25, %v17130_v21  ;;  %v3769_v44 = vmul.f32 %v13098_v5, %v3768_v57  ;;  %v13145_v1 = vpop.eup %5152  ;;  %v3318_v57 = vmul.f32 %v3062_v23, %v7774_v40  ;;  %v17138_v23 = vld [vmem:[#allocation234_spill] sm:$0xff] }
 0x4cb   :  { %4837 = vst [vmem:[%s14510_s1 + $0x8b0] sm:$0xff] %v4325_v32  ;;  %v17132_v32 = vld [vmem:[#allocation250_spill] sm:$0xff]  ;;  %vm3764_vm0 = vweird.f32 %v13145_v1 }
 0x4cc   :  { %4838 = vst [vmem:[%s14510_s1 + $0x8b8] sm:$0xff] %v4326_v14  ;;  %v4316_v43 = vmul.f32 %v3746_v25, %v17132_v32  ;;  %v3736_v14 = vsel %vm3735_vm9, %v13004_v49, %v3732_v16  ;;  %v17135_v49 = vld [vmem:[#allocation230_spill] sm:$0xff]  ;;  %v17136_v16 = vld [vmem:[#allocation227_spill] sm:$0xff]  ;;  %vm3765_vm2 = vmor %vm3763_vm1, %vm3764_vm0 }
 0x4cd   :  { %4823 = vst [vmem:[%s14510_s1 + $0x840] sm:$0xff] %v4311_v0  ;;  %v17133_v0 = vld [vmem:[#allocation260_spill] sm:$0xff]  ;;  %v4304_v53 = vmul.f32 %v3736_v14, %v17136_v16  ;;  %v3053_v16 = vpop.xlane.xlu0 %3052 }
 0x4ce   :  { %4824 = vst [vmem:[%s14510_s1 + $0x848] sm:$0xff] %v4312_v47  ;;  %v4317_v21 = vmul.f32 %v3746_v25, %v17133_v0  ;;  %v4303_v47 = vmul.f32 %v3736_v14, %v17135_v49  ;;  %v3782_v25 = vmul.f32 %v13051_v42, %v3781_v24  ;;  %v17139_v24 = vld [vmem:[#allocation209_spill] sm:$0xff] }
 0x4cf   :  { %4825 = vst [vmem:[%s14510_s1 + $0x850] sm:$0xff] %v4313_v15  ;;  %v3770_v15 = vmul.f32 0.5, %v3769_v44  ;;  %v4307_v0 = vmul.f32 %v3736_v14, %v17139_v24  ;;  %v13182_v44 = vadd.f32 1e-05, %v3318_v57 }
 0x4d0   :  { %4826 = vst [vmem:[%s14510_s1 + $0x858] sm:$0xff] %v4314_v13  ;;  %v3758_v13 = vmul.f32 %v13145_v1, %v13090_v3 }
 0x4d1   :  { %4827 = vst [vmem:[%s14510_s1 + $0x860] sm:$0xff] %v4315_v58  ;;  %v17137_v58 = vld [vmem:[#allocation231_spill] sm:$0xff]  ;;  %v3771_v49 = vsub.f32 1.5, %v3770_v15  ;;  %5156 = vrsqrt.f32 %v13182_v44  ;;  %vm3803_vm7 = vweird.f32 %v13182_v44 }
 0x4d2   :  { %4828 = vst [vmem:[%s14510_s1 + $0x868] sm:$0xff] %v4316_v43  ;;  %v4305_v32 = vmul.f32 %v3736_v14, %v17137_v58  ;;  %v4306_v43 = vmul.f32 %v3736_v14, %v17138_v23  ;;  %v3759_v39 = vmul.f32 %v13145_v1, %v3758_v13  ;;  %v13190_v58 = vpop.eup %5154  ;;  %v17141_v23 = vld [vmem:[#allocation244_spill] sm:$0xff] }
 0x4d3   :  { %4829 = vst [vmem:[%s14510_s1 + $0x870] sm:$0xff] %v4317_v21  ;;  %v17140_v21 = vld [vmem:[#allocation210_spill] sm:$0xff]  ;;  %v4309_v24 = vmul.f32 %v3736_v14, %v17141_v23  ;;  %v3772_v13 = vmul.f32 %v13098_v5, %v3771_v49  ;;  %v17147_v23 = vld [vmem:[#allocation265_spill] sm:$0xff]  ;;  %vm3814_vm3 = vweird.f32 %v13190_v58 }
 0x4d4   :  { %4830 = vst [vmem:[%s14510_s1 + $0x878] sm:$0xff] %v4318_v31  ;;  %v4308_v41 = vmul.f32 %v3736_v14, %v17140_v21  ;;  %v3786_v31 = vsel %vm3785_vm12, %v13051_v42, %v3782_v25  ;;  %v17143_v42 = vld [vmem:[#allocation235_spill] sm:$0xff]  ;;  %v3317_v25 = vmul.f32 %v3053_v16, %v7774_v40  ;;  %v17146_v16 = vld [vmem:[#allocation264_spill] sm:$0xff]  ;;  %vm3815_vm5 = vmor %vm3813_vm4, %vm3814_vm3 }
 0x4d5   :  { %4815 = vst [vmem:[%s14510_s1 + $0x800] sm:$0xff] %v4303_v47  ;;  %v17142_v47 = vld [vmem:[#allocation220_spill] sm:$0xff]  ;;  %v4347_v49 = vmul.f32 %v3786_v31, %v17147_v23 }
 0x4d6   :  { %4816 = vst [vmem:[%s14510_s1 + $0x808] sm:$0xff] %v4304_v53  ;;  %v4310_v57 = vmul.f32 %v3736_v14, %v17142_v47  ;;  %v4343_v53 = vmul.f32 %v3786_v31, %v17143_v42  ;;  %v17144_v14 = vld [vmem:[#allocation262_spill] sm:$0xff] }
 0x4d7   :  { %4817 = vst [vmem:[%s14510_s1 + $0x810] sm:$0xff] %v4305_v32  ;;  %v4344_v15 = vmul.f32 %v3786_v31, %v17144_v14  ;;  %v3760_v32 = vmul.f32 0.5, %v3759_v39  ;;  %v13229_v39 = vadd.f32 1e-05, %v3317_v25  ;;  %v3098_v14 = vpop.xlane.xlu2 %3097  ;;  %v17150_v25 = vld [vmem:[#allocation273_spill] sm:$0xff] }
 0x4d8   :  { %4818 = vst [vmem:[%s14510_s1 + $0x818] sm:$0xff] %v4306_v43  ;;  %v3808_v43 = vmul.f32 %v13190_v58, %v13137_v55  ;;  %v4350_v23 = vmul.f32 %v3786_v31, %v17150_v25 }
 0x4d9   :  { %4819 = vst [vmem:[%s14510_s1 + $0x820] sm:$0xff] %v4307_v0  ;;  %v17145_v0 = vld [vmem:[#allocation239_spill] sm:$0xff]  ;;  %v3761_v34 = vsub.f32 1.5, %v3760_v32  ;;  %5158 = vrsqrt.f32 %v13229_v39  ;;  %vm3793_vm10 = vweird.f32 %v13229_v39 }
 0x4da   :  { %4820 = vst [vmem:[%s14510_s1 + $0x828] sm:$0xff] %v4308_v41  ;;  %v4345_v21 = vmul.f32 %v3786_v31, %v17145_v0  ;;  %v4346_v41 = vmul.f32 %v3786_v31, %v17146_v16  ;;  %v3809_v42 = vmul.f32 %v13190_v58, %v3808_v43  ;;  %v13237_v0 = vpop.eup %5156 }
 0x4db   :  { %4821 = vst [vmem:[%s14510_s1 + $0x830] sm:$0xff] %v4309_v24  ;;  %v17148_v24 = vld [vmem:[#allocation267_spill] sm:$0xff]  ;;  %v3762_v43 = vmul.f32 %v13145_v1, %v3761_v34  ;;  %vm3804_vm6 = vweird.f32 %v13237_v0 }
 0x4dc   :  { %4822 = vst [vmem:[%s14510_s1 + $0x838] sm:$0xff] %v4310_v57  ;;  %v4348_v47 = vmul.f32 %v3786_v31, %v17148_v24  ;;  %v3776_v57 = vsel %vm3775_vm15, %v13098_v5, %v3772_v13  ;;  %v17151_v5 = vld [vmem:[#allocation246_spill] sm:$0xff]  ;;  %v3322_v13 = vmul.f32 %v3098_v14, %v7774_v40  ;;  %v17154_v14 = vld [vmem:[#allocation277_spill] sm:$0xff]  ;;  %vm3805_vm8 = vmor %vm3803_vm7, %vm3804_vm6 }
 0x4dd   :  { %4855 = vst [vmem:[%s14510_s1 + $0x940] sm:$0xff] %v4343_v53  ;;  %v17149_v53 = vld [vmem:[#allocation271_spill] sm:$0xff] }
 0x4de   :  { %4856 = vst [vmem:[%s14510_s1 + $0x948] sm:$0xff] %v4344_v15  ;;  %v4349_v16 = vmul.f32 %v3786_v31, %v17149_v53  ;;  %v4335_v15 = vmul.f32 %v3776_v57, %v17151_v5  ;;  %v17152_v31 = vld [vmem:[#allocation248_spill] sm:$0xff]  ;;  %v17155_v53 = vld [vmem:[#allocation274_spill] sm:$0xff] }
 0x4df   :  { %4857 = vst [vmem:[%s14510_s1 + $0x950] sm:$0xff] %v4345_v21  ;;  %v4336_v32 = vmul.f32 %v3776_v57, %v17152_v31  ;;  %v3810_v21 = vmul.f32 0.5, %v3809_v42  ;;  %v4339_v34 = vmul.f32 %v3776_v57, %v17155_v53  ;;  %v13276_v42 = vadd.f32 1e-05, %v3322_v13  ;;  %v3089_v31 = vpop.xlane.xlu1 %3088  ;;  %v17158_v13 = vld [vmem:[#allocation256_spill] sm:$0xff] }
 0x4e0   :  { %4858 = vst [vmem:[%s14510_s1 + $0x958] sm:$0xff] %v4346_v41  ;;  %v3798_v41 = vmul.f32 %v13237_v0, %v13182_v44  ;;  %v4342_v53 = vmul.f32 %v3776_v57, %v17158_v13 }
 0x4e1   :  { %4859 = vst [vmem:[%s14510_s1 + $0x960] sm:$0xff] %v4347_v49  ;;  %v17153_v49 = vld [vmem:[#allocation272_spill] sm:$0xff]  ;;  %v3811_v3 = vsub.f32 1.5, %v3810_v21  ;;  %5160 = vrsqrt.f32 %v13276_v42  ;;  %vm3843_vm13 = vweird.f32 %v13276_v42 }
 0x4e2   :  { %4860 = vst [vmem:[%s14510_s1 + $0x968] sm:$0xff] %v4348_v47  ;;  %v4337_v24 = vmul.f32 %v3776_v57, %v17153_v49  ;;  %v4338_v47 = vmul.f32 %v3776_v57, %v17154_v14  ;;  %v3799_v5 = vmul.f32 %v13237_v0, %v3798_v41  ;;  %v13284_v49 = vpop.eup %5158  ;;  %v3321_v41 = vmul.f32 %v3089_v31, %v7774_v40  ;;  %v17162_v31 = vld [vmem:[#allocation257_spill] sm:$0xff] }
 0x4e3   :  { %4861 = vst [vmem:[%s14510_s1 + $0x970] sm:$0xff] %v4349_v16  ;;  %v17156_v16 = vld [vmem:[#allocation278_spill] sm:$0xff]  ;;  %vm3794_vm9 = vweird.f32 %v13284_v49 }
 0x4e4   :  { %4862 = vst [vmem:[%s14510_s1 + $0x978] sm:$0xff] %v4350_v23  ;;  %v4340_v25 = vmul.f32 %v3776_v57, %v17156_v16  ;;  %v3766_v23 = vsel %vm3765_vm2, %v13145_v1, %v3762_v43  ;;  %v17159_v1 = vld [vmem:[#allocation254_spill] sm:$0xff]  ;;  %v17160_v43 = vld [vmem:[#allocation251_spill] sm:$0xff]  ;;  %vm3795_vm11 = vmor %vm3793_vm10, %vm3794_vm9 }
 0x4e5   :  { %4847 = vst [vmem:[%s14510_s1 + $0x900] sm:$0xff] %v4335_v15  ;;  %v17157_v15 = vld [vmem:[#allocation284_spill] sm:$0xff]  ;;  %v4328_v21 = vmul.f32 %v3766_v23, %v17160_v43  ;;  %v3080_v43 = vpop.xlane.xlu0 %3079 }
 0x4e6   :  { %4848 = vst [vmem:[%s14510_s1 + $0x908] sm:$0xff] %v4336_v32  ;;  %v4341_v14 = vmul.f32 %v3776_v57, %v17157_v15  ;;  %v4327_v32 = vmul.f32 %v3766_v23, %v17159_v1  ;;  %v3812_v57 = vmul.f32 %v13190_v58, %v3811_v3  ;;  %v17163_v3 = vld [vmem:[#allocation232_spill] sm:$0xff] }
 0x4e7   :  { %4849 = vst [vmem:[%s14510_s1 + $0x910] sm:$0xff] %v4337_v24  ;;  %v3800_v24 = vmul.f32 0.5, %v3799_v5  ;;  %v4331_v15 = vmul.f32 %v3766_v23, %v17163_v3  ;;  %v13321_v5 = vadd.f32 1e-05, %v3321_v41 }
 0x4e8   :  { %4850 = vst [vmem:[%s14510_s1 + $0x918] sm:$0xff] %v4338_v47  ;;  %v3788_v47 = vmul.f32 %v13284_v49, %v13229_v39 }
 0x4e9   :  { %4851 = vst [vmem:[%s14510_s1 + $0x920] sm:$0xff] %v4339_v34  ;;  %v17161_v34 = vld [vmem:[#allocation255_spill] sm:$0xff]  ;;  %v3801_v1 = vsub.f32 1.5, %v3800_v24  ;;  %5162 = vrsqrt.f32 %v13321_v5  ;;  %vm3833_vm0 = vweird.f32 %v13321_v5 }
 0x4ea   :  { %4852 = vst [vmem:[%s14510_s1 + $0x928] sm:$0xff] %v4340_v25  ;;  %v4329_v16 = vmul.f32 %v3766_v23, %v17161_v34  ;;  %v4330_v25 = vmul.f32 %v3766_v23, %v17162_v31  ;;  %v3789_v55 = vmul.f32 %v13284_v49, %v3788_v47  ;;  %v13329_v34 = vpop.eup %5160  ;;  %v17165_v31 = vld [vmem:[#allocation240_spill] sm:$0xff] }
 0x4eb   :  { %4853 = vst [vmem:[%s14510_s1 + $0x930] sm:$0xff] %v4341_v14  ;;  %v17164_v14 = vld [vmem:[#allocation233_spill] sm:$0xff]  ;;  %v4333_v3 = vmul.f32 %v3766_v23, %v17165_v31  ;;  %v3802_v47 = vmul.f32 %v13237_v0, %v3801_v1  ;;  %v17171_v31 = vld [vmem:[#allocation291_spill] sm:$0xff]  ;;  %vm3844_vm12 = vweird.f32 %v13329_v34 }
 0x4ec   :  { %4854 = vst [vmem:[%s14510_s1 + $0x938] sm:$0xff] %v4342_v53  ;;  %v4332_v13 = vmul.f32 %v3766_v23, %v17164_v14  ;;  %v3816_v53 = vsel %vm3815_vm5, %v13190_v58, %v3812_v57  ;;  %v17167_v58 = vld [vmem:[#allocation286_spill] sm:$0xff]  ;;  %v3320_v57 = vmul.f32 %v3080_v43, %v7774_v40  ;;  %vm3845_vm14 = vmor %vm3843_vm13, %vm3844_vm12 }
 0x4ed   :  { %4839 = vst [vmem:[%s14510_s1 + $0x8c0] sm:$0xff] %v4327_v32  ;;  %v17166_v32 = vld [vmem:[#allocation245_spill] sm:$0xff]  ;;  %v17170_v43 = vld [vmem:[#allocation290_spill] sm:$0xff]  ;;  %v4371_v1 = vmul.f32 %v3816_v53, %v17171_v31 }
 0x4ee   :  { %4840 = vst [vmem:[%s14510_s1 + $0x8c8] sm:$0xff] %v4328_v21  ;;  %v4334_v41 = vmul.f32 %v3766_v23, %v17166_v32  ;;  %v4367_v21 = vmul.f32 %v3816_v53, %v17167_v58  ;;  %v17168_v23 = vld [vmem:[#allocation263_spill] sm:$0xff] }
 0x4ef   :  { %4841 = vst [vmem:[%s14510_s1 + $0x8d0] sm:$0xff] %v4329_v16  ;;  %v4368_v24 = vmul.f32 %v3816_v53, %v17168_v23  ;;  %v3790_v16 = vmul.f32 0.5, %v3789_v55  ;;  %v13368_v55 = vadd.f32 1e-05, %v3320_v57  ;;  %v3125_v23 = vpop.xlane.xlu2 %3124  ;;  %v17174_v57 = vld [vmem:[#allocation302_spill] sm:$0xff] }
 0x4f0   :  { %4842 = vst [vmem:[%s14510_s1 + $0x8d8] sm:$0xff] %v4330_v25  ;;  %v3838_v25 = vmul.f32 %v13329_v34, %v13276_v42  ;;  %v4374_v31 = vmul.f32 %v3816_v53, %v17174_v57 }
 0x4f1   :  { %4843 = vst [vmem:[%s14510_s1 + $0x8e0] sm:$0xff] %v4331_v15  ;;  %v17169_v15 = vld [vmem:[#allocation292_spill] sm:$0xff]  ;;  %v3791_v44 = vsub.f32 1.5, %v3790_v16  ;;  %5164 = vrsqrt.f32 %v13368_v55  ;;  %vm3823_vm3 = vweird.f32 %v13368_v55 }
 0x4f2   :  { %4844 = vst [vmem:[%s14510_s1 + $0x8e8] sm:$0xff] %v4332_v13  ;;  %v4369_v14 = vmul.f32 %v3816_v53, %v17169_v15  ;;  %v4370_v13 = vmul.f32 %v3816_v53, %v17170_v43  ;;  %v3839_v58 = vmul.f32 %v13329_v34, %v3838_v25  ;;  %v13376_v15 = vpop.eup %5162 }
 0x4f3   :  { %4845 = vst [vmem:[%s14510_s1 + $0x8f0] sm:$0xff] %v4333_v3  ;;  %v17172_v3 = vld [vmem:[#allocation270_spill] sm:$0xff]  ;;  %v3792_v25 = vmul.f32 %v13284_v49, %v3791_v44  ;;  %vm3834_vm15 = vweird.f32 %v13376_v15 }
 0x4f4   :  { %4846 = vst [vmem:[%s14510_s1 + $0x8f8] sm:$0xff] %v4334_v41  ;;  %v4372_v32 = vmul.f32 %v3816_v53, %v17172_v3  ;;  %v3806_v41 = vsel %vm3805_vm8, %v13237_v0, %v3802_v47  ;;  %v17175_v0 = vld [vmem:[#allocation276_spill] sm:$0xff]  ;;  %v3325_v47 = vmul.f32 %v3125_v23, %v7774_v40  ;;  %v17178_v23 = vld [vmem:[#allocation297_spill] sm:$0xff]  ;;  %vm3835_vm1 = vmor %vm3833_vm0, %vm3834_vm15 }
 0x4f5   :  { %4879 = vst [vmem:[%s14510_s1 + $0xa00] sm:$0xff] %v4367_v21  ;;  %v17173_v21 = vld [vmem:[#allocation301_spill] sm:$0xff] }
 0x4f6   :  { %4880 = vst [vmem:[%s14510_s1 + $0xa08] sm:$0xff] %v4368_v24  ;;  %v4373_v43 = vmul.f32 %v3816_v53, %v17173_v21  ;;  %v4359_v24 = vmul.f32 %v3806_v41, %v17175_v0  ;;  %v17176_v53 = vld [vmem:[#allocation295_spill] sm:$0xff] }
 0x4f7   :  { %4881 = vst [vmem:[%s14510_s1 + $0xa10] sm:$0xff] %v4369_v14  ;;  %v4360_v16 = vmul.f32 %v3806_v41, %v17176_v53  ;;  %v3840_v14 = vmul.f32 0.5, %v3839_v58  ;;  %v17179_v21 = vld [vmem:[#allocation299_spill] sm:$0xff]  ;;  %v13415_v58 = vadd.f32 1e-05, %v3325_v47  ;;  %v3116_v53 = vpop.xlane.xlu1 %3115 }
 0x4f8   :  { %4882 = vst [vmem:[%s14510_s1 + $0xa18] sm:$0xff] %v4370_v13  ;;  %v3828_v13 = vmul.f32 %v13376_v15, %v13321_v5  ;;  %v4363_v44 = vmul.f32 %v3806_v41, %v17179_v21  ;;  %v17182_v47 = vld [vmem:[#allocation283_spill] sm:$0xff] }
 0x4f9   :  { %4883 = vst [vmem:[%s14510_s1 + $0xa20] sm:$0xff] %v4371_v1  ;;  %v17177_v1 = vld [vmem:[#allocation296_spill] sm:$0xff]  ;;  %v3841_v39 = vsub.f32 1.5, %v3840_v14  ;;  %v4366_v21 = vmul.f32 %v3806_v41, %v17182_v47  ;;  %5166 = vrsqrt.f32 %v13415_v58  ;;  %vm3873_vm6 = vweird.f32 %v13415_v58 }
 0x4fa   :  { %4884 = vst [vmem:[%s14510_s1 + $0xa28] sm:$0xff] %v4372_v32  ;;  %v4361_v3 = vmul.f32 %v3806_v41, %v17177_v1  ;;  %v4362_v32 = vmul.f32 %v3806_v41, %v17178_v23  ;;  %v3829_v0 = vmul.f32 %v13376_v15, %v3828_v13  ;;  %v13423_v1 = vpop.eup %5164  ;;  %v3324_v13 = vmul.f32 %v3116_v53, %v7774_v40  ;;  %v17186_v53 = vld [vmem:[#allocation285_spill] sm:$0xff] }
 0x4fb   :  { %4885 = vst [vmem:[%s14510_s1 + $0xa30] sm:$0xff] %v4373_v43  ;;  %v17180_v43 = vld [vmem:[#allocation303_spill] sm:$0xff]  ;;  %vm3824_vm2 = vweird.f32 %v13423_v1 }
 0x4fc   :  { %4886 = vst [vmem:[%s14510_s1 + $0xa38] sm:$0xff] %v4374_v31  ;;  %v4364_v57 = vmul.f32 %v3806_v41, %v17180_v43  ;;  %v3796_v31 = vsel %vm3795_vm11, %v13284_v49, %v3792_v25  ;;  %v17183_v49 = vld [vmem:[#allocation275_spill] sm:$0xff]  ;;  %vm3825_vm4 = vmor %vm3823_vm3, %vm3824_vm2 }
 0x4fd   :  { %4871 = vst [vmem:[%s14510_s1 + $0x9c0] sm:$0xff] %v4359_v24  ;;  %v17181_v24 = vld [vmem:[#allocation281_spill] sm:$0xff]  ;;  %v17184_v25 = vld [vmem:[#allocation279_spill] sm:$0xff] }
 0x4fe   :  { %4872 = vst [vmem:[%s14510_s1 + $0x9c8] sm:$0xff] %v4360_v16  ;;  %v4365_v23 = vmul.f32 %v3806_v41, %v17181_v24  ;;  %v4351_v16 = vmul.f32 %v3796_v31, %v17183_v49  ;;  %v4352_v14 = vmul.f32 %v3796_v31, %v17184_v25  ;;  %v3842_v41 = vmul.f32 %v13329_v34, %v3841_v39  ;;  %v17187_v39 = vld [vmem:[#allocation258_spill] sm:$0xff]  ;;  %v3107_v25 = vpop.xlane.xlu0 %3106 }
 0x4ff   :  { %4873 = vst [vmem:[%s14510_s1 + $0x9d0] sm:$0xff] %v4361_v3  ;;  %v3830_v3 = vmul.f32 0.5, %v3829_v0  ;;  %v4355_v24 = vmul.f32 %v3796_v31, %v17187_v39  ;;  %v13460_v0 = vadd.f32 1e-05, %v3324_v13 }
 0x500   :  { %4874 = vst [vmem:[%s14510_s1 + $0x9d8] sm:$0xff] %v4362_v32  ;;  %v3818_v32 = vmul.f32 %v13423_v1, %v13368_v55 }
 0x501   :  { %4875 = vst [vmem:[%s14510_s1 + $0x9e0] sm:$0xff] %v4363_v44  ;;  %v17185_v44 = vld [vmem:[#allocation280_spill] sm:$0xff]  ;;  %v3831_v49 = vsub.f32 1.5, %v3830_v3  ;;  %5168 = vrsqrt.f32 %v13460_v0  ;;  %vm3863_vm9 = vweird.f32 %v13460_v0 }
 0x502   :  { %4876 = vst [vmem:[%s14510_s1 + $0x9e8] sm:$0xff] %v4364_v57  ;;  %v4353_v43 = vmul.f32 %v3796_v31, %v17185_v44  ;;  %v4354_v57 = vmul.f32 %v3796_v31, %v17186_v53  ;;  %v3819_v42 = vmul.f32 %v13423_v1, %v3818_v32  ;;  %v13468_v44 = vpop.eup %5166  ;;  %v17189_v53 = vld [vmem:[#allocation269_spill] sm:$0xff] }
 0x503   :  { %4877 = vst [vmem:[%s14510_s1 + $0x9f0] sm:$0xff] %v4365_v23  ;;  %v17188_v23 = vld [vmem:[#allocation259_spill] sm:$0xff]  ;;  %v4357_v39 = vmul.f32 %v3796_v31, %v17189_v53  ;;  %v3832_v32 = vmul.f32 %v13376_v15, %v3831_v49  ;;  %v17195_v53 = vld [vmem:[#allocation320_spill] sm:$0xff]  ;;  %vm3874_vm5 = vweird.f32 %v13468_v44 }
 0x504   :  { %4878 = vst [vmem:[%s14510_s1 + $0x9f8] sm:$0xff] %v4366_v21  ;;  %v4356_v47 = vmul.f32 %v3796_v31, %v17188_v23  ;;  %v3846_v21 = vsel %vm3845_vm14, %v13329_v34, %v3842_v41  ;;  %v17191_v34 = vld [vmem:[#allocation312_spill] sm:$0xff]  ;;  %v3323_v41 = vmul.f32 %v3107_v25, %v7774_v40  ;;  %v17194_v25 = vld [vmem:[#allocation318_spill] sm:$0xff]  ;;  %vm3875_vm7 = vmor %vm3873_vm6, %vm3874_vm5 }
 0x505   :  { %4863 = vst [vmem:[%s14510_s1 + $0x980] sm:$0xff] %v4351_v16  ;;  %v17190_v16 = vld [vmem:[#allocation288_spill] sm:$0xff]  ;;  %v4395_v49 = vmul.f32 %v3846_v21, %v17195_v53 }
 0x506   :  { %4864 = vst [vmem:[%s14510_s1 + $0x988] sm:$0xff] %v4352_v14  ;;  %v4358_v13 = vmul.f32 %v3796_v31, %v17190_v16  ;;  %v4391_v14 = vmul.f32 %v3846_v21, %v17191_v34  ;;  %v17192_v31 = vld [vmem:[#allocation313_spill] sm:$0xff] }
 0x507   :  { %4865 = vst [vmem:[%s14510_s1 + $0x990] sm:$0xff] %v4353_v43  ;;  %v4392_v3 = vmul.f32 %v3846_v21, %v17192_v31  ;;  %v3820_v43 = vmul.f32 0.5, %v3819_v42  ;;  %v13507_v42 = vadd.f32 1e-05, %v3323_v41  ;;  %v3152_v31 = vpop.xlane.xlu2 %3151  ;;  %v17198_v41 = vld [vmem:[#allocation331_spill] sm:$0xff] }
 0x508   :  { %4866 = vst [vmem:[%s14510_s1 + $0x998] sm:$0xff] %v4354_v57  ;;  %v3868_v57 = vmul.f32 %v13468_v44, %v13415_v58  ;;  %v4398_v53 = vmul.f32 %v3846_v21, %v17198_v41 }
 0x509   :  { %4867 = vst [vmem:[%s14510_s1 + $0x9a0] sm:$0xff] %v4355_v24  ;;  %v17193_v24 = vld [vmem:[#allocation314_spill] sm:$0xff]  ;;  %v3821_v5 = vsub.f32 1.5, %v3820_v43  ;;  %5170 = vrsqrt.f32 %v13507_v42  ;;  %vm3853_vm12 = vweird.f32 %v13507_v42 }
 0x50a   :  { %4868 = vst [vmem:[%s14510_s1 + $0x9a8] sm:$0xff] %v4356_v47  ;;  %v4393_v23 = vmul.f32 %v3846_v21, %v17193_v24  ;;  %v4394_v47 = vmul.f32 %v3846_v21, %v17194_v25  ;;  %v3869_v34 = vmul.f32 %v13468_v44, %v3868_v57  ;;  %v13515_v24 = vpop.eup %5168 }
 0x50b   :  { %4869 = vst [vmem:[%s14510_s1 + $0x9b0] sm:$0xff] %v4357_v39  ;;  %v17196_v39 = vld [vmem:[#allocation325_spill] sm:$0xff]  ;;  %v3822_v57 = vmul.f32 %v13423_v1, %v3821_v5  ;;  %vm3864_vm8 = vweird.f32 %v13515_v24 }
 0x50c   :  { %4870 = vst [vmem:[%s14510_s1 + $0x9b8] sm:$0xff] %v4358_v13  ;;  %v4396_v16 = vmul.f32 %v3846_v21, %v17196_v39  ;;  %v3836_v13 = vsel %vm3835_vm1, %v13376_v15, %v3832_v32  ;;  %v17199_v15 = vld [vmem:[#allocation319_spill] sm:$0xff]  ;;  %v3328_v32 = vmul.f32 %v3152_v31, %v7774_v40  ;;  %v17202_v31 = vld [vmem:[#allocation326_spill] sm:$0xff]  ;;  %vm3865_vm10 = vmor %vm3863_vm9, %vm3864_vm8 }
 0x50d   :  { %4903 = vst [vmem:[%s14510_s1 + $0xac0] sm:$0xff] %v4391_v14  ;;  %v17197_v14 = vld [vmem:[#allocation327_spill] sm:$0xff] }
 0x50e   :  { %4904 = vst [vmem:[%s14510_s1 + $0xac8] sm:$0xff] %v4392_v3  ;;  %v4397_v25 = vmul.f32 %v3846_v21, %v17197_v14  ;;  %v4383_v3 = vmul.f32 %v3836_v13, %v17199_v15  ;;  %v17200_v21 = vld [vmem:[#allocation321_spill] sm:$0xff] }
 0x50f   :  { %4905 = vst [vmem:[%s14510_s1 + $0xad0] sm:$0xff] %v4393_v23  ;;  %v4384_v43 = vmul.f32 %v3836_v13, %v17200_v21  ;;  %v3870_v23 = vmul.f32 0.5, %v3869_v34  ;;  %v17203_v14 = vld [vmem:[#allocation329_spill] sm:$0xff]  ;;  %v13554_v34 = vadd.f32 1e-05, %v3328_v32  ;;  %v3143_v21 = vpop.xlane.xlu1 %3142  ;;  %v17206_v32 = vld [vmem:[#allocation340_spill] sm:$0xff] }
 0x510   :  { %4906 = vst [vmem:[%s14510_s1 + $0xad8] sm:$0xff] %v4394_v47  ;;  %v3858_v47 = vmul.f32 %v13515_v24, %v13460_v0  ;;  %v4387_v5 = vmul.f32 %v3836_v13, %v17203_v14  ;;  %v4390_v14 = vmul.f32 %v3836_v13, %v17206_v32 }
 0x511   :  { %4907 = vst [vmem:[%s14510_s1 + $0xae0] sm:$0xff] %v4395_v49  ;;  %v17201_v49 = vld [vmem:[#allocation322_spill] sm:$0xff]  ;;  %v3871_v55 = vsub.f32 1.5, %v3870_v23  ;;  %5172 = vrsqrt.f32 %v13554_v34  ;;  %vm3903_vm15 = vweird.f32 %v13554_v34 }
 0x512   :  { %4908 = vst [vmem:[%s14510_s1 + $0xae8] sm:$0xff] %v4396_v16  ;;  %v4385_v39 = vmul.f32 %v3836_v13, %v17201_v49  ;;  %v4386_v16 = vmul.f32 %v3836_v13, %v17202_v31  ;;  %v3859_v15 = vmul.f32 %v13515_v24, %v3858_v47  ;;  %v13562_v49 = vpop.eup %5170  ;;  %v3327_v47 = vmul.f32 %v3143_v21, %v7774_v40  ;;  %v17210_v21 = vld [vmem:[#allocation282_spill] sm:$0xff] }
 0x513   :  { %4909 = vst [vmem:[%s14510_s1 + $0xaf0] sm:$0xff] %v4397_v25  ;;  %v17204_v25 = vld [vmem:[#allocation333_spill] sm:$0xff]  ;;  %vm3854_vm11 = vweird.f32 %v13562_v49 }
 0x514   :  { %4910 = vst [vmem:[%s14510_s1 + $0xaf8] sm:$0xff] %v4398_v53  ;;  %v4388_v41 = vmul.f32 %v3836_v13, %v17204_v25  ;;  %v3826_v53 = vsel %vm3825_vm4, %v13423_v1, %v3822_v57  ;;  %v17207_v1 = vld [vmem:[#allocation308_spill] sm:$0xff]  ;;  %vm3855_vm13 = vmor %vm3853_vm12, %vm3854_vm11 }
 0x515   :  { %4895 = vst [vmem:[%s14510_s1 + $0xa80] sm:$0xff] %v4383_v3  ;;  %v17205_v3 = vld [vmem:[#allocation336_spill] sm:$0xff] }
 0x516   :  { %4896 = vst [vmem:[%s14510_s1 + $0xa88] sm:$0xff] %v4384_v43  ;;  %v4389_v31 = vmul.f32 %v3836_v13, %v17205_v3  ;;  %v4375_v43 = vmul.f32 %v3826_v53, %v17207_v1  ;;  %v17208_v57 = vld [vmem:[#allocation304_spill] sm:$0xff]  ;;  %v3872_v13 = vmul.f32 %v13468_v44, %v3871_v55  ;;  %v17211_v55 = vld [vmem:[#allocation287_spill] sm:$0xff] }
 0x517   :  { %4897 = vst [vmem:[%s14510_s1 + $0xa90] sm:$0xff] %v4385_v39  ;;  %v4376_v23 = vmul.f32 %v3826_v53, %v17208_v57  ;;  %v3860_v39 = vmul.f32 0.5, %v3859_v15  ;;  %v4379_v3 = vmul.f32 %v3826_v53, %v17211_v55  ;;  %v13599_v15 = vadd.f32 1e-05, %v3327_v47  ;;  %v3134_v57 = vpop.xlane.xlu0 %3133 }
 0x518   :  { %4898 = vst [vmem:[%s14510_s1 + $0xa98] sm:$0xff] %v4386_v16  ;;  %v3848_v16 = vmul.f32 %v13562_v49, %v13507_v42 }
 0x519   :  { %4899 = vst [vmem:[%s14510_s1 + $0xaa0] sm:$0xff] %v4387_v5  ;;  %v17209_v5 = vld [vmem:[#allocation309_spill] sm:$0xff]  ;;  %v3861_v1 = vsub.f32 1.5, %v3860_v39  ;;  %5174 = vrsqrt.f32 %v13599_v15  ;;  %vm3893_vm2 = vweird.f32 %v13599_v15 }
 0x51a   :  { %4900 = vst [vmem:[%s14510_s1 + $0xaa8] sm:$0xff] %v4388_v41  ;;  %v4377_v25 = vmul.f32 %v3826_v53, %v17209_v5  ;;  %v4378_v41 = vmul.f32 %v3826_v53, %v17210_v21  ;;  %v3849_v58 = vmul.f32 %v13562_v49, %v3848_v16  ;;  %v13607_v5 = vpop.eup %5172  ;;  %v17213_v21 = vld [vmem:[#allocation294_spill] sm:$0xff] }
 0x51b   :  { %4901 = vst [vmem:[%s14510_s1 + $0xab0] sm:$0xff] %v4389_v31  ;;  %v17212_v31 = vld [vmem:[#allocation289_spill] sm:$0xff]  ;;  %v4381_v55 = vmul.f32 %v3826_v53, %v17213_v21  ;;  %v3862_v16 = vmul.f32 %v13515_v24, %v3861_v1  ;;  %v3179_v21 = vpop.xlane.xlu2 %3178  ;;  %vm3904_vm14 = vweird.f32 %v13607_v5 }
 0x51c   :  { %4902 = vst [vmem:[%s14510_s1 + $0xab8] sm:$0xff] %v4390_v14  ;;  %v4380_v32 = vmul.f32 %v3826_v53, %v17212_v31  ;;  %v3876_v14 = vsel %vm3875_vm7, %v13468_v44, %v3872_v13  ;;  %v17215_v44 = vld [vmem:[#allocation335_spill] sm:$0xff]  ;;  %v3326_v13 = vmul.f32 %v3134_v57, %v7774_v40  ;;  %vm3905_vm0 = vmor %vm3903_vm15, %vm3904_vm14 }
 0x51d   :  { %4887 = vst [vmem:[%s14510_s1 + $0xa40] sm:$0xff] %v4375_v43  ;;  %v17214_v43 = vld [vmem:[#allocation300_spill] sm:$0xff]  ;;  %v4419_v1 = vmul.f32 %v3876_v14, %v10686_v4  ;;  %v4420_v57 = vmul.f32 %v3876_v14, %v10692_v36  ;;  %v4422_v36 = vmul.f32 %v3876_v14, %v10708_v8 }
 0x51e   :  { %4888 = vst [vmem:[%s14510_s1 + $0xa48] sm:$0xff] %v4376_v23  ;;  %v4382_v47 = vmul.f32 %v3826_v53, %v17214_v43  ;;  %v4415_v23 = vmul.f32 %v3876_v14, %v17215_v44  ;;  %v17216_v53 = vld [vmem:[#allocation337_spill] sm:$0xff]  ;;  %v4421_v43 = vmul.f32 %v3876_v14, %v10696_v27  ;;  %v3331_v27 = vmul.f32 %v3179_v21, %v7774_v40 }
 0x51f   :  { %4889 = vst [vmem:[%s14510_s1 + $0xa50] sm:$0xff] %v4377_v25  ;;  %v4416_v39 = vmul.f32 %v3876_v14, %v17216_v53  ;;  %v3850_v25 = vmul.f32 0.5, %v3849_v58  ;;  %v13646_v58 = vadd.f32 1e-05, %v3326_v13  ;;  %v3170_v53 = vpop.xlane.xlu1 %3169 }
 0x520   :  { %4890 = vst [vmem:[%s14510_s1 + $0xa58] sm:$0xff] %v4378_v41  ;;  %v3898_v41 = vmul.f32 %v13607_v5, %v13554_v34  ;;  %v13693_v13 = vadd.f32 1e-05, %v3331_v27 }
 0x521   :  { %4891 = vst [vmem:[%s14510_s1 + $0xa60] sm:$0xff] %v4379_v3  ;;  %v17217_v3 = vld [vmem:[#allocation339_spill] sm:$0xff]  ;;  %v3851_v0 = vsub.f32 1.5, %v3850_v25  ;;  %5176 = vrsqrt.f32 %v13646_v58  ;;  %vm3883_vm5 = vweird.f32 %v13646_v58 }
 0x522   :  { %4892 = vst [vmem:[%s14510_s1 + $0xa68] sm:$0xff] %v4380_v32  ;;  %v4417_v31 = vmul.f32 %v3876_v14, %v17217_v3  ;;  %v4418_v32 = vmul.f32 %v3876_v14, %v10674_v28  ;;  %v3866_v28 = vsel %vm3865_vm10, %v13515_v24, %v3862_v16  ;;  %v3899_v4 = vmul.f32 %v13607_v5, %v3898_v41  ;;  %v17219_v41 = vld [vmem:[#allocation306_spill] sm:$0xff] }
 0x523   :  { %4893 = vst [vmem:[%s14510_s1 + $0xa70] sm:$0xff] %v4381_v55  ;;  %v13654_v55 = vpop.eup %5174  ;;  %v4407_v24 = vmul.f32 %v3866_v28, %v10702_v48  ;;  %v4408_v8 = vmul.f32 %v3866_v28, %v10712_v51  ;;  %v3852_v14 = vmul.f32 %v13562_v49, %v3851_v0  ;;  %v4409_v48 = vmul.f32 %v3866_v28, %v10729_v18 }
 0x524   :  { %4894 = vst [vmem:[%s14510_s1 + $0xa78] sm:$0xff] %v4382_v47  ;;  %v3900_v47 = vmul.f32 0.5, %v3899_v4  ;;  %v3888_v44 = vmul.f32 %v13654_v55, %v13599_v15  ;;  %v4411_v51 = vmul.f32 %v3866_v28, %v10753_v7  ;;  %v4412_v18 = vmul.f32 %v3866_v28, %v10757_v19  ;;  %v17222_v4 = vld [vmem:[#allocation315_spill] sm:$0xff] }
 0x525   :  { %4927 = vst [vmem:[%s14510_s1 + $0xb80] sm:$0xff] %v4415_v23  ;;  %v4410_v23 = vmul.f32 %v3866_v28, %v10733_v52  ;;  %v3856_v52 = vsel %vm3855_vm13, %v13562_v49, %v3852_v14  ;;  %v4413_v16 = vmul.f32 %v3866_v28, %v10766_v54  ;;  %v4414_v19 = vmul.f32 %v3866_v28, %v10770_v59  ;;  %v17218_v49 = vld [vmem:[#allocation305_spill] sm:$0xff]  ;;  %v17221_v28 = vld [vmem:[#allocation310_spill] sm:$0xff]  ;;  %v3161_v14 = vpop.xlane.xlu0 %3160 }
 0x526   :  { %4928 = vst [vmem:[%s14510_s1 + $0xb88] sm:$0xff] %v4416_v39  ;;  %v3901_v42 = vsub.f32 1.5, %v3900_v47  ;;  %v3889_v7 = vmul.f32 %v13654_v55, %v3888_v44  ;;  %v4399_v25 = vmul.f32 %v3856_v52, %v17218_v49  ;;  %v4400_v3 = vmul.f32 %v3856_v52, %v17219_v41  ;;  %v17224_v44 = vld [vmem:[#allocation323_spill] sm:$0xff]  ;;  %v3206_v49 = vpop.xlane.xlu2 %3205 }
 0x527   :  { %4929 = vst [vmem:[%s14510_s1 + $0xb90] sm:$0xff] %v4417_v31  ;;  %v13701_v39 = vpop.eup %5176  ;;  %5178 = vrsqrt.f32 %v13693_v13  ;;  %v3330_v54 = vmul.f32 %v3170_v53, %v7774_v40  ;;  %v4402_v0 = vmul.f32 %v3856_v52, %v17221_v28  ;;  %v4403_v21 = vmul.f32 %v3856_v52, %v17222_v4  ;;  %v17229_v28 = vld [vmem:[#allocation358_spill] sm:$0xff]  ;;  %v17230_v4 = vld [vmem:[#allocation363_spill] sm:$0xff] }
 0x528   :  { %4930 = vst [vmem:[%s14510_s1 + $0xb98] sm:$0xff] %v4418_v32  ;;  %v3902_v59 = vmul.f32 %v13607_v5, %v3901_v42  ;;  %v3890_v31 = vmul.f32 0.5, %v3889_v7  ;;  %v3878_v32 = vmul.f32 %v13701_v39, %v13646_v58  ;;  %vm3894_vm1 = vweird.f32 %v13654_v55 }
 0x529   :  { %4931 = vst [vmem:[%s14510_s1 + $0xba0] sm:$0xff] %v4419_v1  ;;  %v17220_v1 = vld [vmem:[#allocation307_spill] sm:$0xff]  ;;  %vm3895_vm3 = vmor %vm3893_vm2, %vm3894_vm1  ;;  %vm3884_vm4 = vweird.f32 %v13701_v39  ;;  %vm3933_vm8 = vweird.f32 %v13693_v13 }
 0x52a   :  { %4932 = vst [vmem:[%s14510_s1 + $0xba8] sm:$0xff] %v4420_v57  ;;  %v4401_v57 = vmul.f32 %v3856_v52, %v17220_v1  ;;  %v3906_v27 = vsel %vm3905_vm0, %v13607_v5, %v3902_v59  ;;  %v3879_v34 = vmul.f32 %v13701_v39, %v3878_v32  ;;  %v17228_v59 = vld [vmem:[#allocation356_spill] sm:$0xff]  ;;  %vm3885_vm6 = vmor %vm3883_vm5, %vm3884_vm4 }
 0x52b   :  { %4933 = vst [vmem:[%s14510_s1 + $0xbb0] sm:$0xff] %v4421_v43  ;;  %v13738_v43 = vadd.f32 1e-05, %v3330_v54  ;;  %v4439_v5 = vmul.f32 %v3906_v27, %v10874_v60  ;;  %v4441_v60 = vmul.f32 %v3906_v27, %v10906_v6  ;;  %v4444_v6 = vmul.f32 %v3906_v27, %v10940_v11 }
 0x52c   :  { %4934 = vst [vmem:[%s14510_s1 + $0xbb8] sm:$0xff] %v4422_v36  ;;  %v17223_v36 = vld [vmem:[#allocation317_spill] sm:$0xff]  ;;  %v3880_v7 = vmul.f32 0.5, %v3879_v34  ;;  %v4445_v41 = vmul.f32 %v3906_v27, %v10948_v56  ;;  %v3334_v56 = vmul.f32 %v3206_v49, %v7774_v40 }
 0x52d   :  { %4919 = vst [vmem:[%s14510_s1 + $0xb40] sm:$0xff] %v4407_v24  ;;  %v4404_v24 = vmul.f32 %v3856_v52, %v17223_v36  ;;  %v13746_v47 = vpop.eup %5178  ;;  %5180 = vrsqrt.f32 %v13738_v43  ;;  %v17231_v36 = vld [vmem:[#allocation328_spill] sm:$0xff]  ;;  %vm3923_vm11 = vweird.f32 %v13738_v43 }
 0x52e   :  { %4920 = vst [vmem:[%s14510_s1 + $0xb48] sm:$0xff] %v4408_v8  ;;  %v3891_v8 = vsub.f32 1.5, %v3890_v31  ;;  %v3928_v53 = vmul.f32 %v13746_v47, %v13693_v13  ;;  %v3881_v15 = vsub.f32 1.5, %v3880_v7  ;;  %v17236_v7 = vld [vmem:[#allocation346_spill] sm:$0xff]  ;;  %vm3934_vm7 = vweird.f32 %v13746_v47 }
 0x52f   :  { %4921 = vst [vmem:[%s14510_s1 + $0xb50] sm:$0xff] %v4409_v48  ;;  %v4405_v48 = vmul.f32 %v3856_v52, %v17224_v44  ;;  %vm3935_vm9 = vmor %vm3933_vm8, %vm3934_vm7 }
 0x530   :  { %4922 = vst [vmem:[%s14510_s1 + $0xb58] sm:$0xff] %v4410_v23  ;;  %v17225_v23 = vld [vmem:[#allocation324_spill] sm:$0xff]  ;;  %v3892_v42 = vmul.f32 %v13654_v55, %v3891_v8  ;;  %v3882_v32 = vmul.f32 %v13701_v39, %v3881_v15  ;;  %v17232_v8 = vld [vmem:[#allocation330_spill] sm:$0xff] }
 0x531   :  { %4923 = vst [vmem:[%s14510_s1 + $0xb60] sm:$0xff] %v4411_v51  ;;  %v4406_v51 = vmul.f32 %v3856_v52, %v17225_v23  ;;  %v4440_v52 = vmul.f32 %v3906_v27, %v10887_v45  ;;  %v4443_v45 = vmul.f32 %v3906_v27, %v10934_v17  ;;  %v3929_v17 = vmul.f32 %v13746_v47, %v3928_v53 }
 0x532   :  { %4924 = vst [vmem:[%s14510_s1 + $0xb68] sm:$0xff] %v4412_v18  ;;  %v3329_v18 = vmul.f32 %v3161_v14, %v7774_v40  ;;  %v3886_v14 = vsel %vm3885_vm6, %v13701_v39, %v3882_v32  ;;  %v17235_v39 = vld [vmem:[#allocation342_spill] sm:$0xff] }
 0x533   :  { %4925 = vst [vmem:[%s14510_s1 + $0xb70] sm:$0xff] %v4413_v16  ;;  %v4442_v16 = vmul.f32 %v3906_v27, %v10921_v12  ;;  %v3896_v12 = vsel %vm3895_vm3, %v13654_v55, %v3892_v42  ;;  %v17227_v55 = vld [vmem:[#allocation352_spill] sm:$0xff]  ;;  %v3930_v1 = vmul.f32 0.5, %v3929_v17  ;;  %v4423_v42 = vmul.f32 %v3886_v14, %v17235_v39  ;;  %v17238_v17 = vld [vmem:[#allocation351_spill] sm:$0xff] }
 0x534   :  { %4926 = vst [vmem:[%s14510_s1 + $0xb78] sm:$0xff] %v4414_v19  ;;  %v13785_v19 = vadd.f32 1e-05, %v3329_v18  ;;  %v4431_v54 = vmul.f32 %v3896_v12, %v17227_v55  ;;  %v4432_v31 = vmul.f32 %v3896_v12, %v17228_v59  ;;  %v4436_v34 = vmul.f32 %v3896_v12, %v17232_v8  ;;  %v17234_v18 = vld [vmem:[#allocation334_spill] sm:$0xff]  ;;  %v17240_v55 = vld [vmem:[#allocation355_spill] sm:$0xff] }
 0x535   :  { %4911 = vst [vmem:[%s14510_s1 + $0xb00] sm:$0xff] %v4399_v25  ;;  %v13793_v25 = vpop.eup %5180  ;;  %v3931_v58 = vsub.f32 1.5, %v3930_v1  ;;  %v4424_v53 = vmul.f32 %v3886_v14, %v17236_v7  ;;  %v4426_v49 = vmul.f32 %v3886_v14, %v17238_v17  ;;  %v17241_v1 = vld [vmem:[#allocation344_spill] sm:$0xff]  ;;  %v17248_v39 = vld [vmem:[#allocation367_spill] sm:$0xff] }
 0x536   :  { %4912 = vst [vmem:[%s14510_s1 + $0xb08] sm:$0xff] %v4400_v3  ;;  %v17226_v3 = vld [vmem:[#allocation350_spill] sm:$0xff]  ;;  %5182 = vrsqrt.f32 %v13785_v19  ;;  %vm3924_vm10 = vweird.f32 %v13793_v25  ;;  %vm3913_vm14 = vweird.f32 %v13785_v19 }
 0x537   :  { %4913 = vst [vmem:[%s14510_s1 + $0xb10] sm:$0xff] %v4401_v57  ;;  %v4446_v11 = vmul.f32 %v3906_v27, %v17226_v3  ;;  %v3918_v57 = vmul.f32 %v13793_v25, %v13738_v43  ;;  %v13832_v27 = vadd.f32 1e-05, %v3334_v56  ;;  %vm3925_vm12 = vmor %vm3923_vm11, %vm3924_vm10 }
 0x538   :  { %4914 = vst [vmem:[%s14510_s1 + $0xb18] sm:$0xff] %v4402_v0  ;;  %v4433_v0 = vmul.f32 %v3896_v12, %v17229_v28  ;;  %v17242_v28 = vld [vmem:[#allocation347_spill] sm:$0xff] }
 0x539   :  { %4915 = vst [vmem:[%s14510_s1 + $0xb20] sm:$0xff] %v4403_v21  ;;  %v4434_v21 = vmul.f32 %v3896_v12, %v17230_v4  ;;  %v3919_v44 = vmul.f32 %v13793_v25, %v3918_v57  ;;  %5184 = vrsqrt.f32 %v13832_v27  ;;  %v4429_v57 = vmul.f32 %v3886_v14, %v17241_v1 }
 0x53a   :  { %4916 = vst [vmem:[%s14510_s1 + $0xb28] sm:$0xff] %v4404_v24  ;;  %v4435_v24 = vmul.f32 %v3896_v12, %v17231_v36  ;;  %v17244_v36 = vld [vmem:[#allocation365_spill] sm:$0xff]  ;;  %vm3963_vm1 = vweird.f32 %v13832_v27 }
 0x53b   :  { %4917 = vst [vmem:[%s14510_s1 + $0xb30] sm:$0xff] %v4405_v48  ;;  %v3197_v48 = vpop.xlane.xlu1 %3196 }
 0x53c   :  { %4918 = vst [vmem:[%s14510_s1 + $0xb38] sm:$0xff] %v4406_v51  ;;  %v13840_v23 = vpop.eup %5182  ;;  %v17233_v51 = vld [vmem:[#allocation332_spill] sm:$0xff] }
 0x53d   :  { %4951 = vst [vmem:[%s14510_s1 + $0xc40] sm:$0xff] %v4439_v5  ;;  %v4437_v5 = vmul.f32 %v3896_v12, %v17233_v51  ;;  %vm3914_vm13 = vweird.f32 %v13840_v23 }
 0x53e   :  { %4952 = vst [vmem:[%s14510_s1 + $0xc48] sm:$0xff] %v4440_v52  ;;  %v4438_v52 = vmul.f32 %v3896_v12, %v17234_v18  ;;  %v17237_v12 = vld [vmem:[#allocation349_spill] sm:$0xff]  ;;  %vm3915_vm15 = vmor %vm3913_vm14, %vm3914_vm13 }
 0x53f   :  { %4953 = vst [vmem:[%s14510_s1 + $0xc50] sm:$0xff] %v4441_v60  ;;  %v3333_v60 = vmul.f32 %v3197_v48, %v7774_v40  ;;  %v4425_v15 = vmul.f32 %v3886_v14, %v17237_v12  ;;  %v13885_v32 = vpop.eup %5184  ;;  %v17246_v48 = vld [vmem:[#allocation380_spill] sm:$0xff] }
 0x540   :  { %4954 = vst [vmem:[%s14510_s1 + $0xc58] sm:$0xff] %v4442_v16  ;;  %v3932_v16 = vmul.f32 %v13746_v47, %v3931_v58  ;;  %v17245_v58 = vld [vmem:[#allocation378_spill] sm:$0xff]  ;;  %v17250_v12 = vld [vmem:[#allocation372_spill] sm:$0xff]  ;;  %vm3964_vm0 = vweird.f32 %v13885_v32 }
 0x541   :  { %4955 = vst [vmem:[%s14510_s1 + $0xc60] sm:$0xff] %v4443_v45  ;;  %v3920_v45 = vmul.f32 0.5, %v3919_v44  ;;  %vm3965_vm2 = vmor %vm3963_vm1, %vm3964_vm0 }
 0x542   :  { %4956 = vst [vmem:[%s14510_s1 + $0xc68] sm:$0xff] %v4444_v6  ;;  %v3908_v6 = vmul.f32 %v13840_v23, %v13785_v19  ;;  %v3936_v56 = vsel %vm3935_vm9, %v13746_v47, %v3932_v16  ;;  %v17243_v47 = vld [vmem:[#allocation362_spill] sm:$0xff] }
 0x543   :  { %4957 = vst [vmem:[%s14510_s1 + $0xc70] sm:$0xff] %v4445_v41  ;;  %v17239_v41 = vld [vmem:[#allocation343_spill] sm:$0xff]  ;;  %v3921_v59 = vsub.f32 1.5, %v3920_v45  ;;  %v4463_v4 = vmul.f32 %v3936_v56, %v17243_v47  ;;  %v4465_v44 = vmul.f32 %v3936_v56, %v17245_v58  ;;  %v4466_v51 = vmul.f32 %v3936_v56, %v17246_v48  ;;  %v17249_v45 = vld [vmem:[#allocation369_spill] sm:$0xff]  ;;  %v17256_v47 = vld [vmem:[#allocation18_spill] sm:$0xff] }
 0x544   :  { %4958 = vst [vmem:[%s14510_s1 + $0xc78] sm:$0xff] %v4446_v11  ;;  %v4427_v3 = vmul.f32 %v3886_v14, %v17239_v41  ;;  %v13877_v11 = vadd.f32 1e-05, %v3333_v60  ;;  %v3909_v13 = vmul.f32 %v13840_v23, %v3908_v6  ;;  %v3233_v60 = vpop.xlane.xlu2 %3232  ;;  %v4469_v6 = vmul.f32 %v3936_v56, %v17249_v45  ;;  %v17252_v41 = vld [vmem:[#allocation2_spill] sm:$0xff]  ;;  %v17258_v58 = vld [vmem:[#allocation388_spill] sm:$0xff] }
 0x545   :  { %4943 = vst [vmem:[%s14510_s1 + $0xc00] sm:$0xff] %v4431_v54  ;;  %v4428_v54 = vmul.f32 %v3886_v14, %v17240_v55  ;;  %v3922_v8 = vmul.f32 %v13793_v25, %v3921_v59  ;;  %v17253_v59 = vld [vmem:[#allocation3_spill] sm:$0xff] }
 0x546   :  { %4944 = vst [vmem:[%s14510_s1 + $0xc08] sm:$0xff] %v4432_v31  ;;  %v3188_v31 = vpop.xlane.xlu0 %3187  ;;  %5186 = vrsqrt.f32 %v13877_v11  ;;  %vm3953_vm4 = vweird.f32 %v13877_v11 }
 0x547   :  { %4945 = vst [vmem:[%s14510_s1 + $0xc10] sm:$0xff] %v4433_v0  ;;  %v4430_v0 = vmul.f32 %v3886_v14, %v17242_v28  ;;  %v3958_v14 = vmul.f32 %v13885_v32, %v13832_v27  ;;  %v3926_v7 = vsel %vm3925_vm12, %v13793_v25, %v3922_v8  ;;  %v17251_v25 = vld [vmem:[#allocation375_spill] sm:$0xff] }
 0x548   :  { %4946 = vst [vmem:[%s14510_s1 + $0xc18] sm:$0xff] %v4434_v21  ;;  %v3332_v21 = vmul.f32 %v3188_v31, %v7774_v40  ;;  %v4455_v17 = vmul.f32 %v3926_v7, %v17251_v25  ;;  %v17254_v31 = vld [vmem:[#allocation381_spill] sm:$0xff]  ;;  %v17264_v25 = vld [vmem:[#allocation348_spill] sm:$0xff] }
 0x549   :  { %4947 = vst [vmem:[%s14510_s1 + $0xc20] sm:$0xff] %v4435_v24  ;;  %v4464_v24 = vmul.f32 %v3936_v56, %v17244_v36  ;;  %v4458_v1 = vmul.f32 %v3926_v7, %v17254_v31 }
 0x54a   :  { %4948 = vst [vmem:[%s14510_s1 + $0xc28] sm:$0xff] %v4436_v34  ;;  %v3910_v34 = vmul.f32 0.5, %v3909_v13  ;;  %v4457_v13 = vmul.f32 %v3926_v7, %v17253_v59  ;;  %v17266_v59 = vld [vmem:[#allocation374_spill] sm:$0xff] }
 0x54b   :  { %4949 = vst [vmem:[%s14510_s1 + $0xc30] sm:$0xff] %v4437_v5  ;;  %v17247_v5 = vld [vmem:[#allocation366_spill] sm:$0xff] }
 0x54c   :  { %4950 = vst [vmem:[%s14510_s1 + $0xc38] sm:$0xff] %v4438_v52  ;;  %v4467_v18 = vmul.f32 %v3936_v56, %v17247_v5  ;;  %v13924_v52 = vadd.f32 1e-05, %v3332_v21  ;;  %v3911_v43 = vsub.f32 1.5, %v3910_v34  ;;  %v13932_v16 = vpop.eup %5186  ;;  %v17257_v34 = vld [vmem:[#allocation19_spill] sm:$0xff] }
 0x54d   :  { %4935 = vst [vmem:[%s14510_s1 + $0xbc0] sm:$0xff] %v4423_v42  ;;  %v4468_v42 = vmul.f32 %v3936_v56, %v17248_v39  ;;  %vm3954_vm3 = vweird.f32 %v13932_v16 }
 0x54e   :  { %4936 = vst [vmem:[%s14510_s1 + $0xbc8] sm:$0xff] %v4424_v53  ;;  %v3959_v53 = vmul.f32 %v13885_v32, %v3958_v14  ;;  %5188 = vrsqrt.f32 %v13924_v52  ;;  %v3912_v55 = vmul.f32 %v13840_v23, %v3911_v43  ;;  %v4461_v14 = vmul.f32 %v3926_v7, %v17257_v34  ;;  %v17261_v43 = vld [vmem:[#allocation360_spill] sm:$0xff]  ;;  %vm3955_vm5 = vmor %vm3953_vm4, %vm3954_vm3 }
 0x54f   :  { %4937 = vst [vmem:[%s14510_s1 + $0xbd0] sm:$0xff] %v4425_v15  ;;  %v4470_v15 = vmul.f32 %v3936_v56, %v17250_v12  ;;  %v3948_v56 = vmul.f32 %v13932_v16, %v13877_v11  ;;  %vm3943_vm7 = vweird.f32 %v13924_v52 }
 0x550   :  { %4938 = vst [vmem:[%s14510_s1 + $0xbd8] sm:$0xff] %v4426_v49  ;;  %v3337_v49 = vmul.f32 %v3233_v60, %v7774_v40  ;;  %v3916_v21 = vsel %vm3915_vm15, %v13840_v23, %v3912_v55  ;;  %v17259_v23 = vld [vmem:[#allocation338_spill] sm:$0xff]  ;;  %v17262_v60 = vld [vmem:[#allocation345_spill] sm:$0xff] }
 0x551   :  { %4939 = vst [vmem:[%s14510_s1 + $0xbe0] sm:$0xff] %v4427_v3  ;;  %v4456_v3 = vmul.f32 %v3926_v7, %v17252_v41  ;;  %v3949_v36 = vmul.f32 %v13932_v16, %v3948_v56  ;;  %v4447_v48 = vmul.f32 %v3916_v21, %v17259_v23  ;;  %v4450_v45 = vmul.f32 %v3916_v21, %v17262_v60  ;;  %v3260_v23 = vpop.xlane.xlu2 %3259 }
 0x552   :  { %4940 = vst [vmem:[%s14510_s1 + $0xbe8] sm:$0xff] %v4428_v54  ;;  %v3960_v54 = vmul.f32 0.5, %v3959_v53  ;;  %v4449_v53 = vmul.f32 %v3916_v21, %v17261_v43  ;;  %v17274_v43 = vld [vmem:[#allocation368_spill] sm:$0xff] }
 0x553   :  { %4941 = vst [vmem:[%s14510_s1 + $0xbf0] sm:$0xff] %v4429_v57  ;;  %v17255_v57 = vld [vmem:[#allocation384_spill] sm:$0xff] }
 0x554   :  { %4942 = vst [vmem:[%s14510_s1 + $0xbf8] sm:$0xff] %v4430_v0  ;;  %v4459_v28 = vmul.f32 %v3926_v7, %v17255_v57  ;;  %v13971_v0 = vadd.f32 1e-05, %v3337_v49  ;;  %v3961_v19 = vsub.f32 1.5, %v3960_v54  ;;  %v13979_v8 = vpop.eup %5188  ;;  %v17265_v54 = vld [vmem:[#allocation371_spill] sm:$0xff]  ;;  %v17268_v57 = vld [vmem:[#allocation357_spill] sm:$0xff] }
 0x555   :  { %4975 = vst [vmem:[%s14510_s1 + $0xd00] sm:$0xff] %v4463_v4  ;;  %v4460_v4 = vmul.f32 %v3926_v7, %v17256_v47  ;;  %v4453_v56 = vmul.f32 %v3916_v21, %v17265_v54  ;;  %vm3944_vm6 = vweird.f32 %v13979_v8  ;;  %v17276_v54 = vld [vmem:[#allocation383_spill] sm:$0xff] }
 0x556   :  { %4976 = vst [vmem:[%s14510_s1 + $0xd08] sm:$0xff] %v4464_v24  ;;  %v3224_v24 = vpop.xlane.xlu1 %3223  ;;  %5190 = vrsqrt.f32 %v13971_v0  ;;  %v3962_v39 = vmul.f32 %v13885_v32, %v3961_v19  ;;  %v17269_v19 = vld [vmem:[#allocation489_spill] sm:$0xff]  ;;  %vm3945_vm8 = vmor %vm3943_vm7, %vm3944_vm6  ;;  %vm3993_vm10 = vweird.f32 %v13971_v0 }
 0x557   :  { %4977 = vst [vmem:[%s14510_s1 + $0xd10] sm:$0xff] %v4465_v44  ;;  %v4462_v44 = vmul.f32 %v3926_v7, %v17258_v58  ;;  %v3938_v7 = vmul.f32 %v13979_v8, %v13924_v52  ;;  %v17270_v58 = vld [vmem:[#allocation364_spill] sm:$0xff] }
 0x558   :  { %4978 = vst [vmem:[%s14510_s1 + $0xd18] sm:$0xff] %v4466_v51  ;;  %v17260_v51 = vld [vmem:[#allocation341_spill] sm:$0xff]  ;;  %v3966_v49 = vsel %vm3965_vm2, %v13885_v32, %v3962_v39  ;;  %v17267_v32 = vld [vmem:[#allocation354_spill] sm:$0xff] }
 0x559   :  { %4979 = vst [vmem:[%s14510_s1 + $0xd20] sm:$0xff] %v4467_v18  ;;  %v4448_v5 = vmul.f32 %v3916_v21, %v17260_v51  ;;  %v3336_v18 = vmul.f32 %v3224_v24, %v7774_v40  ;;  %v3939_v27 = vmul.f32 %v13979_v8, %v3938_v7  ;;  %v4487_v31 = vmul.f32 %v3966_v49, %v17267_v32  ;;  %v17271_v51 = vld [vmem:[#allocation490_spill] sm:$0xff] }
 0x55a   :  { %4980 = vst [vmem:[%s14510_s1 + $0xd28] sm:$0xff] %v4468_v42  ;;  %v3950_v42 = vmul.f32 0.5, %v3949_v36  ;;  %v4489_v36 = vmul.f32 %v3966_v49, %v17269_v19  ;;  %v4490_v24 = vmul.f32 %v3966_v49, %v11503_v63  ;;  %v4491_v34 = vmul.f32 %v3966_v49, %v11507_v62 }
 0x55b   :  { %4981 = vst [vmem:[%s14510_s1 + $0xd30] sm:$0xff] %v4469_v6  ;;  %v17263_v6 = vld [vmem:[#allocation361_spill] sm:$0xff]  ;;  %v3340_v7 = vmul.f32 %v3260_v23, %v7774_v40 }
 0x55c   :  { %4982 = vst [vmem:[%s14510_s1 + $0xd38] sm:$0xff] %v4470_v15  ;;  %v4451_v12 = vmul.f32 %v3916_v21, %v17263_v6  ;;  %v14016_v15 = vadd.f32 1e-05, %v3336_v18  ;;  %v3951_v41 = vsub.f32 1.5, %v3950_v42  ;;  %v14024_v55 = vpop.eup %5190  ;;  %v17272_v18 = vld [vmem:[#allocation491_spill] sm:$0xff] }
 0x55d   :  { %4967 = vst [vmem:[%s14510_s1 + $0xcc0] sm:$0xff] %v4455_v17  ;;  %v4452_v17 = vmul.f32 %v3916_v21, %v17264_v25  ;;  %v4494_v39 = vmul.f32 %v3966_v49, %v17272_v18  ;;  %vm3994_vm9 = vweird.f32 %v14024_v55  ;;  %v17284_v18 = vld [vmem:[#allocation359_spill] sm:$0xff] }
 0x55e   :  { %4968 = vst [vmem:[%s14510_s1 + $0xcc8] sm:$0xff] %v4456_v3  ;;  %v3215_v3 = vpop.xlane.xlu0 %3214  ;;  %5192 = vrsqrt.f32 %v14016_v15  ;;  %v3952_v47 = vmul.f32 %v13932_v16, %v3951_v41  ;;  %vm3995_vm11 = vmor %vm3993_vm10, %vm3994_vm9  ;;  %vm3983_vm13 = vweird.f32 %v14016_v15 }
 0x55f   :  { %4969 = vst [vmem:[%s14510_s1 + $0xcd0] sm:$0xff] %v4457_v13  ;;  %v4454_v13 = vmul.f32 %v3916_v21, %v17266_v59  ;;  %v3988_v21 = vmul.f32 %v14024_v55, %v13971_v0  ;;  %v17277_v59 = vld [vmem:[#allocation385_spill] sm:$0xff] }
 0x560   :  { %4970 = vst [vmem:[%s14510_s1 + $0xcd8] sm:$0xff] %v4458_v1  ;;  %v3335_v1 = vmul.f32 %v3215_v3, %v7774_v40  ;;  %v3956_v63 = vsel %vm3955_vm5, %v13932_v16, %v3952_v47  ;;  %v17273_v16 = vld [vmem:[#allocation492_spill] sm:$0xff] }
 0x561   :  { %4971 = vst [vmem:[%s14510_s1 + $0xce0] sm:$0xff] %v4459_v28  ;;  %v4488_v28 = vmul.f32 %v3966_v49, %v17268_v57  ;;  %v3989_v62 = vmul.f32 %v14024_v55, %v3988_v21  ;;  %v4479_v42 = vmul.f32 %v3956_v63, %v17273_v16  ;;  %v4482_v25 = vmul.f32 %v3956_v63, %v11585_v10  ;;  %v17280_v21 = vld [vmem:[#allocation268_spill] sm:$0xff] }
 0x562   :  { %4972 = vst [vmem:[%s14510_s1 + $0xce8] sm:$0xff] %v4460_v4  ;;  %v3940_v4 = vmul.f32 0.5, %v3939_v27  ;;  %v3251_v27 = vpop.xlane.xlu1 %3250  ;;  %v17285_v16 = vld [vmem:[#allocation488_spill] sm:$0xff] }
 0x563   :  { %4973 = vst [vmem:[%s14510_s1 + $0xcf0] sm:$0xff] %v4461_v14  ;;  %v14063_v14 = vadd.f32 1e-05, %v3335_v1  ;;  %v3339_v57 = vmul.f32 %v3251_v27, %v7774_v40 }
 0x564   :  { %4974 = vst [vmem:[%s14510_s1 + $0xcf8] sm:$0xff] %v4462_v44  ;;  %v4492_v44 = vmul.f32 %v3966_v49, %v17270_v58  ;;  %v3941_v11 = vsub.f32 1.5, %v3940_v4 }
 0x565   :  { %4959 = vst [vmem:[%s14510_s1 + $0xc80] sm:$0xff] %v4447_v48  ;;  %v14071_v48 = vpop.eup %5192  ;;  %5194 = vrsqrt.f32 %v14063_v14  ;;  %vm3973_vm0 = vweird.f32 %v14063_v14 }
 0x566   :  { %4960 = vst [vmem:[%s14510_s1 + $0xc88] sm:$0xff] %v4448_v5  ;;  %v4493_v5 = vmul.f32 %v3966_v49, %v17271_v51  ;;  %v3942_v60 = vmul.f32 %v13979_v8, %v3941_v11  ;;  %v3978_v6 = vmul.f32 %v14071_v48, %v14016_v15  ;;  %v14110_v49 = vadd.f32 1e-05, %v3340_v7  ;;  %v3242_v51 = vpop.xlane.xlu0 %3241 }
 0x567   :  { %4961 = vst [vmem:[%s14510_s1 + $0xc90] sm:$0xff] %v4449_v53  ;;  %v4480_v53 = vmul.f32 %v3956_v63, %v17274_v43  ;;  %vm3984_vm12 = vweird.f32 %v14071_v48  ;;  %v3338_v43 = vmul.f32 %v3242_v51, %v7774_v40  ;;  %v17297_v51 = vld [vmem:[#allocation393_spill] sm:$0xff] }
 0x568   :  { %4962 = vst [vmem:[%s14510_s1 + $0xc98] sm:$0xff] %v4450_v45  ;;  %v3990_v45 = vmul.f32 0.5, %v3989_v62  ;;  %v3946_v10 = vsel %vm3945_vm8, %v13979_v8, %v3942_v60  ;;  %v17278_v8 = vld [vmem:[#allocation4_spill] sm:$0xff]  ;;  %5196 = vrsqrt.f32 %v14110_v49  ;;  %vm3985_vm14 = vmor %vm3983_vm13, %vm3984_vm12  ;;  %vm4023_vm3 = vweird.f32 %v14110_v49 }
 0x569   :  { %4963 = vst [vmem:[%s14510_s1 + $0xca0] sm:$0xff] %v4451_v12  ;;  %v4481_v12 = vmul.f32 %v3956_v63, %v11577_v22  ;;  %v17275_v22 = vld [vmem:[#allocation298_spill] sm:$0xff]  ;;  %v4471_v32 = vmul.f32 %v3946_v10, %v17278_v8  ;;  %v4473_v19 = vmul.f32 %v3946_v10, %v17280_v21 }
 0x56a   :  { %4964 = vst [vmem:[%s14510_s1 + $0xca8] sm:$0xff] %v4452_v17  ;;  %v4483_v17 = vmul.f32 %v3956_v63, %v11598_v33  ;;  %v4484_v41 = vmul.f32 %v3956_v63, %v17275_v22  ;;  %v3991_v52 = vsub.f32 1.5, %v3990_v45  ;;  %v3979_v33 = vmul.f32 %v14071_v48, %v3978_v6  ;;  %v17289_v22 = vld [vmem:[#allocation404_spill] sm:$0xff] }
 0x56b   :  { %4965 = vst [vmem:[%s14510_s1 + $0xcb0] sm:$0xff] %v4453_v56  ;;  %v14118_v3 = vpop.eup %5194  ;;  %v4485_v56 = vmul.f32 %v3956_v63, %v17276_v54 }
 0x56c   :  { %4966 = vst [vmem:[%s14510_s1 + $0xcb8] sm:$0xff] %v4454_v13  ;;  %v4486_v13 = vmul.f32 %v3956_v63, %v17277_v59  ;;  %v3980_v47 = vmul.f32 0.5, %v3979_v33  ;;  %v3968_v4 = vmul.f32 %v14118_v3, %v14063_v14  ;;  %v17283_v63 = vld [vmem:[#allocation11_spill] sm:$0xff]  ;;  %v17290_v33 = vld [vmem:[#allocation316_spill] sm:$0xff]  ;;  %vm3974_vm15 = vweird.f32 %v14118_v3 }
 0x56d   :  { %4999 = vst [vmem:[%s14510_s1 + $0xdc0] sm:$0xff] %v4487_v31  ;;  %v17279_v31 = vld [vmem:[#allocation5_spill] sm:$0xff]  ;;  %v4476_v11 = vmul.f32 %v3946_v10, %v17283_v63  ;;  %vm3975_vm1 = vmor %vm3973_vm0, %vm3974_vm15 }
 0x56e   :  { %5000 = vst [vmem:[%s14510_s1 + $0xdc8] sm:$0xff] %v4488_v28  ;;  %v4472_v1 = vmul.f32 %v3946_v10, %v17279_v31  ;;  %v3992_v28 = vmul.f32 %v14024_v55, %v3991_v52  ;;  %v3981_v23 = vsub.f32 1.5, %v3980_v47  ;;  %v3969_v0 = vmul.f32 %v14118_v3, %v3968_v4 }
 0x56f   :  { %5001 = vst [vmem:[%s14510_s1 + $0xdd0] sm:$0xff] %v4489_v36  ;;  %v17281_v36 = vld [vmem:[#allocation353_spill] sm:$0xff]  ;;  %v14202_v52 = vadd.f32 1e-05, %v3338_v43 }
 0x570   :  { %5002 = vst [vmem:[%s14510_s1 + $0xdd8] sm:$0xff] %v4490_v24  ;;  %v4474_v24 = vmul.f32 %v3946_v10, %v17281_v36  ;;  %v3996_v62 = vsel %vm3995_vm11, %v14024_v55, %v3992_v28  ;;  %v17286_v55 = vld [vmem:[#allocation293_spill] sm:$0xff]  ;;  %v3982_v45 = vmul.f32 %v14071_v48, %v3981_v23  ;;  %v3970_v6 = vmul.f32 0.5, %v3969_v0  ;;  %v17296_v23 = vld [vmem:[#allocation26_spill] sm:$0xff] }
 0x571   :  { %5003 = vst [vmem:[%s14510_s1 + $0xde0] sm:$0xff] %v4491_v34  ;;  %v17282_v34 = vld [vmem:[#allocation428_spill] sm:$0xff]  ;;  %v4511_v7 = vmul.f32 %v3996_v62, %v17286_v55  ;;  %v4516_v27 = vmul.f32 %v3996_v62, %v17290_v33  ;;  %v17294_v28 = vld [vmem:[#allocation9_spill] sm:$0xff]  ;;  %vm4003_vm9 = vweird.f32 %v14202_v52 }
 0x572   :  { %5004 = vst [vmem:[%s14510_s1 + $0xde8] sm:$0xff] %v4492_v44  ;;  %v4475_v58 = vmul.f32 %v3946_v10, %v17282_v34  ;;  %v14155_v44 = vadd.f32 1e-05, %v3339_v57  ;;  %v3986_v54 = vsel %vm3985_vm14, %v14071_v48, %v3982_v45  ;;  %v3971_v15 = vsub.f32 1.5, %v3970_v6  ;;  %v17293_v48 = vld [vmem:[#allocation13_spill] sm:$0xff] }
 0x573   :  { %5005 = vst [vmem:[%s14510_s1 + $0xdf0] sm:$0xff] %v4493_v5  ;;  %v14163_v5 = vpop.eup %5196  ;;  %v4504_v47 = vmul.f32 %v3986_v54, %v17294_v28  ;;  %v4505_v36 = vmul.f32 %v3986_v54, %v11855_v2  ;;  %v4507_v34 = vmul.f32 %v3986_v54, %v11867_v20  ;;  %v17295_v2 = vld [vmem:[#allocation14_spill] sm:$0xff]  ;;  %v4509_v0 = vmul.f32 %v3986_v54, %v17296_v23 }
 0x574   :  { %5006 = vst [vmem:[%s14510_s1 + $0xdf8] sm:$0xff] %v4494_v39  ;;  %v4477_v39 = vmul.f32 %v3946_v10, %v17284_v18  ;;  %5198 = vrsqrt.f32 %v14155_v44  ;;  %v3972_v4 = vmul.f32 %v14118_v3, %v3971_v15  ;;  %v4508_v63 = vmul.f32 %v3986_v54, %v17295_v2 }
 0x575   :  { %4991 = vst [vmem:[%s14510_s1 + $0xd80] sm:$0xff] %v4479_v42  ;;  %v4478_v42 = vmul.f32 %v3946_v10, %v17285_v16  ;;  %v4515_v10 = vmul.f32 %v3996_v62, %v11789_v26  ;;  %5200 = vrsqrt.f32 %v14202_v52  ;;  %v4510_v18 = vmul.f32 %v3986_v54, %v17297_v51  ;;  %v17299_v16 = vld [vmem:[#allocation494_spill] sm:$0xff] }
 0x576   :  { %4992 = vst [vmem:[%s14510_s1 + $0xd88] sm:$0xff] %v4480_v53  ;;  %v17287_v53 = vld [vmem:[#allocation390_spill] sm:$0xff]  ;;  %vm4024_vm2 = vweird.f32 %v14163_v5  ;;  %vm4013_vm6 = vweird.f32 %v14155_v44 }
 0x577   :  { %4993 = vst [vmem:[%s14510_s1 + $0xd90] sm:$0xff] %v4481_v12  ;;  %v4512_v60 = vmul.f32 %v3996_v62, %v17287_v53  ;;  %v4018_v12 = vmul.f32 %v14163_v5, %v14110_v49  ;;  %vm4025_vm4 = vmor %vm4023_vm3, %vm4024_vm2 }
 0x578   :  { %4994 = vst [vmem:[%s14510_s1 + $0xd98] sm:$0xff] %v4482_v25  ;;  %v17288_v25 = vld [vmem:[#allocation402_spill] sm:$0xff] }
 0x579   :  { %4995 = vst [vmem:[%s14510_s1 + $0xda0] sm:$0xff] %v4483_v17  ;;  %v4513_v17 = vmul.f32 %v3996_v62, %v17288_v25  ;;  %v4019_v26 = vmul.f32 %v14163_v5, %v4018_v12  ;;  %v17302_v12 = vld [vmem:[#allocation495_spill] sm:$0xff] }
 0x57a   :  { %4996 = vst [vmem:[%s14510_s1 + $0xda8] sm:$0xff] %v4484_v41  ;;  %v4514_v41 = vmul.f32 %v3996_v62, %v17289_v22  ;;  %v14210_v59 = vpop.eup %5198  ;;  %v17303_v22 = vld [vmem:[#allocation387_spill] sm:$0xff] }
 0x57b   :  { %4997 = vst [vmem:[%s14510_s1 + $0xdb0] sm:$0xff] %v4485_v56  ;;  %v3278_v56 = vpop.xlane.xlu1 %3277  ;;  %v4020_v21 = vmul.f32 0.5, %v4019_v26  ;;  %v17305_v26 = vld [vmem:[#allocation398_spill] sm:$0xff]  ;;  %vm4014_vm5 = vweird.f32 %v14210_v59 }
 0x57c   :  { %4998 = vst [vmem:[%s14510_s1 + $0xdb8] sm:$0xff] %v4486_v13  ;;  %v17291_v13 = vld [vmem:[#allocation391_spill] sm:$0xff]  ;;  %v3342_v57 = vmul.f32 %v3278_v56, %v7774_v40  ;;  %vm4015_vm7 = vmor %vm4013_vm6, %vm4014_vm5 }
 0x57d   :  { %4983 = vst [vmem:[%s14510_s1 + $0xd40] sm:$0xff] %v4471_v32  ;;  %v4517_v8 = vmul.f32 %v3996_v62, %v17291_v13  ;;  %v17292_v32 = vld [vmem:[#allocation392_spill] sm:$0xff]  ;;  %v4021_v14 = vsub.f32 1.5, %v4020_v21  ;;  %v17310_v21 = vld [vmem:[#allocation470_spill] sm:$0xff] }
 0x57e   :  { %4984 = vst [vmem:[%s14510_s1 + $0xd48] sm:$0xff] %v4472_v1  ;;  %v4518_v31 = vmul.f32 %v3996_v62, %v17292_v32  ;;  %v4503_v1 = vmul.f32 %v3986_v54, %v17293_v48  ;;  %v14257_v62 = vpop.eup %5200 }
 0x57f   :  { %4985 = vst [vmem:[%s14510_s1 + $0xd50] sm:$0xff] %v4473_v19  ;;  %v4008_v19 = vmul.f32 %v14210_v59, %v14155_v44  ;;  %v3998_v53 = vmul.f32 %v14257_v62, %v14202_v52  ;;  %v17312_v44 = vld [vmem:[#allocation38_spill] sm:$0xff]  ;;  %vm4004_vm8 = vweird.f32 %v14257_v62 }
 0x580   :  { %4986 = vst [vmem:[%s14510_s1 + $0xd58] sm:$0xff] %v4474_v24  ;;  %v4506_v24 = vmul.f32 %v3986_v54, %v11859_v9  ;;  %v3976_v9 = vsel %vm3975_vm1, %v14118_v3, %v3972_v4  ;;  %v17298_v3 = vld [vmem:[#allocation493_spill] sm:$0xff]  ;;  %v17304_v54 = vld [vmem:[#allocation395_spill] sm:$0xff]  ;;  %vm4005_vm10 = vmor %vm4003_vm9, %vm4004_vm8 }
 0x581   :  { %4987 = vst [vmem:[%s14510_s1 + $0xd60] sm:$0xff] %v4475_v58  ;;  %v14249_v58 = vadd.f32 1e-05, %v3342_v57  ;;  %v4009_v20 = vmul.f32 %v14210_v59, %v4008_v19  ;;  %v4499_v25 = vmul.f32 %v3976_v9, %v17302_v12  ;;  %v3999_v49 = vmul.f32 %v14257_v62, %v3998_v53  ;;  %v17308_v57 = vld [vmem:[#allocation31_spill] sm:$0xff] }
 0x582   :  { %4988 = vst [vmem:[%s14510_s1 + $0xd68] sm:$0xff] %v4476_v11  ;;  %v3269_v11 = vpop.xlane.xlu0 %3268  ;;  %v4501_v15 = vmul.f32 %v3976_v9, %v17304_v54  ;;  %v4502_v56 = vmul.f32 %v3976_v9, %v17305_v26  ;;  %v17323_v54 = vld [vmem:[#allocation33_spill] sm:$0xff] }
 0x583   :  { %4989 = vst [vmem:[%s14510_s1 + $0xd70] sm:$0xff] %v4477_v39  ;;  %v4495_v39 = vmul.f32 %v3976_v9, %v17298_v3  ;;  %5202 = vrsqrt.f32 %v14249_v58  ;;  %v3341_v55 = vmul.f32 %v3269_v11, %v7774_v40  ;;  %v4010_v43 = vmul.f32 0.5, %v4009_v20  ;;  %v17301_v40 = vld [vmem:[#allocation373_spill] sm:$0xff]  ;;  %v17313_v20 = vld [vmem:[#allocation42_spill] sm:$0xff] }
 0x584   :  { %4990 = vst [vmem:[%s14510_s1 + $0xd78] sm:$0xff] %v4478_v42  ;;  %v4496_v42 = vmul.f32 %v3976_v9, %v17299_v16  ;;  %v4498_v6 = vmul.f32 %v3976_v9, %v17301_v40  ;;  %v4000_v48 = vmul.f32 0.5, %v3999_v49  ;;  %vm4043_vm12 = vweird.f32 %v14249_v58  ;;  %v17324_v26 = vld [vmem:[#allocation405_spill] sm:$0xff] }
 0x585   :  { %5023 = vst [vmem:[%s14510_s1 + $0xe80] sm:$0xff] %v4511_v7  ;;  %v4022_v7 = vmul.f32 %v14163_v5, %v4021_v14  ;;  %v4011_v33 = vsub.f32 1.5, %v4010_v43 }
 0x586   :  { %5024 = vst [vmem:[%s14510_s1 + $0xe88] sm:$0xff] %v4512_v60  ;;  %v17300_v60 = vld [vmem:[#allocation370_spill] sm:$0xff]  ;;  %v4001_v2 = vsub.f32 1.5, %v4000_v48 }
 0x587   :  { %5025 = vst [vmem:[%s14510_s1 + $0xe90] sm:$0xff] %v4513_v17  ;;  %v4497_v45 = vmul.f32 %v3976_v9, %v17300_v60  ;;  %v14294_v17 = vadd.f32 1e-05, %v3341_v55  ;;  %v17317_v60 = vld [vmem:[#allocation377_spill] sm:$0xff] }
 0x588   :  { %5026 = vst [vmem:[%s14510_s1 + $0xe98] sm:$0xff] %v4514_v41  ;;  %v4500_v41 = vmul.f32 %v3976_v9, %v17303_v22 }
 0x589   :  { %5027 = vst [vmem:[%s14510_s1 + $0xea0] sm:$0xff] %v4515_v10  ;;  %v4026_v10 = vsel %vm4025_vm4, %v14163_v5, %v4022_v7  ;;  %v17306_v5 = vld [vmem:[#allocation407_spill] sm:$0xff]  ;;  %5204 = vrsqrt.f32 %v14294_v17  ;;  %v17316_v7 = vld [vmem:[#allocation376_spill] sm:$0xff]  ;;  %vm4033_vm15 = vweird.f32 %v14294_v17 }
 0x58a   :  { %5028 = vst [vmem:[%s14510_s1 + $0xea8] sm:$0xff] %v4516_v27  ;;  %v14302_v27 = vpop.eup %5202  ;;  %v4535_v13 = vmul.f32 %v4026_v10, %v17306_v5  ;;  %v4537_v28 = vmul.f32 %v4026_v10, %v17308_v57  ;;  %v4539_v19 = vmul.f32 %v4026_v10, %v17310_v21  ;;  %v4541_v14 = vmul.f32 %v4026_v10, %v17312_v44  ;;  %v17327_v57 = vld [vmem:[#allocation15_spill] sm:$0xff]  ;;  %v17328_v21 = vld [vmem:[#allocation389_spill] sm:$0xff]  ;;  %v17334_v44 = vld [vmem:[#allocation10_spill] sm:$0xff] }
 0x58b   :  { %5029 = vst [vmem:[%s14510_s1 + $0xeb0] sm:$0xff] %v4517_v8  ;;  %v17307_v8 = vld [vmem:[#allocation32_spill] sm:$0xff]  ;;  %v4542_v11 = vmul.f32 %v4026_v10, %v17313_v20  ;;  %vm4044_vm11 = vweird.f32 %v14302_v27  ;;  %v17335_v20 = vld [vmem:[#allocation386_spill] sm:$0xff] }
 0x58c   :  { %5030 = vst [vmem:[%s14510_s1 + $0xeb8] sm:$0xff] %v4518_v31  ;;  %v4536_v32 = vmul.f32 %v4026_v10, %v17307_v8  ;;  %v4012_v31 = vmul.f32 %v14210_v59, %v4011_v33  ;;  %v17322_v33 = vld [vmem:[#allocation399_spill] sm:$0xff]  ;;  %vm4045_vm13 = vmor %vm4043_vm12, %vm4044_vm11  ;;  %v17325_v8 = vld [vmem:[#allocation412_spill] sm:$0xff] }
 0x58d   :  { %5015 = vst [vmem:[%s14510_s1 + $0xe40] sm:$0xff] %v4503_v1  ;;  %v4038_v1 = vmul.f32 %v14302_v27, %v14249_v58  ;;  %v17326_v58 = vld [vmem:[#allocation17_spill] sm:$0xff] }
 0x58e   :  { %5016 = vst [vmem:[%s14510_s1 + $0xe48] sm:$0xff] %v4504_v47  ;;  %v17309_v47 = vld [vmem:[#allocation37_spill] sm:$0xff] }
 0x58f   :  { %5017 = vst [vmem:[%s14510_s1 + $0xe50] sm:$0xff] %v4505_v36  ;;  %v4538_v4 = vmul.f32 %v4026_v10, %v17309_v47  ;;  %v17311_v36 = vld [vmem:[#allocation34_spill] sm:$0xff]  ;;  %v14344_v9 = vpop.eup %5204 }
 0x590   :  { %5018 = vst [vmem:[%s14510_s1 + $0xe58] sm:$0xff] %v4506_v24  ;;  %v4540_v24 = vmul.f32 %v4026_v10, %v17311_v36  ;;  %vm4034_vm14 = vweird.f32 %v14344_v9  ;;  %v17331_v36 = vld [vmem:[#allocation23_spill] sm:$0xff] }
 0x591   :  { %5019 = vst [vmem:[%s14510_s1 + $0xe60] sm:$0xff] %v4507_v34  ;;  %v4016_v34 = vsel %vm4015_vm7, %v14210_v59, %v4012_v31  ;;  %v17314_v59 = vld [vmem:[#allocation453_spill] sm:$0xff]  ;;  %vm4035_vm0 = vmor %vm4033_vm15, %vm4034_vm14 }
 0x592   :  { %5020 = vst [vmem:[%s14510_s1 + $0xe68] sm:$0xff] %v4508_v63  ;;  %v4039_v63 = vmul.f32 %v14302_v27, %v4038_v1  ;;  %v4527_v23 = vmul.f32 %v4016_v34, %v17314_v59  ;;  %v4529_v16 = vmul.f32 %v4016_v34, %v12145_v29  ;;  %v4531_v55 = vmul.f32 %v4016_v34, %v12163_v30  ;;  %v17318_v30 = vld [vmem:[#allocation379_spill] sm:$0xff]  ;;  %v17336_v59 = vld [vmem:[#allocation12_spill] sm:$0xff] }
 0x593   :  { %5021 = vst [vmem:[%s14510_s1 + $0xe70] sm:$0xff] %v4509_v0  ;;  %v17315_v0 = vld [vmem:[#allocation266_spill] sm:$0xff]  ;;  %v4532_v43 = vmul.f32 %v4016_v34, %v17316_v7  ;;  %v4533_v52 = vmul.f32 %v4016_v34, %v17317_v60 }
 0x594   :  { %5022 = vst [vmem:[%s14510_s1 + $0xe78] sm:$0xff] %v4510_v18  ;;  %v4528_v51 = vmul.f32 %v4016_v34, %v17315_v0  ;;  %v4002_v18 = vmul.f32 %v14257_v62, %v4001_v2  ;;  %v4040_v3 = vmul.f32 0.5, %v4039_v63  ;;  %v17333_v63 = vld [vmem:[#allocation7_spill] sm:$0xff]  ;;  %v17337_v0 = vld [vmem:[#allocation8_spill] sm:$0xff] }
 0x595   :  { %5007 = vst [vmem:[%s14510_s1 + $0xe00] sm:$0xff] %v4495_v39  ;;  %v4028_v39 = vmul.f32 %v14344_v9, %v14294_v17 }
 0x596   :  { %5008 = vst [vmem:[%s14510_s1 + $0xe08] sm:$0xff] %v4496_v42  ;;  %v4530_v42 = vmul.f32 %v4016_v34, %v12149_v37  ;;  %v4006_v29 = vsel %vm4005_vm10, %v14257_v62, %v4002_v18  ;;  %v4041_v53 = vsub.f32 1.5, %v4040_v3  ;;  %v17319_v62 = vld [vmem:[#allocation27_spill] sm:$0xff] }
 0x597   :  { %5009 = vst [vmem:[%s14510_s1 + $0xe10] sm:$0xff] %v4497_v45  ;;  %v4029_v37 = vmul.f32 %v14344_v9, %v4028_v39  ;;  %v4534_v45 = vmul.f32 %v4016_v34, %v17318_v30  ;;  %v4519_v40 = vmul.f32 %v4006_v29, %v17319_v62  ;;  %v4522_v49 = vmul.f32 %v4006_v29, %v17322_v33  ;;  %v17332_v34 = vld [vmem:[#allocation382_spill] sm:$0xff] }
 0x598   :  { %5010 = vst [vmem:[%s14510_s1 + $0xe18] sm:$0xff] %v4498_v6  ;;  %v17320_v6 = vld [vmem:[#allocation16_spill] sm:$0xff]  ;;  %v4526_v31 = vmul.f32 %v4006_v29, %v17326_v58 }
 0x599   :  { %5011 = vst [vmem:[%s14510_s1 + $0xe20] sm:$0xff] %v4499_v25  ;;  %v4520_v12 = vmul.f32 %v4006_v29, %v17320_v6  ;;  %v4042_v25 = vmul.f32 %v14302_v27, %v4041_v53  ;;  %v4030_v22 = vmul.f32 0.5, %v4029_v37 }
 0x59a   :  { %5012 = vst [vmem:[%s14510_s1 + $0xe28] sm:$0xff] %v4500_v41  ;;  %v17321_v41 = vld [vmem:[#allocation396_spill] sm:$0xff] }
 0x59b   :  { %5013 = vst [vmem:[%s14510_s1 + $0xe30] sm:$0xff] %v4501_v15  ;;  %v4521_v10 = vmul.f32 %v4006_v29, %v17321_v41  ;;  %v4523_v15 = vmul.f32 %v4006_v29, %v17323_v54  ;;  %v4046_v5 = vsel %vm4045_vm13, %v14302_v27, %v4042_v25 }
 0x59c   :  { %5014 = vst [vmem:[%s14510_s1 + $0xe38] sm:$0xff] %v4502_v56  ;;  %v4524_v56 = vmul.f32 %v4006_v29, %v17324_v26  ;;  %v4551_v48 = vmul.f32 %v4046_v5, %v12295_v35  ;;  %v4552_v27 = vmul.f32 %v4046_v5, %v12304_v61  ;;  %v4554_v35 = vmul.f32 %v4046_v5, %v12357_v46  ;;  %v17329_v46 = vld [vmem:[#allocation25_spill] sm:$0xff] }
 0x59d   :  { %5047 = vst [vmem:[%s14510_s1 + $0xf40] sm:$0xff] %v4535_v13  ;;  %v4031_v13 = vsub.f32 1.5, %v4030_v22  ;;  %v4555_v61 = vmul.f32 %v4046_v5, %v12365_v38  ;;  %v4556_v47 = vmul.f32 %v4046_v5, %v12372_v50  ;;  %v4558_v38 = vmul.f32 %v4046_v5, %v17329_v46  ;;  %v17330_v50 = vld [vmem:[#allocation6_spill] sm:$0xff] }
 0x59e   :  { %5048 = vst [vmem:[%s14510_s1 + $0xf48] sm:$0xff] %v4536_v32  ;;  %v4525_v32 = vmul.f32 %v4006_v29, %v17325_v8 }
 0x59f   :  { %5049 = vst [vmem:[%s14510_s1 + $0xf50] sm:$0xff] %v4537_v28  ;;  %v4032_v1 = vmul.f32 %v14344_v9, %v4031_v13  ;;  %v4553_v28 = vmul.f32 %v4046_v5, %v17327_v57 }
 0x5a0   :  { %5050 = vst [vmem:[%s14510_s1 + $0xf58] sm:$0xff] %v4538_v4 }
 0x5a1   :  { %5051 = vst [vmem:[%s14510_s1 + $0xf60] sm:$0xff] %v4539_v19  ;;  %v4036_v4 = vsel %vm4035_vm0, %v14344_v9, %v4032_v1  ;;  %v4557_v19 = vmul.f32 %v4046_v5, %v17328_v21 }
 0x5a2   :  { %5052 = vst [vmem:[%s14510_s1 + $0xf68] sm:$0xff] %v4540_v24  ;;  %v4543_v17 = vmul.f32 %v4036_v4, %v17330_v50  ;;  %v4544_v24 = vmul.f32 %v4036_v4, %v17331_v36  ;;  %v4545_v2 = vmul.f32 %v4036_v4, %v17332_v34  ;;  %v4546_v9 = vmul.f32 %v4036_v4, %v17333_v63 }
 0x5a3   :  { %5053 = vst [vmem:[%s14510_s1 + $0xf70] sm:$0xff] %v4541_v14  ;;  %v4547_v14 = vmul.f32 %v4036_v4, %v17334_v44 }
 0x5a4   :  { %5054 = vst [vmem:[%s14510_s1 + $0xf78] sm:$0xff] %v4542_v11  ;;  %v4548_v11 = vmul.f32 %v4036_v4, %v17335_v20 }
 0x5a5   :  { %5039 = vst [vmem:[%s14510_s1 + $0xf00] sm:$0xff] %v4527_v23  ;;  %v4549_v23 = vmul.f32 %v4036_v4, %v17336_v59 }
 0x5a6   :  { %5040 = vst [vmem:[%s14510_s1 + $0xf08] sm:$0xff] %v4528_v51  ;;  %v4550_v51 = vmul.f32 %v4036_v4, %v17337_v0 }
 0x5a7   :  { %5041 = vst [vmem:[%s14510_s1 + $0xf10] sm:$0xff] %v4529_v16 }
 0x5a8   :  { %5042 = vst [vmem:[%s14510_s1 + $0xf18] sm:$0xff] %v4530_v42 }
 0x5a9   :  { %5043 = vst [vmem:[%s14510_s1 + $0xf20] sm:$0xff] %v4531_v55 }
 0x5aa   :  { %5044 = vst [vmem:[%s14510_s1 + $0xf28] sm:$0xff] %v4532_v43 }
 0x5ab   :  { %5045 = vst [vmem:[%s14510_s1 + $0xf30] sm:$0xff] %v4533_v52 }
 0x5ac   :  { %5046 = vst [vmem:[%s14510_s1 + $0xf38] sm:$0xff] %v4534_v45 }
 0x5ad   :  { %5031 = vst [vmem:[%s14510_s1 + $0xec0] sm:$0xff] %v4519_v40 }
 0x5ae   :  { %5032 = vst [vmem:[%s14510_s1 + $0xec8] sm:$0xff] %v4520_v12 }
 0x5af   :  { %5033 = vst [vmem:[%s14510_s1 + $0xed0] sm:$0xff] %v4521_v10 }
 0x5b0   :  { %5034 = vst [vmem:[%s14510_s1 + $0xed8] sm:$0xff] %v4522_v49 }
 0x5b1   :  { %5035 = vst [vmem:[%s14510_s1 + $0xee0] sm:$0xff] %v4523_v15 }
 0x5b2   :  { %5036 = vst [vmem:[%s14510_s1 + $0xee8] sm:$0xff] %v4524_v56 }
 0x5b3   :  { %5037 = vst [vmem:[%s14510_s1 + $0xef0] sm:$0xff] %v4525_v32 }
 0x5b4   :  { %5038 = vst [vmem:[%s14510_s1 + $0xef8] sm:$0xff] %v4526_v31 }
 0x5b5   :  { %5063 = vst [vmem:[%s14510_s1 + $0xfc0] sm:$0xff] %v4551_v48 }
 0x5b6   :  { %5064 = vst [vmem:[%s14510_s1 + $0xfc8] sm:$0xff] %v4552_v27 }
 0x5b7   :  { %5065 = vst [vmem:[%s14510_s1 + $0xfd0] sm:$0xff] %v4553_v28 }
 0x5b8   :  { %5066 = vst [vmem:[%s14510_s1 + $0xfd8] sm:$0xff] %v4554_v35 }
 0x5b9   :  { %5067 = vst [vmem:[%s14510_s1 + $0xfe0] sm:$0xff] %v4555_v61 }
 0x5ba   :  { %5068 = vst [vmem:[%s14510_s1 + $0xfe8] sm:$0xff] %v4556_v47 }
 0x5bb   :  { %5069 = vst [vmem:[%s14510_s1 + $0xff0] sm:$0xff] %v4557_v19 }
 0x5bc   :  { %5070 = vst [vmem:[%s14510_s1 + $0xff8] sm:$0xff] %v4558_v38 }
 0x5bd   :  { %5055 = vst [vmem:[%s14510_s1 + $0xf80] sm:$0xff] %v4543_v17 }
 0x5be   :  { %5056 = vst [vmem:[%s14510_s1 + $0xf88] sm:$0xff] %v4544_v24 }
 0x5bf   :  { %5057 = vst [vmem:[%s14510_s1 + $0xf90] sm:$0xff] %v4545_v2 }
 0x5c0   :  { %5058 = vst [vmem:[%s14510_s1 + $0xf98] sm:$0xff] %v4546_v9 }
 0x5c1   :  { %5059 = vst [vmem:[%s14510_s1 + $0xfa0] sm:$0xff] %v4547_v14 }
 0x5c2   :  { %5060 = vst [vmem:[%s14510_s1 + $0xfa8] sm:$0xff] %v4548_v11 }
 0x5c3   :  { %5061 = vst [vmem:[%s14510_s1 + $0xfb0] sm:$0xff] %v4549_v23 }
 0x5c4   :  { %5062 = vst [vmem:[%s14510_s1 + $0xfb8] sm:$0xff] %v4550_v51 }

</bundles_post_ra>
